<compile_context>
chip_gen: v7x
topology: tpu7x:2x2x1
jax: 0.10.0
libtpu: 0.0.40
codegen_flags: <defaults>
</compile_context>

<pallas_src>
import jax
import jax.numpy as jnp
from jax import lax
from jax.experimental import pallas as pl
from jax.experimental.pallas import tpu as pltpu


# ---------------------------------------------------------------------------
# Fused Pallas kernel (whole network)
# ---------------------------------------------------------------------------

def _make_fused_kernel(N, H0, W0):
    """Builds the fused forward kernel for a 3-block CustomCNN.

    Activations are kept as flat, spatially *padded* 2D buffers:
        row index = n * (H+2) * (W+2) + i * (W+2) + j ,  lanes = channels.
    A 3x3 SAME conv is then 9 matmuls on row-shifted slices of that buffer.
    """

    def kernel(x_ref,
               w1_ref, s1_ref, t1_ref,
               w2_ref, s2_ref, t2_ref,
               w3_ref, s3_ref, t3_ref,
               fw1_ref, fb1_ref, fw2_ref, fb2_ref,
               o_ref,
               xpad2_ref, xpad3_ref, pool3_ref):
        w_refs = (w1_ref, w2_ref, w3_ref)
        sc_refs = (s1_ref, s2_ref, s3_ref)
        sh_refs = (t1_ref, t2_ref, t3_ref)
        in_refs = (x_ref, xpad2_ref, xpad3_ref)     # per-block padded-flat input
        out_refs = (xpad2_ref, xpad3_ref, pool3_ref)

        # Padding rows of the intermediate activations must be exactly zero.
        xpad2_ref[...] = jnp.zeros(xpad2_ref.shape, xpad2_ref.dtype)
        xpad3_ref[...] = jnp.zeros(xpad3_ref.shape, xpad3_ref.dtype)

        H, W = H0, W0
        n_blocks = 3
        for blk in range(n_blocks):
            cin = w_refs[blk].shape[0] // 9
            cout = w_refs[blk].shape[1]
            Wp = W + 2                       # padded width
            R = N * (H + 2) * Wp             # rows of the padded-flat input
            m = W + 3                        # max |row offset| of a 3x3 tap
            L = R - 2 * m                    # rows of conv output we compute
            Lh = L - Wp                      # rows after the vertical pair-max

            # ---- load padded-flat input, cast once to bf16 for the MXU ------
            x_full = in_refs[blk][...]                       # (R, cin) f32
            xb = x_full.astype(jnp.bfloat16)
            wmat = w_refs[blk][...]                          # (9*cin, cout) bf16

            # ---- 3x3 conv = 9 shifted-slice matmuls, f32 accumulation -------
            acc = jnp.zeros((L, cout), jnp.float32)
            for kh in range(3):
                for kw in range(3):
                    off = (kh - 1) * Wp + (kw - 1)
                    tap = kh * 3 + kw
                    lhs = xb[m + off:m + off + L, :]         # (L, cin) bf16
                    rhs = wmat[tap * cin:(tap + 1) * cin, :]  # (cin, cout) bf16
                    acc = acc + jnp.dot(lhs, rhs,
                                        preferred_element_type=jnp.float32)

            # ---- folded BatchNorm (eval) + conv bias + ReLU (f32) ----------
            y = jnp.maximum(acc * sc_refs[blk][...] + sh_refs[blk][...], 0.0)

            # ---- 2x2 maxpool, step 1: vertical pair max (rows i, i+1) ------
            hp = jnp.maximum(y[0:Lh, :], y[Wp:Wp + Lh, :])   # (Lh, cout)

            # ---- step 2: horizontal pair max + compaction -------------------
            Ho, Wo = H // 2, W // 2
            row_i = lax.broadcasted_iota(jnp.int32, (Wo, W), 0)
            col_j = lax.broadcasted_iota(jnp.int32, (Wo, W), 1)
            sel_even = (col_j == 2 * row_i).astype(jnp.float32)      # (Wo, W)
            sel_odd = (col_j == 2 * row_i + 1).astype(jnp.float32)   # (Wo, W)

            dst_ref = out_refs[blk]
            last = blk == n_blocks - 1
            for n in range(N):
                for ho in range(Ho):
                    # conv outputs of the two source rows, cols j=1..W,
                    # already vertically pooled in `hp`
                    t0 = n * (H + 2) * Wp + (2 * ho + 1) * Wp + 1 - m
                    seg = hp[t0:t0 + W, :]                   # (W, cout) f32
                    pooled = jnp.maximum(
                        jnp.dot(sel_even, seg,
                                preferred_element_type=jnp.float32),
                        jnp.dot(sel_odd, seg,
                                preferred_element_type=jnp.float32))  # (Wo, cout)
                    if last:
                        dst = n * (Ho * Wo) + ho * Wo        # dense (n, ho, wo)
                    else:
                        dst = (n * (Ho + 2) * (Wo + 2)
                               + (ho + 1) * (Wo + 2) + 1)    # next padded-flat
                    dst_ref[pl.ds(dst, Wo), :] = pooled

            H, W = Ho, Wo

        # ---- head: adaptive avg-pool(1,1) + fc1 + ReLU + fc2 ----------------
        p = pool3_ref[...]                                   # (N*H*W, C3) f32
        hw = H * W
        feats = jnp.concatenate(
            [jnp.mean(p[n * hw:(n + 1) * hw, :], axis=0, keepdims=True)
             for n in range(N)], axis=0)                     # (N, C3) f32
        h1 = jnp.dot(feats.astype(jnp.bfloat16), fw1_ref[...],
                     preferred_element_type=jnp.float32) + fb1_ref[...]
        h1 = jnp.maximum(h1, 0.0)
        # Dropout(p=0.5) is the identity at inference time.
        out = jnp.dot(h1.astype(jnp.bfloat16), fw2_ref[...],
                      preferred_element_type=jnp.float32) + fb2_ref[...]
        o_ref[...] = out.astype(o_ref.dtype)

    return kernel


# ---------------------------------------------------------------------------
# Wrapper: parameter prep + single pallas_call
# ---------------------------------------------------------------------------

def custom_cnn_forward(params, x_nchw):
    blocks = params["blocks"]
    assert len(blocks) == 3, "fused kernel is built for 3 conv blocks"

    # PyTorch NCHW -> NHWC, spatial zero-pad, flatten rows (n, i, j)
    x = jnp.transpose(x_nchw, (0, 2, 3, 1)).astype(jnp.float32)
    N, H, W, Cin = x.shape
    assert H % 8 == 0 and W % 8 == 0, "needs 3 rounds of 2x2 pooling"
    xpad = jnp.pad(x, ((0, 0), (1, 1), (1, 1), (0, 0)))
    x_flat = xpad.reshape(N * (H + 2) * (W + 2), Cin)

    eps = 1e-5
    args = [x_flat]
    for blk in blocks:
        cout, cin = blk["w"].shape[0], blk["w"].shape[1]
        # (Cout, Cin, kh, kw) -> (kh, kw, Cin, Cout) -> (9*Cin, Cout)
        wk = jnp.transpose(blk["w"], (2, 3, 1, 0)).reshape(9 * cin, cout)
        scale = blk["gamma"] / jnp.sqrt(blk["var"] + eps)          # BN fold (eval)
        shift = blk["beta"] + (blk["b"] - blk["mean"]) * scale     # + conv bias
        args += [wk.astype(jnp.bfloat16),
                 scale.reshape(1, cout).astype(jnp.float32),
                 shift.reshape(1, cout).astype(jnp.float32)]
    args += [params["fc1_w"].astype(jnp.bfloat16),
             params["fc1_b"].reshape(1, -1).astype(jnp.float32),
             params["fc2_w"].astype(jnp.bfloat16),
             params["fc2_b"].reshape(1, -1).astype(jnp.float32)]

    num_classes = params["fc2_w"].shape[1]
    c1, c2, c3 = (b["w"].shape[0] for b in blocks)
    H2, W2 = H // 2, W // 2
    H3, W3 = H2 // 2, W2 // 2
    Hl, Wl = H3 // 2, W3 // 2
    scratch_shapes = [
        pltpu.VMEM((N * (H2 + 2) * (W2 + 2), c1), jnp.float32),   # block-2 input
        pltpu.VMEM((N * (H3 + 2) * (W3 + 2), c2), jnp.float32),   # block-3 input
        pltpu.VMEM((N * Hl * Wl, c3), jnp.float32),               # pre-head feats
    ]

    kernel = _make_fused_kernel(N, H, W)

    def full_spec(a):
        return pl.BlockSpec(a.shape, lambda i: (0, 0))

    return pl.pallas_call(
        kernel,
        out_shape=jax.ShapeDtypeStruct((N, num_classes), jnp.float32),
        grid=(1,),
        in_specs=[full_spec(a) for a in args],
        out_specs=pl.BlockSpec((N, num_classes), lambda i: (0, 0)),
        scratch_shapes=scratch_shapes,
        compiler_params=pltpu.CompilerParams(
            dimension_semantics=("arbitrary",)),
    )(*args)


# ---------------------------------------------------------------------------
# Parameter init (eval-mode BN stats) and a pure-JAX reference
# ---------------------------------------------------------------------------

def init_params(key, input_channels=3, num_classes=10, hidden=(32, 64, 128)):
    chans = (input_channels,) + tuple(hidden)
    blocks = []
    for idx in range(len(hidden)):
        cin, cout = chans[idx], chans[idx + 1]
        key, k1, k2, k3, k4, k5, k6 = jax.random.split(key, 7)
        blocks.append(dict(
            w=0.1 * jax.random.normal(k1, (cout, cin, 3, 3), jnp.float32),
            b=0.05 * jax.random.normal(k2, (cout,), jnp.float32),
            gamma=1.0 + 0.1 * jax.random.normal(k3, (cout,), jnp.float32),
            beta=0.05 * jax.random.normal(k4, (cout,), jnp.float32),
            mean=0.05 * jax.random.normal(k5, (cout,), jnp.float32),
            var=1.0 + 0.1 * jnp.abs(jax.random.normal(k6, (cout,), jnp.float32)),
        ))
    key, k1, k2, k3, k4 = jax.random.split(key, 5)
    return dict(
        blocks=blocks,
        fc1_w=0.05 * jax.random.normal(k1, (hidden[-1], 512), jnp.float32),
        fc1_b=0.05 * jax.random.normal(k2, (512,), jnp.float32),
        fc2_w=0.05 * jax.random.normal(k3, (512, num_classes), jnp.float32),
        fc2_b=0.05 * jax.random.normal(k4, (num_classes,), jnp.float32),
    )


def reference_forward(params, x_nchw):
    """Plain-JAX (f32) reference matching the PyTorch module at eval time."""
    x = jnp.transpose(x_nchw, (0, 2, 3, 1)).astype(jnp.float32)
    eps = 1e-5
    for blk in params["blocks"]:
        w = jnp.transpose(blk["w"], (2, 3, 1, 0))          # HWIO
        y = lax.conv_general_dilated(
            x, w, window_strides=(1, 1), padding="SAME",
            dimension_numbers=("NHWC", "HWIO", "NHWC")) + blk["b"]
        y = (y - blk["mean"]) / jnp.sqrt(blk["var"] + eps) * blk["gamma"] + blk["beta"]
        y = jnp.maximum(y, 0.0)
        n, h, w_, c = y.shape
        x = y.reshape(n, h // 2, 2, w_ // 2, 2, c).max(axis=(2, 4))
    feats = x.mean(axis=(1, 2))
    h = jnp.maximum(feats @ params["fc1_w"] + params["fc1_b"], 0.0)
    return h @ params["fc2_w"] + params["fc2_b"]


if __name__ == "__main__":
    key = jax.random.PRNGKey(0)
    pkey, xkey = jax.random.split(key)
    params = init_params(pkey, input_channels=3, num_classes=10,
                         hidden=(32, 64, 128))
    x = jax.random.normal(xkey, (2, 3, 16, 16), jnp.float32)   # NCHW, like PyTorch

    out = jax.jit(custom_cnn_forward)(params, x)
    out = jax.block_until_ready(out)
    assert out.shape == (2, 10), out.shape
    assert bool(jnp.all(jnp.isfinite(out)))

    ref = reference_forward(params, x)
    err = float(jnp.max(jnp.abs(out - ref)))
    assert err < 0.1, f"max |kernel - reference| = {err}"
    print("KERNEL_OK")
</pallas_src>

<mosaic_0001>
module attributes {stable_mosaic.version = 11 : i64} {
  func.func @kernel(%arg0: i32, %arg1: memref<648x3xf32, #tpu.memory_space<vmem>>, %arg2: memref<27x32xbf16, #tpu.memory_space<vmem>>, %arg3: memref<1x32xf32, #tpu.memory_space<vmem>>, %arg4: memref<1x32xf32, #tpu.memory_space<vmem>>, %arg5: memref<288x64xbf16, #tpu.memory_space<vmem>>, %arg6: memref<1x64xf32, #tpu.memory_space<vmem>>, %arg7: memref<1x64xf32, #tpu.memory_space<vmem>>, %arg8: memref<576x128xbf16, #tpu.memory_space<vmem>>, %arg9: memref<1x128xf32, #tpu.memory_space<vmem>>, %arg10: memref<1x128xf32, #tpu.memory_space<vmem>>, %arg11: memref<128x512xbf16, #tpu.memory_space<vmem>>, %arg12: memref<1x512xf32, #tpu.memory_space<vmem>>, %arg13: memref<512x10xbf16, #tpu.memory_space<vmem>>, %arg14: memref<1x10xf32, #tpu.memory_space<vmem>>, %arg15: memref<2x10xf32, #tpu.memory_space<vmem>>, %arg16: memref<200x32xf32, #tpu.memory_space<vmem>>, %arg17: memref<72x64xf32, #tpu.memory_space<vmem>>, %arg18: memref<8x128xf32, #tpu.memory_space<vmem>>) attributes {dimension_semantics = [#tpu.dimension_semantics<arbitrary>], iteration_bounds = array<i64: 1>, scalar_prefetch = 0 : i64, scratch_operands = 3 : i64, tpu.core_type = #tpu.core_type<tc>, window_params = [{pipeline_mode = #tpu.pipeline_mode<synchronous>, transform_indices = @transform_0, window_bounds = array<i64: 648, 3>}, {pipeline_mode = #tpu.pipeline_mode<synchronous>, transform_indices = @transform_1, window_bounds = array<i64: 27, 32>}, {pipeline_mode = #tpu.pipeline_mode<synchronous>, transform_indices = @transform_2, window_bounds = array<i64: 1, 32>}, {pipeline_mode = #tpu.pipeline_mode<synchronous>, transform_indices = @transform_3, window_bounds = array<i64: 1, 32>}, {pipeline_mode = #tpu.pipeline_mode<synchronous>, transform_indices = @transform_4, window_bounds = array<i64: 288, 64>}, {pipeline_mode = #tpu.pipeline_mode<synchronous>, transform_indices = @transform_5, window_bounds = array<i64: 1, 64>}, {pipeline_mode = #tpu.pipeline_mode<synchronous>, transform_indices = @transform_6, window_bounds = array<i64: 1, 64>}, {pipeline_mode = #tpu.pipeline_mode<synchronous>, transform_indices = @transform_7, window_bounds = array<i64: 576, 128>}, {pipeline_mode = #tpu.pipeline_mode<synchronous>, transform_indices = @transform_8, window_bounds = array<i64: 1, 128>}, {pipeline_mode = #tpu.pipeline_mode<synchronous>, transform_indices = @transform_9, window_bounds = array<i64: 1, 128>}, {pipeline_mode = #tpu.pipeline_mode<synchronous>, transform_indices = @transform_10, window_bounds = array<i64: 128, 512>}, {pipeline_mode = #tpu.pipeline_mode<synchronous>, transform_indices = @transform_11, window_bounds = array<i64: 1, 512>}, {pipeline_mode = #tpu.pipeline_mode<synchronous>, transform_indices = @transform_12, window_bounds = array<i64: 512, 10>}, {pipeline_mode = #tpu.pipeline_mode<synchronous>, transform_indices = @transform_13, window_bounds = array<i64: 1, 10>}, {pipeline_mode = #tpu.pipeline_mode<synchronous>, transform_indices = @transform_14, window_bounds = array<i64: 2, 10>}]} {
    %cst = arith.constant 0.000000e+00 : f32
    %0 = vector.broadcast %cst : f32 to vector<200x32xf32>
    %c0 = arith.constant 0 : index
    %c0_0 = arith.constant 0 : index
    %1 = vector.load %arg16[%c0, %c0_0] : memref<200x32xf32, #tpu.memory_space<vmem>>, vector<200x32xf32>
    tpu.vector_store %arg16[%c0, %c0_0], %0 {strides = array<i32>} : memref<200x32xf32, #tpu.memory_space<vmem>>, vector<200x32xf32>,
    %cst_1 = arith.constant 0.000000e+00 : f32
    %2 = vector.broadcast %cst_1 : f32 to vector<72x64xf32>
    %c0_2 = arith.constant 0 : index
    %c0_3 = arith.constant 0 : index
    %3 = vector.load %arg17[%c0_2, %c0_3] : memref<72x64xf32, #tpu.memory_space<vmem>>, vector<72x64xf32>
    tpu.vector_store %arg17[%c0_2, %c0_3], %2 {strides = array<i32>} : memref<72x64xf32, #tpu.memory_space<vmem>>, vector<72x64xf32>,
    %c0_4 = arith.constant 0 : index
    %c0_5 = arith.constant 0 : index
    %4 = vector.load %arg1[%c0_4, %c0_5] : memref<648x3xf32, #tpu.memory_space<vmem>>, vector<648x3xf32>
    %5 = arith.truncf %4 : vector<648x3xf32> to vector<648x3xbf16>
    %c0_6 = arith.constant 0 : index
    %c0_7 = arith.constant 0 : index
    %6 = vector.load %arg2[%c0_6, %c0_7] : memref<27x32xbf16, #tpu.memory_space<vmem>>, vector<27x32xbf16>
    %cst_8 = arith.constant 0.000000e+00 : f32
    %7 = vector.broadcast %cst_8 : f32 to vector<610x32xf32>
    %8 = vector.extract_strided_slice %5 {offsets = [0, 0], sizes = [610, 3], strides = [1, 1]} : vector<648x3xbf16> to vector<610x3xbf16>
    %9 = vector.extract_strided_slice %6 {offsets = [0, 0], sizes = [3, 32], strides = [1, 1]} : vector<27x32xbf16> to vector<3x32xbf16>
    %cst_9 = arith.constant dense<0.000000e+00> : vector<610x32xf32>
    %10 = tpu.matmul %8, %9, %cst_9 {dimension_numbers = #tpu.dot_dimension_numbers<[1], [0], [0], [1], [0, 0, 1, 1], [], []>} : vector<610x3xbf16>, vector<3x32xbf16>, vector<610x32xf32> -> vector<610x32xf32>
    %11 = arith.addf %7, %10 : vector<610x32xf32>
    %12 = vector.extract_strided_slice %5 {offsets = [1, 0], sizes = [610, 3], strides = [1, 1]} : vector<648x3xbf16> to vector<610x3xbf16>
    %13 = vector.extract_strided_slice %6 {offsets = [3, 0], sizes = [3, 32], strides = [1, 1]} : vector<27x32xbf16> to vector<3x32xbf16>
    %cst_10 = arith.constant dense<0.000000e+00> : vector<610x32xf32>
    %14 = tpu.matmul %12, %13, %cst_10 {dimension_numbers = #tpu.dot_dimension_numbers<[1], [0], [0], [1], [0, 0, 1, 1], [], []>} : vector<610x3xbf16>, vector<3x32xbf16>, vector<610x32xf32> -> vector<610x32xf32>
    %15 = arith.addf %11, %14 : vector<610x32xf32>
    %16 = vector.extract_strided_slice %5 {offsets = [2, 0], sizes = [610, 3], strides = [1, 1]} : vector<648x3xbf16> to vector<610x3xbf16>
    %17 = vector.extract_strided_slice %6 {offsets = [6, 0], sizes = [3, 32], strides = [1, 1]} : vector<27x32xbf16> to vector<3x32xbf16>
    %cst_11 = arith.constant dense<0.000000e+00> : vector<610x32xf32>
    %18 = tpu.matmul %16, %17, %cst_11 {dimension_numbers = #tpu.dot_dimension_numbers<[1], [0], [0], [1], [0, 0, 1, 1], [], []>} : vector<610x3xbf16>, vector<3x32xbf16>, vector<610x32xf32> -> vector<610x32xf32>
    %19 = arith.addf %15, %18 : vector<610x32xf32>
    %20 = vector.extract_strided_slice %5 {offsets = [18, 0], sizes = [610, 3], strides = [1, 1]} : vector<648x3xbf16> to vector<610x3xbf16>
    %21 = vector.extract_strided_slice %6 {offsets = [9, 0], sizes = [3, 32], strides = [1, 1]} : vector<27x32xbf16> to vector<3x32xbf16>
    %cst_12 = arith.constant dense<0.000000e+00> : vector<610x32xf32>
    %22 = tpu.matmul %20, %21, %cst_12 {dimension_numbers = #tpu.dot_dimension_numbers<[1], [0], [0], [1], [0, 0, 1, 1], [], []>} : vector<610x3xbf16>, vector<3x32xbf16>, vector<610x32xf32> -> vector<610x32xf32>
    %23 = arith.addf %19, %22 : vector<610x32xf32>
    %24 = vector.extract_strided_slice %5 {offsets = [19, 0], sizes = [610, 3], strides = [1, 1]} : vector<648x3xbf16> to vector<610x3xbf16>
    %25 = vector.extract_strided_slice %6 {offsets = [12, 0], sizes = [3, 32], strides = [1, 1]} : vector<27x32xbf16> to vector<3x32xbf16>
    %cst_13 = arith.constant dense<0.000000e+00> : vector<610x32xf32>
    %26 = tpu.matmul %24, %25, %cst_13 {dimension_numbers = #tpu.dot_dimension_numbers<[1], [0], [0], [1], [0, 0, 1, 1], [], []>} : vector<610x3xbf16>, vector<3x32xbf16>, vector<610x32xf32> -> vector<610x32xf32>
    %27 = arith.addf %23, %26 : vector<610x32xf32>
    %28 = vector.extract_strided_slice %5 {offsets = [20, 0], sizes = [610, 3], strides = [1, 1]} : vector<648x3xbf16> to vector<610x3xbf16>
    %29 = vector.extract_strided_slice %6 {offsets = [15, 0], sizes = [3, 32], strides = [1, 1]} : vector<27x32xbf16> to vector<3x32xbf16>
    %cst_14 = arith.constant dense<0.000000e+00> : vector<610x32xf32>
    %30 = tpu.matmul %28, %29, %cst_14 {dimension_numbers = #tpu.dot_dimension_numbers<[1], [0], [0], [1], [0, 0, 1, 1], [], []>} : vector<610x3xbf16>, vector<3x32xbf16>, vector<610x32xf32> -> vector<610x32xf32>
    %31 = arith.addf %27, %30 : vector<610x32xf32>
    %32 = vector.extract_strided_slice %5 {offsets = [36, 0], sizes = [610, 3], strides = [1, 1]} : vector<648x3xbf16> to vector<610x3xbf16>
    %33 = vector.extract_strided_slice %6 {offsets = [18, 0], sizes = [3, 32], strides = [1, 1]} : vector<27x32xbf16> to vector<3x32xbf16>
    %cst_15 = arith.constant dense<0.000000e+00> : vector<610x32xf32>
    %34 = tpu.matmul %32, %33, %cst_15 {dimension_numbers = #tpu.dot_dimension_numbers<[1], [0], [0], [1], [0, 0, 1, 1], [], []>} : vector<610x3xbf16>, vector<3x32xbf16>, vector<610x32xf32> -> vector<610x32xf32>
    %35 = arith.addf %31, %34 : vector<610x32xf32>
    %36 = vector.extract_strided_slice %5 {offsets = [37, 0], sizes = [610, 3], strides = [1, 1]} : vector<648x3xbf16> to vector<610x3xbf16>
    %37 = vector.extract_strided_slice %6 {offsets = [21, 0], sizes = [3, 32], strides = [1, 1]} : vector<27x32xbf16> to vector<3x32xbf16>
    %cst_16 = arith.constant dense<0.000000e+00> : vector<610x32xf32>
    %38 = tpu.matmul %36, %37, %cst_16 {dimension_numbers = #tpu.dot_dimension_numbers<[1], [0], [0], [1], [0, 0, 1, 1], [], []>} : vector<610x3xbf16>, vector<3x32xbf16>, vector<610x32xf32> -> vector<610x32xf32>
    %39 = arith.addf %35, %38 : vector<610x32xf32>
    %40 = vector.extract_strided_slice %5 {offsets = [38, 0], sizes = [610, 3], strides = [1, 1]} : vector<648x3xbf16> to vector<610x3xbf16>
    %41 = vector.extract_strided_slice %6 {offsets = [24, 0], sizes = [3, 32], strides = [1, 1]} : vector<27x32xbf16> to vector<3x32xbf16>
    %cst_17 = arith.constant dense<0.000000e+00> : vector<610x32xf32>
    %42 = tpu.matmul %40, %41, %cst_17 {dimension_numbers = #tpu.dot_dimension_numbers<[1], [0], [0], [1], [0, 0, 1, 1], [], []>} : vector<610x3xbf16>, vector<3x32xbf16>, vector<610x32xf32> -> vector<610x32xf32>
    %43 = arith.addf %39, %42 : vector<610x32xf32>
    %c0_18 = arith.constant 0 : index
    %c0_19 = arith.constant 0 : index
    %44 = vector.load %arg3[%c0_18, %c0_19] : memref<1x32xf32, #tpu.memory_space<vmem>>, vector<1x32xf32>
    %45 = vector.broadcast %44 : vector<1x32xf32> to vector<610x32xf32>
    %46 = arith.mulf %43, %45 : vector<610x32xf32>
    %c0_20 = arith.constant 0 : index
    %c0_21 = arith.constant 0 : index
    %47 = vector.load %arg4[%c0_20, %c0_21] : memref<1x32xf32, #tpu.memory_space<vmem>>, vector<1x32xf32>
    %48 = vector.broadcast %47 : vector<1x32xf32> to vector<610x32xf32>
    %49 = arith.addf %46, %48 : vector<610x32xf32>
    %cst_22 = arith.constant 0.000000e+00 : f32
    %50 = vector.broadcast %cst_22 : f32 to vector<610x32xf32>
    %51 = arith.maximumf %49, %50 : vector<610x32xf32>
    %52 = vector.extract_strided_slice %51 {offsets = [0, 0], sizes = [592, 32], strides = [1, 1]} : vector<610x32xf32> to vector<592x32xf32>
    %53 = vector.extract_strided_slice %51 {offsets = [18, 0], sizes = [592, 32], strides = [1, 1]} : vector<610x32xf32> to vector<592x32xf32>
    %54 = arith.maximumf %52, %53 : vector<592x32xf32>
    %55 = tpu.iota {dimensions = array<i32: 0>} : vector<8x16xi32>
    %56 = tpu.iota {dimensions = array<i32: 1>} : vector<8x16xi32>
    %c2_i32 = arith.constant 2 : i32
    %57 = vector.broadcast %c2_i32 : i32 to vector<8x16xi32>
    %58 = arith.muli %57, %55 : vector<8x16xi32>
    %59 = arith.cmpi eq, %56, %58 : vector<8x16xi32>
    %60 = arith.extui %59 : vector<8x16xi1> to vector<8x16xi32>
    %61 = arith.sitofp %60 : vector<8x16xi32> to vector<8x16xf32>
    %c2_i32_23 = arith.constant 2 : i32
    %62 = vector.broadcast %c2_i32_23 : i32 to vector<8x16xi32>
    %63 = arith.muli %62, %55 : vector<8x16xi32>
    %c1_i32 = arith.constant 1 : i32
    %64 = vector.broadcast %c1_i32 : i32 to vector<8x16xi32>
    %65 = arith.addi %63, %64 : vector<8x16xi32>
    %66 = arith.cmpi eq, %56, %65 : vector<8x16xi32>
    %67 = arith.extui %66 : vector<8x16xi1> to vector<8x16xi32>
    %68 = arith.sitofp %67 : vector<8x16xi32> to vector<8x16xf32>
    %69 = vector.extract_strided_slice %54 {offsets = [0, 0], sizes = [16, 32], strides = [1, 1]} : vector<592x32xf32> to vector<16x32xf32>
    %cst_24 = arith.constant dense<0.000000e+00> : vector<8x32xf32>
    %70 = tpu.matmul %61, %69, %cst_24 {dimension_numbers = #tpu.dot_dimension_numbers<[1], [0], [0], [1], [0, 0, 1, 1], [], []>} : vector<8x16xf32>, vector<16x32xf32>, vector<8x32xf32> -> vector<8x32xf32>
    %cst_25 = arith.constant dense<0.000000e+00> : vector<8x32xf32>
    %71 = tpu.matmul %68, %69, %cst_25 {dimension_numbers = #tpu.dot_dimension_numbers<[1], [0], [0], [1], [0, 0, 1, 1], [], []>} : vector<8x16xf32>, vector<16x32xf32>, vector<8x32xf32> -> vector<8x32xf32>
    %72 = arith.maximumf %70, %71 : vector<8x32xf32>
    %c11 = arith.constant 11 : index
    %c0_26 = arith.constant 0 : index
    %73 = vector.load %arg16[%c11, %c0_26] : memref<200x32xf32, #tpu.memory_space<vmem>>, vector<8x32xf32>
    tpu.vector_store %arg16[%c11, %c0_26], %72 {strides = array<i32>} : memref<200x32xf32, #tpu.memory_space<vmem>>, vector<8x32xf32>,
    %74 = vector.extract_strided_slice %54 {offsets = [36, 0], sizes = [16, 32], strides = [1, 1]} : vector<592x32xf32> to vector<16x32xf32>
    %cst_27 = arith.constant dense<0.000000e+00> : vector<8x32xf32>
    %75 = tpu.matmul %61, %74, %cst_27 {dimension_numbers = #tpu.dot_dimension_numbers<[1], [0], [0], [1], [0, 0, 1, 1], [], []>} : vector<8x16xf32>, vector<16x32xf32>, vector<8x32xf32> -> vector<8x32xf32>
    %cst_28 = arith.constant dense<0.000000e+00> : vector<8x32xf32>
    %76 = tpu.matmul %68, %74, %cst_28 {dimension_numbers = #tpu.dot_dimension_numbers<[1], [0], [0], [1], [0, 0, 1, 1], [], []>} : vector<8x16xf32>, vector<16x32xf32>, vector<8x32xf32> -> vector<8x32xf32>
    %77 = arith.maximumf %75, %76 : vector<8x32xf32>
    %c21 = arith.constant 21 : index
    %c0_29 = arith.constant 0 : index
    %78 = vector.load %arg16[%c21, %c0_29] : memref<200x32xf32, #tpu.memory_space<vmem>>, vector<8x32xf32>
    tpu.vector_store %arg16[%c21, %c0_29], %77 {strides = array<i32>} : memref<200x32xf32, #tpu.memory_space<vmem>>, vector<8x32xf32>,
    %79 = vector.extract_strided_slice %54 {offsets = [72, 0], sizes = [16, 32], strides = [1, 1]} : vector<592x32xf32> to vector<16x32xf32>
    %cst_30 = arith.constant dense<0.000000e+00> : vector<8x32xf32>
    %80 = tpu.matmul %61, %79, %cst_30 {dimension_numbers = #tpu.dot_dimension_numbers<[1], [0], [0], [1], [0, 0, 1, 1], [], []>} : vector<8x16xf32>, vector<16x32xf32>, vector<8x32xf32> -> vector<8x32xf32>
    %cst_31 = arith.constant dense<0.000000e+00> : vector<8x32xf32>
    %81 = tpu.matmul %68, %79, %cst_31 {dimension_numbers = #tpu.dot_dimension_numbers<[1], [0], [0], [1], [0, 0, 1, 1], [], []>} : vector<8x16xf32>, vector<16x32xf32>, vector<8x32xf32> -> vector<8x32xf32>
    %82 = arith.maximumf %80, %81 : vector<8x32xf32>
    %c31 = arith.constant 31 : index
    %c0_32 = arith.constant 0 : index
    %83 = vector.load %arg16[%c31, %c0_32] : memref<200x32xf32, #tpu.memory_space<vmem>>, vector<8x32xf32>
    tpu.vector_store %arg16[%c31, %c0_32], %82 {strides = array<i32>} : memref<200x32xf32, #tpu.memory_space<vmem>>, vector<8x32xf32>,
    %84 = vector.extract_strided_slice %54 {offsets = [108, 0], sizes = [16, 32], strides = [1, 1]} : vector<592x32xf32> to vector<16x32xf32>
    %cst_33 = arith.constant dense<0.000000e+00> : vector<8x32xf32>
    %85 = tpu.matmul %61, %84, %cst_33 {dimension_numbers = #tpu.dot_dimension_numbers<[1], [0], [0], [1], [0, 0, 1, 1], [], []>} : vector<8x16xf32>, vector<16x32xf32>, vector<8x32xf32> -> vector<8x32xf32>
    %cst_34 = arith.constant dense<0.000000e+00> : vector<8x32xf32>
    %86 = tpu.matmul %68, %84, %cst_34 {dimension_numbers = #tpu.dot_dimension_numbers<[1], [0], [0], [1], [0, 0, 1, 1], [], []>} : vector<8x16xf32>, vector<16x32xf32>, vector<8x32xf32> -> vector<8x32xf32>
    %87 = arith.maximumf %85, %86 : vector<8x32xf32>
    %c41 = arith.constant 41 : index
    %c0_35 = arith.constant 0 : index
    %88 = vector.load %arg16[%c41, %c0_35] : memref<200x32xf32, #tpu.memory_space<vmem>>, vector<8x32xf32>
    tpu.vector_store %arg16[%c41, %c0_35], %87 {strides = array<i32>} : memref<200x32xf32, #tpu.memory_space<vmem>>, vector<8x32xf32>,
    %89 = vector.extract_strided_slice %54 {offsets = [144, 0], sizes = [16, 32], strides = [1, 1]} : vector<592x32xf32> to vector<16x32xf32>
    %cst_36 = arith.constant dense<0.000000e+00> : vector<8x32xf32>
    %90 = tpu.matmul %61, %89, %cst_36 {dimension_numbers = #tpu.dot_dimension_numbers<[1], [0], [0], [1], [0, 0, 1, 1], [], []>} : vector<8x16xf32>, vector<16x32xf32>, vector<8x32xf32> -> vector<8x32xf32>
    %cst_37 = arith.constant dense<0.000000e+00> : vector<8x32xf32>
    %91 = tpu.matmul %68, %89, %cst_37 {dimension_numbers = #tpu.dot_dimension_numbers<[1], [0], [0], [1], [0, 0, 1, 1], [], []>} : vector<8x16xf32>, vector<16x32xf32>, vector<8x32xf32> -> vector<8x32xf32>
    %92 = arith.maximumf %90, %91 : vector<8x32xf32>
    %c51 = arith.constant 51 : index
    %c0_38 = arith.constant 0 : index
    %93 = vector.load %arg16[%c51, %c0_38] : memref<200x32xf32, #tpu.memory_space<vmem>>, vector<8x32xf32>
    tpu.vector_store %arg16[%c51, %c0_38], %92 {strides = array<i32>} : memref<200x32xf32, #tpu.memory_space<vmem>>, vector<8x32xf32>,
    %94 = vector.extract_strided_slice %54 {offsets = [180, 0], sizes = [16, 32], strides = [1, 1]} : vector<592x32xf32> to vector<16x32xf32>
    %cst_39 = arith.constant dense<0.000000e+00> : vector<8x32xf32>
    %95 = tpu.matmul %61, %94, %cst_39 {dimension_numbers = #tpu.dot_dimension_numbers<[1], [0], [0], [1], [0, 0, 1, 1], [], []>} : vector<8x16xf32>, vector<16x32xf32>, vector<8x32xf32> -> vector<8x32xf32>
    %cst_40 = arith.constant dense<0.000000e+00> : vector<8x32xf32>
    %96 = tpu.matmul %68, %94, %cst_40 {dimension_numbers = #tpu.dot_dimension_numbers<[1], [0], [0], [1], [0, 0, 1, 1], [], []>} : vector<8x16xf32>, vector<16x32xf32>, vector<8x32xf32> -> vector<8x32xf32>
    %97 = arith.maximumf %95, %96 : vector<8x32xf32>
    %c61 = arith.constant 61 : index
    %c0_41 = arith.constant 0 : index
    %98 = vector.load %arg16[%c61, %c0_41] : memref<200x32xf32, #tpu.memory_space<vmem>>, vector<8x32xf32>
    tpu.vector_store %arg16[%c61, %c0_41], %97 {strides = array<i32>} : memref<200x32xf32, #tpu.memory_space<vmem>>, vector<8x32xf32>,
    %99 = vector.extract_strided_slice %54 {offsets = [216, 0], sizes = [16, 32], strides = [1, 1]} : vector<592x32xf32> to vector<16x32xf32>
    %cst_42 = arith.constant dense<0.000000e+00> : vector<8x32xf32>
    %100 = tpu.matmul %61, %99, %cst_42 {dimension_numbers = #tpu.dot_dimension_numbers<[1], [0], [0], [1], [0, 0, 1, 1], [], []>} : vector<8x16xf32>, vector<16x32xf32>, vector<8x32xf32> -> vector<8x32xf32>
    %cst_43 = arith.constant dense<0.000000e+00> : vector<8x32xf32>
    %101 = tpu.matmul %68, %99, %cst_43 {dimension_numbers = #tpu.dot_dimension_numbers<[1], [0], [0], [1], [0, 0, 1, 1], [], []>} : vector<8x16xf32>, vector<16x32xf32>, vector<8x32xf32> -> vector<8x32xf32>
    %102 = arith.maximumf %100, %101 : vector<8x32xf32>
    %c71 = arith.constant 71 : index
    %c0_44 = arith.constant 0 : index
    %103 = vector.load %arg16[%c71, %c0_44] : memref<200x32xf32, #tpu.memory_space<vmem>>, vector<8x32xf32>
    tpu.vector_store %arg16[%c71, %c0_44], %102 {strides = array<i32>} : memref<200x32xf32, #tpu.memory_space<vmem>>, vector<8x32xf32>,
    %104 = vector.extract_strided_slice %54 {offsets = [252, 0], sizes = [16, 32], strides = [1, 1]} : vector<592x32xf32> to vector<16x32xf32>
    %cst_45 = arith.constant dense<0.000000e+00> : vector<8x32xf32>
    %105 = tpu.matmul %61, %104, %cst_45 {dimension_numbers = #tpu.dot_dimension_numbers<[1], [0], [0], [1], [0, 0, 1, 1], [], []>} : vector<8x16xf32>, vector<16x32xf32>, vector<8x32xf32> -> vector<8x32xf32>
    %cst_46 = arith.constant dense<0.000000e+00> : vector<8x32xf32>
    %106 = tpu.matmul %68, %104, %cst_46 {dimension_numbers = #tpu.dot_dimension_numbers<[1], [0], [0], [1], [0, 0, 1, 1], [], []>} : vector<8x16xf32>, vector<16x32xf32>, vector<8x32xf32> -> vector<8x32xf32>
    %107 = arith.maximumf %105, %106 : vector<8x32xf32>
    %c81 = arith.constant 81 : index
    %c0_47 = arith.constant 0 : index
    %108 = vector.load %arg16[%c81, %c0_47] : memref<200x32xf32, #tpu.memory_space<vmem>>, vector<8x32xf32>
    tpu.vector_store %arg16[%c81, %c0_47], %107 {strides = array<i32>} : memref<200x32xf32, #tpu.memory_space<vmem>>, vector<8x32xf32>,
    %109 = vector.extract_strided_slice %54 {offsets = [324, 0], sizes = [16, 32], strides = [1, 1]} : vector<592x32xf32> to vector<16x32xf32>
    %cst_48 = arith.constant dense<0.000000e+00> : vector<8x32xf32>
    %110 = tpu.matmul %61, %109, %cst_48 {dimension_numbers = #tpu.dot_dimension_numbers<[1], [0], [0], [1], [0, 0, 1, 1], [], []>} : vector<8x16xf32>, vector<16x32xf32>, vector<8x32xf32> -> vector<8x32xf32>
    %cst_49 = arith.constant dense<0.000000e+00> : vector<8x32xf32>
    %111 = tpu.matmul %68, %109, %cst_49 {dimension_numbers = #tpu.dot_dimension_numbers<[1], [0], [0], [1], [0, 0, 1, 1], [], []>} : vector<8x16xf32>, vector<16x32xf32>, vector<8x32xf32> -> vector<8x32xf32>
    %112 = arith.maximumf %110, %111 : vector<8x32xf32>
    %c111 = arith.constant 111 : index
    %c0_50 = arith.constant 0 : index
    %113 = vector.load %arg16[%c111, %c0_50] : memref<200x32xf32, #tpu.memory_space<vmem>>, vector<8x32xf32>
    tpu.vector_store %arg16[%c111, %c0_50], %112 {strides = array<i32>} : memref<200x32xf32, #tpu.memory_space<vmem>>, vector<8x32xf32>,
    %114 = vector.extract_strided_slice %54 {offsets = [360, 0], sizes = [16, 32], strides = [1, 1]} : vector<592x32xf32> to vector<16x32xf32>
    %cst_51 = arith.constant dense<0.000000e+00> : vector<8x32xf32>
    %115 = tpu.matmul %61, %114, %cst_51 {dimension_numbers = #tpu.dot_dimension_numbers<[1], [0], [0], [1], [0, 0, 1, 1], [], []>} : vector<8x16xf32>, vector<16x32xf32>, vector<8x32xf32> -> vector<8x32xf32>
    %cst_52 = arith.constant dense<0.000000e+00> : vector<8x32xf32>
    %116 = tpu.matmul %68, %114, %cst_52 {dimension_numbers = #tpu.dot_dimension_numbers<[1], [0], [0], [1], [0, 0, 1, 1], [], []>} : vector<8x16xf32>, vector<16x32xf32>, vector<8x32xf32> -> vector<8x32xf32>
    %117 = arith.maximumf %115, %116 : vector<8x32xf32>
    %c121 = arith.constant 121 : index
    %c0_53 = arith.constant 0 : index
    %118 = vector.load %arg16[%c121, %c0_53] : memref<200x32xf32, #tpu.memory_space<vmem>>, vector<8x32xf32>
    tpu.vector_store %arg16[%c121, %c0_53], %117 {strides = array<i32>} : memref<200x32xf32, #tpu.memory_space<vmem>>, vector<8x32xf32>,
    %119 = vector.extract_strided_slice %54 {offsets = [396, 0], sizes = [16, 32], strides = [1, 1]} : vector<592x32xf32> to vector<16x32xf32>
    %cst_54 = arith.constant dense<0.000000e+00> : vector<8x32xf32>
    %120 = tpu.matmul %61, %119, %cst_54 {dimension_numbers = #tpu.dot_dimension_numbers<[1], [0], [0], [1], [0, 0, 1, 1], [], []>} : vector<8x16xf32>, vector<16x32xf32>, vector<8x32xf32> -> vector<8x32xf32>
    %cst_55 = arith.constant dense<0.000000e+00> : vector<8x32xf32>
    %121 = tpu.matmul %68, %119, %cst_55 {dimension_numbers = #tpu.dot_dimension_numbers<[1], [0], [0], [1], [0, 0, 1, 1], [], []>} : vector<8x16xf32>, vector<16x32xf32>, vector<8x32xf32> -> vector<8x32xf32>
    %122 = arith.maximumf %120, %121 : vector<8x32xf32>
    %c131 = arith.constant 131 : index
    %c0_56 = arith.constant 0 : index
    %123 = vector.load %arg16[%c131, %c0_56] : memref<200x32xf32, #tpu.memory_space<vmem>>, vector<8x32xf32>
    tpu.vector_store %arg16[%c131, %c0_56], %122 {strides = array<i32>} : memref<200x32xf32, #tpu.memory_space<vmem>>, vector<8x32xf32>,
    %124 = vector.extract_strided_slice %54 {offsets = [432, 0], sizes = [16, 32], strides = [1, 1]} : vector<592x32xf32> to vector<16x32xf32>
    %cst_57 = arith.constant dense<0.000000e+00> : vector<8x32xf32>
    %125 = tpu.matmul %61, %124, %cst_57 {dimension_numbers = #tpu.dot_dimension_numbers<[1], [0], [0], [1], [0, 0, 1, 1], [], []>} : vector<8x16xf32>, vector<16x32xf32>, vector<8x32xf32> -> vector<8x32xf32>
    %cst_58 = arith.constant dense<0.000000e+00> : vector<8x32xf32>
    %126 = tpu.matmul %68, %124, %cst_58 {dimension_numbers = #tpu.dot_dimension_numbers<[1], [0], [0], [1], [0, 0, 1, 1], [], []>} : vector<8x16xf32>, vector<16x32xf32>, vector<8x32xf32> -> vector<8x32xf32>
    %127 = arith.maximumf %125, %126 : vector<8x32xf32>
    %c141 = arith.constant 141 : index
    %c0_59 = arith.constant 0 : index
    %128 = vector.load %arg16[%c141, %c0_59] : memref<200x32xf32, #tpu.memory_space<vmem>>, vector<8x32xf32>
    tpu.vector_store %arg16[%c141, %c0_59], %127 {strides = array<i32>} : memref<200x32xf32, #tpu.memory_space<vmem>>, vector<8x32xf32>,
    %129 = vector.extract_strided_slice %54 {offsets = [468, 0], sizes = [16, 32], strides = [1, 1]} : vector<592x32xf32> to vector<16x32xf32>
    %cst_60 = arith.constant dense<0.000000e+00> : vector<8x32xf32>
    %130 = tpu.matmul %61, %129, %cst_60 {dimension_numbers = #tpu.dot_dimension_numbers<[1], [0], [0], [1], [0, 0, 1, 1], [], []>} : vector<8x16xf32>, vector<16x32xf32>, vector<8x32xf32> -> vector<8x32xf32>
    %cst_61 = arith.constant dense<0.000000e+00> : vector<8x32xf32>
    %131 = tpu.matmul %68, %129, %cst_61 {dimension_numbers = #tpu.dot_dimension_numbers<[1], [0], [0], [1], [0, 0, 1, 1], [], []>} : vector<8x16xf32>, vector<16x32xf32>, vector<8x32xf32> -> vector<8x32xf32>
    %132 = arith.maximumf %130, %131 : vector<8x32xf32>
    %c151 = arith.constant 151 : index
    %c0_62 = arith.constant 0 : index
    %133 = vector.load %arg16[%c151, %c0_62] : memref<200x32xf32, #tpu.memory_space<vmem>>, vector<8x32xf32>
    tpu.vector_store %arg16[%c151, %c0_62], %132 {strides = array<i32>} : memref<200x32xf32, #tpu.memory_space<vmem>>, vector<8x32xf32>,
    %134 = vector.extract_strided_slice %54 {offsets = [504, 0], sizes = [16, 32], strides = [1, 1]} : vector<592x32xf32> to vector<16x32xf32>
    %cst_63 = arith.constant dense<0.000000e+00> : vector<8x32xf32>
    %135 = tpu.matmul %61, %134, %cst_63 {dimension_numbers = #tpu.dot_dimension_numbers<[1], [0], [0], [1], [0, 0, 1, 1], [], []>} : vector<8x16xf32>, vector<16x32xf32>, vector<8x32xf32> -> vector<8x32xf32>
    %cst_64 = arith.constant dense<0.000000e+00> : vector<8x32xf32>
    %136 = tpu.matmul %68, %134, %cst_64 {dimension_numbers = #tpu.dot_dimension_numbers<[1], [0], [0], [1], [0, 0, 1, 1], [], []>} : vector<8x16xf32>, vector<16x32xf32>, vector<8x32xf32> -> vector<8x32xf32>
    %137 = arith.maximumf %135, %136 : vector<8x32xf32>
    %c161 = arith.constant 161 : index
    %c0_65 = arith.constant 0 : index
    %138 = vector.load %arg16[%c161, %c0_65] : memref<200x32xf32, #tpu.memory_space<vmem>>, vector<8x32xf32>
    tpu.vector_store %arg16[%c161, %c0_65], %137 {strides = array<i32>} : memref<200x32xf32, #tpu.memory_space<vmem>>, vector<8x32xf32>,
    %139 = vector.extract_strided_slice %54 {offsets = [540, 0], sizes = [16, 32], strides = [1, 1]} : vector<592x32xf32> to vector<16x32xf32>
    %cst_66 = arith.constant dense<0.000000e+00> : vector<8x32xf32>
    %140 = tpu.matmul %61, %139, %cst_66 {dimension_numbers = #tpu.dot_dimension_numbers<[1], [0], [0], [1], [0, 0, 1, 1], [], []>} : vector<8x16xf32>, vector<16x32xf32>, vector<8x32xf32> -> vector<8x32xf32>
    %cst_67 = arith.constant dense<0.000000e+00> : vector<8x32xf32>
    %141 = tpu.matmul %68, %139, %cst_67 {dimension_numbers = #tpu.dot_dimension_numbers<[1], [0], [0], [1], [0, 0, 1, 1], [], []>} : vector<8x16xf32>, vector<16x32xf32>, vector<8x32xf32> -> vector<8x32xf32>
    %142 = arith.maximumf %140, %141 : vector<8x32xf32>
    %c171 = arith.constant 171 : index
    %c0_68 = arith.constant 0 : index
    %143 = vector.load %arg16[%c171, %c0_68] : memref<200x32xf32, #tpu.memory_space<vmem>>, vector<8x32xf32>
    tpu.vector_store %arg16[%c171, %c0_68], %142 {strides = array<i32>} : memref<200x32xf32, #tpu.memory_space<vmem>>, vector<8x32xf32>,
    %144 = vector.extract_strided_slice %54 {offsets = [576, 0], sizes = [16, 32], strides = [1, 1]} : vector<592x32xf32> to vector<16x32xf32>
    %cst_69 = arith.constant dense<0.000000e+00> : vector<8x32xf32>
    %145 = tpu.matmul %61, %144, %cst_69 {dimension_numbers = #tpu.dot_dimension_numbers<[1], [0], [0], [1], [0, 0, 1, 1], [], []>} : vector<8x16xf32>, vector<16x32xf32>, vector<8x32xf32> -> vector<8x32xf32>
    %cst_70 = arith.constant dense<0.000000e+00> : vector<8x32xf32>
    %146 = tpu.matmul %68, %144, %cst_70 {dimension_numbers = #tpu.dot_dimension_numbers<[1], [0], [0], [1], [0, 0, 1, 1], [], []>} : vector<8x16xf32>, vector<16x32xf32>, vector<8x32xf32> -> vector<8x32xf32>
    %147 = arith.maximumf %145, %146 : vector<8x32xf32>
    %c181 = arith.constant 181 : index
    %c0_71 = arith.constant 0 : index
    %148 = vector.load %arg16[%c181, %c0_71] : memref<200x32xf32, #tpu.memory_space<vmem>>, vector<8x32xf32>
    tpu.vector_store %arg16[%c181, %c0_71], %147 {strides = array<i32>} : memref<200x32xf32, #tpu.memory_space<vmem>>, vector<8x32xf32>,
    %c0_72 = arith.constant 0 : index
    %c0_73 = arith.constant 0 : index
    %149 = vector.load %arg16[%c0_72, %c0_73] : memref<200x32xf32, #tpu.memory_space<vmem>>, vector<200x32xf32>
    %150 = arith.truncf %149 : vector<200x32xf32> to vector<200x32xbf16>
    %c0_74 = arith.constant 0 : index
    %c0_75 = arith.constant 0 : index
    %151 = vector.load %arg5[%c0_74, %c0_75] : memref<288x64xbf16, #tpu.memory_space<vmem>>, vector<288x64xbf16>
    %cst_76 = arith.constant 0.000000e+00 : f32
    %152 = vector.broadcast %cst_76 : f32 to vector<178x64xf32>
    %153 = vector.extract_strided_slice %150 {offsets = [0, 0], sizes = [178, 32], strides = [1, 1]} : vector<200x32xbf16> to vector<178x32xbf16>
    %154 = vector.extract_strided_slice %151 {offsets = [0, 0], sizes = [32, 64], strides = [1, 1]} : vector<288x64xbf16> to vector<32x64xbf16>
    %cst_77 = arith.constant dense<0.000000e+00> : vector<178x64xf32>
    %155 = tpu.matmul %153, %154, %cst_77 {dimension_numbers = #tpu.dot_dimension_numbers<[1], [0], [0], [1], [0, 0, 1, 1], [], []>} : vector<178x32xbf16>, vector<32x64xbf16>, vector<178x64xf32> -> vector<178x64xf32>
    %156 = arith.addf %152, %155 : vector<178x64xf32>
    %157 = vector.extract_strided_slice %150 {offsets = [1, 0], sizes = [178, 32], strides = [1, 1]} : vector<200x32xbf16> to vector<178x32xbf16>
    %158 = vector.extract_strided_slice %151 {offsets = [32, 0], sizes = [32, 64], strides = [1, 1]} : vector<288x64xbf16> to vector<32x64xbf16>
    %cst_78 = arith.constant dense<0.000000e+00> : vector<178x64xf32>
    %159 = tpu.matmul %157, %158, %cst_78 {dimension_numbers = #tpu.dot_dimension_numbers<[1], [0], [0], [1], [0, 0, 1, 1], [], []>} : vector<178x32xbf16>, vector<32x64xbf16>, vector<178x64xf32> -> vector<178x64xf32>
    %160 = arith.addf %156, %159 : vector<178x64xf32>
    %161 = vector.extract_strided_slice %150 {offsets = [2, 0], sizes = [178, 32], strides = [1, 1]} : vector<200x32xbf16> to vector<178x32xbf16>
    %162 = vector.extract_strided_slice %151 {offsets = [64, 0], sizes = [32, 64], strides = [1, 1]} : vector<288x64xbf16> to vector<32x64xbf16>
    %cst_79 = arith.constant dense<0.000000e+00> : vector<178x64xf32>
    %163 = tpu.matmul %161, %162, %cst_79 {dimension_numbers = #tpu.dot_dimension_numbers<[1], [0], [0], [1], [0, 0, 1, 1], [], []>} : vector<178x32xbf16>, vector<32x64xbf16>, vector<178x64xf32> -> vector<178x64xf32>
    %164 = arith.addf %160, %163 : vector<178x64xf32>
    %165 = vector.extract_strided_slice %150 {offsets = [10, 0], sizes = [178, 32], strides = [1, 1]} : vector<200x32xbf16> to vector<178x32xbf16>
    %166 = vector.extract_strided_slice %151 {offsets = [96, 0], sizes = [32, 64], strides = [1, 1]} : vector<288x64xbf16> to vector<32x64xbf16>
    %cst_80 = arith.constant dense<0.000000e+00> : vector<178x64xf32>
    %167 = tpu.matmul %165, %166, %cst_80 {dimension_numbers = #tpu.dot_dimension_numbers<[1], [0], [0], [1], [0, 0, 1, 1], [], []>} : vector<178x32xbf16>, vector<32x64xbf16>, vector<178x64xf32> -> vector<178x64xf32>
    %168 = arith.addf %164, %167 : vector<178x64xf32>
    %169 = vector.extract_strided_slice %150 {offsets = [11, 0], sizes = [178, 32], strides = [1, 1]} : vector<200x32xbf16> to vector<178x32xbf16>
    %170 = vector.extract_strided_slice %151 {offsets = [128, 0], sizes = [32, 64], strides = [1, 1]} : vector<288x64xbf16> to vector<32x64xbf16>
    %cst_81 = arith.constant dense<0.000000e+00> : vector<178x64xf32>
    %171 = tpu.matmul %169, %170, %cst_81 {dimension_numbers = #tpu.dot_dimension_numbers<[1], [0], [0], [1], [0, 0, 1, 1], [], []>} : vector<178x32xbf16>, vector<32x64xbf16>, vector<178x64xf32> -> vector<178x64xf32>
    %172 = arith.addf %168, %171 : vector<178x64xf32>
    %173 = vector.extract_strided_slice %150 {offsets = [12, 0], sizes = [178, 32], strides = [1, 1]} : vector<200x32xbf16> to vector<178x32xbf16>
    %174 = vector.extract_strided_slice %151 {offsets = [160, 0], sizes = [32, 64], strides = [1, 1]} : vector<288x64xbf16> to vector<32x64xbf16>
    %cst_82 = arith.constant dense<0.000000e+00> : vector<178x64xf32>
    %175 = tpu.matmul %173, %174, %cst_82 {dimension_numbers = #tpu.dot_dimension_numbers<[1], [0], [0], [1], [0, 0, 1, 1], [], []>} : vector<178x32xbf16>, vector<32x64xbf16>, vector<178x64xf32> -> vector<178x64xf32>
    %176 = arith.addf %172, %175 : vector<178x64xf32>
    %177 = vector.extract_strided_slice %150 {offsets = [20, 0], sizes = [178, 32], strides = [1, 1]} : vector<200x32xbf16> to vector<178x32xbf16>
    %178 = vector.extract_strided_slice %151 {offsets = [192, 0], sizes = [32, 64], strides = [1, 1]} : vector<288x64xbf16> to vector<32x64xbf16>
    %cst_83 = arith.constant dense<0.000000e+00> : vector<178x64xf32>
    %179 = tpu.matmul %177, %178, %cst_83 {dimension_numbers = #tpu.dot_dimension_numbers<[1], [0], [0], [1], [0, 0, 1, 1], [], []>} : vector<178x32xbf16>, vector<32x64xbf16>, vector<178x64xf32> -> vector<178x64xf32>
    %180 = arith.addf %176, %179 : vector<178x64xf32>
    %181 = vector.extract_strided_slice %150 {offsets = [21, 0], sizes = [178, 32], strides = [1, 1]} : vector<200x32xbf16> to vector<178x32xbf16>
    %182 = vector.extract_strided_slice %151 {offsets = [224, 0], sizes = [32, 64], strides = [1, 1]} : vector<288x64xbf16> to vector<32x64xbf16>
    %cst_84 = arith.constant dense<0.000000e+00> : vector<178x64xf32>
    %183 = tpu.matmul %181, %182, %cst_84 {dimension_numbers = #tpu.dot_dimension_numbers<[1], [0], [0], [1], [0, 0, 1, 1], [], []>} : vector<178x32xbf16>, vector<32x64xbf16>, vector<178x64xf32> -> vector<178x64xf32>
    %184 = arith.addf %180, %183 : vector<178x64xf32>
    %185 = vector.extract_strided_slice %150 {offsets = [22, 0], sizes = [178, 32], strides = [1, 1]} : vector<200x32xbf16> to vector<178x32xbf16>
    %186 = vector.extract_strided_slice %151 {offsets = [256, 0], sizes = [32, 64], strides = [1, 1]} : vector<288x64xbf16> to vector<32x64xbf16>
    %cst_85 = arith.constant dense<0.000000e+00> : vector<178x64xf32>
    %187 = tpu.matmul %185, %186, %cst_85 {dimension_numbers = #tpu.dot_dimension_numbers<[1], [0], [0], [1], [0, 0, 1, 1], [], []>} : vector<178x32xbf16>, vector<32x64xbf16>, vector<178x64xf32> -> vector<178x64xf32>
    %188 = arith.addf %184, %187 : vector<178x64xf32>
    %c0_86 = arith.constant 0 : index
    %c0_87 = arith.constant 0 : index
    %189 = vector.load %arg6[%c0_86, %c0_87] : memref<1x64xf32, #tpu.memory_space<vmem>>, vector<1x64xf32>
    %190 = vector.broadcast %189 : vector<1x64xf32> to vector<178x64xf32>
    %191 = arith.mulf %188, %190 : vector<178x64xf32>
    %c0_88 = arith.constant 0 : index
    %c0_89 = arith.constant 0 : index
    %192 = vector.load %arg7[%c0_88, %c0_89] : memref<1x64xf32, #tpu.memory_space<vmem>>, vector<1x64xf32>
    %193 = vector.broadcast %192 : vector<1x64xf32> to vector<178x64xf32>
    %194 = arith.addf %191, %193 : vector<178x64xf32>
    %cst_90 = arith.constant 0.000000e+00 : f32
    %195 = vector.broadcast %cst_90 : f32 to vector<178x64xf32>
    %196 = arith.maximumf %194, %195 : vector<178x64xf32>
    %197 = vector.extract_strided_slice %196 {offsets = [0, 0], sizes = [168, 64], strides = [1, 1]} : vector<178x64xf32> to vector<168x64xf32>
    %198 = vector.extract_strided_slice %196 {offsets = [10, 0], sizes = [168, 64], strides = [1, 1]} : vector<178x64xf32> to vector<168x64xf32>
    %199 = arith.maximumf %197, %198 : vector<168x64xf32>
    %200 = tpu.iota {dimensions = array<i32: 0>} : vector<4x8xi32>
    %201 = tpu.iota {dimensions = array<i32: 1>} : vector<4x8xi32>
    %c2_i32_91 = arith.constant 2 : i32
    %202 = vector.broadcast %c2_i32_91 : i32 to vector<4x8xi32>
    %203 = arith.muli %202, %200 : vector<4x8xi32>
    %204 = arith.cmpi eq, %201, %203 : vector<4x8xi32>
    %205 = arith.extui %204 : vector<4x8xi1> to vector<4x8xi32>
    %206 = arith.sitofp %205 : vector<4x8xi32> to vector<4x8xf32>
    %c2_i32_92 = arith.constant 2 : i32
    %207 = vector.broadcast %c2_i32_92 : i32 to vector<4x8xi32>
    %208 = arith.muli %207, %200 : vector<4x8xi32>
    %c1_i32_93 = arith.constant 1 : i32
    %209 = vector.broadcast %c1_i32_93 : i32 to vector<4x8xi32>
    %210 = arith.addi %208, %209 : vector<4x8xi32>
    %211 = arith.cmpi eq, %201, %210 : vector<4x8xi32>
    %212 = arith.extui %211 : vector<4x8xi1> to vector<4x8xi32>
    %213 = arith.sitofp %212 : vector<4x8xi32> to vector<4x8xf32>
    %214 = vector.extract_strided_slice %199 {offsets = [0, 0], sizes = [8, 64], strides = [1, 1]} : vector<168x64xf32> to vector<8x64xf32>
    %cst_94 = arith.constant dense<0.000000e+00> : vector<4x64xf32>
    %215 = tpu.matmul %206, %214, %cst_94 {dimension_numbers = #tpu.dot_dimension_numbers<[1], [0], [0], [1], [0, 0, 1, 1], [], []>} : vector<4x8xf32>, vector<8x64xf32>, vector<4x64xf32> -> vector<4x64xf32>
    %cst_95 = arith.constant dense<0.000000e+00> : vector<4x64xf32>
    %216 = tpu.matmul %213, %214, %cst_95 {dimension_numbers = #tpu.dot_dimension_numbers<[1], [0], [0], [1], [0, 0, 1, 1], [], []>} : vector<4x8xf32>, vector<8x64xf32>, vector<4x64xf32> -> vector<4x64xf32>
    %217 = arith.maximumf %215, %216 : vector<4x64xf32>
    %c7 = arith.constant 7 : index
    %c0_96 = arith.constant 0 : index
    %218 = vector.load %arg17[%c7, %c0_96] : memref<72x64xf32, #tpu.memory_space<vmem>>, vector<4x64xf32>
    tpu.vector_store %arg17[%c7, %c0_96], %217 {strides = array<i32>} : memref<72x64xf32, #tpu.memory_space<vmem>>, vector<4x64xf32>,
    %219 = vector.extract_strided_slice %199 {offsets = [20, 0], sizes = [8, 64], strides = [1, 1]} : vector<168x64xf32> to vector<8x64xf32>
    %cst_97 = arith.constant dense<0.000000e+00> : vector<4x64xf32>
    %220 = tpu.matmul %206, %219, %cst_97 {dimension_numbers = #tpu.dot_dimension_numbers<[1], [0], [0], [1], [0, 0, 1, 1], [], []>} : vector<4x8xf32>, vector<8x64xf32>, vector<4x64xf32> -> vector<4x64xf32>
    %cst_98 = arith.constant dense<0.000000e+00> : vector<4x64xf32>
    %221 = tpu.matmul %213, %219, %cst_98 {dimension_numbers = #tpu.dot_dimension_numbers<[1], [0], [0], [1], [0, 0, 1, 1], [], []>} : vector<4x8xf32>, vector<8x64xf32>, vector<4x64xf32> -> vector<4x64xf32>
    %222 = arith.maximumf %220, %221 : vector<4x64xf32>
    %c13 = arith.constant 13 : index
    %c0_99 = arith.constant 0 : index
    %223 = vector.load %arg17[%c13, %c0_99] : memref<72x64xf32, #tpu.memory_space<vmem>>, vector<4x64xf32>
    tpu.vector_store %arg17[%c13, %c0_99], %222 {strides = array<i32>} : memref<72x64xf32, #tpu.memory_space<vmem>>, vector<4x64xf32>,
    %224 = vector.extract_strided_slice %199 {offsets = [40, 0], sizes = [8, 64], strides = [1, 1]} : vector<168x64xf32> to vector<8x64xf32>
    %cst_100 = arith.constant dense<0.000000e+00> : vector<4x64xf32>
    %225 = tpu.matmul %206, %224, %cst_100 {dimension_numbers = #tpu.dot_dimension_numbers<[1], [0], [0], [1], [0, 0, 1, 1], [], []>} : vector<4x8xf32>, vector<8x64xf32>, vector<4x64xf32> -> vector<4x64xf32>
    %cst_101 = arith.constant dense<0.000000e+00> : vector<4x64xf32>
    %226 = tpu.matmul %213, %224, %cst_101 {dimension_numbers = #tpu.dot_dimension_numbers<[1], [0], [0], [1], [0, 0, 1, 1], [], []>} : vector<4x8xf32>, vector<8x64xf32>, vector<4x64xf32> -> vector<4x64xf32>
    %227 = arith.maximumf %225, %226 : vector<4x64xf32>
    %c19 = arith.constant 19 : index
    %c0_102 = arith.constant 0 : index
    %228 = vector.load %arg17[%c19, %c0_102] : memref<72x64xf32, #tpu.memory_space<vmem>>, vector<4x64xf32>
    tpu.vector_store %arg17[%c19, %c0_102], %227 {strides = array<i32>} : memref<72x64xf32, #tpu.memory_space<vmem>>, vector<4x64xf32>,
    %229 = vector.extract_strided_slice %199 {offsets = [60, 0], sizes = [8, 64], strides = [1, 1]} : vector<168x64xf32> to vector<8x64xf32>
    %cst_103 = arith.constant dense<0.000000e+00> : vector<4x64xf32>
    %230 = tpu.matmul %206, %229, %cst_103 {dimension_numbers = #tpu.dot_dimension_numbers<[1], [0], [0], [1], [0, 0, 1, 1], [], []>} : vector<4x8xf32>, vector<8x64xf32>, vector<4x64xf32> -> vector<4x64xf32>
    %cst_104 = arith.constant dense<0.000000e+00> : vector<4x64xf32>
    %231 = tpu.matmul %213, %229, %cst_104 {dimension_numbers = #tpu.dot_dimension_numbers<[1], [0], [0], [1], [0, 0, 1, 1], [], []>} : vector<4x8xf32>, vector<8x64xf32>, vector<4x64xf32> -> vector<4x64xf32>
    %232 = arith.maximumf %230, %231 : vector<4x64xf32>
    %c25 = arith.constant 25 : index
    %c0_105 = arith.constant 0 : index
    %233 = vector.load %arg17[%c25, %c0_105] : memref<72x64xf32, #tpu.memory_space<vmem>>, vector<4x64xf32>
    tpu.vector_store %arg17[%c25, %c0_105], %232 {strides = array<i32>} : memref<72x64xf32, #tpu.memory_space<vmem>>, vector<4x64xf32>,
    %234 = vector.extract_strided_slice %199 {offsets = [100, 0], sizes = [8, 64], strides = [1, 1]} : vector<168x64xf32> to vector<8x64xf32>
    %cst_106 = arith.constant dense<0.000000e+00> : vector<4x64xf32>
    %235 = tpu.matmul %206, %234, %cst_106 {dimension_numbers = #tpu.dot_dimension_numbers<[1], [0], [0], [1], [0, 0, 1, 1], [], []>} : vector<4x8xf32>, vector<8x64xf32>, vector<4x64xf32> -> vector<4x64xf32>
    %cst_107 = arith.constant dense<0.000000e+00> : vector<4x64xf32>
    %236 = tpu.matmul %213, %234, %cst_107 {dimension_numbers = #tpu.dot_dimension_numbers<[1], [0], [0], [1], [0, 0, 1, 1], [], []>} : vector<4x8xf32>, vector<8x64xf32>, vector<4x64xf32> -> vector<4x64xf32>
    %237 = arith.maximumf %235, %236 : vector<4x64xf32>
    %c43 = arith.constant 43 : index
    %c0_108 = arith.constant 0 : index
    %238 = vector.load %arg17[%c43, %c0_108] : memref<72x64xf32, #tpu.memory_space<vmem>>, vector<4x64xf32>
    tpu.vector_store %arg17[%c43, %c0_108], %237 {strides = array<i32>} : memref<72x64xf32, #tpu.memory_space<vmem>>, vector<4x64xf32>,
    %239 = vector.extract_strided_slice %199 {offsets = [120, 0], sizes = [8, 64], strides = [1, 1]} : vector<168x64xf32> to vector<8x64xf32>
    %cst_109 = arith.constant dense<0.000000e+00> : vector<4x64xf32>
    %240 = tpu.matmul %206, %239, %cst_109 {dimension_numbers = #tpu.dot_dimension_numbers<[1], [0], [0], [1], [0, 0, 1, 1], [], []>} : vector<4x8xf32>, vector<8x64xf32>, vector<4x64xf32> -> vector<4x64xf32>
    %cst_110 = arith.constant dense<0.000000e+00> : vector<4x64xf32>
    %241 = tpu.matmul %213, %239, %cst_110 {dimension_numbers = #tpu.dot_dimension_numbers<[1], [0], [0], [1], [0, 0, 1, 1], [], []>} : vector<4x8xf32>, vector<8x64xf32>, vector<4x64xf32> -> vector<4x64xf32>
    %242 = arith.maximumf %240, %241 : vector<4x64xf32>
    %c49 = arith.constant 49 : index
    %c0_111 = arith.constant 0 : index
    %243 = vector.load %arg17[%c49, %c0_111] : memref<72x64xf32, #tpu.memory_space<vmem>>, vector<4x64xf32>
    tpu.vector_store %arg17[%c49, %c0_111], %242 {strides = array<i32>} : memref<72x64xf32, #tpu.memory_space<vmem>>, vector<4x64xf32>,
    %244 = vector.extract_strided_slice %199 {offsets = [140, 0], sizes = [8, 64], strides = [1, 1]} : vector<168x64xf32> to vector<8x64xf32>
    %cst_112 = arith.constant dense<0.000000e+00> : vector<4x64xf32>
    %245 = tpu.matmul %206, %244, %cst_112 {dimension_numbers = #tpu.dot_dimension_numbers<[1], [0], [0], [1], [0, 0, 1, 1], [], []>} : vector<4x8xf32>, vector<8x64xf32>, vector<4x64xf32> -> vector<4x64xf32>
    %cst_113 = arith.constant dense<0.000000e+00> : vector<4x64xf32>
    %246 = tpu.matmul %213, %244, %cst_113 {dimension_numbers = #tpu.dot_dimension_numbers<[1], [0], [0], [1], [0, 0, 1, 1], [], []>} : vector<4x8xf32>, vector<8x64xf32>, vector<4x64xf32> -> vector<4x64xf32>
    %247 = arith.maximumf %245, %246 : vector<4x64xf32>
    %c55 = arith.constant 55 : index
    %c0_114 = arith.constant 0 : index
    %248 = vector.load %arg17[%c55, %c0_114] : memref<72x64xf32, #tpu.memory_space<vmem>>, vector<4x64xf32>
    tpu.vector_store %arg17[%c55, %c0_114], %247 {strides = array<i32>} : memref<72x64xf32, #tpu.memory_space<vmem>>, vector<4x64xf32>,
    %249 = vector.extract_strided_slice %199 {offsets = [160, 0], sizes = [8, 64], strides = [1, 1]} : vector<168x64xf32> to vector<8x64xf32>
    %cst_115 = arith.constant dense<0.000000e+00> : vector<4x64xf32>
    %250 = tpu.matmul %206, %249, %cst_115 {dimension_numbers = #tpu.dot_dimension_numbers<[1], [0], [0], [1], [0, 0, 1, 1], [], []>} : vector<4x8xf32>, vector<8x64xf32>, vector<4x64xf32> -> vector<4x64xf32>
    %cst_116 = arith.constant dense<0.000000e+00> : vector<4x64xf32>
    %251 = tpu.matmul %213, %249, %cst_116 {dimension_numbers = #tpu.dot_dimension_numbers<[1], [0], [0], [1], [0, 0, 1, 1], [], []>} : vector<4x8xf32>, vector<8x64xf32>, vector<4x64xf32> -> vector<4x64xf32>
    %252 = arith.maximumf %250, %251 : vector<4x64xf32>
    %c61_117 = arith.constant 61 : index
    %c0_118 = arith.constant 0 : index
    %253 = vector.load %arg17[%c61_117, %c0_118] : memref<72x64xf32, #tpu.memory_space<vmem>>, vector<4x64xf32>
    tpu.vector_store %arg17[%c61_117, %c0_118], %252 {strides = array<i32>} : memref<72x64xf32, #tpu.memory_space<vmem>>, vector<4x64xf32>,
    %c0_119 = arith.constant 0 : index
    %c0_120 = arith.constant 0 : index
    %254 = vector.load %arg17[%c0_119, %c0_120] : memref<72x64xf32, #tpu.memory_space<vmem>>, vector<72x64xf32>
    %255 = arith.truncf %254 : vector<72x64xf32> to vector<72x64xbf16>
    %c0_121 = arith.constant 0 : index
    %c0_122 = arith.constant 0 : index
    %256 = vector.load %arg8[%c0_121, %c0_122] : memref<576x128xbf16, #tpu.memory_space<vmem>>, vector<576x128xbf16>
    %cst_123 = arith.constant 0.000000e+00 : f32
    %257 = vector.broadcast %cst_123 : f32 to vector<58x128xf32>
    %258 = vector.extract_strided_slice %255 {offsets = [0, 0], sizes = [58, 64], strides = [1, 1]} : vector<72x64xbf16> to vector<58x64xbf16>
    %259 = vector.extract_strided_slice %256 {offsets = [0, 0], sizes = [64, 128], strides = [1, 1]} : vector<576x128xbf16> to vector<64x128xbf16>
    %cst_124 = arith.constant dense<0.000000e+00> : vector<58x128xf32>
    %260 = tpu.matmul %258, %259, %cst_124 {dimension_numbers = #tpu.dot_dimension_numbers<[1], [0], [0], [1], [0, 0, 1, 1], [], []>} : vector<58x64xbf16>, vector<64x128xbf16>, vector<58x128xf32> -> vector<58x128xf32>
    %261 = arith.addf %257, %260 : vector<58x128xf32>
    %262 = vector.extract_strided_slice %255 {offsets = [1, 0], sizes = [58, 64], strides = [1, 1]} : vector<72x64xbf16> to vector<58x64xbf16>
    %263 = vector.extract_strided_slice %256 {offsets = [64, 0], sizes = [64, 128], strides = [1, 1]} : vector<576x128xbf16> to vector<64x128xbf16>
    %cst_125 = arith.constant dense<0.000000e+00> : vector<58x128xf32>
    %264 = tpu.matmul %262, %263, %cst_125 {dimension_numbers = #tpu.dot_dimension_numbers<[1], [0], [0], [1], [0, 0, 1, 1], [], []>} : vector<58x64xbf16>, vector<64x128xbf16>, vector<58x128xf32> -> vector<58x128xf32>
    %265 = arith.addf %261, %264 : vector<58x128xf32>
    %266 = vector.extract_strided_slice %255 {offsets = [2, 0], sizes = [58, 64], strides = [1, 1]} : vector<72x64xbf16> to vector<58x64xbf16>
    %267 = vector.extract_strided_slice %256 {offsets = [128, 0], sizes = [64, 128], strides = [1, 1]} : vector<576x128xbf16> to vector<64x128xbf16>
    %cst_126 = arith.constant dense<0.000000e+00> : vector<58x128xf32>
    %268 = tpu.matmul %266, %267, %cst_126 {dimension_numbers = #tpu.dot_dimension_numbers<[1], [0], [0], [1], [0, 0, 1, 1], [], []>} : vector<58x64xbf16>, vector<64x128xbf16>, vector<58x128xf32> -> vector<58x128xf32>
    %269 = arith.addf %265, %268 : vector<58x128xf32>
    %270 = vector.extract_strided_slice %255 {offsets = [6, 0], sizes = [58, 64], strides = [1, 1]} : vector<72x64xbf16> to vector<58x64xbf16>
    %271 = vector.extract_strided_slice %256 {offsets = [192, 0], sizes = [64, 128], strides = [1, 1]} : vector<576x128xbf16> to vector<64x128xbf16>
    %cst_127 = arith.constant dense<0.000000e+00> : vector<58x128xf32>
    %272 = tpu.matmul %270, %271, %cst_127 {dimension_numbers = #tpu.dot_dimension_numbers<[1], [0], [0], [1], [0, 0, 1, 1], [], []>} : vector<58x64xbf16>, vector<64x128xbf16>, vector<58x128xf32> -> vector<58x128xf32>
    %273 = arith.addf %269, %272 : vector<58x128xf32>
    %274 = vector.extract_strided_slice %255 {offsets = [7, 0], sizes = [58, 64], strides = [1, 1]} : vector<72x64xbf16> to vector<58x64xbf16>
    %275 = vector.extract_strided_slice %256 {offsets = [256, 0], sizes = [64, 128], strides = [1, 1]} : vector<576x128xbf16> to vector<64x128xbf16>
    %cst_128 = arith.constant dense<0.000000e+00> : vector<58x128xf32>
    %276 = tpu.matmul %274, %275, %cst_128 {dimension_numbers = #tpu.dot_dimension_numbers<[1], [0], [0], [1], [0, 0, 1, 1], [], []>} : vector<58x64xbf16>, vector<64x128xbf16>, vector<58x128xf32> -> vector<58x128xf32>
    %277 = arith.addf %273, %276 : vector<58x128xf32>
    %278 = vector.extract_strided_slice %255 {offsets = [8, 0], sizes = [58, 64], strides = [1, 1]} : vector<72x64xbf16> to vector<58x64xbf16>
    %279 = vector.extract_strided_slice %256 {offsets = [320, 0], sizes = [64, 128], strides = [1, 1]} : vector<576x128xbf16> to vector<64x128xbf16>
    %cst_129 = arith.constant dense<0.000000e+00> : vector<58x128xf32>
    %280 = tpu.matmul %278, %279, %cst_129 {dimension_numbers = #tpu.dot_dimension_numbers<[1], [0], [0], [1], [0, 0, 1, 1], [], []>} : vector<58x64xbf16>, vector<64x128xbf16>, vector<58x128xf32> -> vector<58x128xf32>
    %281 = arith.addf %277, %280 : vector<58x128xf32>
    %282 = vector.extract_strided_slice %255 {offsets = [12, 0], sizes = [58, 64], strides = [1, 1]} : vector<72x64xbf16> to vector<58x64xbf16>
    %283 = vector.extract_strided_slice %256 {offsets = [384, 0], sizes = [64, 128], strides = [1, 1]} : vector<576x128xbf16> to vector<64x128xbf16>
    %cst_130 = arith.constant dense<0.000000e+00> : vector<58x128xf32>
    %284 = tpu.matmul %282, %283, %cst_130 {dimension_numbers = #tpu.dot_dimension_numbers<[1], [0], [0], [1], [0, 0, 1, 1], [], []>} : vector<58x64xbf16>, vector<64x128xbf16>, vector<58x128xf32> -> vector<58x128xf32>
    %285 = arith.addf %281, %284 : vector<58x128xf32>
    %286 = vector.extract_strided_slice %255 {offsets = [13, 0], sizes = [58, 64], strides = [1, 1]} : vector<72x64xbf16> to vector<58x64xbf16>
    %287 = vector.extract_strided_slice %256 {offsets = [448, 0], sizes = [64, 128], strides = [1, 1]} : vector<576x128xbf16> to vector<64x128xbf16>
    %cst_131 = arith.constant dense<0.000000e+00> : vector<58x128xf32>
    %288 = tpu.matmul %286, %287, %cst_131 {dimension_numbers = #tpu.dot_dimension_numbers<[1], [0], [0], [1], [0, 0, 1, 1], [], []>} : vector<58x64xbf16>, vector<64x128xbf16>, vector<58x128xf32> -> vector<58x128xf32>
    %289 = arith.addf %285, %288 : vector<58x128xf32>
    %290 = vector.extract_strided_slice %255 {offsets = [14, 0], sizes = [58, 64], strides = [1, 1]} : vector<72x64xbf16> to vector<58x64xbf16>
    %291 = vector.extract_strided_slice %256 {offsets = [512, 0], sizes = [64, 128], strides = [1, 1]} : vector<576x128xbf16> to vector<64x128xbf16>
    %cst_132 = arith.constant dense<0.000000e+00> : vector<58x128xf32>
    %292 = tpu.matmul %290, %291, %cst_132 {dimension_numbers = #tpu.dot_dimension_numbers<[1], [0], [0], [1], [0, 0, 1, 1], [], []>} : vector<58x64xbf16>, vector<64x128xbf16>, vector<58x128xf32> -> vector<58x128xf32>
    %293 = arith.addf %289, %292 : vector<58x128xf32>
    %c0_133 = arith.constant 0 : index
    %c0_134 = arith.constant 0 : index
    %294 = vector.load %arg9[%c0_133, %c0_134] : memref<1x128xf32, #tpu.memory_space<vmem>>, vector<1x128xf32>
    %295 = vector.broadcast %294 : vector<1x128xf32> to vector<58x128xf32>
    %296 = arith.mulf %293, %295 : vector<58x128xf32>
    %c0_135 = arith.constant 0 : index
    %c0_136 = arith.constant 0 : index
    %297 = vector.load %arg10[%c0_135, %c0_136] : memref<1x128xf32, #tpu.memory_space<vmem>>, vector<1x128xf32>
    %298 = vector.broadcast %297 : vector<1x128xf32> to vector<58x128xf32>
    %299 = arith.addf %296, %298 : vector<58x128xf32>
    %cst_137 = arith.constant 0.000000e+00 : f32
    %300 = vector.broadcast %cst_137 : f32 to vector<58x128xf32>
    %301 = arith.maximumf %299, %300 : vector<58x128xf32>
    %302 = vector.extract_strided_slice %301 {offsets = [0, 0], sizes = [52, 128], strides = [1, 1]} : vector<58x128xf32> to vector<52x128xf32>
    %303 = vector.extract_strided_slice %301 {offsets = [6, 0], sizes = [52, 128], strides = [1, 1]} : vector<58x128xf32> to vector<52x128xf32>
    %304 = arith.maximumf %302, %303 : vector<52x128xf32>
    %305 = tpu.iota {dimensions = array<i32: 0>} : vector<2x4xi32>
    %306 = tpu.iota {dimensions = array<i32: 1>} : vector<2x4xi32>
    %c2_i32_138 = arith.constant 2 : i32
    %307 = vector.broadcast %c2_i32_138 : i32 to vector<2x4xi32>
    %308 = arith.muli %307, %305 : vector<2x4xi32>
    %309 = arith.cmpi eq, %306, %308 : vector<2x4xi32>
    %310 = arith.extui %309 : vector<2x4xi1> to vector<2x4xi32>
    %311 = arith.sitofp %310 : vector<2x4xi32> to vector<2x4xf32>
    %c2_i32_139 = arith.constant 2 : i32
    %312 = vector.broadcast %c2_i32_139 : i32 to vector<2x4xi32>
    %313 = arith.muli %312, %305 : vector<2x4xi32>
    %c1_i32_140 = arith.constant 1 : i32
    %314 = vector.broadcast %c1_i32_140 : i32 to vector<2x4xi32>
    %315 = arith.addi %313, %314 : vector<2x4xi32>
    %316 = arith.cmpi eq, %306, %315 : vector<2x4xi32>
    %317 = arith.extui %316 : vector<2x4xi1> to vector<2x4xi32>
    %318 = arith.sitofp %317 : vector<2x4xi32> to vector<2x4xf32>
    %319 = vector.extract_strided_slice %304 {offsets = [0, 0], sizes = [4, 128], strides = [1, 1]} : vector<52x128xf32> to vector<4x128xf32>
    %cst_141 = arith.constant dense<0.000000e+00> : vector<2x128xf32>
    %320 = tpu.matmul %311, %319, %cst_141 {dimension_numbers = #tpu.dot_dimension_numbers<[1], [0], [0], [1], [0, 0, 1, 1], [], []>} : vector<2x4xf32>, vector<4x128xf32>, vector<2x128xf32> -> vector<2x128xf32>
    %cst_142 = arith.constant dense<0.000000e+00> : vector<2x128xf32>
    %321 = tpu.matmul %318, %319, %cst_142 {dimension_numbers = #tpu.dot_dimension_numbers<[1], [0], [0], [1], [0, 0, 1, 1], [], []>} : vector<2x4xf32>, vector<4x128xf32>, vector<2x128xf32> -> vector<2x128xf32>
    %322 = arith.maximumf %320, %321 : vector<2x128xf32>
    %c0_143 = arith.constant 0 : index
    %c0_144 = arith.constant 0 : index
    %323 = vector.load %arg18[%c0_143, %c0_144] : memref<8x128xf32, #tpu.memory_space<vmem>>, vector<2x128xf32>
    tpu.vector_store %arg18[%c0_143, %c0_144], %322 {strides = array<i32>} : memref<8x128xf32, #tpu.memory_space<vmem>>, vector<2x128xf32>,
    %324 = vector.extract_strided_slice %304 {offsets = [12, 0], sizes = [4, 128], strides = [1, 1]} : vector<52x128xf32> to vector<4x128xf32>
    %cst_145 = arith.constant dense<0.000000e+00> : vector<2x128xf32>
    %325 = tpu.matmul %311, %324, %cst_145 {dimension_numbers = #tpu.dot_dimension_numbers<[1], [0], [0], [1], [0, 0, 1, 1], [], []>} : vector<2x4xf32>, vector<4x128xf32>, vector<2x128xf32> -> vector<2x128xf32>
    %cst_146 = arith.constant dense<0.000000e+00> : vector<2x128xf32>
    %326 = tpu.matmul %318, %324, %cst_146 {dimension_numbers = #tpu.dot_dimension_numbers<[1], [0], [0], [1], [0, 0, 1, 1], [], []>} : vector<2x4xf32>, vector<4x128xf32>, vector<2x128xf32> -> vector<2x128xf32>
    %327 = arith.maximumf %325, %326 : vector<2x128xf32>
    %c2 = arith.constant 2 : index
    %c0_147 = arith.constant 0 : index
    %328 = vector.load %arg18[%c2, %c0_147] : memref<8x128xf32, #tpu.memory_space<vmem>>, vector<2x128xf32>
    tpu.vector_store %arg18[%c2, %c0_147], %327 {strides = array<i32>} : memref<8x128xf32, #tpu.memory_space<vmem>>, vector<2x128xf32>,
    %329 = vector.extract_strided_slice %304 {offsets = [36, 0], sizes = [4, 128], strides = [1, 1]} : vector<52x128xf32> to vector<4x128xf32>
    %cst_148 = arith.constant dense<0.000000e+00> : vector<2x128xf32>
    %330 = tpu.matmul %311, %329, %cst_148 {dimension_numbers = #tpu.dot_dimension_numbers<[1], [0], [0], [1], [0, 0, 1, 1], [], []>} : vector<2x4xf32>, vector<4x128xf32>, vector<2x128xf32> -> vector<2x128xf32>
    %cst_149 = arith.constant dense<0.000000e+00> : vector<2x128xf32>
    %331 = tpu.matmul %318, %329, %cst_149 {dimension_numbers = #tpu.dot_dimension_numbers<[1], [0], [0], [1], [0, 0, 1, 1], [], []>} : vector<2x4xf32>, vector<4x128xf32>, vector<2x128xf32> -> vector<2x128xf32>
    %332 = arith.maximumf %330, %331 : vector<2x128xf32>
    %c4 = arith.constant 4 : index
    %c0_150 = arith.constant 0 : index
    %333 = vector.load %arg18[%c4, %c0_150] : memref<8x128xf32, #tpu.memory_space<vmem>>, vector<2x128xf32>
    tpu.vector_store %arg18[%c4, %c0_150], %332 {strides = array<i32>} : memref<8x128xf32, #tpu.memory_space<vmem>>, vector<2x128xf32>,
    %334 = vector.extract_strided_slice %304 {offsets = [48, 0], sizes = [4, 128], strides = [1, 1]} : vector<52x128xf32> to vector<4x128xf32>
    %cst_151 = arith.constant dense<0.000000e+00> : vector<2x128xf32>
    %335 = tpu.matmul %311, %334, %cst_151 {dimension_numbers = #tpu.dot_dimension_numbers<[1], [0], [0], [1], [0, 0, 1, 1], [], []>} : vector<2x4xf32>, vector<4x128xf32>, vector<2x128xf32> -> vector<2x128xf32>
    %cst_152 = arith.constant dense<0.000000e+00> : vector<2x128xf32>
    %336 = tpu.matmul %318, %334, %cst_152 {dimension_numbers = #tpu.dot_dimension_numbers<[1], [0], [0], [1], [0, 0, 1, 1], [], []>} : vector<2x4xf32>, vector<4x128xf32>, vector<2x128xf32> -> vector<2x128xf32>
    %337 = arith.maximumf %335, %336 : vector<2x128xf32>
    %c6 = arith.constant 6 : index
    %c0_153 = arith.constant 0 : index
    %338 = vector.load %arg18[%c6, %c0_153] : memref<8x128xf32, #tpu.memory_space<vmem>>, vector<2x128xf32>
    tpu.vector_store %arg18[%c6, %c0_153], %337 {strides = array<i32>} : memref<8x128xf32, #tpu.memory_space<vmem>>, vector<2x128xf32>,
    %c0_154 = arith.constant 0 : index
    %c0_155 = arith.constant 0 : index
    %339 = vector.load %arg18[%c0_154, %c0_155] : memref<8x128xf32, #tpu.memory_space<vmem>>, vector<8x128xf32>
    %340 = vector.extract_strided_slice %339 {offsets = [0, 0], sizes = [4, 128], strides = [1, 1]} : vector<8x128xf32> to vector<4x128xf32>
    %cst_156 = arith.constant dense<0.000000e+00> : vector<128xf32>
    %341 = vector.multi_reduction <add>, %340, %cst_156 [0] : vector<4x128xf32> to vector<128xf32>
    %342 = vector.shape_cast %341 : vector<128xf32> to vector<1x128xf32>
    %cst_157 = arith.constant 4.000000e+00 : f32
    %343 = vector.broadcast %cst_157 : f32 to vector<1x128xf32>
    %344 = arith.divf %342, %343 : vector<1x128xf32>
    %345 = vector.extract_strided_slice %339 {offsets = [4, 0], sizes = [4, 128], strides = [1, 1]} : vector<8x128xf32> to vector<4x128xf32>
    %cst_158 = arith.constant dense<0.000000e+00> : vector<128xf32>
    %346 = vector.multi_reduction <add>, %345, %cst_158 [0] : vector<4x128xf32> to vector<128xf32>
    %347 = vector.shape_cast %346 : vector<128xf32> to vector<1x128xf32>
    %cst_159 = arith.constant 4.000000e+00 : f32
    %348 = vector.broadcast %cst_159 : f32 to vector<1x128xf32>
    %349 = arith.divf %347, %348 : vector<1x128xf32>
    %350 = tpu.concatenate %344, %349 in 0 : vector<1x128xf32>, vector<1x128xf32> -> vector<2x128xf32>
    %351 = arith.truncf %350 : vector<2x128xf32> to vector<2x128xbf16>
    %c0_160 = arith.constant 0 : index
    %c0_161 = arith.constant 0 : index
    %352 = vector.load %arg11[%c0_160, %c0_161] : memref<128x512xbf16, #tpu.memory_space<vmem>>, vector<128x512xbf16>
    %cst_162 = arith.constant dense<0.000000e+00> : vector<2x512xf32>
    %353 = tpu.matmul %351, %352, %cst_162 {dimension_numbers = #tpu.dot_dimension_numbers<[1], [0], [0], [1], [0, 0, 1, 1], [], []>} : vector<2x128xbf16>, vector<128x512xbf16>, vector<2x512xf32> -> vector<2x512xf32>
    %c0_163 = arith.constant 0 : index
    %c0_164 = arith.constant 0 : index
    %354 = vector.load %arg12[%c0_163, %c0_164] : memref<1x512xf32, #tpu.memory_space<vmem>>, vector<1x512xf32>
    %355 = vector.broadcast %354 : vector<1x512xf32> to vector<2x512xf32>
    %356 = arith.addf %353, %355 : vector<2x512xf32>
    %cst_165 = arith.constant 0.000000e+00 : f32
    %357 = vector.broadcast %cst_165 : f32 to vector<2x512xf32>
    %358 = arith.maximumf %356, %357 : vector<2x512xf32>
    %359 = arith.truncf %358 : vector<2x512xf32> to vector<2x512xbf16>
    %c0_166 = arith.constant 0 : index
    %c0_167 = arith.constant 0 : index
    %360 = vector.load %arg13[%c0_166, %c0_167] : memref<512x10xbf16, #tpu.memory_space<vmem>>, vector<512x10xbf16>
    %cst_168 = arith.constant dense<0.000000e+00> : vector<2x10xf32>
    %361 = tpu.matmul %359, %360, %cst_168 {dimension_numbers = #tpu.dot_dimension_numbers<[1], [0], [0], [1], [0, 0, 1, 1], [], []>} : vector<2x512xbf16>, vector<512x10xbf16>, vector<2x10xf32> -> vector<2x10xf32>
    %c0_169 = arith.constant 0 : index
    %c0_170 = arith.constant 0 : index
    %362 = vector.load %arg14[%c0_169, %c0_170] : memref<1x10xf32, #tpu.memory_space<vmem>>, vector<1x10xf32>
    %363 = vector.broadcast %362 : vector<1x10xf32> to vector<2x10xf32>
    %364 = arith.addf %361, %363 : vector<2x10xf32>
    %c0_171 = arith.constant 0 : index
    %c0_172 = arith.constant 0 : index
    %365 = vector.load %arg15[%c0_171, %c0_172] : memref<2x10xf32, #tpu.memory_space<vmem>>, vector<2x10xf32>
    tpu.vector_store %arg15[%c0_171, %c0_172], %364 {strides = array<i32>} : memref<2x10xf32, #tpu.memory_space<vmem>>, vector<2x10xf32>,
    return
  }
  func.func @transform_0(%arg0: i32) -> (i32, i32) {
    %c0_i32 = arith.constant 0 : i32
    %c0_i32_0 = arith.constant 0 : i32
    %c0_i32_1 = arith.constant 0 : i32
    return %c0_i32, %c0_i32_0 : i32, i32
  }
  func.func @transform_1(%arg0: i32) -> (i32, i32) {
    %c0_i32 = arith.constant 0 : i32
    %c0_i32_0 = arith.constant 0 : i32
    %c0_i32_1 = arith.constant 0 : i32
    return %c0_i32, %c0_i32_0 : i32, i32
  }
  func.func @transform_2(%arg0: i32) -> (i32, i32) {
    %c0_i32 = arith.constant 0 : i32
    %c0_i32_0 = arith.constant 0 : i32
    %c0_i32_1 = arith.constant 0 : i32
    return %c0_i32, %c0_i32_0 : i32, i32
  }
  func.func @transform_3(%arg0: i32) -> (i32, i32) {
    %c0_i32 = arith.constant 0 : i32
    %c0_i32_0 = arith.constant 0 : i32
    %c0_i32_1 = arith.constant 0 : i32
    return %c0_i32, %c0_i32_0 : i32, i32
  }
  func.func @transform_4(%arg0: i32) -> (i32, i32) {
    %c0_i32 = arith.constant 0 : i32
    %c0_i32_0 = arith.constant 0 : i32
    %c0_i32_1 = arith.constant 0 : i32
    return %c0_i32, %c0_i32_0 : i32, i32
  }
  func.func @transform_5(%arg0: i32) -> (i32, i32) {
    %c0_i32 = arith.constant 0 : i32
    %c0_i32_0 = arith.constant 0 : i32
    %c0_i32_1 = arith.constant 0 : i32
    return %c0_i32, %c0_i32_0 : i32, i32
  }
  func.func @transform_6(%arg0: i32) -> (i32, i32) {
    %c0_i32 = arith.constant 0 : i32
    %c0_i32_0 = arith.constant 0 : i32
    %c0_i32_1 = arith.constant 0 : i32
    return %c0_i32, %c0_i32_0 : i32, i32
  }
  func.func @transform_7(%arg0: i32) -> (i32, i32) {
    %c0_i32 = arith.constant 0 : i32
    %c0_i32_0 = arith.constant 0 : i32
    %c0_i32_1 = arith.constant 0 : i32
    return %c0_i32, %c0_i32_0 : i32, i32
  }
  func.func @transform_8(%arg0: i32) -> (i32, i32) {
    %c0_i32 = arith.constant 0 : i32
    %c0_i32_0 = arith.constant 0 : i32
    %c0_i32_1 = arith.constant 0 : i32
    return %c0_i32, %c0_i32_0 : i32, i32
  }
  func.func @transform_9(%arg0: i32) -> (i32, i32) {
    %c0_i32 = arith.constant 0 : i32
    %c0_i32_0 = arith.constant 0 : i32
    %c0_i32_1 = arith.constant 0 : i32
    return %c0_i32, %c0_i32_0 : i32, i32
  }
  func.func @transform_10(%arg0: i32) -> (i32, i32) {
    %c0_i32 = arith.constant 0 : i32
    %c0_i32_0 = arith.constant 0 : i32
    %c0_i32_1 = arith.constant 0 : i32
    return %c0_i32, %c0_i32_0 : i32, i32
  }
  func.func @transform_11(%arg0: i32) -> (i32, i32) {
    %c0_i32 = arith.constant 0 : i32
    %c0_i32_0 = arith.constant 0 : i32
    %c0_i32_1 = arith.constant 0 : i32
    return %c0_i32, %c0_i32_0 : i32, i32
  }
  func.func @transform_12(%arg0: i32) -> (i32, i32) {
    %c0_i32 = arith.constant 0 : i32
    %c0_i32_0 = arith.constant 0 : i32
    %c0_i32_1 = arith.constant 0 : i32
    return %c0_i32, %c0_i32_0 : i32, i32
  }
  func.func @transform_13(%arg0: i32) -> (i32, i32) {
    %c0_i32 = arith.constant 0 : i32
    %c0_i32_0 = arith.constant 0 : i32
    %c0_i32_1 = arith.constant 0 : i32
    return %c0_i32, %c0_i32_0 : i32, i32
  }
  func.func @transform_14(%arg0: i32) -> (i32, i32) {
    %c0_i32 = arith.constant 0 : i32
    %c0_i32_0 = arith.constant 0 : i32
    %c0_i32_1 = arith.constant 0 : i32
    return %c0_i32, %c0_i32_0 : i32, i32
  }
}

</mosaic_0001>

<bundles_post_ra>
// kernel: custom_cnn_forward.1
= control target key start
LH: loop header
LB: loop body
LE: loop exit
PB: predicated region body
PF: predicated region fallthrough
CT: control target
= control target key end

     0   :  { %vm652_vm0 = vcmask 1040384   ;;  %v24319_v2 = vmov 0.0   ;;  %vm653_vm1 = vcmask 1041408   ;;  %v19611_v6 = vmov 65535   ;;  %s24304_s0 = inlined_call_operand.vmem [shape: f32[648,3], index: 0, kind: input, shape index: {}]   ;;  %s24305_s1 = inlined_call_operand.vmem [shape: bf16[27,32], index: 1, kind: input, shape index: {}]   ;;  %s24306_s2 = inlined_call_operand.vmem [shape: f32[1,32], index: 2, kind: input, shape index: {}]   ;;  %s24307_s3 = inlined_call_operand.vmem [shape: f32[1,32], index: 3, kind: input, shape index: {}]   ;;  %s24308_s4 = inlined_call_operand.vmem [shape: bf16[288,64], index: 4, kind: input, shape index: {}]   ;;  %s24309_s5 = inlined_call_operand.vmem [shape: f32[1,64], index: 5, kind: input, shape index: {}]   ;;  %s24310_s6 = inlined_call_operand.vmem [shape: f32[1,64], index: 6, kind: input, shape index: {}]   ;;  %s24311_s7 = inlined_call_operand.vmem [shape: bf16[576,128], index: 7, kind: input, shape index: {}]   ;;  %s24312_s8 = inlined_call_operand.vmem [shape: f32[1,128], index: 8, kind: input, shape index: {}]   ;;  %s24313_s9 = inlined_call_operand.vmem [shape: f32[1,128], index: 9, kind: input, shape index: {}]   ;;  %s24314_s10 = inlined_call_operand.vmem [shape: bf16[128,512], index: 10, kind: input, shape index: {}]   ;;  %s24315_s11 = inlined_call_operand.vmem [shape: f32[1,512], index: 11, kind: input, shape index: {}]   ;;  %s24316_s12 = inlined_call_operand.vmem [shape: bf16[512,10], index: 12, kind: input, shape index: {}]   ;;  %s24317_s13 = inlined_call_operand.vmem [shape: f32[1,10], index: 13, kind: input, shape index: {}]   ;;  %s24318_s14 = inlined_call_operand.hbm [shape: f32[2,10], index: 14, kind: output, shape index: {}]  }
   0x1   :  { %v19694_v0 = vld [vmem:[%s24305_s1] sm:$0xf]  ;;  %v208_v1 = vld [vmem:[%s24305_s1 + $0x4] sm:$0xf]  ;;  %16099 = vmatprep.subr.bf16.mxu0 %v24319_v2  ;;  %v86_v5 = vld [vmem:[%s24304_s0 + $0x8] sm:$0xff]  ;;  %15783 = vmatprep.subr.bf16.mxu1 %v24319_v2  ;;  %v654_v7 = vsel %vm652_vm0, 4294967295, %v19611_v6 }
   0x2   :  { %v14425_v3 = vcombine.low %v19694_v0, %v208_v1  ;;  %v85_v4 = vld [vmem:[%s24304_s0] sm:$0xff]  ;;  %v14465_v8 = vcombine.low %v208_v1, %v208_v1  ;;  %v87_v9 = vld [vmem:[%s24304_s0 + $0x10] sm:$0xff]  ;;  %v88_v10 = vld [vmem:[%s24304_s0 + $0x18] sm:$0xff]  ;;  %v19716_v11 = vsel %vm653_vm1, %v654_v7, 0  ;;  %vm19612_vm2 = vmmov 0  }
   0x3   :  { %16101 = vmatprep.mubr.msk.bf16.mxu0 %vm19612_vm2, %v24319_v2  ;;  %v19720_v13 = vpack.c.bf16 %v86_v5, %v85_v4  ;;  %v19722_v14 = vpack.c.bf16 %v88_v10, %v87_v9  ;;  %15785 = vmatprep.mubr.msk.bf16.mxu1 %vm19612_vm2, %v24319_v2  ;;  %vm1461_vm3 = vcmask 1046528   ;;  %vm534_vm4 = vcmask 23552   ;;  %v89_v22 = vld [vmem:[%s24304_s0 + $0x20] sm:$0xff]  ;;  %v90_v23 = vld [vmem:[%s24304_s0 + $0x28] sm:$0xff]  ;;  %v91_v28 = vld [vmem:[%s24304_s0 + $0x30] sm:$0xff] }
   0x4   :  { %v1542_v12 = vrot.slane %v14425_v3, 3  ;;  %v2083_v18 = vshrl.u32 %v14465_v8, 16  ;;  %v2085_v19 = vshll.u32 %v14465_v8, 16  ;;  %v19743_v25 = vpack.c.bf16 %v90_v23, %v89_v22  ;;  %v92_v29 = vld [vmem:[%s24304_s0 + $0x38] sm:$0xff]  ;;  %v93_v34 = vld [vmem:[%s24304_s0 + $0x40] sm:$0xff]  ;;  %v94_v35 = vld [vmem:[%s24304_s0 + $0x48] sm:$0xff] }
   0x5   :  { %24501 = vst [vmem:[#allocation8_spill] sm:$0xff] %v19720_v13  ;;  %24502 = vst [vmem:[#allocation9_spill] sm:$0xff] %v19722_v14  ;;  %v1462_v16 = vrot.slane %v19720_v13, 1  ;;  %v1463_v17 = vrot.slane %v19722_v14, 1  ;;  %v19757_v31 = vpack.c.bf16 %v92_v29, %v91_v28  ;;  %v2674_v32 = vrot.slane %v14465_v8, 2  ;;  %v95_v40 = vld [vmem:[%s24304_s0 + $0x50] sm:$0xff] }
   0x6   :  { %v19727_v15 = vand.u32 %v1542_v12, %v19716_v11  ;;  %v2087_v21 = vrot.slane %v2085_v19, 1  ;;  %24504 = vst [vmem:[#allocation11_spill] sm:$0xff] %v19743_v25  ;;  %v1465_v27 = vrot.slane %v19743_v25, 1  ;;  %v19774_v38 = vpack.c.bf16 %v94_v35, %v93_v34  ;;  %v96_v41 = vld [vmem:[%s24304_s0 + $0x58] sm:$0xff]  ;;  %v97_v45 = vld [vmem:[%s24304_s0 + $0x60] sm:$0xff]  ;;  %v98_v46 = vld [vmem:[%s24304_s0 + $0x68] sm:$0xff] }
   0x7   :  { %v1464_v20 = vsel %vm1461_vm3, %v1462_v16, %v1463_v17  ;;  %24506 = vst [vmem:[#allocation13_spill] sm:$0xff] %v19757_v31  ;;  %v1467_v33 = vrot.slane %v19757_v31, 1  ;;  %v2793_v36 = vand.u32 %v2674_v32, %v19716_v11  ;;  %v19791_v43 = vpack.c.bf16 %v96_v41, %v95_v40  ;;  %v99_v50 = vld [vmem:[%s24304_s0 + $0x70] sm:$0xff]  ;;  %v100_v51 = vld [vmem:[%s24304_s0 + $0x78] sm:$0xff]  ;;  %v101_v55 = vld [vmem:[%s24304_s0 + $0x80] sm:$0xff] }
   0x8   :  { %24503 = vst [vmem:[#allocation10_spill] sm:$0xff] %v19727_v15  ;;  %16100 = vmatpush3.bf16.msra.mxu0 %v19727_v15  ;;  %v2088_v24 = vor.u32 %v2087_v21, %v2083_v18  ;;  %v19755_v30 = vsel %vm1461_vm3, %v1463_v17, %v1465_v27  ;;  %24508 = vst [vmem:[#allocation15_spill] sm:$0xff] %v19774_v38  ;;  %v1469_v39 = vrot.slane %v19774_v38, 1  ;;  %v102_v56 = vld [vmem:[%s24304_s0 + $0x88] sm:$0xff]  ;;  %v103_v60 = vld [vmem:[%s24304_s0 + $0x90] sm:$0xff] }
   0x9   :  { %16257 = vmatprep.subr.bf16.mxu0 %v24319_v2  ;;  %24505 = vst [vmem:[#allocation12_spill] sm:$0xff] %v19755_v30  ;;  %v19772_v37 = vsel %vm1461_vm3, %v1465_v27, %v1467_v33  ;;  %24510 = vst [vmem:[#allocation17_spill] sm:$0xff] %v19791_v43  ;;  %v1471_v44 = vrot.slane %v19791_v43, 1  ;;  %v19807_v48 = vpack.c.bf16 %v98_v46, %v97_v45  ;;  %v104_v61 = vld [vmem:[%s24304_s0 + $0x98] sm:$0xff]  ;;  %v105_v3 = vld [vmem:[%s24304_s0 + $0xa0] sm:$0xff] }
   0xa   :  { %v2096_v26 = vand.u32 %v2088_v24, %v19716_v11  ;;  %24507 = vst [vmem:[#allocation14_spill] sm:$0xff] %v19772_v37  ;;  %v19789_v42 = vsel %vm1461_vm3, %v1467_v33, %v1469_v39  ;;  %v19823_v53 = vpack.c.bf16 %v100_v51, %v99_v50  ;;  %v19839_v58 = vpack.c.bf16 %v102_v56, %v101_v55  ;;  %v106_v4 = vld [vmem:[%s24304_s0 + $0xa8] sm:$0xff]  ;;  %v107_v8 = vld [vmem:[%s24304_s0 + $0xb0] sm:$0xff]  ;;  %v108_v9 = vld [vmem:[%s24304_s0 + $0xb8] sm:$0xff] }
   0xb   :  { %16102 = vmatmul.mubr.msk.bf16.vlgmr.msra.gmra.mrb[0].mxu0 %vm534_vm4, %v1464_v20  ;;  %24509 = vst [vmem:[#allocation16_spill] sm:$0xff] %v19789_v42  ;;  %v19805_v47 = vsel %vm1461_vm3, %v1469_v39, %v1471_v44  ;;  %24512 = vst [vmem:[#allocation19_spill] sm:$0xff] %v19807_v48  ;;  %v1473_v49 = vrot.slane %v19807_v48, 1  ;;  %v19855_v63 = vpack.c.bf16 %v104_v61, %v103_v60  ;;  %v109_v17 = vld [vmem:[%s24304_s0 + $0xc0] sm:$0xff]  ;;  %v110_v18 = vld [vmem:[%s24304_s0 + $0xc8] sm:$0xff] }
   0xc   :  { %16259 = vmatprep.mubr.msk.bf16.mxu0 %vm19612_vm2, %v24319_v2  ;;  %16258 = vmatpush3.bf16.msra.mxu0 %v2096_v26  ;;  %24511 = vst [vmem:[#allocation18_spill] sm:$0xff] %v19805_v47  ;;  %24514 = vst [vmem:[#allocation21_spill] sm:$0xff] %v19823_v53  ;;  %v1475_v54 = vrot.slane %v19823_v53, 1  ;;  %v1477_v59 = vrot.slane %v19839_v58, 1  ;;  %v19871_v6 = vpack.c.bf16 %v106_v4, %v105_v3 }
   0xd   :  { %16415 = vmatprep.subr.bf16.mxu0 %v24319_v2  ;;  %v19821_v52 = vsel %vm1461_vm3, %v1471_v44, %v1473_v49  ;;  %24516 = vst [vmem:[#allocation23_spill] sm:$0xff] %v19839_v58  ;;  %24518 = vst [vmem:[#allocation25_spill] sm:$0xff] %v19855_v63  ;;  %v1479_v1 = vrot.slane %v19855_v63, 1  ;;  %v19887_v12 = vpack.c.bf16 %v108_v9, %v107_v8 }
   0xe   :  { %24513 = vst [vmem:[#allocation20_spill] sm:$0xff] %v19821_v52  ;;  %v19837_v57 = vsel %vm1461_vm3, %v1473_v49, %v1475_v54  ;;  %v19853_v62 = vsel %vm1461_vm3, %v1475_v54, %v1477_v59  ;;  %24520 = vst [vmem:[#allocation27_spill] sm:$0xff] %v19871_v6  ;;  %v1481_v7 = vrot.slane %v19871_v6, 1 }
   0xf   :  { %24515 = vst [vmem:[#allocation22_spill] sm:$0xff] %v19837_v57  ;;  %24517 = vst [vmem:[#allocation24_spill] sm:$0xff] %v19853_v62  ;;  %v19869_v5 = vsel %vm1461_vm3, %v1477_v59, %v1479_v1  ;;  %v1483_v16 = vrot.slane %v19887_v12, 1 }
  0x10   :  { %24519 = vst [vmem:[#allocation26_spill] sm:$0xff] %v19869_v5  ;;  %v19885_v10 = vsel %vm1461_vm3, %v1479_v1, %v1481_v7  ;;  %24522 = vst [vmem:[#allocation29_spill] sm:$0xff] %v19887_v12 }
  0x11   :  { %24521 = vst [vmem:[#allocation28_spill] sm:$0xff] %v19885_v10 }
  0x17   :  { %16260 = vmatmul.mubr.msk.bf16.vlgmr.msra.gmra.mrb[0].mxu0 %vm534_vm4, %v19755_v30 }
  0x18   :  { %16263 = vmatprep.mubr.msk.bf16.mxu0 %vm19612_vm2, %v24319_v2  ;;  %16416 = vmatpush3.bf16.msra.mxu0 %v2793_v36 }
  0x19   :  { %16573 = vmatprep.subr.bf16.mxu0 %v24319_v2 }
  0x1f   :  { %16264 = vmatmul.mubr.msk.bf16.gmra.mrb[4].mxu0 %vm534_vm4, %v19772_v37 }
  0x20   :  { %16267 = vmatprep.mubr.msk.bf16.mxu0 %vm19612_vm2, %v24319_v2 }
  0x27   :  { %16268 = vmatmul.mubr.msk.bf16.gmra.mrb[8].mxu0 %vm534_vm4, %v19789_v42 }
  0x28   :  { %16271 = vmatprep.mubr.msk.bf16.mxu0 %vm19612_vm2, %v24319_v2 }
  0x2f   :  { %16272 = vmatmul.mubr.msk.bf16.gmra.mrb[12].mxu0 %vm534_vm4, %v19805_v47 }
  0x30   :  { %16275 = vmatprep.mubr.msk.bf16.mxu0 %vm19612_vm2, %v24319_v2 }
  0x37   :  { %16276 = vmatmul.mubr.msk.bf16.gmra.mrb[16].mxu0 %vm534_vm4, %v19821_v52 }
  0x38   :  { %16279 = vmatprep.mubr.msk.bf16.mxu0 %vm19612_vm2, %v24319_v2 }
  0x3f   :  { %16280 = vmatmul.mubr.msk.bf16.gmra.mrb[20].mxu0 %vm534_vm4, %v19837_v57 }
  0x40   :  { %16283 = vmatprep.mubr.msk.bf16.mxu0 %vm19612_vm2, %v24319_v2 }
  0x47   :  { %16284 = vmatmul.mubr.msk.bf16.gmra.mrb[24].mxu0 %vm534_vm4, %v19853_v62 }
  0x48   :  { %16287 = vmatprep.mubr.msk.bf16.mxu0 %vm19612_vm2, %v24319_v2 }
  0x4f   :  { %16288 = vmatmul.mubr.msk.bf16.gmra.mrb[28].mxu0 %vm534_vm4, %v19869_v5 }
  0x50   :  { %16291 = vmatprep.mubr.msk.bf16.mxu0 %vm19612_vm2, %v24319_v2 }
  0x57   :  { %16292 = vmatmul.mubr.msk.bf16.gmra.mrb[32].mxu0 %vm534_vm4, %v19885_v10 }
  0x58   :  { %16295 = vmatprep.mubr.msk.bf16.mxu0 %vm19612_vm2, %v24319_v2 }
  0x59   :  { %19 = vsyncpa [#allocation6], 0  ;;  %v19901_v19 = vsel %vm1461_vm3, %v1481_v7, %v1483_v16  ;;  %v19903_v20 = vpack.c.bf16 %v110_v18, %v109_v17  ;;  %v111_v22 = vld [vmem:[%s24304_s0 + $0xd0] sm:$0xff]  ;;  %v112_v23 = vld [vmem:[%s24304_s0 + $0xd8] sm:$0xff]  ;;  %vm211_vm5 = vsmask.f32 7424 }
  0x5a   :  { %24523 = vst [vmem:[#allocation30_spill] sm:$0xff] %v19901_v19  ;;  %v19919_v26 = vpack.c.bf16 %v112_v23, %v111_v22  ;;  %v113_v28 = vld [vmem:[%s24304_s0 + $0xe0] sm:$0xff]  ;;  %v114_v29 = vld [vmem:[%s24304_s0 + $0xe8] sm:$0xff]  ;;  %v115_v35 = vld [vmem:[%s24304_s0 + $0xf0] sm:$0xff]  ;;  %v20314_v62 = vshrl.u32 %v19807_v48, 16  ;;  %v20317_v57 = vshll.u32 %v19823_v53, 16 }
  0x5b   :  { %24524 = vst [vmem:[#allocation31_spill] sm:$0xff] %v19903_v20  ;;  %v1485_v21 = vrot.slane %v19903_v20, 1  ;;  %v19935_v33 = vpack.c.bf16 %v114_v29, %v113_v28  ;;  %v116_v36 = vld [vmem:[%s24304_s0 + $0xf8] sm:$0xff]  ;;  %v117_v44 = vld [vmem:[%s24304_s0 + $0x100] sm:$0xff]  ;;  %v118_v45 = vld [vmem:[%s24304_s0 + $0x108] sm:$0xff]  ;;  %v20342_v52 = vshrl.u32 %v19823_v53, 16 }
  0x5c   :  { %24526 = vst [vmem:[#allocation33_spill] sm:$0xff] %v19919_v26  ;;  %v1487_v27 = vrot.slane %v19919_v26, 1  ;;  %v19951_v40 = vpack.c.bf16 %v116_v36, %v115_v35  ;;  %v19967_v49 = vpack.c.bf16 %v118_v45, %v117_v44  ;;  %v119_v51 = vld [vmem:[%s24304_s0 + $0x110] sm:$0xff]  ;;  %v120_v54 = vld [vmem:[%s24304_s0 + $0x118] sm:$0xff]  ;;  %v121_v60 = vld [vmem:[%s24304_s0 + $0x120] sm:$0xff]  ;;  %v20345_v47 = vshll.u32 %v19839_v58, 16 }
  0x5d   :  { %v19917_v24 = vsel %vm1461_vm3, %v1483_v16, %v1485_v21  ;;  %24528 = vst [vmem:[#allocation35_spill] sm:$0xff] %v19935_v33  ;;  %v1489_v34 = vrot.slane %v19935_v33, 1  ;;  %v19983_v56 = vpack.c.bf16 %v120_v54, %v119_v51  ;;  %v122_v61 = vld [vmem:[%s24304_s0 + $0x128] sm:$0xff]  ;;  %v123_v7 = vld [vmem:[%s24304_s0 + $0x130] sm:$0xff]  ;;  %v124_v8 = vld [vmem:[%s24304_s0 + $0x138] sm:$0xff]  ;;  %v20370_v37 = vshrl.u32 %v19839_v58, 16 }
  0x5e   :  { %24525 = vst [vmem:[#allocation32_spill] sm:$0xff] %v19917_v24  ;;  %v19933_v32 = vsel %vm1461_vm3, %v1485_v21, %v1487_v27  ;;  %24530 = vst [vmem:[#allocation37_spill] sm:$0xff] %v19951_v40  ;;  %v1491_v41 = vrot.slane %v19951_v40, 1  ;;  %v1493_v50 = vrot.slane %v19967_v49, 1  ;;  %v19999_v3 = vpack.c.bf16 %v122_v61, %v121_v60  ;;  %v125_v18 = vld [vmem:[%s24304_s0 + $0x140] sm:$0xff]  ;;  %v126_v21 = vld [vmem:[%s24304_s0 + $0x148] sm:$0xff] }
  0x5f   :  { %16296 = vmatmul.mubr.msk.bf16.gmra.mrb[36].mxu0 %vm534_vm4, %v19901_v19  ;;  %24527 = vst [vmem:[#allocation34_spill] sm:$0xff] %v19933_v32  ;;  %v19949_v39 = vsel %vm1461_vm3, %v1487_v27, %v1489_v34  ;;  %24532 = vst [vmem:[#allocation39_spill] sm:$0xff] %v19967_v49  ;;  %v1495_v59 = vrot.slane %v19983_v56, 1  ;;  %v20015_v16 = vpack.c.bf16 %v124_v8, %v123_v7  ;;  %v127_v28 = vld [vmem:[%s24304_s0 + $0x150] sm:$0xff]  ;;  %v128_v29 = vld [vmem:[%s24304_s0 + $0x158] sm:$0xff]  ;;  %v20293_v19 = vshll.u32 %v19807_v48, 16 }
  0x60   :  { %16299 = vmatprep.mubr.msk.bf16.mxu0 %vm19612_vm2, %v24319_v2  ;;  %24529 = vst [vmem:[#allocation36_spill] sm:$0xff] %v19949_v39  ;;  %v19965_v46 = vsel %vm1461_vm3, %v1489_v34, %v1491_v41  ;;  %v19981_v55 = vsel %vm1461_vm3, %v1491_v41, %v1493_v50  ;;  %24534 = vst [vmem:[#allocation41_spill] sm:$0xff] %v19983_v56  ;;  %v1497_v4 = vrot.slane %v19999_v3, 1  ;;  %v129_v41 = vld [vmem:[%s24304_s0 + $0x160] sm:$0xff]  ;;  %v130_v44 = vld [vmem:[%s24304_s0 + $0x168] sm:$0xff]  ;;  %v20373_v30 = vshll.u32 %v19855_v63, 16 }
  0x61   :  { %24531 = vst [vmem:[#allocation38_spill] sm:$0xff] %v19965_v46  ;;  %24533 = vst [vmem:[#allocation40_spill] sm:$0xff] %v19981_v55  ;;  %v19997_v1 = vsel %vm1461_vm3, %v1493_v50, %v1495_v59  ;;  %v1499_v17 = vrot.slane %v20015_v16, 1  ;;  %v20031_v23 = vpack.c.bf16 %v126_v21, %v125_v18  ;;  %v20047_v35 = vpack.c.bf16 %v128_v29, %v127_v28  ;;  %v131_v54 = vld [vmem:[%s24304_s0 + $0x170] sm:$0xff]  ;;  %v133_v7 = vld [vmem:[%s24304_s0 + $0x180] sm:$0xff] }
  0x62   :  { %24535 = vst [vmem:[#allocation42_spill] sm:$0xff] %v19997_v1  ;;  %24536 = vst [vmem:[#allocation43_spill] sm:$0xff] %v19999_v3  ;;  %v20013_v9 = vsel %vm1461_vm3, %v1495_v59, %v1497_v4  ;;  %v20063_v50 = vpack.c.bf16 %v130_v44, %v129_v41  ;;  %v132_v59 = vld [vmem:[%s24304_s0 + $0x178] sm:$0xff]  ;;  %v134_v8 = vld [vmem:[%s24304_s0 + $0x188] sm:$0xff]  ;;  %v220_v44 = vshll.u32 %v19722_v14, 16  ;;  %v20398_v53 = vshrl.u32 %v19855_v63, 16 }
  0x63   :  { %24537 = vst [vmem:[#allocation44_spill] sm:$0xff] %v20013_v9  ;;  %24538 = vst [vmem:[#allocation45_spill] sm:$0xff] %v20015_v16  ;;  %v20029_v22 = vsel %vm1461_vm3, %v1497_v4, %v1499_v17  ;;  %v1501_v27 = vrot.slane %v20031_v23, 1  ;;  %v1503_v36 = vrot.slane %v20047_v35, 1  ;;  %v20079_v61 = vpack.c.bf16 %v132_v59, %v131_v54  ;;  %v136_v28 = vld [vmem:[%s24304_s0 + $0x198] sm:$0xff]  ;;  %v137_v54 = vld [vmem:[%s24304_s0 + $0x1a0] sm:$0xff] }
  0x64   :  { %24539 = vst [vmem:[#allocation46_spill] sm:$0xff] %v20029_v22  ;;  %24540 = vst [vmem:[#allocation47_spill] sm:$0xff] %v20031_v23  ;;  %v1505_v51 = vrot.slane %v20063_v50, 1  ;;  %v20095_v18 = vpack.c.bf16 %v134_v8, %v133_v7  ;;  %v138_v59 = vld [vmem:[%s24304_s0 + $0x1a8] sm:$0xff]  ;;  %v20128_v7 = vrot.slane %v220_v44, 2  ;;  %v20401_v48 = vshll.u32 %v19871_v6, 16 }
  0x65   :  { %v20045_v34 = vsel %vm1461_vm3, %v1499_v17, %v1501_v27  ;;  %24542 = vst [vmem:[#allocation49_spill] sm:$0xff] %v20047_v35  ;;  %v20061_v45 = vsel %vm1461_vm3, %v1501_v27, %v1503_v36  ;;  %24544 = vst [vmem:[#allocation51_spill] sm:$0xff] %v20063_v50  ;;  %v1507_v4 = vrot.slane %v20079_v61, 1  ;;  %v135_v27 = vld [vmem:[%s24304_s0 + $0x190] sm:$0xff]  ;;  %v20488_v15 = vshll.u32 %v19919_v26, 16 }
  0x66   :  { %24541 = vst [vmem:[#allocation48_spill] sm:$0xff] %v20045_v34  ;;  %24543 = vst [vmem:[#allocation50_spill] sm:$0xff] %v20061_v45  ;;  %v20077_v60 = vsel %vm1461_vm3, %v1503_v36, %v1505_v51  ;;  %v1509_v21 = vrot.slane %v20095_v18, 1  ;;  %v20111_v36 = vpack.c.bf16 %v136_v28, %v135_v27  ;;  %v20133_v27 = vpack.c.bf16 %v138_v59, %v137_v54  ;;  %v140_v54 = vld [vmem:[%s24304_s0 + $0x1b8] sm:$0xff] }
  0x67   :  { %16300 = vmatmul.mubr.msk.bf16.gmra.mrb[40].mxu0 %vm534_vm4, %v19917_v24  ;;  %24545 = vst [vmem:[#allocation52_spill] sm:$0xff] %v20077_v60  ;;  %24546 = vst [vmem:[#allocation53_spill] sm:$0xff] %v20079_v61  ;;  %v20093_v17 = vsel %vm1461_vm3, %v1505_v51, %v1507_v4  ;;  %v224_v51 = vshrl.u32 %v19722_v14, 16  ;;  %v20290_v24 = vshrl.u32 %v19791_v43, 16  ;;  %v20485_v14 = vshrl.u32 %v19903_v20, 16 }
  0x68   :  { %16303 = vmatprep.mubr.msk.bf16.mxu0 %vm19612_vm2, %v24319_v2  ;;  %24547 = vst [vmem:[#allocation54_spill] sm:$0xff] %v20093_v17  ;;  %24548 = vst [vmem:[#allocation55_spill] sm:$0xff] %v20095_v18  ;;  %v20109_v29 = vsel %vm1461_vm3, %v1507_v4, %v1509_v21  ;;  %v1511_v41 = vrot.slane %v20111_v36, 1  ;;  %vm2513_vm6 = vsmask.f32 6400  ;;  %vm3210_vm7 = vcmask 1045504  }
  0x69   :  { %24549 = vst [vmem:[#allocation56_spill] sm:$0xff] %v20109_v29  ;;  %24550 = vst [vmem:[#allocation57_spill] sm:$0xff] %v20111_v36  ;;  %v20126_v4 = vrot.slane %v224_v51, 1  ;;  %vm4263_vm8 = vsmask.f32 5376  ;;  %vm4967_vm9 = vcmask 1044480  }
  0x6a   :  { %v20131_v8 = vsel %vm1461_vm3, %v1509_v21, %v1511_v41  ;;  %24552 = vst [vmem:[#allocation59_spill] sm:$0xff] %v20133_v27  ;;  %v139_v21 = vld [vmem:[%s24304_s0 + $0x1b0] sm:$0xff]  ;;  %24572 = vst [vmem:[#allocation78_spill] sm:$0xff] %v20290_v24  ;;  %vm6061_vm11 = vcmask 130048   ;;  %vm6213_vm13 = vcmask 1043456   ;;  %vm49_vm14 = vcmask 261120  }
  0x6b   :  { %24551 = vst [vmem:[#allocation58_spill] sm:$0xff] %v20131_v8  ;;  %24573 = vst [vmem:[#allocation79_spill] sm:$0xff] %v20293_v19  ;;  %vm9381_vm15 = vsmask.f32 2304 }
  0x6c   :  { %24576 = vst [vmem:[#allocation82_spill] sm:$0xff] %v20314_v62  ;;  %24577 = vst [vmem:[#allocation83_spill] sm:$0xff] %v20317_v57 }
  0x6d   :  { %24580 = vst [vmem:[#allocation86_spill] sm:$0xff] %v20342_v52  ;;  %24581 = vst [vmem:[#allocation87_spill] sm:$0xff] %v20345_v47 }
  0x6e   :  { %24584 = vst [vmem:[#allocation90_spill] sm:$0xff] %v20370_v37  ;;  %24585 = vst [vmem:[#allocation91_spill] sm:$0xff] %v20373_v30 }
  0x6f   :  { %16304 = vmatmul.mubr.msk.bf16.gmra.mrb[44].mxu0 %vm534_vm4, %v19933_v32  ;;  %24588 = vst [vmem:[#allocation94_spill] sm:$0xff] %v20398_v53  ;;  %24589 = vst [vmem:[#allocation95_spill] sm:$0xff] %v20401_v48 }
  0x70   :  { %16307 = vmatprep.mubr.msk.bf16.mxu0 %vm19612_vm2, %v24319_v2  ;;  %24601 = vst [vmem:[#allocation107_spill] sm:$0xff] %v20485_v14  ;;  %24602 = vst [vmem:[#allocation108_spill] sm:$0xff] %v20488_v15 }
  0x77   :  { %16308 = vmatmul.mubr.msk.bf16.gmra.mrb[48].mxu0 %vm534_vm4, %v19949_v39  ;;  %v20261_v39 = vshll.u32 %v19791_v43, 16  ;;  %v20426_v43 = vshrl.u32 %v19871_v6, 16 }
  0x78   :  { %16311 = vmatprep.mubr.msk.bf16.mxu0 %vm19612_vm2, %v24319_v2 }
  0x79   :  { %24569 = vst [vmem:[#allocation75_spill] sm:$0xff] %v20261_v39  ;;  %24592 = vst [vmem:[#allocation98_spill] sm:$0xff] %v20426_v43 }
  0x7f   :  { %16312 = vmatmul.mubr.msk.bf16.gmra.mrb[52].mxu0 %vm534_vm4, %v19965_v46  ;;  %v20258_v46 = vshrl.u32 %v19774_v38, 16 }
  0x80   :  { %16315 = vmatprep.mubr.msk.bf16.mxu0 %vm19612_vm2, %v24319_v2 }
  0x81   :  { %24568 = vst [vmem:[#allocation74_spill] sm:$0xff] %v20258_v46 }
  0x87   :  { %16316 = vmatmul.mubr.msk.bf16.gmra.mrb[56].mxu0 %vm534_vm4, %v19981_v55 }
  0x88   :  { %16319 = vmatprep.mubr.msk.bf16.mxu0 %vm19612_vm2, %v24319_v2 }
  0x8f   :  { %16320 = vmatmul.mubr.msk.bf16.gmra.mrb[60].mxu0 %vm534_vm4, %v19997_v1  ;;  %v213_v1 = vshrl.u32 %v19720_v13, 16 }
  0x90   :  { %16323 = vmatprep.mubr.msk.bf16.mxu0 %vm19612_vm2, %v24319_v2 }
  0x97   :  { %16324 = vmatmul.mubr.msk.bf16.gmra.mrb[64].mxu0 %vm534_vm4, %v20013_v9 }
  0x98   :  { %16327 = vmatprep.mubr.msk.bf16.mxu0 %vm19612_vm2, %v24319_v2 }
  0x9f   :  { %16328 = vmatmul.mubr.msk.bf16.gmra.mrb[68].mxu0 %vm534_vm4, %v20029_v22  ;;  %v215_v22 = vshll.u32 %v19720_v13, 16  ;;  %v20530_v13 = vshrl.u32 %v19935_v33, 16 }
  0xa0   :  { %16331 = vmatprep.mubr.msk.bf16.mxu0 %vm19612_vm2, %v24319_v2 }
  0xa1   :  { %v217_v55 = vrot.slane %v215_v22, 1  ;;  %24606 = vst [vmem:[#allocation112_spill] sm:$0xff] %v20530_v13 }
  0xa7   :  { %16332 = vmatmul.mubr.msk.bf16.gmra.mrb[72].mxu0 %vm534_vm4, %v20045_v34 }
  0xa8   :  { %16335 = vmatprep.mubr.msk.bf16.mxu0 %vm19612_vm2, %v24319_v2 }
  0xaf   :  { %16336 = vmatmul.mubr.msk.bf16.gmra.mrb[76].mxu0 %vm534_vm4, %v20061_v45 }
  0xb0   :  { %16339 = vmatprep.mubr.msk.bf16.mxu0 %vm19612_vm2, %v24319_v2 }
  0xb7   :  { %16340 = vmatmul.mubr.msk.bf16.gmra.mrb[80].mxu0 %vm534_vm4, %v20077_v60 }
  0xb8   :  { %16343 = vmatprep.mubr.msk.bf16.mxu0 %vm19612_vm2, %v24319_v2 }
  0xbf   :  { %16344 = vmatmul.mubr.msk.bf16.gmra.mrb[84].mxu0 %vm534_vm4, %v20093_v17  ;;  %v1513_v17 = vrot.slane %v20133_v27, 1 }
  0xc0   :  { %16347 = vmatprep.mubr.msk.bf16.mxu0 %vm19612_vm2, %v24319_v2 }
  0xc1   :  { %v20151_v45 = vsel %vm1461_vm3, %v1511_v41, %v1513_v17  ;;  %v222_v41 = vrot.slane %v220_v44, 1  ;;  %v20178_v44 = vshll.u32 %v19743_v25, 16 }
  0xc2   :  { %24554 = vst [vmem:[#allocation60_spill] sm:$0xff] %v20151_v45 }
  0xc3   :  { %24558 = vst [vmem:[#allocation64_spill] sm:$0xff] %v20178_v44 }
  0xc7   :  { %16348 = vmatmul.mubr.msk.bf16.gmra.mrb[88].mxu0 %vm534_vm4, %v20109_v29  ;;  %v24553_v29 = vmov 0.0  }
  0xc8   :  { %16351 = vmatprep.mubr.msk.bf16.mxu0 %vm19612_vm2, %v24319_v2  ;;  %v14346_v2 = vcombine.low %v19694_v0, %v19694_v0  ;;  %v20153_v0 = vpack.c.bf16 %v140_v54, %v139_v21  ;;  %v144_v54 = vld [vmem:[%s24304_s0 + $0x1d8] sm:$0xff]  ;;  %51 = vst.msk [vmem:[#allocation2 + $0x8] sm:$0xff] %vm49_vm14, %v24553_v29  ;;  %52 = vst.msk [vmem:[#allocation2 + $0x10] sm:$0xff] %vm49_vm14, %v24553_v29 }
  0xc9   :  { %50 = vst.msk [vmem:[#allocation2] sm:$0xff] %vm49_vm14, %v24553_v29  ;;  %53 = vst.msk [vmem:[#allocation2 + $0x18] sm:$0xff] %vm49_vm14, %v24553_v29 }
  0xca   :  { %v527_v59 = vshrl.u32 %v14346_v2, 16  ;;  %v530_v28 = vshll.u32 %v14346_v2, 16  ;;  %24555 = vst [vmem:[#allocation61_spill] sm:$0xff] %v20153_v0  ;;  %v1515_v2 = vrot.slane %v20153_v0, 1  ;;  %54 = vst.msk [vmem:[#allocation2 + $0x20] sm:$0xff] %vm49_vm14, %v24553_v29 }
  0xcb   :  { %55 = vst.msk [vmem:[#allocation2 + $0x28] sm:$0xff] %vm49_vm14, %v24553_v29  ;;  %56 = vst.msk [vmem:[#allocation2 + $0x30] sm:$0xff] %vm49_vm14, %v24553_v29 }
  0xcc   :  { %v529_v60 = vrot.slane %v527_v59, 1  ;;  %57 = vst.msk [vmem:[#allocation2 + $0x38] sm:$0xff] %vm49_vm14, %v24553_v29  ;;  %58 = vst.msk [vmem:[#allocation2 + $0x40] sm:$0xff] %vm49_vm14, %v24553_v29 }
  0xcd   :  { %59 = vst.msk [vmem:[#allocation2 + $0x48] sm:$0xff] %vm49_vm14, %v24553_v29  ;;  %60 = vst.msk [vmem:[#allocation2 + $0x50] sm:$0xff] %vm49_vm14, %v24553_v29 }
  0xce   :  { %61 = vst.msk [vmem:[#allocation2 + $0x58] sm:$0xff] %vm49_vm14, %v24553_v29  ;;  %62 = vst.msk [vmem:[#allocation2 + $0x60] sm:$0xff] %vm49_vm14, %v24553_v29 }
  0xcf   :  { %16352 = vmatmul.mubr.msk.bf16.gmra.mrb[92].mxu0 %vm534_vm4, %v20131_v8  ;;  %v532_v8 = vrot.slane %v530_v28, 2  ;;  %v20172_v28 = vsel %vm1461_vm3, %v1513_v17, %v1515_v2  ;;  %v143_v17 = vld [vmem:[%s24304_s0 + $0x1d0] sm:$0xff]  ;;  %63 = vst.msk [vmem:[#allocation2 + $0x68] sm:$0xff] %vm49_vm14, %v24553_v29  ;;  %64 = vst.msk [vmem:[#allocation2 + $0x70] sm:$0xff] %vm49_vm14, %v24553_v29 }
  0xd0   :  { %16355 = vmatprep.mubr.msk.bf16.mxu0 %vm19612_vm2, %v24553_v29  ;;  %24556 = vst [vmem:[#allocation62_spill] sm:$0xff] %v20172_v28  ;;  %65 = vst.msk [vmem:[#allocation2 + $0x78] sm:$0xff] %vm49_vm14, %v24553_v29 }
  0xd1   :  { %v533_v34 = vor.u32 %v532_v8, %v529_v60  ;;  %v141_v60 = vld [vmem:[%s24304_s0 + $0x1c0] sm:$0xff]  ;;  %v142_v8 = vld [vmem:[%s24304_s0 + $0x1c8] sm:$0xff]  ;;  %66 = vst.msk [vmem:[#allocation2 + $0x80] sm:$0xff] %vm49_vm14, %v24553_v29  ;;  %67 = vst.msk [vmem:[#allocation2 + $0x88] sm:$0xff] %vm49_vm14, %v24553_v29 }
  0xd2   :  { %v20174_v21 = vpack.c.bf16 %v142_v8, %v141_v60  ;;  %v20205_v8 = vshll.u32 %v19757_v31, 16  ;;  %68 = vst.msk [vmem:[#allocation2 + $0x90] sm:$0xff] %vm49_vm14, %v24553_v29  ;;  %69 = vst.msk [vmem:[#allocation2 + $0x98] sm:$0xff] %vm49_vm14, %v24553_v29 }
  0xd3   :  { %v657_v9 = vand.u32 %v19716_v11, %v533_v34  ;;  %v218_v34 = vor.u32 %v217_v55, %v213_v1  ;;  %v226_v55 = vor.u32 %v224_v51, %v222_v41  ;;  %v230_v1 = vrot.slane %v20178_v44, 1  ;;  %70 = vst.msk [vmem:[#allocation2 + $0xa0] sm:$0xff] %vm49_vm14, %v24553_v29  ;;  %71 = vst.msk [vmem:[#allocation2 + $0xa8] sm:$0xff] %vm49_vm14, %v24553_v29 }
  0xd4   :  { %24557 = vst [vmem:[#allocation63_spill] sm:$0xff] %v20174_v21  ;;  %v20198_v51 = vpack.c.bf16 %v144_v54, %v143_v17  ;;  %24562 = vst [vmem:[#allocation68_spill] sm:$0xff] %v20205_v8  ;;  %v146_v17 = vld [vmem:[%s24304_s0 + $0x1e8] sm:$0xff] }
  0xd5   :  { %15784 = vmatpush3.bf16.msra.mxu1 %v657_v9  ;;  %v223_v22 = vsel %vm211_vm5, %v218_v34, %v222_v41  ;;  %v1517_v9 = vrot.slane %v20174_v21, 1  ;;  %v231_v59 = vsel %vm211_vm5, %v226_v55, %v230_v1  ;;  %v20202_v41 = vshrl.u32 %v19743_v25, 16  ;;  %v145_v55 = vld [vmem:[%s24304_s0 + $0x1e0] sm:$0xff]  ;;  %72 = vst.msk [vmem:[#allocation2 + $0xb0] sm:$0xff] %vm49_vm14, %v24553_v29  ;;  %73 = vst.msk [vmem:[#allocation2 + $0xb8] sm:$0xff] %vm49_vm14, %v24553_v29 }
  0xd6   :  { %15941 = vmatprep.subr.bf16.mxu1 %v24553_v29  ;;  %24560 = vst [vmem:[#allocation66_spill] sm:$0xff] %v20198_v51  ;;  %v20457_v25 = vshll.u32 %v19903_v20, 16  ;;  %v20504_v20 = vshrl.u32 %v19919_v26, 16  ;;  %v19582_v26 = vld [vmem:[%s24305_s1 + $0x4] sm:$0xf]  ;;  %74 = vst.msk [vmem:[#allocation2 + $0xc0] sm:$0xff] %vm49_vm14, %v24553_v29 }
  0xd7   :  { %16356 = vmatmul.mubr.msk.bf16.gmra.mrb[96].mxu0 %vm534_vm4, %v20151_v45  ;;  %v20196_v60 = vsel %vm1461_vm3, %v1515_v2, %v1517_v9  ;;  %24561 = vst [vmem:[#allocation67_spill] sm:$0xff] %v20202_v41  ;;  %v234_v34 = vor.u32 %v20202_v41, %v230_v1  ;;  %v238_v2 = vrot.slane %v20205_v8, 1  ;;  %v20226_v1 = vpack.c.bf16 %v146_v17, %v145_v55  ;;  %v147_v17 = vld [vmem:[%s24304_s0 + $0x1f0] sm:$0xff] }
  0xd8   :  { %16359 = vmatprep.mubr.msk.bf16.mxu0 %vm19612_vm2, %v24553_v29  ;;  %15786 = vmatmul.mubr.msk.bf16.vlgmr.msra.gmra.mrb[0].mxu1 %vm534_vm4, %v223_v22  ;;  %24559 = vst [vmem:[#allocation65_spill] sm:$0xff] %v20196_v60  ;;  %v1519_v22 = vrot.slane %v20198_v51, 1  ;;  %24597 = vst [vmem:[#allocation103_spill] sm:$0xff] %v20457_v25 }
  0xd9   :  { %15789 = vmatprep.mubr.msk.bf16.mxu1 %vm19612_vm2, %v24553_v29  ;;  %v239_v54 = vsel %vm211_vm5, %v234_v34, %v238_v2  ;;  %24564 = vst [vmem:[#allocation70_spill] sm:$0xff] %v20226_v1  ;;  %v1521_v55 = vrot.slane %v20226_v1, 1  ;;  %24603 = vst [vmem:[#allocation109_spill] sm:$0xff] %v20504_v20 }
  0xdf   :  { %16360 = vmatmul.mubr.msk.bf16.gmra.mrb[100].mxu0 %vm534_vm4, %v20172_v28  ;;  %v20233_v28 = vshll.u32 %v19774_v38, 16  ;;  %v20429_v38 = vshll.u32 %v19887_v12, 16 }
  0xe0   :  { %16363 = vmatprep.mubr.msk.bf16.mxu0 %vm19612_vm2, %v24553_v29  ;;  %15790 = vmatmul.mubr.msk.bf16.gmra.mrb[4].mxu1 %vm534_vm4, %v231_v59  ;;  %v20224_v59 = vsel %vm1461_vm3, %v1517_v9, %v1519_v22 }
  0xe1   :  { %15793 = vmatprep.mubr.msk.bf16.mxu1 %vm19612_vm2, %v24553_v29  ;;  %24563 = vst [vmem:[#allocation69_spill] sm:$0xff] %v20224_v59  ;;  %24565 = vst [vmem:[#allocation71_spill] sm:$0xff] %v20233_v28  ;;  %v246_v9 = vrot.slane %v20233_v28, 1 }
  0xe2   :  { %24593 = vst [vmem:[#allocation99_spill] sm:$0xff] %v20429_v38 }
  0xe7   :  { %16364 = vmatmul.mubr.msk.bf16.gmra.mrb[104].mxu0 %vm534_vm4, %v20196_v60  ;;  %v20230_v60 = vshrl.u32 %v19757_v31, 16  ;;  %v20454_v31 = vshrl.u32 %v19887_v12, 16 }
  0xe8   :  { %16367 = vmatprep.mubr.msk.bf16.mxu0 %vm19612_vm2, %v24553_v29  ;;  %15794 = vmatmul.mubr.msk.bf16.gmra.mrb[8].mxu1 %vm534_vm4, %v239_v54  ;;  %v148_v54 = vld [vmem:[%s24304_s0 + $0x1f8] sm:$0xff] }
  0xe9   :  { %15797 = vmatprep.mubr.msk.bf16.mxu1 %vm19612_vm2, %v24553_v29  ;;  %v242_v34 = vor.u32 %v20230_v60, %v238_v2  ;;  %v20254_v2 = vpack.c.bf16 %v148_v54, %v147_v17  ;;  %v149_v17 = vld [vmem:[%s24304_s0 + $0x200] sm:$0xff]  ;;  %v150_v54 = vld [vmem:[%s24304_s0 + $0x208] sm:$0xff]  ;;  %24596 = vst [vmem:[#allocation102_spill] sm:$0xff] %v20454_v31 }
  0xeb   :  { %v247_v45 = vsel %vm211_vm5, %v242_v34, %v246_v9  ;;  %24567 = vst [vmem:[#allocation73_spill] sm:$0xff] %v20254_v2  ;;  %v250_v34 = vor.u32 %v20258_v46, %v246_v9  ;;  %v20282_v9 = vpack.c.bf16 %v150_v54, %v149_v17  ;;  %v262_v54 = vrot.slane %v20293_v19, 1 }
  0xed   :  { %24571 = vst [vmem:[#allocation77_spill] sm:$0xff] %v20282_v9 }
  0xef   :  { %16368 = vmatmul.mubr.msk.bf16.gmra.mrb[108].mxu0 %vm534_vm4, %v20224_v59  ;;  %v20252_v59 = vsel %vm1461_vm3, %v1519_v22, %v1521_v55  ;;  %v254_v22 = vrot.slane %v20261_v39, 1 }
  0xf0   :  { %16371 = vmatprep.mubr.msk.bf16.mxu0 %vm19612_vm2, %v24553_v29  ;;  %24566 = vst [vmem:[#allocation72_spill] sm:$0xff] %v20252_v59  ;;  %15798 = vmatmul.mubr.msk.bf16.gmra.mrb[12].mxu1 %vm534_vm4, %v247_v45  ;;  %v1523_v45 = vrot.slane %v20254_v2, 1 }
  0xf1   :  { %15801 = vmatprep.mubr.msk.bf16.mxu1 %vm19612_vm2, %v24553_v29  ;;  %v255_v32 = vsel %vm211_vm5, %v250_v34, %v254_v22  ;;  %v152_v34 = vld [vmem:[%s24304_s0 + $0x218] sm:$0xff]  ;;  %v258_v17 = vor.u32 %v20290_v24, %v254_v22  ;;  %v266_v22 = vor.u32 %v20314_v62, %v262_v54 }
  0xf7   :  { %16372 = vmatmul.mubr.msk.bf16.gmra.mrb[112].mxu0 %vm534_vm4, %v20252_v59  ;;  %v20280_v59 = vsel %vm1461_vm3, %v1521_v55, %v1523_v45  ;;  %v1525_v55 = vrot.slane %v20282_v9, 1 }
  0xf8   :  { %16375 = vmatprep.mubr.msk.bf16.mxu0 %vm19612_vm2, %v24553_v29  ;;  %24570 = vst [vmem:[#allocation76_spill] sm:$0xff] %v20280_v59  ;;  %15802 = vmatmul.mubr.msk.bf16.gmra.mrb[16].mxu1 %vm534_vm4, %v255_v32  ;;  %v151_v32 = vld [vmem:[%s24304_s0 + $0x210] sm:$0xff] }
  0xf9   :  { %15805 = vmatprep.mubr.msk.bf16.mxu1 %vm19612_vm2, %v24553_v29  ;;  %v20308_v10 = vsel %vm1461_vm3, %v1523_v45, %v1525_v55  ;;  %v20310_v5 = vpack.c.bf16 %v152_v34, %v151_v32  ;;  %v270_v45 = vrot.slane %v20317_v57, 1  ;;  %v153_v32 = vld [vmem:[%s24304_s0 + $0x220] sm:$0xff]  ;;  %v154_v34 = vld [vmem:[%s24304_s0 + $0x228] sm:$0xff] }
  0xfa   :  { %24574 = vst [vmem:[#allocation80_spill] sm:$0xff] %v20308_v10 }
  0xfb   :  { %24575 = vst [vmem:[#allocation81_spill] sm:$0xff] %v20310_v5 }
  0xff   :  { %16376 = vmatmul.mubr.msk.bf16.gmra.mrb[116].mxu0 %vm534_vm4, %v20280_v59  ;;  %v263_v59 = vsel %vm211_vm5, %v258_v17, %v262_v54  ;;  %v271_v17 = vsel %vm211_vm5, %v266_v22, %v270_v45  ;;  %v20338_v54 = vpack.c.bf16 %v154_v34, %v153_v32  ;;  %v274_v22 = vor.u32 %v20342_v52, %v270_v45  ;;  %v155_v34 = vld [vmem:[%s24304_s0 + $0x230] sm:$0xff] }
 0x100   :  { %16379 = vmatprep.mubr.msk.bf16.mxu0 %vm19612_vm2, %v24553_v29  ;;  %15806 = vmatmul.mubr.msk.bf16.gmra.mrb[20].mxu1 %vm534_vm4, %v263_v59  ;;  %v1527_v59 = vrot.slane %v20310_v5, 1 }
 0x101   :  { %15809 = vmatprep.mubr.msk.bf16.mxu1 %vm19612_vm2, %v24553_v29  ;;  %24579 = vst [vmem:[#allocation85_spill] sm:$0xff] %v20338_v54  ;;  %v1529_v32 = vrot.slane %v20338_v54, 1 }
 0x107   :  { %16380 = vmatmul.mubr.msk.bf16.gmra.mrb[120].mxu0 %vm534_vm4, %v20308_v10  ;;  %v20336_v10 = vsel %vm1461_vm3, %v1525_v55, %v1527_v59  ;;  %v278_v55 = vrot.slane %v20345_v47, 1 }
 0x108   :  { %16383 = vmatprep.mubr.msk.bf16.mxu0 %vm19612_vm2, %v24553_v29  ;;  %24578 = vst [vmem:[#allocation84_spill] sm:$0xff] %v20336_v10  ;;  %15810 = vmatmul.mubr.msk.bf16.gmra.mrb[24].mxu1 %vm534_vm4, %v271_v17  ;;  %v156_v17 = vld [vmem:[%s24304_s0 + $0x238] sm:$0xff] }
 0x109   :  { %15813 = vmatprep.mubr.msk.bf16.mxu1 %vm19612_vm2, %v24553_v29  ;;  %v279_v42 = vsel %vm211_vm5, %v274_v22, %v278_v55  ;;  %v20366_v45 = vpack.c.bf16 %v156_v17, %v155_v34  ;;  %v282_v22 = vor.u32 %v20370_v37, %v278_v55  ;;  %v157_v34 = vld [vmem:[%s24304_s0 + $0x240] sm:$0xff]  ;;  %v158_v17 = vld [vmem:[%s24304_s0 + $0x248] sm:$0xff] }
 0x10a   :  { %v20394_v55 = vpack.c.bf16 %v158_v17, %v157_v34  ;;  %v159_v34 = vld [vmem:[%s24304_s0 + $0x250] sm:$0xff]  ;;  %v160_v17 = vld [vmem:[%s24304_s0 + $0x258] sm:$0xff] }
 0x10b   :  { %24583 = vst [vmem:[#allocation89_spill] sm:$0xff] %v20366_v45 }
 0x10c   :  { %24587 = vst [vmem:[#allocation93_spill] sm:$0xff] %v20394_v55 }
 0x10f   :  { %16384 = vmatmul.mubr.msk.bf16.gmra.mrb[124].mxu0 %vm534_vm4, %v20336_v10  ;;  %v20364_v10 = vsel %vm1461_vm3, %v1527_v59, %v1529_v32  ;;  %v286_v59 = vrot.slane %v20373_v30, 1 }
 0x110   :  { %16387 = vmatprep.mubr.msk.bf16.mxu0 %vm19612_vm2, %v24553_v29  ;;  %24582 = vst [vmem:[#allocation88_spill] sm:$0xff] %v20364_v10  ;;  %15814 = vmatmul.mubr.msk.bf16.gmra.mrb[28].mxu1 %vm534_vm4, %v279_v42  ;;  %v1531_v42 = vrot.slane %v20366_v45, 1  ;;  %v20551_v45 = vshrl.u32 %v19951_v40, 16 }
 0x111   :  { %15817 = vmatprep.mubr.msk.bf16.mxu1 %vm19612_vm2, %v24553_v29  ;;  %v287_v58 = vsel %vm211_vm5, %v282_v22, %v286_v59  ;;  %v290_v22 = vor.u32 %v20398_v53, %v286_v59  ;;  %v20422_v59 = vpack.c.bf16 %v160_v17, %v159_v34  ;;  %v161_v34 = vld [vmem:[%s24304_s0 + $0x260] sm:$0xff]  ;;  %v162_v17 = vld [vmem:[%s24304_s0 + $0x268] sm:$0xff] }
 0x112   :  { %24609 = vst [vmem:[#allocation114_spill] sm:$0xff] %v20551_v45 }
 0x113   :  { %24591 = vst [vmem:[#allocation97_spill] sm:$0xff] %v20422_v59 }
 0x117   :  { %16388 = vmatmul.mubr.msk.bf16.gmra.mrb[128].mxu0 %vm534_vm4, %v20364_v10  ;;  %v20392_v10 = vsel %vm1461_vm3, %v1529_v32, %v1531_v42  ;;  %v294_v32 = vrot.slane %v20401_v48, 1 }
 0x118   :  { %16391 = vmatprep.mubr.msk.bf16.mxu0 %vm19612_vm2, %v24553_v29  ;;  %24586 = vst [vmem:[#allocation92_spill] sm:$0xff] %v20392_v10  ;;  %15818 = vmatmul.mubr.msk.bf16.gmra.mrb[32].mxu1 %vm534_vm4, %v287_v58  ;;  %v1533_v58 = vrot.slane %v20394_v55, 1  ;;  %v24608_v55 = vor.u32 %v20128_v7, %v20126_v4 }
 0x119   :  { %15821 = vmatprep.mubr.msk.bf16.mxu1 %vm19612_vm2, %v24553_v29  ;;  %v295_v63 = vsel %vm211_vm5, %v290_v22, %v294_v32  ;;  %v298_v22 = vor.u32 %v20426_v43, %v294_v32  ;;  %v20450_v32 = vpack.c.bf16 %v162_v17, %v161_v34  ;;  %v163_v34 = vld [vmem:[%s24304_s0 + $0x270] sm:$0xff]  ;;  %v164_v17 = vld [vmem:[%s24304_s0 + $0x278] sm:$0xff] }
 0x11a   :  { %v20481_v12 = vpack.c.bf16 %v164_v17, %v163_v34 }
 0x11b   :  { %24595 = vst [vmem:[#allocation101_spill] sm:$0xff] %v20450_v32 }
 0x11c   :  { %24600 = vst [vmem:[#allocation106_spill] sm:$0xff] %v20481_v12 }
 0x11f   :  { %16392 = vmatmul.mubr.msk.bf16.gmra.mrb[132].mxu0 %vm534_vm4, %v20392_v10  ;;  %v20420_v10 = vsel %vm1461_vm3, %v1531_v42, %v1533_v58  ;;  %v302_v42 = vrot.slane %v20429_v38, 1 }
 0x120   :  { %16395 = vmatprep.mubr.msk.bf16.mxu0 %vm19612_vm2, %v24553_v29  ;;  %24590 = vst [vmem:[#allocation96_spill] sm:$0xff] %v20420_v10  ;;  %15822 = vmatmul.mubr.msk.bf16.gmra.mrb[36].mxu1 %vm534_vm4, %v295_v63  ;;  %v1535_v63 = vrot.slane %v20422_v59, 1 }
 0x121   :  { %15825 = vmatprep.mubr.msk.bf16.mxu1 %vm19612_vm2, %v24553_v29  ;;  %v303_v6 = vsel %vm211_vm5, %v298_v22, %v302_v42  ;;  %v306_v22 = vor.u32 %v20454_v31, %v302_v42 }
 0x127   :  { %16396 = vmatmul.mubr.msk.bf16.gmra.mrb[136].mxu0 %vm534_vm4, %v20420_v10  ;;  %v20448_v10 = vsel %vm1461_vm3, %v1533_v58, %v1535_v63  ;;  %v310_v58 = vrot.slane %v20457_v25, 1 }
 0x128   :  { %16399 = vmatprep.mubr.msk.bf16.mxu0 %vm19612_vm2, %v24553_v29  ;;  %24594 = vst [vmem:[#allocation100_spill] sm:$0xff] %v20448_v10  ;;  %15826 = vmatmul.mubr.msk.bf16.gmra.mrb[40].mxu1 %vm534_vm4, %v303_v6  ;;  %v20468_v6 = vrot.slane %v20450_v32, 1  ;;  %v20533_v32 = vshll.u32 %v19951_v40, 16 }
 0x129   :  { %15829 = vmatprep.mubr.msk.bf16.mxu1 %vm19612_vm2, %v24553_v29 }
 0x12a   :  { %24598 = vst [vmem:[#allocation104_spill] sm:$0xff] %v20468_v6  ;;  %v20479_v42 = vsel %vm1461_vm3, %v1535_v63, %v20468_v6  ;;  %v318_v63 = vrot.slane %v20488_v15, 1  ;;  %24607 = vst [vmem:[#allocation113_spill] sm:$0xff] %v20533_v32 }
 0x12b   :  { %24599 = vst [vmem:[#allocation105_spill] sm:$0xff] %v20479_v42 }
 0x12f   :  { %16400 = vmatmul.mubr.msk.bf16.gmra.mrb[140].mxu0 %vm534_vm4, %v20448_v10  ;;  %v311_v10 = vsel %vm211_vm5, %v306_v22, %v310_v58  ;;  %v314_v22 = vor.u32 %v20485_v14, %v310_v58  ;;  %v322_v58 = vor.u32 %v20504_v20, %v318_v63 }
 0x130   :  { %16403 = vmatprep.mubr.msk.bf16.mxu0 %vm19612_vm2, %v24553_v29  ;;  %15830 = vmatmul.mubr.msk.bf16.gmra.mrb[44].mxu1 %vm534_vm4, %v311_v10  ;;  %v2079_v10 = vrot.slane %v20481_v12, 1  ;;  %v2518_v12 = vrot.slane %v20178_v44, 2 }
 0x131   :  { %15833 = vmatprep.mubr.msk.bf16.mxu1 %vm19612_vm2, %v24553_v29  ;;  %v319_v34 = vsel %vm211_vm5, %v314_v22, %v318_v63  ;;  %v2517_v63 = vrot.slane %v20202_v41, 1  ;;  %v334_v41 = vrot.slane %v20533_v32, 1 }
 0x132   :  { %v2080_v17 = vsel %vm1461_vm3, %v20468_v6, %v2079_v10  ;;  %v20517_v6 = vld [vmem:[%s24305_s1 + $0x8] sm:$0xf] }
 0x133   :  { %24605 = vst [vmem:[#allocation111_spill] sm:$0xff] %v20517_v6  ;;  %v338_v4 = vor.u32 %v20551_v45, %v334_v41 }
 0x137   :  { %16404 = vmatmul.mubr.msk.bf16.gmra.mrb[144].mxu0 %vm534_vm4, %v20479_v42  ;;  %v20507_v42 = vshll.u32 %v19935_v33, 16 }
 0x138   :  { %16407 = vmatprep.mubr.msk.bf16.mxu0 %vm19612_vm2, %v24553_v29  ;;  %15834 = vmatmul.mubr.msk.bf16.gmra.mrb[48].mxu1 %vm534_vm4, %v319_v34 }
 0x139   :  { %24604 = vst [vmem:[#allocation110_spill] sm:$0xff] %v20507_v42  ;;  %15837 = vmatprep.mubr.msk.bf16.mxu1 %vm19612_vm2, %v24553_v29  ;;  %v326_v22 = vrot.slane %v20507_v42, 1 }
 0x13b   :  { %v327_v34 = vsel %vm211_vm5, %v322_v58, %v326_v22 }
 0x13f   :  { %16408 = vmatmul.mubr.msk.bf16.gmra.mrb[148].mxu0 %vm534_vm4, %v2080_v17  ;;  %v14544_v17 = vcombine.low %v19582_v26, %v20517_v6  ;;  %v330_v26 = vor.u32 %v20530_v13, %v326_v22  ;;  %v2522_v22 = vrot.slane %v20205_v8, 2  ;;  %v20682_v8 = vshll.u32 %v20079_v61, 16 }
 0x140   :  { %16411 = vmatprep.mubr.msk.bf16.mxu0 %vm19612_vm2, %v24553_v29  ;;  %15838 = vmatmul.mubr.msk.bf16.gmra.mrb[52].mxu1 %vm534_vm4, %v327_v34  ;;  %v2519_v34 = vor.u32 %v2518_v12, %v2517_v63  ;;  %v20554_v12 = vshll.u32 %v19967_v49, 16 }
 0x141   :  { %15841 = vmatprep.mubr.msk.bf16.mxu1 %vm19612_vm2, %v24553_v29  ;;  %v3292_v58 = vshrl.u32 %v14544_v17, 16  ;;  %v3295_v59 = vshll.u32 %v14544_v17, 16  ;;  %v335_v44 = vsel %vm211_vm5, %v330_v26, %v334_v41  ;;  %v2525_v26 = vrot.slane %v20258_v46, 1  ;;  %24624 = vst [vmem:[#allocation129_spill] sm:$0xff] %v20682_v8 }
 0x142   :  { %v2520_v17 = vsel %vm2513_vm6, %v24608_v55, %v2519_v34  ;;  %24610 = vst [vmem:[#allocation115_spill] sm:$0xff] %v20554_v12  ;;  %v342_v7 = vrot.slane %v20554_v12, 1  ;;  %v20574_v41 = vshll.u32 %v19983_v56, 16  ;;  %v2550_v46 = vrot.slane %v20401_v48, 2 }
 0x143   :  { %v3294_v33 = vrot.slane %v3292_v58, 3  ;;  %v3297_v6 = vrot.slane %v3295_v59, 4 }
 0x144   :  { %v343_v59 = vsel %vm211_vm5, %v338_v4, %v342_v7  ;;  %24612 = vst [vmem:[#allocation117_spill] sm:$0xff] %v20574_v41 }
 0x145   :  { %v3298_v55 = vor.u32 %v3297_v6, %v3294_v33  ;;  %v20571_v33 = vshrl.u32 %v19967_v49, 16 }
 0x147   :  { %16412 = vmatmul.mubr.msk.bf16.gmra.mrb[152].mxu0 %vm534_vm4, %v2079_v10  ;;  %v2521_v10 = vrot.slane %v20230_v60, 1  ;;  %v3417_v63 = vand.u32 %v3298_v55, %v19716_v11  ;;  %24611 = vst [vmem:[#allocation116_spill] sm:$0xff] %v20571_v33  ;;  %v346_v6 = vor.u32 %v20571_v33, %v342_v7  ;;  %v2529_v55 = vrot.slane %v20290_v24, 1 }
 0x148   :  { %16417 = vmatprep.mubr.msk.bf16.mxu0 %vm19612_vm2, %v24553_v29  ;;  %15842 = vmatmul.mubr.msk.bf16.gmra.mrb[56].mxu1 %vm534_vm4, %v335_v44  ;;  %v20592_v7 = vshll.u32 %v19999_v3, 16 }
 0x149   :  { %15845 = vmatprep.mubr.msk.bf16.mxu1 %vm19612_vm2, %v24553_v29  ;;  %v2523_v44 = vor.u32 %v2522_v22, %v2521_v10 }
 0x14a   :  { %24614 = vst [vmem:[#allocation119_spill] sm:$0xff] %v20592_v7 }
 0x14b   :  { %v2524_v58 = vsel %vm2513_vm6, %v2519_v34, %v2523_v44  ;;  %v350_v34 = vrot.slane %v20574_v41, 1 }
 0x14d   :  { %v351_v22 = vsel %vm211_vm5, %v346_v6, %v350_v34 }
 0x14f   :  { %16418 = vmatmul.mubr.msk.bf16.vlgmr.msra.gmra.mrb[0].mxu0 %vm534_vm4, %v2520_v17  ;;  %v2526_v17 = vrot.slane %v20233_v28, 2  ;;  %v2549_v28 = vrot.slane %v20426_v43, 1 }
 0x150   :  { %16421 = vmatprep.mubr.msk.bf16.mxu0 %vm19612_vm2, %v24553_v29  ;;  %16574 = vmatpush3.bf16.msra.mxu0 %v3417_v63  ;;  %v20589_v63 = vshrl.u32 %v19983_v56, 16 }
 0x151   :  { %15846 = vmatmul.mubr.msk.bf16.gmra.mrb[60].mxu1 %vm534_vm4, %v343_v59  ;;  %16731 = vmatprep.subr.bf16.mxu0 %v24553_v29  ;;  %v2527_v10 = vor.u32 %v2526_v17, %v2525_v26  ;;  %v2530_v59 = vrot.slane %v20261_v39, 2  ;;  %v2534_v39 = vrot.slane %v20293_v19, 2  ;;  %v2537_v19 = vrot.slane %v20342_v52, 1 }
 0x152   :  { %15849 = vmatprep.mubr.msk.bf16.mxu1 %vm19612_vm2, %v24553_v29  ;;  %24613 = vst [vmem:[#allocation118_spill] sm:$0xff] %v20589_v63  ;;  %v2542_v52 = vrot.slane %v20345_v47, 2  ;;  %v2545_v47 = vrot.slane %v20398_v53, 1 }
 0x153   :  { %v2528_v4 = vsel %vm2513_vm6, %v2523_v44, %v2527_v10  ;;  %v358_v44 = vrot.slane %v20592_v7, 1  ;;  %v2531_v26 = vor.u32 %v2530_v59, %v2529_v55 }
 0x155   :  { %v2532_v6 = vsel %vm2513_vm6, %v2527_v10, %v2531_v26 }
 0x157   :  { %16422 = vmatmul.mubr.msk.bf16.gmra.mrb[4].mxu0 %vm534_vm4, %v2524_v58  ;;  %v354_v58 = vor.u32 %v20589_v63, %v350_v34  ;;  %v20610_v34 = vshll.u32 %v20015_v16, 16 }
 0x158   :  { %16425 = vmatprep.mubr.msk.bf16.mxu0 %vm19612_vm2, %v24553_v29 }
 0x159   :  { %15850 = vmatmul.mubr.msk.bf16.gmra.mrb[64].mxu1 %vm534_vm4, %v351_v22  ;;  %v359_v17 = vsel %vm211_vm5, %v354_v58, %v358_v44  ;;  %v2533_v22 = vrot.slane %v20314_v62, 1  ;;  %24616 = vst [vmem:[#allocation121_spill] sm:$0xff] %v20610_v34  ;;  %v366_v10 = vrot.slane %v20610_v34, 1  ;;  %v2538_v62 = vrot.slane %v20317_v57, 2 }
 0x15a   :  { %15853 = vmatprep.mubr.msk.bf16.mxu1 %vm19612_vm2, %v24553_v29  ;;  %v2541_v57 = vrot.slane %v20370_v37, 1  ;;  %v2546_v37 = vrot.slane %v20373_v30, 2 }
 0x15b   :  { %v2535_v59 = vor.u32 %v2534_v39, %v2533_v22  ;;  %v2539_v22 = vor.u32 %v2538_v62, %v2537_v19 }
 0x15f   :  { %16426 = vmatmul.mubr.msk.bf16.gmra.mrb[8].mxu0 %vm534_vm4, %v2528_v4  ;;  %v20607_v4 = vshrl.u32 %v19999_v3, 16 }
 0x160   :  { %16429 = vmatprep.mubr.msk.bf16.mxu0 %vm19612_vm2, %v24553_v29 }
 0x161   :  { %15854 = vmatmul.mubr.msk.bf16.gmra.mrb[68].mxu1 %vm534_vm4, %v359_v17  ;;  %24615 = vst [vmem:[#allocation120_spill] sm:$0xff] %v20607_v4  ;;  %v362_v55 = vor.u32 %v20607_v4, %v358_v44  ;;  %v2536_v17 = vsel %vm2513_vm6, %v2531_v26, %v2535_v59  ;;  %v20628_v44 = vshll.u32 %v20031_v23, 16 }
 0x162   :  { %15857 = vmatprep.mubr.msk.bf16.mxu1 %vm19612_vm2, %v24553_v29 }
 0x163   :  { %v367_v58 = vsel %vm211_vm5, %v362_v55, %v366_v10  ;;  %24618 = vst [vmem:[#allocation123_spill] sm:$0xff] %v20628_v44  ;;  %v374_v26 = vrot.slane %v20628_v44, 1 }
 0x167   :  { %16430 = vmatmul.mubr.msk.bf16.gmra.mrb[12].mxu0 %vm534_vm4, %v2532_v6  ;;  %v20625_v6 = vshrl.u32 %v20015_v16, 16 }
 0x168   :  { %16433 = vmatprep.mubr.msk.bf16.mxu0 %vm19612_vm2, %v24553_v29 }
 0x169   :  { %15858 = vmatmul.mubr.msk.bf16.gmra.mrb[72].mxu1 %vm534_vm4, %v367_v58  ;;  %24617 = vst [vmem:[#allocation122_spill] sm:$0xff] %v20625_v6  ;;  %v370_v39 = vor.u32 %v20625_v6, %v366_v10  ;;  %v2540_v58 = vsel %vm2513_vm6, %v2535_v59, %v2539_v22  ;;  %v20646_v10 = vshll.u32 %v20047_v35, 16  ;;  %v2543_v59 = vor.u32 %v2542_v52, %v2541_v57 }
 0x16a   :  { %15861 = vmatprep.mubr.msk.bf16.mxu1 %vm19612_vm2, %v24553_v29 }
 0x16b   :  { %v375_v55 = vsel %vm211_vm5, %v370_v39, %v374_v26  ;;  %24620 = vst [vmem:[#allocation125_spill] sm:$0xff] %v20646_v10  ;;  %v382_v19 = vrot.slane %v20646_v10, 1 }
 0x16f   :  { %16434 = vmatmul.mubr.msk.bf16.gmra.mrb[16].mxu0 %vm534_vm4, %v2536_v17  ;;  %v20643_v17 = vshrl.u32 %v20031_v23, 16 }
 0x170   :  { %16437 = vmatprep.mubr.msk.bf16.mxu0 %vm19612_vm2, %v24553_v29 }
 0x171   :  { %15862 = vmatmul.mubr.msk.bf16.gmra.mrb[76].mxu1 %vm534_vm4, %v375_v55  ;;  %24619 = vst [vmem:[#allocation124_spill] sm:$0xff] %v20643_v17  ;;  %v378_v62 = vor.u32 %v20643_v17, %v374_v26  ;;  %v2544_v55 = vsel %vm2513_vm6, %v2539_v22, %v2543_v59  ;;  %v20664_v26 = vshll.u32 %v20063_v50, 16  ;;  %v2547_v22 = vor.u32 %v2546_v37, %v2545_v47 }
 0x172   :  { %15865 = vmatprep.mubr.msk.bf16.mxu1 %vm19612_vm2, %v24553_v29  ;;  %v398_v37 = vrot.slane %v20682_v8, 1  ;;  %v2551_v47 = vor.u32 %v2550_v46, %v2549_v28 }
 0x173   :  { %v383_v39 = vsel %vm211_vm5, %v378_v62, %v382_v19  ;;  %24622 = vst [vmem:[#allocation127_spill] sm:$0xff] %v20664_v26  ;;  %v390_v57 = vrot.slane %v20664_v26, 1  ;;  %v2548_v24 = vsel %vm2513_vm6, %v2543_v59, %v2547_v22 }
 0x174   :  { %v2552_v59 = vsel %vm2513_vm6, %v2547_v22, %v2551_v47 }
 0x177   :  { %16438 = vmatmul.mubr.msk.bf16.gmra.mrb[20].mxu0 %vm534_vm4, %v2540_v58  ;;  %v20661_v58 = vshrl.u32 %v20047_v35, 16 }
 0x178   :  { %16441 = vmatprep.mubr.msk.bf16.mxu0 %vm19612_vm2, %v24553_v29 }
 0x179   :  { %15866 = vmatmul.mubr.msk.bf16.gmra.mrb[80].mxu1 %vm534_vm4, %v383_v39  ;;  %24621 = vst [vmem:[#allocation126_spill] sm:$0xff] %v20661_v58  ;;  %v386_v52 = vor.u32 %v20661_v58, %v382_v19 }
 0x17a   :  { %15869 = vmatprep.mubr.msk.bf16.mxu1 %vm19612_vm2, %v24553_v29 }
 0x17b   :  { %v391_v62 = vsel %vm211_vm5, %v386_v52, %v390_v57  ;;  %v2553_v52 = vrot.slane %v20454_v31, 1 }
 0x17f   :  { %16442 = vmatmul.mubr.msk.bf16.gmra.mrb[24].mxu0 %vm534_vm4, %v2544_v55  ;;  %v20679_v55 = vshrl.u32 %v20063_v50, 16 }
 0x180   :  { %16445 = vmatprep.mubr.msk.bf16.mxu0 %vm19612_vm2, %v24553_v29 }
 0x181   :  { %15870 = vmatmul.mubr.msk.bf16.gmra.mrb[84].mxu1 %vm534_vm4, %v391_v62  ;;  %24623 = vst [vmem:[#allocation128_spill] sm:$0xff] %v20679_v55  ;;  %v2554_v62 = vrot.slane %v20429_v38, 2 }
 0x182   :  { %v2283_v39 = vpop.f32.mrb[76].mxu0  ;;  %15873 = vmatprep.mubr.msk.bf16.mxu1 %vm19612_vm2, %v24553_v29 }
 0x183   :  { %v16337_v30 = vpop.f32.mrb[77].mxu0  ;;  %v2555_v22 = vor.u32 %v2554_v62, %v2553_v52 }
 0x184   :  { %v2285_v53 = vpop.f32.mrb[78].mxu0  ;;  %v394_v30 = vor.u32 %v20679_v55, %v390_v57  ;;  %v20700_v57 = vshll.u32 %v20095_v18, 16 }
 0x185   :  { %v16338_v19 = vpop.f32.mrb[79].mxu0 }
 0x186   :  { %v399_v53 = vsel %vm211_vm5, %v394_v30, %v398_v37  ;;  %24626 = vst [vmem:[#allocation131_spill] sm:$0xff] %v20700_v57  ;;  %v406_v28 = vrot.slane %v20700_v57, 1  ;;  %v2556_v19 = vsel %vm2513_vm6, %v2551_v47, %v2555_v22  ;;  %v2557_v30 = vrot.slane %v20485_v14, 1 }
 0x187   :  { %16446 = vmatmul.mubr.msk.bf16.gmra.mrb[28].mxu0 %vm534_vm4, %v2548_v24  ;;  %v20697_v24 = vshrl.u32 %v20079_v61, 16  ;;  %v2562_v14 = vrot.slane %v20488_v15, 2  ;;  %v2565_v15 = vrot.slane %v20530_v13, 1  ;;  %v2570_v13 = vrot.slane %v20533_v32, 2 }
 0x188   :  { %16449 = vmatprep.mubr.msk.bf16.mxu0 %vm19612_vm2, %v24553_v29  ;;  %v2573_v32 = vrot.slane %v20571_v33, 1  ;;  %v2578_v33 = vrot.slane %v20574_v41, 2  ;;  %v2581_v41 = vrot.slane %v20607_v4, 1  ;;  %v2586_v4 = vrot.slane %v20610_v34, 2 }
 0x189   :  { %15874 = vmatmul.mubr.msk.bf16.gmra.mrb[88].mxu1 %vm534_vm4, %v399_v53  ;;  %24625 = vst [vmem:[#allocation130_spill] sm:$0xff] %v20697_v24  ;;  %v402_v46 = vor.u32 %v20697_v24, %v398_v37  ;;  %v2558_v53 = vrot.slane %v20457_v25, 2  ;;  %v20718_v37 = vshll.u32 %v20111_v36, 16  ;;  %v2561_v25 = vrot.slane %v20504_v20, 1 }
 0x18a   :  { %15877 = vmatprep.mubr.msk.bf16.mxu1 %vm19612_vm2, %v24553_v29  ;;  %v2566_v20 = vrot.slane %v20507_v42, 2  ;;  %v2569_v42 = vrot.slane %v20551_v45, 1  ;;  %v2574_v45 = vrot.slane %v20554_v12, 2  ;;  %v2577_v12 = vrot.slane %v20589_v63, 1 }
 0x18b   :  { %v407_v39 = vsel %vm211_vm5, %v402_v46, %v406_v28  ;;  %24628 = vst [vmem:[#allocation133_spill] sm:$0xff] %v20718_v37  ;;  %v414_v47 = vrot.slane %v20718_v37, 1  ;;  %v2559_v62 = vor.u32 %v2558_v53, %v2557_v30  ;;  %v2563_v53 = vor.u32 %v2562_v14, %v2561_v25 }
 0x18c   :  { %v2582_v63 = vrot.slane %v20592_v7, 2  ;;  %v2585_v7 = vrot.slane %v20625_v6, 1  ;;  %v2589_v34 = vrot.slane %v20643_v17, 1  ;;  %v2590_v6 = vrot.slane %v20628_v44, 2 }
 0x18d   :  { %v2593_v44 = vrot.slane %v20661_v58, 1  ;;  %v2594_v17 = vrot.slane %v20646_v10, 2  ;;  %v2597_v10 = vrot.slane %v20679_v55, 1  ;;  %v2598_v58 = vrot.slane %v20664_v26, 2 }
 0x18e   :  { %v2601_v26 = vrot.slane %v20697_v24, 1  ;;  %v2602_v55 = vrot.slane %v20682_v8, 2  ;;  %v2606_v24 = vrot.slane %v20700_v57, 2 }
 0x18f   :  { %16450 = vmatmul.mubr.msk.bf16.gmra.mrb[32].mxu0 %vm534_vm4, %v2552_v59  ;;  %v20715_v59 = vshrl.u32 %v20095_v18, 16 }
 0x190   :  { %16453 = vmatprep.mubr.msk.bf16.mxu0 %vm19612_vm2, %v24553_v29 }
 0x191   :  { %15878 = vmatmul.mubr.msk.bf16.gmra.mrb[92].mxu1 %vm534_vm4, %v407_v39  ;;  %24627 = vst [vmem:[#allocation132_spill] sm:$0xff] %v20715_v59  ;;  %v410_v52 = vor.u32 %v20715_v59, %v406_v28  ;;  %v2560_v39 = vsel %vm2513_vm6, %v2555_v22, %v2559_v62  ;;  %v20736_v28 = vshll.u32 %v20133_v27, 16  ;;  %v2605_v8 = vrot.slane %v20715_v59, 1 }
 0x192   :  { %15881 = vmatprep.mubr.msk.bf16.mxu1 %vm19612_vm2, %v24553_v29  ;;  %v2610_v59 = vrot.slane %v20718_v37, 2 }
 0x193   :  { %v415_v46 = vsel %vm211_vm5, %v410_v52, %v414_v47  ;;  %v422_v22 = vrot.slane %v20736_v28, 1 }
 0x197   :  { %16454 = vmatmul.mubr.msk.bf16.gmra.mrb[36].mxu0 %vm534_vm4, %v2556_v19  ;;  %v20733_v19 = vshrl.u32 %v20111_v36, 16 }
 0x198   :  { %16457 = vmatprep.mubr.msk.bf16.mxu0 %vm19612_vm2, %v24553_v29 }
 0x199   :  { %15882 = vmatmul.mubr.msk.bf16.gmra.mrb[96].mxu1 %vm534_vm4, %v415_v46  ;;  %24629 = vst [vmem:[#allocation134_spill] sm:$0xff] %v20733_v19  ;;  %v418_v30 = vor.u32 %v20733_v19, %v414_v47  ;;  %v2564_v46 = vsel %vm2513_vm6, %v2559_v62, %v2563_v53  ;;  %v20754_v47 = vshll.u32 %v20153_v0, 16  ;;  %v2567_v62 = vor.u32 %v2566_v20, %v2565_v15 }
 0x19a   :  { %15885 = vmatprep.mubr.msk.bf16.mxu1 %vm19612_vm2, %v24553_v29  ;;  %v2609_v57 = vrot.slane %v20733_v19, 1  ;;  %v2614_v19 = vrot.slane %v20736_v28, 2 }
 0x19b   :  { %v423_v52 = vsel %vm211_vm5, %v418_v30, %v422_v22  ;;  %v430_v25 = vrot.slane %v20754_v47, 1 }
 0x19f   :  { %16458 = vmatmul.mubr.msk.bf16.gmra.mrb[40].mxu0 %vm534_vm4, %v2560_v39  ;;  %v20751_v39 = vshrl.u32 %v20133_v27, 16 }
 0x1a0   :  { %16461 = vmatprep.mubr.msk.bf16.mxu0 %vm19612_vm2, %v24553_v29 }
 0x1a1   :  { %15886 = vmatmul.mubr.msk.bf16.gmra.mrb[100].mxu1 %vm534_vm4, %v423_v52  ;;  %v426_v14 = vor.u32 %v20751_v39, %v422_v22  ;;  %v2568_v52 = vsel %vm2513_vm6, %v2563_v53, %v2567_v62  ;;  %v20772_v22 = vshll.u32 %v20174_v21, 16  ;;  %v2571_v53 = vor.u32 %v2570_v13, %v2569_v42 }
 0x1a2   :  { %15889 = vmatprep.mubr.msk.bf16.mxu1 %vm19612_vm2, %v24553_v29  ;;  %v2613_v37 = vrot.slane %v20751_v39, 1 }
 0x1a3   :  { %v431_v30 = vsel %vm211_vm5, %v426_v14, %v430_v25  ;;  %v438_v20 = vrot.slane %v20772_v22, 1 }
 0x1a7   :  { %16462 = vmatmul.mubr.msk.bf16.gmra.mrb[44].mxu0 %vm534_vm4, %v2564_v46  ;;  %v20769_v46 = vshrl.u32 %v20153_v0, 16 }
 0x1a8   :  { %16465 = vmatprep.mubr.msk.bf16.mxu0 %vm19612_vm2, %v24553_v29 }
 0x1a9   :  { %15890 = vmatmul.mubr.msk.bf16.gmra.mrb[104].mxu1 %vm534_vm4, %v431_v30  ;;  %v434_v15 = vor.u32 %v20769_v46, %v430_v25  ;;  %v2572_v30 = vsel %vm2513_vm6, %v2567_v62, %v2571_v53  ;;  %v20790_v25 = vshll.u32 %v20198_v51, 16  ;;  %v2575_v62 = vor.u32 %v2574_v45, %v2573_v32 }
 0x1aa   :  { %15893 = vmatprep.mubr.msk.bf16.mxu1 %vm19612_vm2, %v24553_v29 }
 0x1ab   :  { %v439_v14 = vsel %vm211_vm5, %v434_v15, %v438_v20  ;;  %v446_v42 = vrot.slane %v20790_v25, 1 }
 0x1af   :  { %16466 = vmatmul.mubr.msk.bf16.gmra.mrb[48].mxu0 %vm534_vm4, %v2568_v52  ;;  %v20787_v52 = vshrl.u32 %v20174_v21, 16 }
 0x1b0   :  { %16469 = vmatprep.mubr.msk.bf16.mxu0 %vm19612_vm2, %v24553_v29 }
 0x1b1   :  { %15894 = vmatmul.mubr.msk.bf16.gmra.mrb[108].mxu1 %vm534_vm4, %v439_v14  ;;  %v442_v13 = vor.u32 %v20787_v52, %v438_v20  ;;  %v2576_v14 = vsel %vm2513_vm6, %v2571_v53, %v2575_v62  ;;  %v20808_v20 = vshll.u32 %v20226_v1, 16  ;;  %v2579_v53 = vor.u32 %v2578_v33, %v2577_v12 }
 0x1b2   :  { %15897 = vmatprep.mubr.msk.bf16.mxu1 %vm19612_vm2, %v24553_v29 }
 0x1b3   :  { %v447_v15 = vsel %vm211_vm5, %v442_v13, %v446_v42  ;;  %v454_v32 = vrot.slane %v20808_v20, 1 }
 0x1b7   :  { %16470 = vmatmul.mubr.msk.bf16.gmra.mrb[52].mxu0 %vm534_vm4, %v2572_v30  ;;  %v20805_v30 = vshrl.u32 %v20198_v51, 16 }
 0x1b8   :  { %16473 = vmatprep.mubr.msk.bf16.mxu0 %vm19612_vm2, %v24553_v29 }
 0x1b9   :  { %15898 = vmatmul.mubr.msk.bf16.gmra.mrb[112].mxu1 %vm534_vm4, %v447_v15  ;;  %v450_v45 = vor.u32 %v20805_v30, %v446_v42  ;;  %v2580_v15 = vsel %vm2513_vm6, %v2575_v62, %v2579_v53  ;;  %v20826_v42 = vshll.u32 %v20254_v2, 16  ;;  %v2583_v62 = vor.u32 %v2582_v63, %v2581_v41 }
 0x1ba   :  { %15901 = vmatprep.mubr.msk.bf16.mxu1 %vm19612_vm2, %v24553_v29 }
 0x1bb   :  { %v455_v13 = vsel %vm211_vm5, %v450_v45, %v454_v32  ;;  %24630 = vst [vmem:[#allocation135_spill] sm:$0xff] %v20826_v42  ;;  %v462_v33 = vrot.slane %v20826_v42, 1 }
 0x1bf   :  { %16474 = vmatmul.mubr.msk.bf16.gmra.mrb[56].mxu0 %vm534_vm4, %v2576_v14  ;;  %v20823_v14 = vshrl.u32 %v20226_v1, 16 }
 0x1c0   :  { %16477 = vmatprep.mubr.msk.bf16.mxu0 %vm19612_vm2, %v24553_v29 }
 0x1c1   :  { %15902 = vmatmul.mubr.msk.bf16.gmra.mrb[116].mxu1 %vm534_vm4, %v455_v13  ;;  %v458_v12 = vor.u32 %v20823_v14, %v454_v32  ;;  %v2584_v13 = vsel %vm2513_vm6, %v2579_v53, %v2583_v62  ;;  %v20844_v32 = vshll.u32 %v20282_v9, 16  ;;  %v2587_v53 = vor.u32 %v2586_v4, %v2585_v7 }
 0x1c2   :  { %15905 = vmatprep.mubr.msk.bf16.mxu1 %vm19612_vm2, %v24553_v29 }
 0x1c3   :  { %v463_v45 = vsel %vm211_vm5, %v458_v12, %v462_v33  ;;  %24632 = vst [vmem:[#allocation137_spill] sm:$0xff] %v20844_v32  ;;  %v470_v63 = vrot.slane %v20844_v32, 1 }
 0x1c7   :  { %16478 = vmatmul.mubr.msk.bf16.gmra.mrb[60].mxu0 %vm534_vm4, %v2580_v15  ;;  %v20841_v15 = vshrl.u32 %v20254_v2, 16 }
 0x1c8   :  { %16481 = vmatprep.mubr.msk.bf16.mxu0 %vm19612_vm2, %v24553_v29 }
 0x1c9   :  { %15906 = vmatmul.mubr.msk.bf16.gmra.mrb[120].mxu1 %vm534_vm4, %v463_v45  ;;  %24631 = vst [vmem:[#allocation136_spill] sm:$0xff] %v20841_v15  ;;  %v466_v41 = vor.u32 %v20841_v15, %v462_v33  ;;  %v2588_v45 = vsel %vm2513_vm6, %v2583_v62, %v2587_v53  ;;  %v20862_v33 = vshll.u32 %v20310_v5, 16  ;;  %v2591_v62 = vor.u32 %v2590_v6, %v2589_v34 }
 0x1ca   :  { %15909 = vmatprep.mubr.msk.bf16.mxu1 %vm19612_vm2, %v24553_v29 }
 0x1cb   :  { %v471_v12 = vsel %vm211_vm5, %v466_v41, %v470_v63  ;;  %24634 = vst [vmem:[#allocation139_spill] sm:$0xff] %v20862_v33  ;;  %v478_v4 = vrot.slane %v20862_v33, 1 }
 0x1cf   :  { %16482 = vmatmul.mubr.msk.bf16.gmra.mrb[64].mxu0 %vm534_vm4, %v2584_v13  ;;  %v20859_v13 = vshrl.u32 %v20282_v9, 16 }
 0x1d0   :  { %16485 = vmatprep.mubr.msk.bf16.mxu0 %vm19612_vm2, %v24553_v29 }
 0x1d1   :  { %15910 = vmatmul.mubr.msk.bf16.gmra.mrb[124].mxu1 %vm534_vm4, %v471_v12  ;;  %24633 = vst [vmem:[#allocation138_spill] sm:$0xff] %v20859_v13  ;;  %v474_v7 = vor.u32 %v20859_v13, %v470_v63  ;;  %v2592_v12 = vsel %vm2513_vm6, %v2587_v53, %v2591_v62  ;;  %v20880_v63 = vshll.u32 %v20338_v54, 16  ;;  %v2595_v53 = vor.u32 %v2594_v17, %v2593_v44 }
 0x1d2   :  { %15913 = vmatprep.mubr.msk.bf16.mxu1 %vm19612_vm2, %v24553_v29 }
 0x1d3   :  { %v479_v41 = vsel %vm211_vm5, %v474_v7, %v478_v4  ;;  %24636 = vst [vmem:[#allocation141_spill] sm:$0xff] %v20880_v63  ;;  %v486_v6 = vrot.slane %v20880_v63, 1 }
 0x1d7   :  { %16486 = vmatmul.mubr.msk.bf16.gmra.mrb[68].mxu0 %vm534_vm4, %v2588_v45  ;;  %v20877_v45 = vshrl.u32 %v20310_v5, 16 }
 0x1d8   :  { %16489 = vmatprep.mubr.msk.bf16.mxu0 %vm19612_vm2, %v24553_v29 }
 0x1d9   :  { %15914 = vmatmul.mubr.msk.bf16.gmra.mrb[128].mxu1 %vm534_vm4, %v479_v41  ;;  %24635 = vst [vmem:[#allocation140_spill] sm:$0xff] %v20877_v45  ;;  %v482_v34 = vor.u32 %v20877_v45, %v478_v4  ;;  %v2596_v41 = vsel %vm2513_vm6, %v2591_v62, %v2595_v53  ;;  %v24638_v4 = vld [vmem:[#allocation89_spill] sm:$0xff]  ;;  %v2599_v62 = vor.u32 %v2598_v58, %v2597_v10 }
 0x1da   :  { %15917 = vmatprep.mubr.msk.bf16.mxu1 %vm19612_vm2, %v24553_v29  ;;  %v20898_v38 = vshll.u32 %v24638_v4, 16 }
 0x1db   :  { %v487_v7 = vsel %vm211_vm5, %v482_v34, %v486_v6 }
 0x1dc   :  { %v494_v17 = vrot.slane %v20898_v38, 1 }
 0x1df   :  { %16490 = vmatmul.mubr.msk.bf16.gmra.mrb[72].mxu0 %vm534_vm4, %v2592_v12  ;;  %v20895_v12 = vshrl.u32 %v20338_v54, 16 }
 0x1e0   :  { %16493 = vmatprep.mubr.msk.bf16.mxu0 %vm19612_vm2, %v24553_v29 }
 0x1e1   :  { %15918 = vmatmul.mubr.msk.bf16.gmra.mrb[132].mxu1 %vm534_vm4, %v487_v7  ;;  %24637 = vst [vmem:[#allocation142_spill] sm:$0xff] %v20895_v12  ;;  %v490_v44 = vor.u32 %v20895_v12, %v486_v6  ;;  %v2600_v7 = vsel %vm2513_vm6, %v2595_v53, %v2599_v62  ;;  %v24639_v6 = vld [vmem:[#allocation93_spill] sm:$0xff]  ;;  %v2603_v53 = vor.u32 %v2602_v55, %v2601_v26 }
 0x1e2   :  { %15921 = vmatprep.mubr.msk.bf16.mxu1 %vm19612_vm2, %v24553_v29  ;;  %v20916_v31 = vshll.u32 %v24639_v6, 16 }
 0x1e3   :  { %v495_v34 = vsel %vm211_vm5, %v490_v44, %v494_v17 }
 0x1e4   :  { %v502_v58 = vrot.slane %v20916_v31, 1 }
 0x1e7   :  { %16494 = vmatmul.mubr.msk.bf16.gmra.mrb[156].mxu0 %vm534_vm4, %v2596_v41  ;;  %v20913_v41 = vshrl.u32 %v24638_v4, 16 }
 0x1e8   :  { %16497 = vmatprep.mubr.msk.bf16.mxu0 %vm19612_vm2, %v24553_v29 }
 0x1e9   :  { %15922 = vmatmul.mubr.msk.bf16.gmra.mrb[136].mxu1 %vm534_vm4, %v495_v34  ;;  %v498_v10 = vor.u32 %v20913_v41, %v494_v17  ;;  %v2604_v34 = vsel %vm2513_vm6, %v2599_v62, %v2603_v53  ;;  %v24640_v17 = vld [vmem:[#allocation97_spill] sm:$0xff]  ;;  %v2607_v62 = vor.u32 %v2606_v24, %v2605_v8 }
 0x1ea   :  { %15925 = vmatprep.mubr.msk.bf16.mxu1 %vm19612_vm2, %v24553_v29  ;;  %v20934_v48 = vshll.u32 %v24640_v17, 16 }
 0x1eb   :  { %v503_v44 = vsel %vm211_vm5, %v498_v10, %v502_v58 }
 0x1ec   :  { %24641 = vst [vmem:[#allocation143_spill] sm:$0xff] %v20934_v48  ;;  %v510_v55 = vrot.slane %v20934_v48, 1 }
 0x1ef   :  { %16498 = vmatmul.mubr.msk.bf16.gmra.mrb[80].mxu0 %vm534_vm4, %v2600_v7  ;;  %v20931_v7 = vshrl.u32 %v24639_v6, 16 }
 0x1f0   :  { %16501 = vmatprep.mubr.msk.bf16.mxu0 %vm19612_vm2, %v24553_v29 }
 0x1f1   :  { %15926 = vmatmul.mubr.msk.bf16.gmra.mrb[140].mxu1 %vm534_vm4, %v503_v44  ;;  %v506_v26 = vor.u32 %v20931_v7, %v502_v58  ;;  %v2608_v44 = vsel %vm2513_vm6, %v2603_v53, %v2607_v62  ;;  %v24642_v58 = vld [vmem:[#allocation101_spill] sm:$0xff]  ;;  %v2611_v53 = vor.u32 %v2610_v59, %v2609_v57  ;;  %v2615_v57 = vor.u32 %v2614_v19, %v2613_v37 }
 0x1f2   :  { %15929 = vmatprep.mubr.msk.bf16.mxu1 %vm19612_vm2, %v24553_v29  ;;  %v20952_v43 = vshll.u32 %v24642_v58, 16 }
 0x1f3   :  { %v511_v10 = vsel %vm211_vm5, %v506_v26, %v510_v55 }
 0x1f4   :  { %24643 = vst [vmem:[#allocation144_spill] sm:$0xff] %v20952_v43  ;;  %v518_v24 = vrot.slane %v20952_v43, 1 }
 0x1f7   :  { %16502 = vmatmul.mubr.msk.bf16.gmra.mrb[84].mxu0 %vm534_vm4, %v2604_v34  ;;  %v20949_v34 = vshrl.u32 %v24640_v17, 16 }
 0x1f8   :  { %16505 = vmatprep.mubr.msk.bf16.mxu0 %vm19612_vm2, %v24553_v29 }
 0x1f9   :  { %15930 = vmatmul.mubr.msk.bf16.gmra.mrb[144].mxu1 %vm534_vm4, %v511_v10  ;;  %v514_v8 = vor.u32 %v20949_v34, %v510_v55  ;;  %v2612_v10 = vsel %vm2513_vm6, %v2607_v62, %v2611_v53  ;;  %v20969_v55 = vshrl.u32 %v24642_v58, 16  ;;  %v2616_v62 = vsel %vm2513_vm6, %v2611_v53, %v2615_v57 }
 0x1fa   :  { %15933 = vmatprep.mubr.msk.bf16.mxu1 %vm19612_vm2, %v24553_v29  ;;  %v2621_v53 = vrot.slane %v20787_v52, 1 }
 0x1fb   :  { %v519_v26 = vsel %vm211_vm5, %v514_v8, %v518_v24  ;;  %24644 = vst [vmem:[#allocation145_spill] sm:$0xff] %v20969_v55  ;;  %v522_v59 = vor.u32 %v20969_v55, %v518_v24  ;;  %v2618_v8 = vrot.slane %v20754_v47, 2 }
 0x1ff   :  { %16506 = vmatmul.mubr.msk.bf16.gmra.mrb[88].mxu0 %vm534_vm4, %v2608_v44  ;;  %v2617_v44 = vrot.slane %v20769_v46, 1 }
 0x200   :  { %16509 = vmatprep.mubr.msk.bf16.mxu0 %vm19612_vm2, %v24553_v29 }
 0x201   :  { %15934 = vmatmul.mubr.msk.bf16.gmra.mrb[148].mxu1 %vm534_vm4, %v519_v26  ;;  %v19583_v26 = vld [vmem:[%s24305_s1] sm:$0xf]  ;;  %v2619_v19 = vor.u32 %v2618_v8, %v2617_v44  ;;  %v2625_v8 = vrot.slane %v20805_v30, 1 }
 0x202   :  { %15937 = vmatprep.mubr.msk.bf16.mxu1 %vm19612_vm2, %v24553_v29  ;;  %v1079_v37 = vand.u32 %v19583_v26, %v19716_v11  ;;  %v2626_v26 = vrot.slane %v20790_v25, 2 }
 0x203   :  { %v2620_v24 = vsel %vm2513_vm6, %v2615_v57, %v2619_v19 }
 0x204   :  { %15942 = vmatpush3.bf16.msra.mxu1 %v1079_v37  ;;  %v24647_v37 = vld [vmem:[#allocation9_spill] sm:$0xff] }
 0x205   :  { %18041 = vmatprep.subr.bf16.mxu1 %v24553_v29 }
 0x207   :  { %16510 = vmatmul.mubr.msk.bf16.gmra.mrb[92].mxu0 %vm534_vm4, %v2612_v10  ;;  %v2622_v10 = vrot.slane %v20772_v22, 2 }
 0x208   :  { %16513 = vmatprep.mubr.msk.bf16.mxu0 %vm19612_vm2, %v24553_v29 }
 0x209   :  { %15938 = vmatmul.mubr.msk.bf16.gmra.mrb[152].mxu1 %vm534_vm4, %v522_v59  ;;  %v24645_v59 = vld [vmem:[#allocation8_spill] sm:$0xff]  ;;  %v2623_v44 = vor.u32 %v2622_v10, %v2621_v53  ;;  %v2630_v10 = vrot.slane %v20808_v20, 2 }
 0x20a   :  { %15943 = vmatprep.mubr.msk.bf16.mxu1 %vm19612_vm2, %v24553_v29 }
 0x20b   :  { %v2624_v57 = vsel %vm2513_vm6, %v2619_v19, %v2623_v44  ;;  %v2629_v19 = vrot.slane %v20823_v14, 1 }
 0x20f   :  { %16514 = vmatmul.mubr.msk.bf16.gmra.mrb[96].mxu0 %vm534_vm4, %v2616_v62  ;;  %v24646_v62 = vld [vmem:[#allocation10_spill] sm:$0xff] }
 0x210   :  { %16517 = vmatprep.mubr.msk.bf16.mxu0 %vm19612_vm2, %v24553_v29 }
 0x211   :  { %15944 = vmatmul.mubr.msk.bf16.vlgmr.msra.gmra.mrb[0].mxu1 %vm534_vm4, %v24645_v59  ;;  %v24648_v59 = vld [vmem:[#allocation11_spill] sm:$0xff] }
 0x212   :  { %15947 = vmatprep.mubr.msk.bf16.mxu1 %vm19612_vm2, %v24553_v29  ;;  %18042 = vmatpush3.bf16.msra.mxu1 %v24646_v62  ;;  %v2631_v62 = vor.u32 %v2630_v10, %v2629_v19  ;;  %v2638_v10 = vrot.slane %v20844_v32, 2  ;;  %v2650_v32 = vrot.slane %v20898_v38, 2 }
 0x217   :  { %16518 = vmatmul.mubr.msk.bf16.gmra.mrb[100].mxu0 %vm534_vm4, %v2620_v24  ;;  %v2627_v24 = vor.u32 %v2626_v26, %v2625_v8  ;;  %v2634_v8 = vrot.slane %v20826_v42, 2  ;;  %v24649_v26 = vld [vmem:[#allocation13_spill] sm:$0xff] }
 0x218   :  { %16521 = vmatprep.mubr.msk.bf16.mxu0 %vm19612_vm2, %v24553_v29  ;;  %v24653_v42 = vld [vmem:[#allocation21_spill] sm:$0xff] }
 0x219   :  { %15948 = vmatmul.mubr.msk.bf16.gmra.mrb[4].mxu1 %vm534_vm4, %v24647_v37  ;;  %v2628_v53 = vsel %vm2513_vm6, %v2623_v44, %v2627_v24  ;;  %v2633_v44 = vrot.slane %v20841_v15, 1  ;;  %v24650_v15 = vld [vmem:[#allocation15_spill] sm:$0xff] }
 0x21a   :  { %15951 = vmatprep.mubr.msk.bf16.mxu1 %vm19612_vm2, %v24553_v29 }
 0x21f   :  { %16522 = vmatmul.mubr.msk.bf16.gmra.mrb[104].mxu0 %vm534_vm4, %v2624_v57  ;;  %v2632_v57 = vsel %vm2513_vm6, %v2627_v24, %v2631_v62  ;;  %v2637_v24 = vrot.slane %v20859_v13, 1  ;;  %v24651_v13 = vld [vmem:[#allocation17_spill] sm:$0xff] }
 0x220   :  { %16525 = vmatprep.mubr.msk.bf16.mxu0 %vm19612_vm2, %v24553_v29 }
 0x221   :  { %15952 = vmatmul.mubr.msk.bf16.gmra.mrb[8].mxu1 %vm534_vm4, %v24648_v59 }
 0x222   :  { %15955 = vmatprep.mubr.msk.bf16.mxu1 %vm19612_vm2, %v24553_v29 }
 0x227   :  { %16526 = vmatmul.mubr.msk.bf16.gmra.mrb[108].mxu0 %vm534_vm4, %v2628_v53  ;;  %v2635_v53 = vor.u32 %v2634_v8, %v2633_v44  ;;  %v2642_v8 = vrot.slane %v20862_v33, 2 }
 0x228   :  { %16529 = vmatprep.mubr.msk.bf16.mxu0 %vm19612_vm2, %v24553_v29 }
 0x229   :  { %15956 = vmatmul.mubr.msk.bf16.gmra.mrb[12].mxu1 %vm534_vm4, %v24649_v26  ;;  %v2636_v19 = vsel %vm2513_vm6, %v2631_v62, %v2635_v53  ;;  %v2641_v62 = vrot.slane %v20877_v45, 1  ;;  %v24652_v45 = vld [vmem:[#allocation19_spill] sm:$0xff] }
 0x22a   :  { %15959 = vmatprep.mubr.msk.bf16.mxu1 %vm19612_vm2, %v24553_v29 }
 0x22f   :  { %16530 = vmatmul.mubr.msk.bf16.gmra.mrb[112].mxu0 %vm534_vm4, %v2632_v57  ;;  %v2639_v57 = vor.u32 %v2638_v10, %v2637_v24  ;;  %v2646_v10 = vrot.slane %v20880_v63, 2  ;;  %v2649_v63 = vrot.slane %v20913_v41, 1 }
 0x230   :  { %16533 = vmatprep.mubr.msk.bf16.mxu0 %vm19612_vm2, %v24553_v29 }
 0x231   :  { %15960 = vmatmul.mubr.msk.bf16.gmra.mrb[16].mxu1 %vm534_vm4, %v24650_v15  ;;  %v2640_v44 = vsel %vm2513_vm6, %v2635_v53, %v2639_v57  ;;  %v2645_v53 = vrot.slane %v20895_v12, 1 }
 0x232   :  { %15963 = vmatprep.mubr.msk.bf16.mxu1 %vm19612_vm2, %v24553_v29 }
 0x237   :  { %16534 = vmatmul.mubr.msk.bf16.gmra.mrb[116].mxu0 %vm534_vm4, %v2636_v19  ;;  %v2643_v19 = vor.u32 %v2642_v8, %v2641_v62 }
 0x238   :  { %16537 = vmatprep.mubr.msk.bf16.mxu0 %vm19612_vm2, %v24553_v29 }
 0x239   :  { %15964 = vmatmul.mubr.msk.bf16.gmra.mrb[20].mxu1 %vm534_vm4, %v24651_v13  ;;  %v2644_v24 = vsel %vm2513_vm6, %v2639_v57, %v2643_v19 }
 0x23a   :  { %15967 = vmatprep.mubr.msk.bf16.mxu1 %vm19612_vm2, %v24553_v29 }
 0x23f   :  { %16538 = vmatmul.mubr.msk.bf16.gmra.mrb[120].mxu0 %vm534_vm4, %v2640_v44  ;;  %v2647_v44 = vor.u32 %v2646_v10, %v2645_v53  ;;  %v2654_v53 = vrot.slane %v20916_v31, 2  ;;  %v24654_v10 = vld [vmem:[#allocation23_spill] sm:$0xff] }
 0x240   :  { %16541 = vmatprep.mubr.msk.bf16.mxu0 %vm19612_vm2, %v24553_v29 }
 0x241   :  { %15968 = vmatmul.mubr.msk.bf16.gmra.mrb[24].mxu1 %vm534_vm4, %v24652_v45  ;;  %v2648_v12 = vsel %vm2513_vm6, %v2643_v19, %v2647_v44  ;;  %v2653_v19 = vrot.slane %v20931_v7, 1 }
 0x242   :  { %15971 = vmatprep.mubr.msk.bf16.mxu1 %vm19612_vm2, %v24553_v29 }
 0x244   :  { %v844_v33 = vpop.f32.mrb[76].mxu1 }
 0x245   :  { %v15863_v62 = vpop.f32.mrb[77].mxu1  ;;  %v2651_v33 = vor.u32 %v2650_v32, %v2649_v63  ;;  %v2657_v63 = vrot.slane %v20949_v34, 1 }
 0x246   :  { %v846_v8 = vpop.f32.mrb[78].mxu1  ;;  %v24655_v62 = vld [vmem:[#allocation25_spill] sm:$0xff] }
 0x247   :  { %16542 = vmatmul.mubr.msk.bf16.gmra.mrb[124].mxu0 %vm534_vm4, %v2644_v24  ;;  %v15864_v57 = vpop.f32.mrb[79].mxu1  ;;  %v2652_v24 = vsel %vm2513_vm6, %v2647_v44, %v2651_v33  ;;  %v2658_v44 = vrot.slane %v20934_v48, 2  ;;  %v24658_v48 = vld [vmem:[#allocation29_spill] sm:$0xff] }
 0x248   :  { %16545 = vmatprep.mubr.msk.bf16.mxu0 %vm19612_vm2, %v24553_v29 }
 0x249   :  { %15972 = vmatmul.mubr.msk.bf16.gmra.mrb[28].mxu1 %vm534_vm4, %v24653_v42  ;;  %v2659_v8 = vor.u32 %v2658_v44, %v2657_v63 }
 0x24a   :  { %15975 = vmatprep.mubr.msk.bf16.mxu1 %vm19612_vm2, %v24553_v29 }
 0x24f   :  { %16546 = vmatmul.mubr.msk.bf16.gmra.mrb[128].mxu0 %vm534_vm4, %v2648_v12  ;;  %v2655_v12 = vor.u32 %v2654_v53, %v2653_v19  ;;  %v24656_v19 = vld [vmem:[#allocation27_spill] sm:$0xff] }
 0x250   :  { %16549 = vmatprep.mubr.msk.bf16.mxu0 %vm19612_vm2, %v24553_v29 }
 0x251   :  { %15976 = vmatmul.mubr.msk.bf16.gmra.mrb[32].mxu1 %vm534_vm4, %v24654_v10  ;;  %v2656_v32 = vsel %vm2513_vm6, %v2651_v33, %v2655_v12  ;;  %v2660_v57 = vsel %vm2513_vm6, %v2655_v12, %v2659_v8  ;;  %v2661_v33 = vrot.slane %v20969_v55, 1 }
 0x252   :  { %15979 = vmatprep.mubr.msk.bf16.mxu1 %vm19612_vm2, %v24553_v29 }
 0x257   :  { %16550 = vmatmul.mubr.msk.bf16.gmra.mrb[132].mxu0 %vm534_vm4, %v2652_v24  ;;  %v2662_v24 = vrot.slane %v20952_v43, 2 }
 0x258   :  { %16553 = vmatprep.mubr.msk.bf16.mxu0 %vm19612_vm2, %v24553_v29 }
 0x259   :  { %15980 = vmatmul.mubr.msk.bf16.gmra.mrb[36].mxu1 %vm534_vm4, %v24655_v62  ;;  %v2663_v53 = vor.u32 %v2662_v24, %v2661_v33  ;;  %v24659_v33 = vld [vmem:[#allocation31_spill] sm:$0xff]  ;;  %v24660_v24 = vld [vmem:[#allocation33_spill] sm:$0xff] }
 0x25a   :  { %15983 = vmatprep.mubr.msk.bf16.mxu1 %vm19612_vm2, %v24553_v29 }
 0x25b   :  { %v2664_v44 = vsel %vm2513_vm6, %v2659_v8, %v2663_v53 }
 0x25f   :  { %16554 = vmatmul.mubr.msk.bf16.gmra.mrb[136].mxu0 %vm534_vm4, %v2656_v32  ;;  %v24657_v32 = vld [vmem:[#allocation106_spill] sm:$0xff] }
 0x260   :  { %16557 = vmatprep.mubr.msk.bf16.mxu0 %vm19612_vm2, %v24553_v29  ;;  %v24459_v63 = vshrl.u32 %v24657_v32, 16  ;;  %v24458_v12 = vshll.u32 %v24657_v32, 16 }
 0x261   :  { %15984 = vmatmul.mubr.msk.bf16.gmra.mrb[40].mxu1 %vm534_vm4, %v24656_v19 }
 0x262   :  { %15987 = vmatprep.mubr.msk.bf16.mxu1 %vm19612_vm2, %v24553_v29  ;;  %v2668_v43 = vrot.slane %v24459_v63, 1  ;;  %v2671_v55 = vrot.slane %v24458_v12, 2  ;;  %v24662_v12 = vld [vmem:[#allocation35_spill] sm:$0xff] }
 0x267   :  { %16558 = vmatmul.mubr.msk.bf16.gmra.mrb[140].mxu0 %vm534_vm4, %v2660_v57  ;;  %v2672_v57 = vor.u32 %v2671_v55, %v2668_v43  ;;  %v3211_v43 = vrot.slane %v24647_v37, 2  ;;  %v3212_v55 = vrot.slane %v24648_v59, 2  ;;  %v3214_v37 = vrot.slane %v24649_v26, 2 }
 0x268   :  { %16561 = vmatprep.mubr.msk.bf16.mxu0 %vm19612_vm2, %v24553_v29 }
 0x269   :  { %15988 = vmatmul.mubr.msk.bf16.gmra.mrb[44].mxu1 %vm534_vm4, %v24658_v48  ;;  %v2673_v8 = vsel %vm2513_vm6, %v2663_v53, %v2672_v57  ;;  %v24661_v53 = vld [vmem:[#allocation111_spill] sm:$0xff]  ;;  %vm10693_vm6 = vcmask 64512  }
 0x26a   :  { %15991 = vmatprep.mubr.msk.bf16.mxu1 %vm19612_vm2, %v24553_v29 }
 0x26f   :  { %16562 = vmatmul.mubr.msk.bf16.gmra.mrb[144].mxu0 %vm534_vm4, %v2664_v44  ;;  %v21133_v44 = vcombine.low %v24661_v53, %v24661_v53 }
 0x270   :  { %16565 = vmatprep.mubr.msk.bf16.mxu0 %vm19612_vm2, %v24553_v29 }
 0x271   :  { %15992 = vmatmul.mubr.msk.bf16.gmra.mrb[48].mxu1 %vm534_vm4, %v24659_v33 }
 0x272   :  { %15995 = vmatprep.mubr.msk.bf16.mxu1 %vm19612_vm2, %v24553_v29 }
 0x277   :  { %16566 = vmatmul.mubr.msk.bf16.gmra.mrb[148].mxu0 %vm534_vm4, %v2673_v8  ;;  %v3213_v8 = vsel %vm3210_vm7, %v3211_v43, %v3212_v55  ;;  %v21147_v43 = vsel %vm3210_vm7, %v3212_v55, %v3214_v37  ;;  %v3218_v55 = vrot.slane %v24651_v13, 2 }
 0x278   :  { %16569 = vmatprep.mubr.msk.bf16.mxu0 %vm19612_vm2, %v24553_v29 }
 0x279   :  { %15996 = vmatmul.mubr.msk.bf16.gmra.mrb[52].mxu1 %vm534_vm4, %v24660_v24 }
 0x27a   :  { %15999 = vmatprep.mubr.msk.bf16.mxu1 %vm19612_vm2, %v24553_v29 }
 0x27f   :  { %16570 = vmatmul.mubr.msk.bf16.gmra.mrb[152].mxu0 %vm534_vm4, %v2672_v57  ;;  %v3838_v57 = vrot.slane %v21133_v44, 1 }
 0x280   :  { %16575 = vmatprep.mubr.msk.bf16.mxu0 %vm19612_vm2, %v24553_v29 }
 0x281   :  { %16000 = vmatmul.mubr.msk.bf16.gmra.mrb[56].mxu1 %vm534_vm4, %v24662_v12  ;;  %v3846_v53 = vand.u32 %v3838_v57, %v19716_v11 }
 0x282   :  { %16003 = vmatprep.mubr.msk.bf16.mxu1 %vm19612_vm2, %v24553_v29 }
 0x287   :  { %16576 = vmatmul.mubr.msk.bf16.vlgmr.msra.gmra.mrb[0].mxu0 %vm534_vm4, %v3213_v8  ;;  %v3216_v8 = vrot.slane %v24650_v15, 2 }
 0x288   :  { %16579 = vmatprep.mubr.msk.bf16.mxu0 %vm19612_vm2, %v24553_v29  ;;  %16732 = vmatpush3.bf16.msra.mxu0 %v3846_v53 }
 0x289   :  { %16004 = vmatmul.mubr.msk.bf16.gmra.mrb[60].mxu1 %vm534_vm4, %v19951_v40  ;;  %16889 = vmatprep.subr.bf16.mxu0 %v24553_v29  ;;  %v21160_v57 = vsel %vm3210_vm7, %v3214_v37, %v3216_v8  ;;  %v21172_v53 = vsel %vm3210_vm7, %v3216_v8, %v3218_v55  ;;  %v3220_v37 = vrot.slane %v24652_v45, 2  ;;  %v3222_v8 = vrot.slane %v24653_v42, 2 }
 0x28a   :  { %16007 = vmatprep.mubr.msk.bf16.mxu1 %vm19612_vm2, %v24553_v29 }
 0x28b   :  { %v21184_v63 = vsel %vm3210_vm7, %v3218_v55, %v3220_v37  ;;  %v21196_v13 = vsel %vm3210_vm7, %v3220_v37, %v3222_v8  ;;  %v3224_v55 = vrot.slane %v24654_v10, 2  ;;  %v3226_v37 = vrot.slane %v24655_v62, 2 }
 0x28d   :  { %v21208_v45 = vsel %vm3210_vm7, %v3222_v8, %v3224_v55  ;;  %v21220_v8 = vsel %vm3210_vm7, %v3224_v55, %v3226_v37  ;;  %v3232_v55 = vrot.slane %v24659_v33, 2 }
 0x28f   :  { %16580 = vmatmul.mubr.msk.bf16.gmra.mrb[4].mxu0 %vm534_vm4, %v21147_v43 }
 0x290   :  { %16583 = vmatprep.mubr.msk.bf16.mxu0 %vm19612_vm2, %v24553_v29 }
 0x291   :  { %16008 = vmatmul.mubr.msk.bf16.gmra.mrb[64].mxu1 %vm534_vm4, %v19967_v49 }
 0x292   :  { %16011 = vmatprep.mubr.msk.bf16.mxu1 %vm19612_vm2, %v24553_v29 }
 0x297   :  { %16584 = vmatmul.mubr.msk.bf16.gmra.mrb[8].mxu0 %vm534_vm4, %v21160_v57 }
 0x298   :  { %16587 = vmatprep.mubr.msk.bf16.mxu0 %vm19612_vm2, %v24553_v29 }
 0x299   :  { %16012 = vmatmul.mubr.msk.bf16.gmra.mrb[68].mxu1 %vm534_vm4, %v19983_v56 }
 0x29a   :  { %16015 = vmatprep.mubr.msk.bf16.mxu1 %vm19612_vm2, %v24553_v29 }
 0x29f   :  { %16588 = vmatmul.mubr.msk.bf16.gmra.mrb[12].mxu0 %vm534_vm4, %v21172_v53 }
 0x2a0   :  { %16591 = vmatprep.mubr.msk.bf16.mxu0 %vm19612_vm2, %v24553_v29 }
 0x2a1   :  { %16016 = vmatmul.mubr.msk.bf16.gmra.mrb[72].mxu1 %vm534_vm4, %v19999_v3 }
 0x2a2   :  { %16019 = vmatprep.mubr.msk.bf16.mxu1 %vm19612_vm2, %v24553_v29 }
 0x2a7   :  { %16592 = vmatmul.mubr.msk.bf16.gmra.mrb[16].mxu0 %vm534_vm4, %v21184_v63 }
 0x2a8   :  { %16595 = vmatprep.mubr.msk.bf16.mxu0 %vm19612_vm2, %v24553_v29 }
 0x2a9   :  { %16020 = vmatmul.mubr.msk.bf16.gmra.mrb[156].mxu1 %vm534_vm4, %v20015_v16 }
 0x2aa   :  { %16023 = vmatprep.mubr.msk.bf16.mxu1 %vm19612_vm2, %v24553_v29 }
 0x2af   :  { %16596 = vmatmul.mubr.msk.bf16.gmra.mrb[20].mxu0 %vm534_vm4, %v21196_v13 }
 0x2b0   :  { %16599 = vmatprep.mubr.msk.bf16.mxu0 %vm19612_vm2, %v24553_v29 }
 0x2b1   :  { %16024 = vmatmul.mubr.msk.bf16.gmra.mrb[80].mxu1 %vm534_vm4, %v20031_v23 }
 0x2b2   :  { %16027 = vmatprep.mubr.msk.bf16.mxu1 %vm19612_vm2, %v24553_v29 }
 0x2b7   :  { %16600 = vmatmul.mubr.msk.bf16.gmra.mrb[24].mxu0 %vm534_vm4, %v21208_v45 }
 0x2b8   :  { %16603 = vmatprep.mubr.msk.bf16.mxu0 %vm19612_vm2, %v24553_v29 }
 0x2b9   :  { %16028 = vmatmul.mubr.msk.bf16.gmra.mrb[84].mxu1 %vm534_vm4, %v20047_v35 }
 0x2ba   :  { %v2980_v42 = vpop.f32.mrb[156].mxu0  ;;  %16031 = vmatprep.mubr.msk.bf16.mxu1 %vm19612_vm2, %v24553_v29 }
 0x2bb   :  { %v16495_v15 = vpop.f32.mrb[157].mxu0  ;;  %v3228_v42 = vrot.slane %v24656_v19, 2 }
 0x2bc   :  { %v2982_v10 = vpop.f32.mrb[158].mxu0 }
 0x2bd   :  { %v16496_v26 = vpop.f32.mrb[159].mxu0  ;;  %v21232_v15 = vsel %vm3210_vm7, %v3226_v37, %v3228_v42 }
 0x2be   :  { %v3230_v26 = vrot.slane %v24658_v48, 2 }
 0x2bf   :  { %16604 = vmatmul.mubr.msk.bf16.gmra.mrb[28].mxu0 %vm534_vm4, %v21220_v8 }
 0x2c0   :  { %16607 = vmatprep.mubr.msk.bf16.mxu0 %vm19612_vm2, %v24553_v29  ;;  %v21244_v10 = vsel %vm3210_vm7, %v3228_v42, %v3230_v26  ;;  %v21256_v37 = vsel %vm3210_vm7, %v3230_v26, %v3232_v55  ;;  %v3234_v42 = vrot.slane %v24660_v24, 2  ;;  %v3236_v26 = vrot.slane %v24662_v12, 2 }
 0x2c1   :  { %16032 = vmatmul.mubr.msk.bf16.gmra.mrb[88].mxu1 %vm534_vm4, %v20063_v50 }
 0x2c2   :  { %16035 = vmatprep.mubr.msk.bf16.mxu1 %vm19612_vm2, %v24553_v29  ;;  %v21268_v48 = vsel %vm3210_vm7, %v3232_v55, %v3234_v42  ;;  %v21280_v33 = vsel %vm3210_vm7, %v3234_v42, %v3236_v26  ;;  %v3238_v55 = vrot.slane %v19951_v40, 2  ;;  %v3240_v42 = vrot.slane %v19967_v49, 2 }
 0x2c4   :  { %v21292_v24 = vsel %vm3210_vm7, %v3236_v26, %v3238_v55  ;;  %v21304_v12 = vsel %vm3210_vm7, %v3238_v55, %v3240_v42  ;;  %v3242_v26 = vrot.slane %v19983_v56, 2  ;;  %v3244_v55 = vrot.slane %v19999_v3, 2 }
 0x2c6   :  { %v21316_v40 = vsel %vm3210_vm7, %v3240_v42, %v3242_v26  ;;  %v21328_v49 = vsel %vm3210_vm7, %v3242_v26, %v3244_v55  ;;  %v3246_v42 = vrot.slane %v20015_v16, 2  ;;  %v3248_v26 = vrot.slane %v20031_v23, 2 }
 0x2c7   :  { %16608 = vmatmul.mubr.msk.bf16.gmra.mrb[32].mxu0 %vm534_vm4, %v21232_v15 }
 0x2c8   :  { %16611 = vmatprep.mubr.msk.bf16.mxu0 %vm19612_vm2, %v24553_v29  ;;  %v21340_v56 = vsel %vm3210_vm7, %v3244_v55, %v3246_v42  ;;  %v21352_v3 = vsel %vm3210_vm7, %v3246_v42, %v3248_v26  ;;  %v3250_v55 = vrot.slane %v20047_v35, 2  ;;  %v3252_v42 = vrot.slane %v20063_v50, 2 }
 0x2c9   :  { %16036 = vmatmul.mubr.msk.bf16.gmra.mrb[92].mxu1 %vm534_vm4, %v20079_v61 }
 0x2ca   :  { %16039 = vmatprep.mubr.msk.bf16.mxu1 %vm19612_vm2, %v24553_v29  ;;  %v21364_v16 = vsel %vm3210_vm7, %v3248_v26, %v3250_v55  ;;  %v21376_v23 = vsel %vm3210_vm7, %v3250_v55, %v3252_v42  ;;  %v3254_v26 = vrot.slane %v20079_v61, 2  ;;  %v3256_v55 = vrot.slane %v20095_v18, 2 }
 0x2cc   :  { %v21388_v35 = vsel %vm3210_vm7, %v3252_v42, %v3254_v26  ;;  %v21400_v50 = vsel %vm3210_vm7, %v3254_v26, %v3256_v55  ;;  %v3258_v42 = vrot.slane %v20111_v36, 2  ;;  %v3260_v26 = vrot.slane %v20133_v27, 2 }
 0x2ce   :  { %v21412_v61 = vsel %vm3210_vm7, %v3256_v55, %v3258_v42  ;;  %v3262_v55 = vrot.slane %v20153_v0, 2 }
 0x2cf   :  { %16612 = vmatmul.mubr.msk.bf16.gmra.mrb[36].mxu0 %vm534_vm4, %v21244_v10 }
 0x2d0   :  { %16615 = vmatprep.mubr.msk.bf16.mxu0 %vm19612_vm2, %v24553_v29 }
 0x2d1   :  { %16040 = vmatmul.mubr.msk.bf16.gmra.mrb[96].mxu1 %vm534_vm4, %v20095_v18  ;;  %v21424_v18 = vsel %vm3210_vm7, %v3258_v42, %v3260_v26  ;;  %v3264_v42 = vrot.slane %v20174_v21, 2 }
 0x2d2   :  { %16043 = vmatprep.mubr.msk.bf16.mxu1 %vm19612_vm2, %v24553_v29 }
 0x2d3   :  { %v21448_v19 = vsel %vm3210_vm7, %v3262_v55, %v3264_v42 }
 0x2d7   :  { %16616 = vmatmul.mubr.msk.bf16.gmra.mrb[40].mxu0 %vm534_vm4, %v21256_v37 }
 0x2d8   :  { %16619 = vmatprep.mubr.msk.bf16.mxu0 %vm19612_vm2, %v24553_v29 }
 0x2d9   :  { %16044 = vmatmul.mubr.msk.bf16.gmra.mrb[100].mxu1 %vm534_vm4, %v20111_v36  ;;  %v21436_v36 = vsel %vm3210_vm7, %v3260_v26, %v3262_v55 }
 0x2da   :  { %16047 = vmatprep.mubr.msk.bf16.mxu1 %vm19612_vm2, %v24553_v29 }
 0x2df   :  { %16620 = vmatmul.mubr.msk.bf16.gmra.mrb[44].mxu0 %vm534_vm4, %v21268_v48 }
 0x2e0   :  { %16623 = vmatprep.mubr.msk.bf16.mxu0 %vm19612_vm2, %v24553_v29 }
 0x2e1   :  { %16048 = vmatmul.mubr.msk.bf16.gmra.mrb[104].mxu1 %vm534_vm4, %v20133_v27  ;;  %v24663_v27 = vld [vmem:[#allocation12_spill] sm:$0xff] }
 0x2e2   :  { %16051 = vmatprep.mubr.msk.bf16.mxu1 %vm19612_vm2, %v24553_v29 }
 0x2e7   :  { %16624 = vmatmul.mubr.msk.bf16.gmra.mrb[48].mxu0 %vm534_vm4, %v21280_v33 }
 0x2e8   :  { %16627 = vmatprep.mubr.msk.bf16.mxu0 %vm19612_vm2, %v24553_v29 }
 0x2e9   :  { %16052 = vmatmul.mubr.msk.bf16.gmra.mrb[108].mxu1 %vm534_vm4, %v20153_v0  ;;  %v24664_v0 = vld [vmem:[#allocation14_spill] sm:$0xff] }
 0x2ea   :  { %16055 = vmatprep.mubr.msk.bf16.mxu1 %vm19612_vm2, %v24553_v29 }
 0x2ef   :  { %16628 = vmatmul.mubr.msk.bf16.gmra.mrb[52].mxu0 %vm534_vm4, %v21292_v24 }
 0x2f0   :  { %16631 = vmatprep.mubr.msk.bf16.mxu0 %vm19612_vm2, %v24553_v29 }
 0x2f1   :  { %16056 = vmatmul.mubr.msk.bf16.gmra.mrb[112].mxu1 %vm534_vm4, %v20174_v21  ;;  %v24665_v21 = vld [vmem:[#allocation16_spill] sm:$0xff] }
 0x2f2   :  { %16059 = vmatprep.mubr.msk.bf16.mxu1 %vm19612_vm2, %v24553_v29 }
 0x2f7   :  { %16632 = vmatmul.mubr.msk.bf16.gmra.mrb[56].mxu0 %vm534_vm4, %v21304_v12 }
 0x2f8   :  { %16635 = vmatprep.mubr.msk.bf16.mxu0 %vm19612_vm2, %v24553_v29 }
 0x2f9   :  { %16060 = vmatmul.mubr.msk.bf16.gmra.mrb[116].mxu1 %vm534_vm4, %v20198_v51 }
 0x2fa   :  { %16063 = vmatprep.mubr.msk.bf16.mxu1 %vm19612_vm2, %v24553_v29 }
 0x2ff   :  { %16636 = vmatmul.mubr.msk.bf16.gmra.mrb[60].mxu0 %vm534_vm4, %v21316_v40 }
 0x300   :  { %16639 = vmatprep.mubr.msk.bf16.mxu0 %vm19612_vm2, %v24553_v29 }
 0x301   :  { %16064 = vmatmul.mubr.msk.bf16.gmra.mrb[120].mxu1 %vm534_vm4, %v20226_v1 }
 0x302   :  { %16067 = vmatprep.mubr.msk.bf16.mxu1 %vm19612_vm2, %v24553_v29 }
 0x307   :  { %16640 = vmatmul.mubr.msk.bf16.gmra.mrb[64].mxu0 %vm534_vm4, %v21328_v49 }
 0x308   :  { %16643 = vmatprep.mubr.msk.bf16.mxu0 %vm19612_vm2, %v24553_v29 }
 0x309   :  { %16068 = vmatmul.mubr.msk.bf16.gmra.mrb[124].mxu1 %vm534_vm4, %v20254_v2 }
 0x30a   :  { %16071 = vmatprep.mubr.msk.bf16.mxu1 %vm19612_vm2, %v24553_v29 }
 0x30f   :  { %16644 = vmatmul.mubr.msk.bf16.gmra.mrb[68].mxu0 %vm534_vm4, %v21340_v56 }
 0x310   :  { %16647 = vmatprep.mubr.msk.bf16.mxu0 %vm19612_vm2, %v24553_v29 }
 0x311   :  { %16072 = vmatmul.mubr.msk.bf16.gmra.mrb[128].mxu1 %vm534_vm4, %v20282_v9 }
 0x312   :  { %16075 = vmatprep.mubr.msk.bf16.mxu1 %vm19612_vm2, %v24553_v29 }
 0x317   :  { %16648 = vmatmul.mubr.msk.bf16.gmra.mrb[72].mxu0 %vm534_vm4, %v21352_v3 }
 0x318   :  { %16651 = vmatprep.mubr.msk.bf16.mxu0 %vm19612_vm2, %v24553_v29 }
 0x319   :  { %16076 = vmatmul.mubr.msk.bf16.gmra.mrb[132].mxu1 %vm534_vm4, %v20310_v5 }
 0x31a   :  { %16079 = vmatprep.mubr.msk.bf16.mxu1 %vm19612_vm2, %v24553_v29 }
 0x31f   :  { %16652 = vmatmul.mubr.msk.bf16.gmra.mrb[160].mxu0 %vm534_vm4, %v21364_v16 }
 0x320   :  { %16655 = vmatprep.mubr.msk.bf16.mxu0 %vm19612_vm2, %v24553_v29 }
 0x321   :  { %16080 = vmatmul.mubr.msk.bf16.gmra.mrb[136].mxu1 %vm534_vm4, %v20338_v54 }
 0x322   :  { %16083 = vmatprep.mubr.msk.bf16.mxu1 %vm19612_vm2, %v24553_v29 }
 0x327   :  { %16656 = vmatmul.mubr.msk.bf16.gmra.mrb[80].mxu0 %vm534_vm4, %v21376_v23 }
 0x328   :  { %16659 = vmatprep.mubr.msk.bf16.mxu0 %vm19612_vm2, %v24553_v29 }
 0x329   :  { %16084 = vmatmul.mubr.msk.bf16.gmra.mrb[140].mxu1 %vm534_vm4, %v24638_v4 }
 0x32a   :  { %16087 = vmatprep.mubr.msk.bf16.mxu1 %vm19612_vm2, %v24553_v29 }
 0x32f   :  { %16660 = vmatmul.mubr.msk.bf16.gmra.mrb[84].mxu0 %vm534_vm4, %v21388_v35 }
 0x330   :  { %16663 = vmatprep.mubr.msk.bf16.mxu0 %vm19612_vm2, %v24553_v29 }
 0x331   :  { %16088 = vmatmul.mubr.msk.bf16.gmra.mrb[144].mxu1 %vm534_vm4, %v24639_v6 }
 0x332   :  { %16091 = vmatprep.mubr.msk.bf16.mxu1 %vm19612_vm2, %v24553_v29 }
 0x337   :  { %16664 = vmatmul.mubr.msk.bf16.gmra.mrb[88].mxu0 %vm534_vm4, %v21400_v50 }
 0x338   :  { %16667 = vmatprep.mubr.msk.bf16.mxu0 %vm19612_vm2, %v24553_v29 }
 0x339   :  { %16092 = vmatmul.mubr.msk.bf16.gmra.mrb[148].mxu1 %vm534_vm4, %v24640_v17 }
 0x33a   :  { %16095 = vmatprep.mubr.msk.bf16.mxu1 %vm19612_vm2, %v24553_v29 }
 0x33f   :  { %16668 = vmatmul.mubr.msk.bf16.gmra.mrb[92].mxu0 %vm534_vm4, %v21412_v61 }
 0x340   :  { %16671 = vmatprep.mubr.msk.bf16.mxu0 %vm19612_vm2, %v24553_v29 }
 0x341   :  { %16096 = vmatmul.mubr.msk.bf16.gmra.mrb[152].mxu1 %vm534_vm4, %v24642_v58 }
 0x342   :  { %16105 = vmatprep.mubr.msk.bf16.mxu1 %vm19612_vm2, %v24553_v29 }
 0x347   :  { %16672 = vmatmul.mubr.msk.bf16.gmra.mrb[96].mxu0 %vm534_vm4, %v21424_v18 }
 0x348   :  { %16675 = vmatprep.mubr.msk.bf16.mxu0 %vm19612_vm2, %v24553_v29 }
 0x349   :  { %16106 = vmatmul.mubr.msk.bf16.vlgmr.msra.gmra.mrb[4].mxu1 %vm534_vm4, %v24663_v27  ;;  %v3266_v27 = vrot.slane %v20198_v51, 2  ;;  %v24666_v51 = vld [vmem:[#allocation18_spill] sm:$0xff] }
 0x34a   :  { %16109 = vmatprep.mubr.msk.bf16.mxu1 %vm19612_vm2, %v24553_v29 }
 0x34b   :  { %v21460_v26 = vsel %vm3210_vm7, %v3264_v42, %v3266_v27 }
 0x34f   :  { %16676 = vmatmul.mubr.msk.bf16.gmra.mrb[100].mxu0 %vm534_vm4, %v21436_v36 }
 0x350   :  { %16679 = vmatprep.mubr.msk.bf16.mxu0 %vm19612_vm2, %v24553_v29 }
 0x351   :  { %16110 = vmatmul.mubr.msk.bf16.gmra.mrb[8].mxu1 %vm534_vm4, %v24664_v0  ;;  %v3268_v0 = vrot.slane %v20226_v1, 2  ;;  %v24667_v1 = vld [vmem:[#allocation20_spill] sm:$0xff] }
 0x352   :  { %16113 = vmatprep.mubr.msk.bf16.mxu1 %vm19612_vm2, %v24553_v29 }
 0x353   :  { %v21472_v55 = vsel %vm3210_vm7, %v3266_v27, %v3268_v0 }
 0x357   :  { %16680 = vmatmul.mubr.msk.bf16.gmra.mrb[104].mxu0 %vm534_vm4, %v21448_v19 }
 0x358   :  { %16683 = vmatprep.mubr.msk.bf16.mxu0 %vm19612_vm2, %v24553_v29 }
 0x359   :  { %16114 = vmatmul.mubr.msk.bf16.gmra.mrb[12].mxu1 %vm534_vm4, %v24665_v21  ;;  %v3270_v21 = vrot.slane %v20254_v2, 2  ;;  %v24668_v2 = vld [vmem:[#allocation22_spill] sm:$0xff] }
 0x35a   :  { %16117 = vmatprep.mubr.msk.bf16.mxu1 %vm19612_vm2, %v24553_v29 }
 0x35b   :  { %v21484_v42 = vsel %vm3210_vm7, %v3268_v0, %v3270_v21 }
 0x35f   :  { %16684 = vmatmul.mubr.msk.bf16.gmra.mrb[108].mxu0 %vm534_vm4, %v21460_v26 }
 0x360   :  { %16687 = vmatprep.mubr.msk.bf16.mxu0 %vm19612_vm2, %v24553_v29 }
 0x361   :  { %16118 = vmatmul.mubr.msk.bf16.gmra.mrb[16].mxu1 %vm534_vm4, %v24666_v51  ;;  %v3272_v51 = vrot.slane %v20282_v9, 2  ;;  %v24669_v9 = vld [vmem:[#allocation24_spill] sm:$0xff] }
 0x362   :  { %16121 = vmatprep.mubr.msk.bf16.mxu1 %vm19612_vm2, %v24553_v29 }
 0x363   :  { %v21496_v27 = vsel %vm3210_vm7, %v3270_v21, %v3272_v51 }
 0x367   :  { %16688 = vmatmul.mubr.msk.bf16.gmra.mrb[112].mxu0 %vm534_vm4, %v21472_v55 }
 0x368   :  { %16691 = vmatprep.mubr.msk.bf16.mxu0 %vm19612_vm2, %v24553_v29 }
 0x369   :  { %16122 = vmatmul.mubr.msk.bf16.gmra.mrb[20].mxu1 %vm534_vm4, %v24667_v1  ;;  %v3274_v1 = vrot.slane %v20310_v5, 2  ;;  %v24670_v5 = vld [vmem:[#allocation26_spill] sm:$0xff] }
 0x36a   :  { %16125 = vmatprep.mubr.msk.bf16.mxu1 %vm19612_vm2, %v24553_v29 }
 0x36b   :  { %v21508_v0 = vsel %vm3210_vm7, %v3272_v51, %v3274_v1 }
 0x36f   :  { %16692 = vmatmul.mubr.msk.bf16.gmra.mrb[116].mxu0 %vm534_vm4, %v21484_v42 }
 0x370   :  { %16695 = vmatprep.mubr.msk.bf16.mxu0 %vm19612_vm2, %v24553_v29 }
 0x371   :  { %16126 = vmatmul.mubr.msk.bf16.gmra.mrb[24].mxu1 %vm534_vm4, %v24668_v2  ;;  %v3276_v2 = vrot.slane %v20338_v54, 2  ;;  %v24671_v54 = vld [vmem:[#allocation28_spill] sm:$0xff] }
 0x372   :  { %16129 = vmatprep.mubr.msk.bf16.mxu1 %vm19612_vm2, %v24553_v29 }
 0x373   :  { %v21520_v21 = vsel %vm3210_vm7, %v3274_v1, %v3276_v2 }
 0x377   :  { %16696 = vmatmul.mubr.msk.bf16.gmra.mrb[120].mxu0 %vm534_vm4, %v21496_v27 }
 0x378   :  { %16699 = vmatprep.mubr.msk.bf16.mxu0 %vm19612_vm2, %v24553_v29 }
 0x379   :  { %16130 = vmatmul.mubr.msk.bf16.gmra.mrb[28].mxu1 %vm534_vm4, %v24669_v9  ;;  %v3278_v9 = vrot.slane %v24638_v4, 2  ;;  %v24672_v4 = vld [vmem:[#allocation30_spill] sm:$0xff] }
 0x37a   :  { %16133 = vmatprep.mubr.msk.bf16.mxu1 %vm19612_vm2, %v24553_v29 }
 0x37b   :  { %v21532_v51 = vsel %vm3210_vm7, %v3276_v2, %v3278_v9 }
 0x37f   :  { %16700 = vmatmul.mubr.msk.bf16.gmra.mrb[124].mxu0 %vm534_vm4, %v21508_v0 }
 0x380   :  { %16703 = vmatprep.mubr.msk.bf16.mxu0 %vm19612_vm2, %v24553_v29 }
 0x381   :  { %16134 = vmatmul.mubr.msk.bf16.gmra.mrb[32].mxu1 %vm534_vm4, %v24670_v5  ;;  %v3280_v5 = vrot.slane %v24639_v6, 2  ;;  %v24673_v6 = vld [vmem:[#allocation32_spill] sm:$0xff] }
 0x382   :  { %16137 = vmatprep.mubr.msk.bf16.mxu1 %vm19612_vm2, %v24553_v29 }
 0x383   :  { %v21544_v1 = vsel %vm3210_vm7, %v3278_v9, %v3280_v5 }
 0x387   :  { %16704 = vmatmul.mubr.msk.bf16.gmra.mrb[128].mxu0 %vm534_vm4, %v21520_v21 }
 0x388   :  { %16707 = vmatprep.mubr.msk.bf16.mxu0 %vm19612_vm2, %v24553_v29 }
 0x389   :  { %16138 = vmatmul.mubr.msk.bf16.gmra.mrb[36].mxu1 %vm534_vm4, %v24671_v54  ;;  %v3282_v54 = vrot.slane %v24640_v17, 2  ;;  %v24674_v17 = vld [vmem:[#allocation34_spill] sm:$0xff] }
 0x38a   :  { %16141 = vmatprep.mubr.msk.bf16.mxu1 %vm19612_vm2, %v24553_v29 }
 0x38b   :  { %v21556_v2 = vsel %vm3210_vm7, %v3280_v5, %v3282_v54 }
 0x38f   :  { %16708 = vmatmul.mubr.msk.bf16.gmra.mrb[132].mxu0 %vm534_vm4, %v21532_v51 }
 0x390   :  { %16711 = vmatprep.mubr.msk.bf16.mxu0 %vm19612_vm2, %v24553_v29 }
 0x391   :  { %16142 = vmatmul.mubr.msk.bf16.gmra.mrb[40].mxu1 %vm534_vm4, %v24672_v4  ;;  %v3284_v4 = vrot.slane %v24642_v58, 2 }
 0x392   :  { %16145 = vmatprep.mubr.msk.bf16.mxu1 %vm19612_vm2, %v24553_v29 }
 0x393   :  { %v21568_v9 = vsel %vm3210_vm7, %v3282_v54, %v3284_v4  ;;  %v24675_v54 = vld [vmem:[#allocation36_spill] sm:$0xff] }
 0x397   :  { %16712 = vmatmul.mubr.msk.bf16.gmra.mrb[136].mxu0 %vm534_vm4, %v21544_v1 }
 0x398   :  { %16715 = vmatprep.mubr.msk.bf16.mxu0 %vm19612_vm2, %v24553_v29 }
 0x399   :  { %16146 = vmatmul.mubr.msk.bf16.gmra.mrb[44].mxu1 %vm534_vm4, %v24673_v6  ;;  %v21579_v6 = vrot.slane %v24657_v32, 2  ;;  %v24678_v32 = vld [vmem:[#allocation42_spill] sm:$0xff] }
 0x39a   :  { %16149 = vmatprep.mubr.msk.bf16.mxu1 %vm19612_vm2, %v24553_v29 }
 0x39b   :  { %v21583_v5 = vsel %vm3210_vm7, %v3284_v4, %v21579_v6  ;;  %v24677_v4 = vld [vmem:[#allocation40_spill] sm:$0xff] }
 0x39f   :  { %16716 = vmatmul.mubr.msk.bf16.gmra.mrb[140].mxu0 %vm534_vm4, %v21556_v2 }
 0x3a0   :  { %16719 = vmatprep.mubr.msk.bf16.mxu0 %vm19612_vm2, %v24553_v29 }
 0x3a1   :  { %16150 = vmatmul.mubr.msk.bf16.gmra.mrb[48].mxu1 %vm534_vm4, %v24674_v17  ;;  %v24676_v17 = vld [vmem:[#allocation38_spill] sm:$0xff] }
 0x3a2   :  { %16153 = vmatprep.mubr.msk.bf16.mxu1 %vm19612_vm2, %v24553_v29 }
 0x3a7   :  { %16720 = vmatmul.mubr.msk.bf16.gmra.mrb[144].mxu0 %vm534_vm4, %v21568_v9 }
 0x3a8   :  { %16723 = vmatprep.mubr.msk.bf16.mxu0 %vm19612_vm2, %v24553_v29 }
 0x3a9   :  { %16154 = vmatmul.mubr.msk.bf16.gmra.mrb[52].mxu1 %vm534_vm4, %v24675_v54  ;;  %v4425_v54 = vshrl.u32 %v21133_v44, 16 }
 0x3aa   :  { %16157 = vmatprep.mubr.msk.bf16.mxu1 %vm19612_vm2, %v24553_v29 }
 0x3ab   :  { %v4427_v58 = vrot.slane %v4425_v54, 2 }
 0x3af   :  { %16724 = vmatmul.mubr.msk.bf16.gmra.mrb[148].mxu0 %vm534_vm4, %v21583_v5 }
 0x3b0   :  { %16727 = vmatprep.mubr.msk.bf16.mxu0 %vm19612_vm2, %v24553_v29 }
 0x3b1   :  { %16158 = vmatmul.mubr.msk.bf16.gmra.mrb[56].mxu1 %vm534_vm4, %v24676_v17  ;;  %v4428_v17 = vshll.u32 %v21133_v44, 16  ;;  %v24679_v44 = vld [vmem:[#allocation44_spill] sm:$0xff] }
 0x3b2   :  { %16161 = vmatprep.mubr.msk.bf16.mxu1 %vm19612_vm2, %v24553_v29 }
 0x3b3   :  { %v4430_v62 = vrot.slane %v4428_v17, 3  ;;  %v24688_v17 = vld [vmem:[#allocation62_spill] sm:$0xff] }
 0x3b5   :  { %v4431_v59 = vor.u32 %v4430_v62, %v4427_v58  ;;  %v24680_v58 = vld [vmem:[#allocation46_spill] sm:$0xff] }
 0x3b6   :  { %v24682_v62 = vld [vmem:[#allocation50_spill] sm:$0xff] }
 0x3b7   :  { %16728 = vmatmul.mubr.msk.bf16.gmra.mrb[152].mxu0 %vm534_vm4, %v21579_v6 }
 0x3b8   :  { %16733 = vmatprep.mubr.msk.bf16.mxu0 %vm19612_vm2, %v24553_v29 }
 0x3b9   :  { %16162 = vmatmul.mubr.msk.bf16.gmra.mrb[60].mxu1 %vm534_vm4, %v24677_v4  ;;  %v4550_v4 = vand.u32 %v4431_v59, %v19716_v11  ;;  %v24681_v59 = vld [vmem:[#allocation48_spill] sm:$0xff] }
 0x3ba   :  { %16165 = vmatprep.mubr.msk.bf16.mxu1 %vm19612_vm2, %v24553_v29 }
 0x3bf   :  { %16734 = vmatmul.mubr.msk.bf16.vlgmr.msra.gmra.mrb[0].mxu0 %vm534_vm4, %v21147_v43 }
 0x3c0   :  { %16737 = vmatprep.mubr.msk.bf16.mxu0 %vm19612_vm2, %v24553_v29  ;;  %16890 = vmatpush3.bf16.msra.mxu0 %v4550_v4 }
 0x3c1   :  { %16166 = vmatmul.mubr.msk.bf16.gmra.mrb[64].mxu1 %vm534_vm4, %v24678_v32  ;;  %17047 = vmatprep.subr.bf16.mxu0 %v24553_v29  ;;  %v24683_v32 = vld [vmem:[#allocation52_spill] sm:$0xff] }
 0x3c2   :  { %16169 = vmatprep.mubr.msk.bf16.mxu1 %vm19612_vm2, %v24553_v29 }
 0x3c7   :  { %16738 = vmatmul.mubr.msk.bf16.gmra.mrb[4].mxu0 %vm534_vm4, %v21160_v57  ;;  %v24684_v57 = vld [vmem:[#allocation54_spill] sm:$0xff] }
 0x3c8   :  { %16741 = vmatprep.mubr.msk.bf16.mxu0 %vm19612_vm2, %v24553_v29 }
 0x3c9   :  { %16170 = vmatmul.mubr.msk.bf16.gmra.mrb[68].mxu1 %vm534_vm4, %v24679_v44 }
 0x3ca   :  { %16173 = vmatprep.mubr.msk.bf16.mxu1 %vm19612_vm2, %v24553_v29 }
 0x3cf   :  { %16742 = vmatmul.mubr.msk.bf16.gmra.mrb[8].mxu0 %vm534_vm4, %v21172_v53  ;;  %v24685_v53 = vld [vmem:[#allocation56_spill] sm:$0xff] }
 0x3d0   :  { %16745 = vmatprep.mubr.msk.bf16.mxu0 %vm19612_vm2, %v24553_v29 }
 0x3d1   :  { %16174 = vmatmul.mubr.msk.bf16.gmra.mrb[72].mxu1 %vm534_vm4, %v24680_v58 }
 0x3d2   :  { %16177 = vmatprep.mubr.msk.bf16.mxu1 %vm19612_vm2, %v24553_v29 }
 0x3d7   :  { %16746 = vmatmul.mubr.msk.bf16.gmra.mrb[12].mxu0 %vm534_vm4, %v21184_v63 }
 0x3d8   :  { %16749 = vmatprep.mubr.msk.bf16.mxu0 %vm19612_vm2, %v24553_v29 }
 0x3d9   :  { %16178 = vmatmul.mubr.msk.bf16.gmra.mrb[160].mxu1 %vm534_vm4, %v24681_v59  ;;  %v24689_v59 = vld [vmem:[#allocation65_spill] sm:$0xff] }
 0x3da   :  { %16181 = vmatprep.mubr.msk.bf16.mxu1 %vm19612_vm2, %v24553_v29 }
 0x3df   :  { %16750 = vmatmul.mubr.msk.bf16.gmra.mrb[16].mxu0 %vm534_vm4, %v21196_v13 }
 0x3e0   :  { %16753 = vmatprep.mubr.msk.bf16.mxu0 %vm19612_vm2, %v24553_v29 }
 0x3e1   :  { %16182 = vmatmul.mubr.msk.bf16.gmra.mrb[80].mxu1 %vm534_vm4, %v24682_v62 }
 0x3e2   :  { %16185 = vmatprep.mubr.msk.bf16.mxu1 %vm19612_vm2, %v24553_v29 }
 0x3e7   :  { %16754 = vmatmul.mubr.msk.bf16.gmra.mrb[20].mxu0 %vm534_vm4, %v21208_v45 }
 0x3e8   :  { %16757 = vmatprep.mubr.msk.bf16.mxu0 %vm19612_vm2, %v24553_v29 }
 0x3e9   :  { %16186 = vmatmul.mubr.msk.bf16.gmra.mrb[84].mxu1 %vm534_vm4, %v24683_v32 }
 0x3ea   :  { %16189 = vmatprep.mubr.msk.bf16.mxu1 %vm19612_vm2, %v24553_v29 }
 0x3ef   :  { %16758 = vmatmul.mubr.msk.bf16.gmra.mrb[24].mxu0 %vm534_vm4, %v21220_v8  ;;  %v24686_v8 = vld [vmem:[#allocation58_spill] sm:$0xff] }
 0x3f0   :  { %16761 = vmatprep.mubr.msk.bf16.mxu0 %vm19612_vm2, %v24553_v29 }
 0x3f1   :  { %16190 = vmatmul.mubr.msk.bf16.gmra.mrb[88].mxu1 %vm534_vm4, %v24684_v57 }
 0x3f2   :  { %v3604_v13 = vpop.f32.mrb[160].mxu0  ;;  %16193 = vmatprep.mubr.msk.bf16.mxu1 %vm19612_vm2, %v24553_v29 }
 0x3f3   :  { %v16653_v63 = vpop.f32.mrb[161].mxu0 }
 0x3f4   :  { %v3606_v43 = vpop.f32.mrb[162].mxu0 }
 0x3f5   :  { %v16654_v45 = vpop.f32.mrb[163].mxu0  ;;  %v24690_v43 = vld [vmem:[#allocation69_spill] sm:$0xff] }
 0x3f7   :  { %16762 = vmatmul.mubr.msk.bf16.gmra.mrb[28].mxu0 %vm534_vm4, %v21232_v15  ;;  %v24687_v15 = vld [vmem:[#allocation60_spill] sm:$0xff] }
 0x3f8   :  { %16765 = vmatprep.mubr.msk.bf16.mxu0 %vm19612_vm2, %v24553_v29 }
 0x3f9   :  { %16194 = vmatmul.mubr.msk.bf16.gmra.mrb[92].mxu1 %vm534_vm4, %v24685_v53 }
 0x3fa   :  { %16197 = vmatprep.mubr.msk.bf16.mxu1 %vm19612_vm2, %v24553_v29 }
 0x3ff   :  { %16766 = vmatmul.mubr.msk.bf16.gmra.mrb[32].mxu0 %vm534_vm4, %v21244_v10  ;;  %v21693_v10 = vpop.f32.mrb[0].mxu1 }
 0x400   :  { %16769 = vmatprep.mubr.msk.bf16.mxu0 %vm19612_vm2, %v24553_v29  ;;  %v15945_v54 = vpop.f32.mrb[1].mxu1 }
 0x401   :  { %16198 = vmatmul.mubr.msk.bf16.gmra.mrb[96].mxu1 %vm534_vm4, %v24686_v8  ;;  %v24691_v8 = vld [vmem:[#allocation72_spill] sm:$0xff] }
 0x402   :  { %16201 = vmatprep.mubr.msk.bf16.mxu1 %vm19612_vm2, %v24553_v29 }
 0x407   :  { %16770 = vmatmul.mubr.msk.bf16.gmra.mrb[36].mxu0 %vm534_vm4, %v21256_v37  ;;  %v21701_v37 = vpop.f32.mrb[2].mxu1 }
 0x408   :  { %16773 = vmatprep.mubr.msk.bf16.mxu0 %vm19612_vm2, %v24553_v29 }
 0x409   :  { %16202 = vmatmul.mubr.msk.bf16.gmra.mrb[100].mxu1 %vm534_vm4, %v24687_v15 }
 0x40a   :  { %16205 = vmatprep.mubr.msk.bf16.mxu1 %vm19612_vm2, %v24553_v29 }
 0x40f   :  { %16774 = vmatmul.mubr.msk.bf16.gmra.mrb[40].mxu0 %vm534_vm4, %v21268_v48  ;;  %v15946_v48 = vpop.f32.mrb[3].mxu1 }
 0x410   :  { %16777 = vmatprep.mubr.msk.bf16.mxu0 %vm19612_vm2, %v24553_v29  ;;  %v1266_v4 = vpop.f32.mrb[156].mxu1  ;;  %v24692_v48 = vld [vmem:[#allocation76_spill] sm:$0xff] }
 0x411   :  { %16206 = vmatmul.mubr.msk.bf16.gmra.mrb[104].mxu1 %vm534_vm4, %v24688_v17  ;;  %v16021_v44 = vpop.f32.mrb[157].mxu1 }
 0x412   :  { %16209 = vmatprep.mubr.msk.bf16.mxu1 %vm19612_vm2, %v24553_v29  ;;  %v1268_v58 = vpop.f32.mrb[158].mxu1 }
 0x413   :  { %v16022_v62 = vpop.f32.mrb[159].mxu1 }
 0x417   :  { %16778 = vmatmul.mubr.msk.bf16.gmra.mrb[44].mxu0 %vm534_vm4, %v21280_v33 }
 0x418   :  { %16781 = vmatprep.mubr.msk.bf16.mxu0 %vm19612_vm2, %v24553_v29 }
 0x419   :  { %16210 = vmatmul.mubr.msk.bf16.gmra.mrb[108].mxu1 %vm534_vm4, %v24689_v59  ;;  %v24693_v59 = vld [vmem:[#allocation80_spill] sm:$0xff] }
 0x41a   :  { %16213 = vmatprep.mubr.msk.bf16.mxu1 %vm19612_vm2, %v24553_v29 }
 0x41c   :  { %v21711_v33 = vpop.f32.mrb[4].mxu1 }
 0x41d   :  { %v16107_v32 = vpop.f32.mrb[5].mxu1 }
 0x41e   :  { %v21715_v13 = vpop.f32.mrb[6].mxu1 }
 0x41f   :  { %16782 = vmatmul.mubr.msk.bf16.gmra.mrb[48].mxu0 %vm534_vm4, %v21292_v24  ;;  %v16108_v63 = vpop.f32.mrb[7].mxu1 }
 0x420   :  { %16785 = vmatprep.mubr.msk.bf16.mxu0 %vm19612_vm2, %v24553_v29 }
 0x421   :  { %16214 = vmatmul.mubr.msk.bf16.gmra.mrb[112].mxu1 %vm534_vm4, %v24690_v43  ;;  %v24694_v43 = vld [vmem:[#allocation84_spill] sm:$0xff] }
 0x422   :  { %16217 = vmatprep.mubr.msk.bf16.mxu1 %vm19612_vm2, %v24553_v29 }
 0x424   :  { %v21723_v57 = vpop.f32.mrb[8].mxu1 }
 0x425   :  { %v16111_v24 = vpop.f32.mrb[9].mxu1 }
 0x426   :  { %v21727_v45 = vpop.f32.mrb[10].mxu1 }
 0x427   :  { %16786 = vmatmul.mubr.msk.bf16.gmra.mrb[52].mxu0 %vm534_vm4, %v21304_v12  ;;  %v16112_v53 = vpop.f32.mrb[11].mxu1 }
 0x428   :  { %16789 = vmatprep.mubr.msk.bf16.mxu0 %vm19612_vm2, %v24553_v29 }
 0x429   :  { %16218 = vmatmul.mubr.msk.bf16.gmra.mrb[116].mxu1 %vm534_vm4, %v24691_v8 }
 0x42a   :  { %16221 = vmatprep.mubr.msk.bf16.mxu1 %vm19612_vm2, %v24553_v29 }
 0x42c   :  { %v21735_v15 = vpop.f32.mrb[12].mxu1 }
 0x42d   :  { %v16115_v12 = vpop.f32.mrb[13].mxu1 }
 0x42e   :  { %v21739_v54 = vpop.f32.mrb[14].mxu1  ;;  %v24695_v12 = vld [vmem:[#allocation88_spill] sm:$0xff] }
 0x42f   :  { %16790 = vmatmul.mubr.msk.bf16.gmra.mrb[56].mxu0 %vm534_vm4, %v21316_v40  ;;  %v16116_v17 = vpop.f32.mrb[15].mxu1 }
 0x430   :  { %16793 = vmatprep.mubr.msk.bf16.mxu0 %vm19612_vm2, %v24553_v29 }
 0x431   :  { %16222 = vmatmul.mubr.msk.bf16.gmra.mrb[120].mxu1 %vm534_vm4, %v24692_v48 }
 0x432   :  { %16225 = vmatprep.mubr.msk.bf16.mxu1 %vm19612_vm2, %v24553_v29 }
 0x434   :  { %v21747_v4 = vpop.f32.mrb[16].mxu1 }
 0x435   :  { %v16119_v40 = vpop.f32.mrb[17].mxu1 }
 0x436   :  { %v21751_v44 = vpop.f32.mrb[18].mxu1 }
 0x437   :  { %16794 = vmatmul.mubr.msk.bf16.gmra.mrb[60].mxu0 %vm534_vm4, %v21328_v49  ;;  %v16120_v58 = vpop.f32.mrb[19].mxu1 }
 0x438   :  { %16797 = vmatprep.mubr.msk.bf16.mxu0 %vm19612_vm2, %v24553_v29  ;;  %v24696_v58 = vld [vmem:[#allocation92_spill] sm:$0xff] }
 0x439   :  { %16226 = vmatmul.mubr.msk.bf16.gmra.mrb[124].mxu1 %vm534_vm4, %v24693_v59 }
 0x43a   :  { %16229 = vmatprep.mubr.msk.bf16.mxu1 %vm19612_vm2, %v24553_v29 }
 0x43c   :  { %v21759_v62 = vpop.f32.mrb[20].mxu1 }
 0x43d   :  { %v16123_v49 = vpop.f32.mrb[21].mxu1 }
 0x43e   :  { %v21763_v32 = vpop.f32.mrb[22].mxu1 }
 0x43f   :  { %16798 = vmatmul.mubr.msk.bf16.gmra.mrb[64].mxu0 %vm534_vm4, %v21340_v56  ;;  %v16124_v63 = vpop.f32.mrb[23].mxu1 }
 0x440   :  { %16801 = vmatprep.mubr.msk.bf16.mxu0 %vm19612_vm2, %v24553_v29 }
 0x441   :  { %16230 = vmatmul.mubr.msk.bf16.gmra.mrb[128].mxu1 %vm534_vm4, %v24694_v43  ;;  %v24697_v43 = vld [vmem:[#allocation96_spill] sm:$0xff] }
 0x442   :  { %16233 = vmatprep.mubr.msk.bf16.mxu1 %vm19612_vm2, %v24553_v29 }
 0x444   :  { %v21771_v24 = vpop.f32.mrb[24].mxu1 }
 0x445   :  { %v16127_v56 = vpop.f32.mrb[25].mxu1 }
 0x446   :  { %v21775_v53 = vpop.f32.mrb[26].mxu1 }
 0x447   :  { %16802 = vmatmul.mubr.msk.bf16.gmra.mrb[68].mxu0 %vm534_vm4, %v21352_v3  ;;  %v16128_v8 = vpop.f32.mrb[27].mxu1 }
 0x448   :  { %16805 = vmatprep.mubr.msk.bf16.mxu0 %vm19612_vm2, %v24553_v29 }
 0x449   :  { %16234 = vmatmul.mubr.msk.bf16.gmra.mrb[132].mxu1 %vm534_vm4, %v24695_v12 }
 0x44a   :  { %16237 = vmatprep.mubr.msk.bf16.mxu1 %vm19612_vm2, %v24553_v29 }
 0x44c   :  { %v21783_v17 = vpop.f32.mrb[28].mxu1 }
 0x44d   :  { %v16131_v3 = vpop.f32.mrb[29].mxu1 }
 0x44e   :  { %v21787_v48 = vpop.f32.mrb[30].mxu1  ;;  %v24698_v3 = vld [vmem:[#allocation100_spill] sm:$0xff] }
 0x44f   :  { %16806 = vmatmul.mubr.msk.bf16.gmra.mrb[72].mxu0 %vm534_vm4, %v21364_v16  ;;  %v16132_v40 = vpop.f32.mrb[31].mxu1 }
 0x450   :  { %16809 = vmatprep.mubr.msk.bf16.mxu0 %vm19612_vm2, %v24553_v29 }
 0x451   :  { %16238 = vmatmul.mubr.msk.bf16.gmra.mrb[136].mxu1 %vm534_vm4, %v24696_v58 }
 0x452   :  { %16241 = vmatprep.mubr.msk.bf16.mxu1 %vm19612_vm2, %v24553_v29 }
 0x454   :  { %v21795_v59 = vpop.f32.mrb[32].mxu1 }
 0x455   :  { %v16135_v16 = vpop.f32.mrb[33].mxu1 }
 0x456   :  { %v21799_v49 = vpop.f32.mrb[34].mxu1 }
 0x457   :  { %16810 = vmatmul.mubr.msk.bf16.gmra.mrb[164].mxu0 %vm534_vm4, %v21376_v23  ;;  %v16136_v63 = vpop.f32.mrb[35].mxu1 }
 0x458   :  { %16813 = vmatprep.mubr.msk.bf16.mxu0 %vm19612_vm2, %v24553_v29  ;;  %v24699_v63 = vld [vmem:[#allocation105_spill] sm:$0xff] }
 0x459   :  { %16242 = vmatmul.mubr.msk.bf16.gmra.mrb[140].mxu1 %vm534_vm4, %v24697_v43 }
 0x45a   :  { %16245 = vmatprep.mubr.msk.bf16.mxu1 %vm19612_vm2, %v24553_v29 }
 0x45c   :  { %v21807_v56 = vpop.f32.mrb[36].mxu1 }
 0x45d   :  { %v16139_v23 = vpop.f32.mrb[37].mxu1 }
 0x45e   :  { %v21811_v8 = vpop.f32.mrb[38].mxu1 }
 0x45f   :  { %16814 = vmatmul.mubr.msk.bf16.gmra.mrb[80].mxu0 %vm534_vm4, %v21388_v35  ;;  %v16140_v12 = vpop.f32.mrb[39].mxu1 }
 0x460   :  { %16817 = vmatprep.mubr.msk.bf16.mxu0 %vm19612_vm2, %v24553_v29 }
 0x461   :  { %16246 = vmatmul.mubr.msk.bf16.gmra.mrb[144].mxu1 %vm534_vm4, %v24698_v3  ;;  %v24700_v3 = vld [vmem:[#allocation104_spill] sm:$0xff] }
 0x462   :  { %16249 = vmatprep.mubr.msk.bf16.mxu1 %vm19612_vm2, %v24553_v29 }
 0x464   :  { %v21819_v40 = vpop.f32.mrb[40].mxu1 }
 0x465   :  { %v16143_v35 = vpop.f32.mrb[41].mxu1 }
 0x466   :  { %v21823_v58 = vpop.f32.mrb[42].mxu1 }
 0x467   :  { %16818 = vmatmul.mubr.msk.bf16.gmra.mrb[84].mxu0 %vm534_vm4, %v21400_v50  ;;  %v16144_v16 = vpop.f32.mrb[43].mxu1 }
 0x468   :  { %16821 = vmatprep.mubr.msk.bf16.mxu0 %vm19612_vm2, %v24553_v29 }
 0x469   :  { %16250 = vmatmul.mubr.msk.bf16.gmra.mrb[148].mxu1 %vm534_vm4, %v24699_v63 }
 0x46a   :  { %16253 = vmatprep.mubr.msk.bf16.mxu1 %vm19612_vm2, %v24553_v29 }
 0x46c   :  { %v21831_v43 = vpop.f32.mrb[44].mxu1 }
 0x46d   :  { %v16147_v50 = vpop.f32.mrb[45].mxu1 }
 0x46e   :  { %v21835_v23 = vpop.f32.mrb[46].mxu1 }
 0x46f   :  { %16822 = vmatmul.mubr.msk.bf16.gmra.mrb[88].mxu0 %vm534_vm4, %v21412_v61  ;;  %v16148_v12 = vpop.f32.mrb[47].mxu1 }
 0x470   :  { %16825 = vmatprep.mubr.msk.bf16.mxu0 %vm19612_vm2, %v24553_v29 }
 0x471   :  { %16254 = vmatmul.mubr.msk.bf16.gmra.mrb[152].mxu1 %vm534_vm4, %v24700_v3 }
 0x472   :  { %17209 = vmatprep.mubr.msk.f32.mxu1 %vm19612_vm2, %v24553_v29 }
 0x474   :  { %v21843_v35 = vpop.f32.mrb[48].mxu1 }
 0x475   :  { %24701 = vst [vmem:[#allocation8_spill] sm:$0xff] %v21843_v35  ;;  %v16151_v61 = vpop.f32.mrb[49].mxu1 }
 0x476   :  { %v21847_v16 = vpop.f32.mrb[50].mxu1 }
 0x477   :  { %16826 = vmatmul.mubr.msk.bf16.gmra.mrb[92].mxu0 %vm534_vm4, %v21424_v18  ;;  %v16152_v63 = vpop.f32.mrb[51].mxu1 }
 0x478   :  { %16829 = vmatprep.mubr.msk.bf16.mxu0 %vm19612_vm2, %v24553_v29 }
 0x47c   :  { %v21851_v50 = vpop.f32.mrb[52].mxu1 }
 0x47d   :  { %24702 = vst [vmem:[#allocation10_spill] sm:$0xff] %v21851_v50  ;;  %v16155_v12 = vpop.f32.mrb[53].mxu1 }
 0x47e   :  { %v21855_v3 = vpop.f32.mrb[54].mxu1 }
 0x47f   :  { %16830 = vmatmul.mubr.msk.bf16.gmra.mrb[96].mxu0 %vm534_vm4, %v21436_v36  ;;  %v16156_v18 = vpop.f32.mrb[55].mxu1 }
 0x480   :  { %16833 = vmatprep.mubr.msk.bf16.mxu0 %vm19612_vm2, %v24553_v29 }
 0x484   :  { %v21859_v35 = vpop.f32.mrb[56].mxu1 }
 0x485   :  { %24703 = vst [vmem:[#allocation9_spill] sm:$0xff] %v21859_v35  ;;  %v16159_v61 = vpop.f32.mrb[57].mxu1 }
 0x486   :  { %v21863_v63 = vpop.f32.mrb[58].mxu1 }
 0x487   :  { %16834 = vmatmul.mubr.msk.bf16.gmra.mrb[100].mxu0 %vm534_vm4, %v21448_v19  ;;  %v16160_v36 = vpop.f32.mrb[59].mxu1 }
 0x488   :  { %16837 = vmatprep.mubr.msk.bf16.mxu0 %vm19612_vm2, %v24553_v29 }
 0x48c   :  { %v21867_v50 = vpop.f32.mrb[60].mxu1 }
 0x48d   :  { %24704 = vst [vmem:[#allocation111_spill] sm:$0xff] %v21867_v50  ;;  %v16163_v12 = vpop.f32.mrb[61].mxu1 }
 0x48e   :  { %v21871_v18 = vpop.f32.mrb[62].mxu1 }
 0x48f   :  { %16838 = vmatmul.mubr.msk.bf16.gmra.mrb[104].mxu0 %vm534_vm4, %v21460_v26  ;;  %v16164_v19 = vpop.f32.mrb[63].mxu1 }
 0x490   :  { %16841 = vmatprep.mubr.msk.bf16.mxu0 %vm19612_vm2, %v24553_v29 }
 0x494   :  { %v21875_v35 = vpop.f32.mrb[64].mxu1 }
 0x495   :  { %24705 = vst [vmem:[#allocation12_spill] sm:$0xff] %v21875_v35  ;;  %v16167_v61 = vpop.f32.mrb[65].mxu1 }
 0x496   :  { %v21879_v36 = vpop.f32.mrb[66].mxu1 }
 0x497   :  { %16842 = vmatmul.mubr.msk.bf16.gmra.mrb[108].mxu0 %vm534_vm4, %v21472_v55  ;;  %v16168_v26 = vpop.f32.mrb[67].mxu1 }
 0x498   :  { %16845 = vmatprep.mubr.msk.bf16.mxu0 %vm19612_vm2, %v24553_v29 }
 0x49c   :  { %v21883_v50 = vpop.f32.mrb[68].mxu1 }
 0x49d   :  { %24706 = vst [vmem:[#allocation14_spill] sm:$0xff] %v21883_v50  ;;  %v16171_v12 = vpop.f32.mrb[69].mxu1 }
 0x49e   :  { %v21887_v19 = vpop.f32.mrb[70].mxu1 }
 0x49f   :  { %16846 = vmatmul.mubr.msk.bf16.gmra.mrb[112].mxu0 %vm534_vm4, %v21484_v42  ;;  %24707 = vst [vmem:[#allocation16_spill] sm:$0xff] %v21887_v19  ;;  %v16172_v55 = vpop.f32.mrb[71].mxu1 }
 0x4a0   :  { %16849 = vmatprep.mubr.msk.bf16.mxu0 %vm19612_vm2, %v24553_v29 }
 0x4a4   :  { %v21891_v35 = vpop.f32.mrb[72].mxu1 }
 0x4a5   :  { %v16175_v61 = vpop.f32.mrb[73].mxu1 }
 0x4a6   :  { %v1844_v26 = vpop.f32.mrb[74].mxu1 }
 0x4a7   :  { %16850 = vmatmul.mubr.msk.bf16.gmra.mrb[116].mxu0 %vm534_vm4, %v21496_v27  ;;  %v16176_v42 = vpop.f32.mrb[75].mxu1 }
 0x4a8   :  { %16853 = vmatprep.mubr.msk.bf16.mxu0 %vm19612_vm2, %v24553_v29 }
 0x4ac   :  { %v1848_v50 = vpop.f32.mrb[160].mxu1 }
 0x4ad   :  { %v16179_v12 = vpop.f32.mrb[161].mxu1 }
 0x4ae   :  { %v1850_v55 = vpop.f32.mrb[162].mxu1 }
 0x4af   :  { %16854 = vmatmul.mubr.msk.bf16.gmra.mrb[120].mxu0 %vm534_vm4, %v21508_v0  ;;  %v16180_v19 = vpop.f32.mrb[163].mxu1 }
 0x4b0   :  { %16857 = vmatprep.mubr.msk.bf16.mxu0 %vm19612_vm2, %v24553_v29 }
 0x4b4   :  { %v21901_v27 = vpop.f32.mrb[80].mxu1 }
 0x4b5   :  { %24708 = vst [vmem:[#allocation18_spill] sm:$0xff] %v21901_v27  ;;  %v16183_v61 = vpop.f32.mrb[81].mxu1  ;;  %v24728_v27 = vld [vmem:[#allocation71_spill] sm:$0xff] }
 0x4b6   :  { %v21905_v26 = vpop.f32.mrb[82].mxu1 }
 0x4b7   :  { %16858 = vmatmul.mubr.msk.bf16.gmra.mrb[124].mxu0 %vm534_vm4, %v21520_v21  ;;  %24709 = vst [vmem:[#allocation20_spill] sm:$0xff] %v21905_v26  ;;  %v16184_v42 = vpop.f32.mrb[83].mxu1 }
 0x4b8   :  { %16861 = vmatprep.mubr.msk.bf16.mxu0 %vm19612_vm2, %v24553_v29 }
 0x4bc   :  { %v21909_v0 = vpop.f32.mrb[84].mxu1 }
 0x4bd   :  { %24710 = vst [vmem:[#allocation22_spill] sm:$0xff] %v21909_v0  ;;  %v16187_v50 = vpop.f32.mrb[85].mxu1 }
 0x4be   :  { %v21913_v19 = vpop.f32.mrb[86].mxu1 }
 0x4bf   :  { %16862 = vmatmul.mubr.msk.bf16.gmra.mrb[128].mxu0 %vm534_vm4, %v21532_v51  ;;  %24711 = vst [vmem:[#allocation24_spill] sm:$0xff] %v21913_v19  ;;  %v16188_v21 = vpop.f32.mrb[87].mxu1 }
 0x4c0   :  { %16865 = vmatprep.mubr.msk.bf16.mxu0 %vm19612_vm2, %v24553_v29 }
 0x4c4   :  { %v21917_v12 = vpop.f32.mrb[88].mxu1 }
 0x4c5   :  { %24712 = vst [vmem:[#allocation26_spill] sm:$0xff] %v21917_v12  ;;  %v16191_v55 = vpop.f32.mrb[89].mxu1 }
 0x4c6   :  { %v21921_v61 = vpop.f32.mrb[90].mxu1 }
 0x4c7   :  { %16866 = vmatmul.mubr.msk.bf16.gmra.mrb[132].mxu0 %vm534_vm4, %v21544_v1  ;;  %24713 = vst [vmem:[#allocation28_spill] sm:$0xff] %v21921_v61  ;;  %v16192_v51 = vpop.f32.mrb[91].mxu1  ;;  %v24722_v61 = vld [vmem:[#allocation67_spill] sm:$0xff] }
 0x4c8   :  { %16869 = vmatprep.mubr.msk.bf16.mxu0 %vm19612_vm2, %v24553_v29  ;;  %v4264_v19 = vrot.slane %v24722_v61, 2 }
 0x4cc   :  { %v21925_v42 = vpop.f32.mrb[92].mxu1 }
 0x4cd   :  { %24714 = vst [vmem:[#allocation30_spill] sm:$0xff] %v21925_v42  ;;  %v16195_v50 = vpop.f32.mrb[93].mxu1 }
 0x4ce   :  { %v21929_v21 = vpop.f32.mrb[94].mxu1 }
 0x4cf   :  { %16870 = vmatmul.mubr.msk.bf16.gmra.mrb[136].mxu0 %vm534_vm4, %v21556_v2  ;;  %24715 = vst [vmem:[#allocation32_spill] sm:$0xff] %v21929_v21  ;;  %v16196_v1 = vpop.f32.mrb[95].mxu1  ;;  %v165_v2 = vld [vmem:[%s24304_s0 + $0x280] sm:$0xff] }
 0x4d0   :  { %16873 = vmatprep.mubr.msk.bf16.mxu0 %vm19612_vm2, %v24553_v29  ;;  %v21942_v50 = vpack.c.bf16 %v165_v2, %v165_v2 }
 0x4d4   :  { %v21933_v12 = vpop.f32.mrb[96].mxu1 }
 0x4d5   :  { %24716 = vst [vmem:[#allocation34_spill] sm:$0xff] %v21933_v12  ;;  %v16199_v55 = vpop.f32.mrb[97].mxu1 }
 0x4d6   :  { %v21940_v51 = vpop.f32.mrb[98].mxu1 }
 0x4d7   :  { %16874 = vmatmul.mubr.msk.bf16.gmra.mrb[140].mxu0 %vm534_vm4, %v21568_v9  ;;  %24717 = vst [vmem:[#allocation36_spill] sm:$0xff] %v21940_v51  ;;  %v16200_v42 = vpop.f32.mrb[99].mxu1  ;;  %v3835_v9 = vrot.slane %v21942_v50, 2 }
 0x4d8   :  { %16877 = vmatprep.mubr.msk.bf16.mxu0 %vm19612_vm2, %v24553_v29 }
 0x4d9   :  { %v3836_v51 = vsel %vm3210_vm7, %v21579_v6, %v3835_v9 }
 0x4dc   :  { %v21946_v1 = vpop.f32.mrb[100].mxu1 }
 0x4dd   :  { %24718 = vst [vmem:[#allocation38_spill] sm:$0xff] %v21946_v1  ;;  %v16203_v55 = vpop.f32.mrb[101].mxu1 }
 0x4de   :  { %v21951_v12 = vpop.f32.mrb[102].mxu1  ;;  %v24723_v55 = vld [vmem:[#allocation64_spill] sm:$0xff] }
 0x4df   :  { %16878 = vmatmul.mubr.msk.bf16.gmra.mrb[144].mxu0 %vm534_vm4, %v21583_v5  ;;  %24719 = vst [vmem:[#allocation40_spill] sm:$0xff] %v21951_v12  ;;  %v16204_v21 = vpop.f32.mrb[103].mxu1  ;;  %v4265_v0 = vrot.slane %v24723_v55, 3  ;;  %v24724_v12 = vld [vmem:[#allocation68_spill] sm:$0xff] }
 0x4e0   :  { %16881 = vmatprep.mubr.msk.bf16.mxu0 %vm19612_vm2, %v24553_v29  ;;  %v4267_v21 = vrot.slane %v20230_v60, 2  ;;  %v4268_v26 = vrot.slane %v24724_v12, 3  ;;  %v4272_v12 = vrot.slane %v24728_v27, 3 }
 0x4e4   :  { %v21956_v42 = vpop.f32.mrb[104].mxu1 }
 0x4e5   :  { %24720 = vst [vmem:[#allocation42_spill] sm:$0xff] %v21956_v42  ;;  %v16207_v5 = vpop.f32.mrb[105].mxu1 }
 0x4e6   :  { %v21960_v2 = vpop.f32.mrb[106].mxu1  ;;  %v4269_v5 = vor.u32 %v4268_v26, %v4267_v21 }
 0x4e7   :  { %16882 = vmatmul.mubr.msk.bf16.gmra.mrb[148].mxu0 %vm534_vm4, %v3836_v51  ;;  %24721 = vst [vmem:[#allocation44_spill] sm:$0xff] %v21960_v2  ;;  %v16208_v1 = vpop.f32.mrb[107].mxu1  ;;  %v4266_v51 = vor.u32 %v4265_v0, %v4264_v19  ;;  %v24727_v2 = vld [vmem:[#allocation74_spill] sm:$0xff] }
 0x4e8   :  { %16885 = vmatprep.mubr.msk.bf16.mxu0 %vm19612_vm2, %v24553_v29  ;;  %v4271_v60 = vrot.slane %v24727_v2, 2  ;;  %v210_v0 = vld [vmem:[%s24305_s1 + $0xc] sm:$0x3] }
 0x4e9   :  { %v4270_v55 = vsel %vm4263_vm8, %v4266_v51, %v4269_v5  ;;  %v24731_v51 = vld [vmem:[#allocation78_spill] sm:$0xff] }
 0x4ea   :  { %v4273_v26 = vor.u32 %v4272_v12, %v4271_v60 }
 0x4ec   :  { %v21967_v6 = vpop.f32.mrb[108].mxu1  ;;  %v4274_v27 = vsel %vm4263_vm8, %v4269_v5, %v4273_v26 }
 0x4ed   :  { %24725 = vst [vmem:[#allocation46_spill] sm:$0xff] %v21967_v6  ;;  %v16211_v42 = vpop.f32.mrb[109].mxu1 }
 0x4ee   :  { %v21971_v1 = vpop.f32.mrb[110].mxu1  ;;  %v5163_v42 = vand.u32 %v19716_v11, %v210_v0 }
 0x4ef   :  { %16886 = vmatmul.mubr.msk.bf16.gmra.mrb[152].mxu0 %vm534_vm4, %v3835_v9  ;;  %24726 = vst [vmem:[#allocation48_spill] sm:$0xff] %v21971_v1  ;;  %v16212_v61 = vpop.f32.mrb[111].mxu1 }
 0x4f0   :  { %16891 = vmatprep.mubr.msk.bf16.mxu0 %vm19612_vm2, %v24553_v29  ;;  %v4275_v61 = vrot.slane %v24731_v51, 2 }
 0x4f4   :  { %v21977_v9 = vpop.f32.mrb[112].mxu1 }
 0x4f5   :  { %24729 = vst [vmem:[#allocation50_spill] sm:$0xff] %v21977_v9  ;;  %v16215_v19 = vpop.f32.mrb[113].mxu1 }
 0x4f6   :  { %v21985_v21 = vpop.f32.mrb[114].mxu1 }
 0x4f7   :  { %16892 = vmatmul.mubr.msk.bf16.vlgmr.msra.gmra.mrb[0].mxu0 %vm534_vm4, %v4270_v55  ;;  %24730 = vst [vmem:[#allocation52_spill] sm:$0xff] %v21985_v21  ;;  %v16216_v2 = vpop.f32.mrb[115].mxu1  ;;  %v24732_v55 = vld [vmem:[#allocation75_spill] sm:$0xff] }
 0x4f8   :  { %16895 = vmatprep.mubr.msk.bf16.mxu0 %vm19612_vm2, %v24553_v29  ;;  %17048 = vmatpush3.bf16.msra.mxu0 %v5163_v42  ;;  %v4276_v9 = vrot.slane %v24732_v55, 3  ;;  %v24735_v42 = vld [vmem:[#allocation82_spill] sm:$0xff]  ;;  %v24736_v2 = vld [vmem:[#allocation79_spill] sm:$0xff] }
 0x4f9   :  { %v4279_v5 = vrot.slane %v24735_v42, 2  ;;  %v4280_v51 = vrot.slane %v24736_v2, 3 }
 0x4fa   :  { %v4277_v60 = vor.u32 %v4276_v9, %v4275_v61 }
 0x4fc   :  { %v21991_v1 = vpop.f32.mrb[116].mxu1  ;;  %v4278_v19 = vsel %vm4263_vm8, %v4273_v26, %v4277_v60 }
 0x4fd   :  { %24733 = vst [vmem:[#allocation54_spill] sm:$0xff] %v21991_v1  ;;  %v16219_v12 = vpop.f32.mrb[117].mxu1 }
 0x4fe   :  { %v21995_v11 = vpop.f32.mrb[118].mxu1 }
 0x4ff   :  { %16896 = vmatmul.mubr.msk.bf16.gmra.mrb[4].mxu0 %vm534_vm4, %v4274_v27  ;;  %24734 = vst [vmem:[#allocation56_spill] sm:$0xff] %v21995_v11  ;;  %v16220_v0 = vpop.f32.mrb[119].mxu1  ;;  %v4281_v27 = vor.u32 %v4280_v51, %v4279_v5  ;;  %v24740_v11 = vld [vmem:[#allocation83_spill] sm:$0xff] }
 0x500   :  { %16899 = vmatprep.mubr.msk.bf16.mxu0 %vm19612_vm2, %v24553_v29  ;;  %v24739_v0 = vld [vmem:[#allocation86_spill] sm:$0xff]  ;;  %v4284_v42 = vrot.slane %v24740_v11, 3 }
 0x501   :  { %v4282_v12 = vsel %vm4263_vm8, %v4277_v60, %v4281_v27  ;;  %v4283_v26 = vrot.slane %v24739_v0, 2 }
 0x504   :  { %v22001_v55 = vpop.f32.mrb[120].mxu1 }
 0x505   :  { %24737 = vst [vmem:[#allocation58_spill] sm:$0xff] %v22001_v55  ;;  %v16223_v1 = vpop.f32.mrb[121].mxu1 }
 0x506   :  { %v22005_v9 = vpop.f32.mrb[122].mxu1 }
 0x507   :  { %16900 = vmatmul.mubr.msk.bf16.gmra.mrb[8].mxu0 %vm534_vm4, %v4278_v19  ;;  %24738 = vst [vmem:[#allocation60_spill] sm:$0xff] %v22005_v9  ;;  %v16224_v61 = vpop.f32.mrb[123].mxu1  ;;  %v4285_v19 = vor.u32 %v4284_v42, %v4283_v26  ;;  %v24744_v9 = vld [vmem:[#allocation87_spill] sm:$0xff] }
 0x508   :  { %16903 = vmatprep.mubr.msk.bf16.mxu0 %vm19612_vm2, %v24553_v29  ;;  %v24743_v61 = vld [vmem:[#allocation90_spill] sm:$0xff]  ;;  %v4288_v0 = vrot.slane %v24744_v9, 3 }
 0x509   :  { %v4286_v51 = vsel %vm4263_vm8, %v4281_v27, %v4285_v19  ;;  %v4287_v60 = vrot.slane %v24743_v61, 2 }
 0x50c   :  { %v22011_v2 = vpop.f32.mrb[124].mxu1 }
 0x50d   :  { %24741 = vst [vmem:[#allocation62_spill] sm:$0xff] %v22011_v2  ;;  %v16227_v55 = vpop.f32.mrb[125].mxu1 }
 0x50e   :  { %v22015_v5 = vpop.f32.mrb[126].mxu1 }
 0x50f   :  { %16904 = vmatmul.mubr.msk.bf16.gmra.mrb[12].mxu0 %vm534_vm4, %v4282_v12  ;;  %24742 = vst [vmem:[#allocation65_spill] sm:$0xff] %v22015_v5  ;;  %v16228_v1 = vpop.f32.mrb[127].mxu1  ;;  %v4289_v12 = vor.u32 %v4288_v0, %v4287_v60  ;;  %v24748_v5 = vld [vmem:[#allocation91_spill] sm:$0xff] }
 0x510   :  { %16907 = vmatprep.mubr.msk.bf16.mxu0 %vm19612_vm2, %v24553_v29  ;;  %v24747_v1 = vld [vmem:[#allocation94_spill] sm:$0xff]  ;;  %v4292_v61 = vrot.slane %v24748_v5, 3 }
 0x511   :  { %v4290_v42 = vsel %vm4263_vm8, %v4285_v19, %v4289_v12  ;;  %v4291_v27 = vrot.slane %v24747_v1, 2 }
 0x514   :  { %v22021_v11 = vpop.f32.mrb[128].mxu1 }
 0x515   :  { %24745 = vst [vmem:[#allocation69_spill] sm:$0xff] %v22021_v11  ;;  %v16231_v2 = vpop.f32.mrb[129].mxu1 }
 0x516   :  { %v22025_v26 = vpop.f32.mrb[130].mxu1 }
 0x517   :  { %16908 = vmatmul.mubr.msk.bf16.gmra.mrb[16].mxu0 %vm534_vm4, %v4286_v51  ;;  %24746 = vst [vmem:[#allocation72_spill] sm:$0xff] %v22025_v26  ;;  %v16232_v55 = vpop.f32.mrb[131].mxu1  ;;  %v4293_v51 = vor.u32 %v4292_v61, %v4291_v27  ;;  %v24752_v26 = vld [vmem:[#allocation95_spill] sm:$0xff] }
 0x518   :  { %16911 = vmatprep.mubr.msk.bf16.mxu0 %vm19612_vm2, %v24553_v29  ;;  %v24751_v55 = vld [vmem:[#allocation98_spill] sm:$0xff]  ;;  %v4296_v1 = vrot.slane %v24752_v26, 3  ;;  %v24755_v26 = vld [vmem:[#allocation99_spill] sm:$0xff] }
 0x519   :  { %v4294_v0 = vsel %vm4263_vm8, %v4289_v12, %v4293_v51  ;;  %v4295_v19 = vrot.slane %v24751_v55, 2  ;;  %v24754_v55 = vld [vmem:[#allocation102_spill] sm:$0xff]  ;;  %v4300_v6 = vrot.slane %v24755_v26, 3 }
 0x51a   :  { %v4299_v21 = vrot.slane %v24754_v55, 2 }
 0x51c   :  { %v22031_v9 = vpop.f32.mrb[132].mxu1 }
 0x51d   :  { %24749 = vst [vmem:[#allocation76_spill] sm:$0xff] %v22031_v9  ;;  %v16235_v11 = vpop.f32.mrb[133].mxu1 }
 0x51e   :  { %v22035_v60 = vpop.f32.mrb[134].mxu1 }
 0x51f   :  { %16912 = vmatmul.mubr.msk.bf16.gmra.mrb[20].mxu0 %vm534_vm4, %v4290_v42  ;;  %24750 = vst [vmem:[#allocation80_spill] sm:$0xff] %v22035_v60  ;;  %v16236_v2 = vpop.f32.mrb[135].mxu1  ;;  %v4297_v42 = vor.u32 %v4296_v1, %v4295_v19 }
 0x520   :  { %16915 = vmatprep.mubr.msk.bf16.mxu0 %vm19612_vm2, %v24553_v29 }
 0x521   :  { %v4298_v12 = vsel %vm4263_vm8, %v4293_v51, %v4297_v42  ;;  %v24758_v51 = vld [vmem:[#allocation107_spill] sm:$0xff] }
 0x524   :  { %v22041_v5 = vpop.f32.mrb[136].mxu1 }
 0x525   :  { %24753 = vst [vmem:[#allocation84_spill] sm:$0xff] %v22041_v5  ;;  %v16239_v9 = vpop.f32.mrb[137].mxu1 }
 0x526   :  { %v22045_v27 = vpop.f32.mrb[138].mxu1  ;;  %v4301_v9 = vor.u32 %v4300_v6, %v4299_v21 }
 0x527   :  { %16916 = vmatmul.mubr.msk.bf16.gmra.mrb[24].mxu0 %vm534_vm4, %v4294_v0  ;;  %v16240_v61 = vpop.f32.mrb[139].mxu1 }
 0x528   :  { %16919 = vmatprep.mubr.msk.bf16.mxu0 %vm19612_vm2, %v24553_v29  ;;  %v4303_v61 = vrot.slane %v24758_v51, 2 }
 0x52a   :  { %v4033_v11 = vpop.f32.mrb[164].mxu0 }
 0x52b   :  { %v16811_v2 = vpop.f32.mrb[165].mxu0 }
 0x52c   :  { %v4035_v60 = vpop.f32.mrb[166].mxu0  ;;  %v22051_v5 = vpop.f32.mrb[140].mxu1  ;;  %v24759_v2 = vld [vmem:[#allocation103_spill] sm:$0xff] }
 0x52d   :  { %v16812_v0 = vpop.f32.mrb[167].mxu0  ;;  %24756 = vst [vmem:[#allocation88_spill] sm:$0xff] %v22051_v5  ;;  %v16243_v19 = vpop.f32.mrb[141].mxu1  ;;  %v4302_v60 = vsel %vm4263_vm8, %v4297_v42, %v4301_v9  ;;  %v4304_v55 = vrot.slane %v24759_v2, 3 }
 0x52e   :  { %v22055_v1 = vpop.f32.mrb[142].mxu1 }
 0x52f   :  { %16920 = vmatmul.mubr.msk.bf16.gmra.mrb[28].mxu0 %vm534_vm4, %v4298_v12  ;;  %24757 = vst [vmem:[#allocation92_spill] sm:$0xff] %v22055_v1  ;;  %v16244_v11 = vpop.f32.mrb[143].mxu1  ;;  %v4305_v12 = vor.u32 %v4304_v55, %v4303_v61  ;;  %v24763_v1 = vld [vmem:[#allocation108_spill] sm:$0xff] }
 0x530   :  { %16923 = vmatprep.mubr.msk.bf16.mxu0 %vm19612_vm2, %v24553_v29  ;;  %v24762_v11 = vld [vmem:[#allocation109_spill] sm:$0xff]  ;;  %v4308_v51 = vrot.slane %v24763_v1, 3 }
 0x531   :  { %v4306_v19 = vsel %vm4263_vm8, %v4301_v9, %v4305_v12  ;;  %v4307_v42 = vrot.slane %v24762_v11, 2 }
 0x534   :  { %v22061_v26 = vpop.f32.mrb[144].mxu1 }
 0x535   :  { %24760 = vst [vmem:[#allocation96_spill] sm:$0xff] %v22061_v26  ;;  %v16247_v0 = vpop.f32.mrb[145].mxu1 }
 0x536   :  { %v22065_v6 = vpop.f32.mrb[146].mxu1 }
 0x537   :  { %16924 = vmatmul.mubr.msk.bf16.gmra.mrb[32].mxu0 %vm534_vm4, %v4302_v60  ;;  %24761 = vst [vmem:[#allocation100_spill] sm:$0xff] %v22065_v6  ;;  %v16248_v21 = vpop.f32.mrb[147].mxu1  ;;  %v4309_v60 = vor.u32 %v4308_v51, %v4307_v42  ;;  %v24767_v6 = vld [vmem:[#allocation110_spill] sm:$0xff] }
 0x538   :  { %16927 = vmatprep.mubr.msk.bf16.mxu0 %vm19612_vm2, %v24553_v29  ;;  %v24766_v21 = vld [vmem:[#allocation112_spill] sm:$0xff]  ;;  %v4312_v11 = vrot.slane %v24767_v6, 3 }
 0x539   :  { %v4310_v0 = vsel %vm4263_vm8, %v4305_v12, %v4309_v60  ;;  %v4311_v9 = vrot.slane %v24766_v21, 2  ;;  %v24770_v12 = vld [vmem:[#allocation113_spill] sm:$0xff]  ;;  %v24771_v21 = vld [vmem:[#allocation116_spill] sm:$0xff] }
 0x53a   :  { %v4316_v5 = vrot.slane %v24770_v12, 3 }
 0x53c   :  { %v22071_v2 = vpop.f32.mrb[148].mxu1 }
 0x53d   :  { %24764 = vst [vmem:[#allocation105_spill] sm:$0xff] %v22071_v2  ;;  %v16251_v26 = vpop.f32.mrb[149].mxu1 }
 0x53e   :  { %v22075_v61 = vpop.f32.mrb[150].mxu1 }
 0x53f   :  { %16928 = vmatmul.mubr.msk.bf16.gmra.mrb[36].mxu0 %vm534_vm4, %v4306_v19  ;;  %24765 = vst [vmem:[#allocation104_spill] sm:$0xff] %v22075_v61  ;;  %v16252_v55 = vpop.f32.mrb[151].mxu1  ;;  %v4313_v19 = vor.u32 %v4312_v11, %v4311_v9  ;;  %v24772_v9 = vld [vmem:[#allocation115_spill] sm:$0xff] }
 0x540   :  { %16931 = vmatprep.mubr.msk.bf16.mxu0 %vm19612_vm2, %v24553_v29  ;;  %v24769_v55 = vld [vmem:[#allocation114_spill] sm:$0xff] }
 0x541   :  { %v4314_v51 = vsel %vm4263_vm8, %v4309_v60, %v4313_v19  ;;  %v4315_v61 = vrot.slane %v24769_v55, 2 }
 0x543   :  { %v4317_v6 = vor.u32 %v4316_v5, %v4315_v61 }
 0x544   :  { %v22081_v1 = vpop.f32.mrb[152].mxu1 }
 0x545   :  { %24768 = vst [vmem:[#allocation67_spill] sm:$0xff] %v22081_v1  ;;  %v16255_v2 = vpop.f32.mrb[153].mxu1  ;;  %v4319_v1 = vrot.slane %v24771_v21, 2 }
 0x546   :  { %v2001_v42 = vpop.f32.mrb[154].mxu1  ;;  %v4320_v2 = vrot.slane %v24772_v9, 3  ;;  %v24777_v9 = vld [vmem:[#allocation122_spill] sm:$0xff] }
 0x547   :  { %16932 = vmatmul.mubr.msk.bf16.gmra.mrb[40].mxu0 %vm534_vm4, %v4310_v0  ;;  %v16256_v26 = vpop.f32.mrb[155].mxu1  ;;  %v4318_v0 = vsel %vm4263_vm8, %v4313_v19, %v4317_v6  ;;  %v24773_v42 = vld [vmem:[#allocation118_spill] sm:$0xff]  ;;  %v24775_v19 = vld [vmem:[#allocation120_spill] sm:$0xff] }
 0x548   :  { %16935 = vmatprep.mubr.msk.bf16.mxu0 %vm19612_vm2, %v24553_v29  ;;  %v4321_v60 = vor.u32 %v4320_v2, %v4319_v1  ;;  %v4323_v26 = vrot.slane %v24773_v42, 2  ;;  %v4327_v12 = vrot.slane %v24775_v19, 2  ;;  %v4331_v2 = vrot.slane %v24777_v9, 2 }
 0x54a   :  { %v4322_v11 = vsel %vm4263_vm8, %v4317_v6, %v4321_v60 }
 0x54f   :  { %16936 = vmatmul.mubr.msk.bf16.gmra.mrb[44].mxu0 %vm534_vm4, %v4314_v51  ;;  %v24774_v51 = vld [vmem:[#allocation117_spill] sm:$0xff] }
 0x550   :  { %16939 = vmatprep.mubr.msk.bf16.mxu0 %vm19612_vm2, %v24553_v29  ;;  %v4324_v55 = vrot.slane %v24774_v51, 3  ;;  %v24779_v51 = vld [vmem:[#allocation124_spill] sm:$0xff] }
 0x552   :  { %v4325_v5 = vor.u32 %v4324_v55, %v4323_v26  ;;  %v4335_v55 = vrot.slane %v24779_v51, 2 }
 0x554   :  { %v4326_v61 = vsel %vm4263_vm8, %v4321_v60, %v4325_v5 }
 0x557   :  { %16940 = vmatmul.mubr.msk.bf16.gmra.mrb[48].mxu0 %vm534_vm4, %v4318_v0  ;;  %v24776_v0 = vld [vmem:[#allocation119_spill] sm:$0xff] }
 0x558   :  { %16943 = vmatprep.mubr.msk.bf16.mxu0 %vm19612_vm2, %v24553_v29  ;;  %v4328_v21 = vrot.slane %v24776_v0, 3  ;;  %v24781_v0 = vld [vmem:[#allocation126_spill] sm:$0xff] }
 0x55a   :  { %v4329_v1 = vor.u32 %v4328_v21, %v4327_v12  ;;  %v4339_v21 = vrot.slane %v24781_v0, 2 }
 0x55c   :  { %v4330_v6 = vsel %vm4263_vm8, %v4325_v5, %v4329_v1 }
 0x55f   :  { %16944 = vmatmul.mubr.msk.bf16.gmra.mrb[52].mxu0 %vm534_vm4, %v4322_v11  ;;  %v24778_v11 = vld [vmem:[#allocation121_spill] sm:$0xff] }
 0x560   :  { %16947 = vmatprep.mubr.msk.bf16.mxu0 %vm19612_vm2, %v24553_v29  ;;  %v4332_v42 = vrot.slane %v24778_v11, 3  ;;  %v24783_v11 = vld [vmem:[#allocation128_spill] sm:$0xff] }
 0x562   :  { %v4333_v60 = vor.u32 %v4332_v42, %v4331_v2  ;;  %v4343_v42 = vrot.slane %v24783_v11, 2 }
 0x564   :  { %v4334_v26 = vsel %vm4263_vm8, %v4329_v1, %v4333_v60 }
 0x567   :  { %16948 = vmatmul.mubr.msk.bf16.gmra.mrb[56].mxu0 %vm534_vm4, %v4326_v61  ;;  %v24780_v61 = vld [vmem:[#allocation123_spill] sm:$0xff] }
 0x568   :  { %16951 = vmatprep.mubr.msk.bf16.mxu0 %vm19612_vm2, %v24553_v29  ;;  %v4336_v19 = vrot.slane %v24780_v61, 3  ;;  %v24785_v61 = vld [vmem:[#allocation130_spill] sm:$0xff] }
 0x56a   :  { %v4337_v5 = vor.u32 %v4336_v19, %v4335_v55  ;;  %v4347_v19 = vrot.slane %v24785_v61, 2 }
 0x56c   :  { %v4338_v12 = vsel %vm4263_vm8, %v4333_v60, %v4337_v5 }
 0x56f   :  { %16952 = vmatmul.mubr.msk.bf16.gmra.mrb[60].mxu0 %vm534_vm4, %v4330_v6  ;;  %v24782_v6 = vld [vmem:[#allocation125_spill] sm:$0xff] }
 0x570   :  { %16955 = vmatprep.mubr.msk.bf16.mxu0 %vm19612_vm2, %v24553_v29  ;;  %v4340_v9 = vrot.slane %v24782_v6, 3  ;;  %v24787_v6 = vld [vmem:[#allocation132_spill] sm:$0xff] }
 0x572   :  { %v4341_v1 = vor.u32 %v4340_v9, %v4339_v21  ;;  %v4351_v9 = vrot.slane %v24787_v6, 2  ;;  %v4363_v6 = vrot.slane %v20769_v46, 2 }
 0x574   :  { %v4342_v2 = vsel %vm4263_vm8, %v4337_v5, %v4341_v1 }
 0x577   :  { %16956 = vmatmul.mubr.msk.bf16.gmra.mrb[64].mxu0 %vm534_vm4, %v4334_v26  ;;  %v24784_v26 = vld [vmem:[#allocation127_spill] sm:$0xff] }
 0x578   :  { %16959 = vmatprep.mubr.msk.bf16.mxu0 %vm19612_vm2, %v24553_v29  ;;  %v4344_v51 = vrot.slane %v24784_v26, 3  ;;  %v24789_v26 = vld [vmem:[#allocation134_spill] sm:$0xff] }
 0x57a   :  { %v4345_v60 = vor.u32 %v4344_v51, %v4343_v42  ;;  %v4355_v51 = vrot.slane %v24789_v26, 2  ;;  %v4375_v26 = vrot.slane %v20823_v14, 2 }
 0x57c   :  { %v4346_v55 = vsel %vm4263_vm8, %v4341_v1, %v4345_v60 }
 0x57f   :  { %16960 = vmatmul.mubr.msk.bf16.gmra.mrb[68].mxu0 %vm534_vm4, %v4338_v12  ;;  %v24786_v12 = vld [vmem:[#allocation129_spill] sm:$0xff] }
 0x580   :  { %16963 = vmatprep.mubr.msk.bf16.mxu0 %vm19612_vm2, %v24553_v29  ;;  %v4348_v0 = vrot.slane %v24786_v12, 3  ;;  %v4359_v12 = vrot.slane %v20751_v39, 2 }
 0x582   :  { %v4349_v5 = vor.u32 %v4348_v0, %v4347_v19  ;;  %v4360_v0 = vrot.slane %v20736_v28, 3 }
 0x584   :  { %v4350_v21 = vsel %vm4263_vm8, %v4345_v60, %v4349_v5 }
 0x587   :  { %16964 = vmatmul.mubr.msk.bf16.gmra.mrb[72].mxu0 %vm534_vm4, %v4342_v2  ;;  %v24788_v2 = vld [vmem:[#allocation131_spill] sm:$0xff] }
 0x588   :  { %16967 = vmatprep.mubr.msk.bf16.mxu0 %vm19612_vm2, %v24553_v29  ;;  %v4352_v11 = vrot.slane %v24788_v2, 3  ;;  %v4367_v2 = vrot.slane %v20787_v52, 2 }
 0x58a   :  { %v4353_v1 = vor.u32 %v4352_v11, %v4351_v9  ;;  %v4364_v9 = vrot.slane %v20754_v47, 3  ;;  %v4368_v11 = vrot.slane %v20772_v22, 3 }
 0x58c   :  { %v4354_v42 = vsel %vm4263_vm8, %v4349_v5, %v4353_v1  ;;  %v4361_v5 = vor.u32 %v4360_v0, %v4359_v12  ;;  %v4365_v39 = vor.u32 %v4364_v9, %v4363_v6  ;;  %v4369_v46 = vor.u32 %v4368_v11, %v4367_v2  ;;  %v24793_v12 = vld [vmem:[#allocation138_spill] sm:$0xff]  ;;  %v24796_v2 = vld [vmem:[#allocation139_spill] sm:$0xff] }
 0x58d   :  { %v4383_v0 = vrot.slane %v24793_v12, 2  ;;  %v4388_v11 = vrot.slane %v24796_v2, 3 }
 0x58e   :  { %v4366_v28 = vsel %vm4263_vm8, %v4361_v5, %v4365_v39  ;;  %v4370_v47 = vsel %vm4263_vm8, %v4365_v39, %v4369_v46  ;;  %v24795_v39 = vld [vmem:[#allocation140_spill] sm:$0xff] }
 0x58f   :  { %16968 = vmatmul.mubr.msk.bf16.gmra.mrb[168].mxu0 %vm534_vm4, %v4346_v55  ;;  %v24790_v55 = vld [vmem:[#allocation133_spill] sm:$0xff] }
 0x590   :  { %16971 = vmatprep.mubr.msk.bf16.mxu0 %vm19612_vm2, %v24553_v29  ;;  %v4356_v61 = vrot.slane %v24790_v55, 3  ;;  %v24791_v55 = vld [vmem:[#allocation136_spill] sm:$0xff] }
 0x592   :  { %v4357_v60 = vor.u32 %v4356_v61, %v4355_v51  ;;  %v4376_v51 = vrot.slane %v20808_v20, 3  ;;  %v4379_v61 = vrot.slane %v24791_v55, 2 }
 0x594   :  { %v4358_v19 = vsel %vm4263_vm8, %v4353_v1, %v4357_v60  ;;  %v4371_v1 = vrot.slane %v20805_v30, 2  ;;  %v4377_v30 = vor.u32 %v4376_v51, %v4375_v26 }
 0x597   :  { %16972 = vmatmul.mubr.msk.bf16.gmra.mrb[80].mxu0 %vm534_vm4, %v4350_v21  ;;  %v4362_v21 = vsel %vm4263_vm8, %v4357_v60, %v4361_v5  ;;  %v24792_v60 = vld [vmem:[#allocation135_spill] sm:$0xff]  ;;  %v24794_v5 = vld [vmem:[#allocation137_spill] sm:$0xff] }
 0x598   :  { %16975 = vmatprep.mubr.msk.bf16.mxu0 %vm19612_vm2, %v24553_v29 }
 0x59f   :  { %16976 = vmatmul.mubr.msk.bf16.gmra.mrb[84].mxu0 %vm534_vm4, %v4354_v42  ;;  %v4372_v42 = vrot.slane %v20790_v25, 3 }
 0x5a0   :  { %16979 = vmatprep.mubr.msk.bf16.mxu0 %vm19612_vm2, %v24553_v29 }
 0x5a1   :  { %v4373_v52 = vor.u32 %v4372_v42, %v4371_v1  ;;  %v24797_v1 = vld [vmem:[#allocation142_spill] sm:$0xff] }
 0x5a2   :  { %v4391_v42 = vrot.slane %v24797_v1, 2  ;;  %v4416_v1 = vshrl.u32 %v21942_v50, 16 }
 0x5a3   :  { %v4374_v22 = vsel %vm4263_vm8, %v4369_v46, %v4373_v52  ;;  %v4378_v25 = vsel %vm4263_vm8, %v4373_v52, %v4377_v30  ;;  %v24798_v52 = vld [vmem:[#allocation141_spill] sm:$0xff] }
 0x5a7   :  { %16980 = vmatmul.mubr.msk.bf16.gmra.mrb[88].mxu0 %vm534_vm4, %v4358_v19  ;;  %v4380_v19 = vrot.slane %v24792_v60, 3  ;;  %v4399_v60 = vrot.slane %v20931_v7, 2 }
 0x5a8   :  { %16983 = vmatprep.mubr.msk.bf16.mxu0 %vm19612_vm2, %v24553_v29 }
 0x5a9   :  { %v4381_v14 = vor.u32 %v4380_v19, %v4379_v61  ;;  %v4400_v19 = vrot.slane %v20916_v31, 3 }
 0x5ab   :  { %v4382_v20 = vsel %vm4263_vm8, %v4377_v30, %v4381_v14  ;;  %v4395_v30 = vrot.slane %v20913_v41, 2  ;;  %v4401_v41 = vor.u32 %v4400_v19, %v4399_v60 }
 0x5af   :  { %16984 = vmatmul.mubr.msk.bf16.gmra.mrb[92].mxu0 %vm534_vm4, %v4362_v21  ;;  %v4384_v21 = vrot.slane %v24794_v5, 3 }
 0x5b0   :  { %16987 = vmatprep.mubr.msk.bf16.mxu0 %vm19612_vm2, %v24553_v29 }
 0x5b1   :  { %v4385_v6 = vor.u32 %v4384_v21, %v4383_v0  ;;  %v24800_v0 = vld [vmem:[#allocation145_spill] sm:$0xff]  ;;  %v24801_v21 = vld [vmem:[#allocation144_spill] sm:$0xff] }
 0x5b2   :  { %v4407_v5 = vrot.slane %v24800_v0, 2 }
 0x5b3   :  { %v4386_v9 = vsel %vm4263_vm8, %v4381_v14, %v4385_v6  ;;  %v4403_v14 = vrot.slane %v20949_v34, 2 }
 0x5b7   :  { %16988 = vmatmul.mubr.msk.bf16.gmra.mrb[96].mxu0 %vm534_vm4, %v4366_v28  ;;  %v4387_v28 = vrot.slane %v24795_v39, 2  ;;  %v24802_v39 = vld [vmem:[#allocation106_spill] sm:$0xff] }
 0x5b8   :  { %16991 = vmatprep.mubr.msk.bf16.mxu0 %vm19612_vm2, %v24553_v29 }
 0x5b9   :  { %v4389_v46 = vor.u32 %v4388_v11, %v4387_v28  ;;  %v24803_v28 = vshrl.u32 %v24802_v39, 16  ;;  %v24804_v11 = vshll.u32 %v24802_v39, 16 }
 0x5bb   :  { %v4411_v2 = vrot.slane %v24803_v28, 2 }
 0x5bf   :  { %16992 = vmatmul.mubr.msk.bf16.gmra.mrb[100].mxu0 %vm534_vm4, %v4370_v47  ;;  %v4390_v47 = vsel %vm4263_vm8, %v4385_v6, %v4389_v46  ;;  %v4408_v6 = vrot.slane %v24801_v21, 3  ;;  %v24810_v21 = vld [vmem:[#allocation21_spill] sm:$0xff] }
 0x5c0   :  { %16995 = vmatprep.mubr.msk.bf16.mxu0 %vm19612_vm2, %v24553_v29 }
 0x5c1   :  { %v4409_v34 = vor.u32 %v4408_v6, %v4407_v5  ;;  %v4977_v6 = vrot.slane %v24810_v21, 3 }
 0x5c7   :  { %16996 = vmatmul.mubr.msk.bf16.gmra.mrb[104].mxu0 %vm534_vm4, %v4374_v22  ;;  %v4392_v22 = vrot.slane %v24798_v52, 3 }
 0x5c8   :  { %16999 = vmatprep.mubr.msk.bf16.mxu0 %vm19612_vm2, %v24553_v29 }
 0x5c9   :  { %v4393_v26 = vor.u32 %v4392_v22, %v4391_v42  ;;  %v4419_v42 = vshll.u32 %v21942_v50, 16  ;;  %v4418_v22 = vrot.slane %v4416_v1, 2  ;;  %v24813_v1 = vld [vmem:[#allocation27_spill] sm:$0xff] }
 0x5cb   :  { %v4394_v51 = vsel %vm4263_vm8, %v4389_v46, %v4393_v26  ;;  %v4412_v46 = vrot.slane %v24804_v11, 3  ;;  %v24812_v11 = vld [vmem:[#allocation25_spill] sm:$0xff] }
 0x5cf   :  { %17000 = vmatmul.mubr.msk.bf16.gmra.mrb[108].mxu0 %vm534_vm4, %v4378_v25  ;;  %v4396_v25 = vrot.slane %v20898_v38, 3 }
 0x5d0   :  { %17003 = vmatprep.mubr.msk.bf16.mxu0 %vm19612_vm2, %v24553_v29 }
 0x5d1   :  { %v4397_v55 = vor.u32 %v4396_v25, %v4395_v30  ;;  %v24805_v25 = vld [vmem:[#allocation11_spill] sm:$0xff] }
 0x5d3   :  { %v4398_v61 = vsel %vm4263_vm8, %v4393_v26, %v4397_v55  ;;  %v4402_v38 = vsel %vm4263_vm8, %v4397_v55, %v4401_v41  ;;  %v4421_v26 = vrot.slane %v4419_v42, 3  ;;  %v4968_v55 = vrot.slane %v24805_v25, 3  ;;  %v24814_v25 = vld [vmem:[#allocation29_spill] sm:$0xff] }
 0x5d4   :  { %v4983_v42 = vrot.slane %v24813_v1, 3  ;;  %v19613_v1 = vmov 0.0|0.0  }
 0x5d5   :  { %17945 = vmatprep.subr.bf16.mxu1 %v19613_v1 }
 0x5d7   :  { %17004 = vmatmul.mubr.msk.bf16.gmra.mrb[112].mxu0 %vm534_vm4, %v4382_v20  ;;  %v24799_v20 = vld [vmem:[#allocation143_spill] sm:$0xff] }
 0x5d8   :  { %17007 = vmatprep.mubr.msk.bf16.mxu0 %vm19612_vm2, %v24553_v29  ;;  %v4404_v12 = vrot.slane %v24799_v20, 3  ;;  %v24808_v20 = vld [vmem:[#allocation17_spill] sm:$0xff] }
 0x5da   :  { %v4405_v7 = vor.u32 %v4404_v12, %v4403_v14  ;;  %v4973_v12 = vrot.slane %v24808_v20, 3 }
 0x5dc   :  { %v4406_v31 = vsel %vm4263_vm8, %v4401_v41, %v4405_v7  ;;  %v24807_v41 = vld [vmem:[#allocation15_spill] sm:$0xff] }
 0x5df   :  { %17008 = vmatmul.mubr.msk.bf16.gmra.mrb[116].mxu0 %vm534_vm4, %v4386_v9  ;;  %v4410_v9 = vsel %vm4263_vm8, %v4405_v7, %v4409_v34 }
 0x5e0   :  { %17011 = vmatprep.mubr.msk.bf16.mxu0 %vm19612_vm2, %v24553_v29 }
 0x5e7   :  { %17012 = vmatmul.mubr.msk.bf16.gmra.mrb[120].mxu0 %vm534_vm4, %v4390_v47  ;;  %v4413_v47 = vor.u32 %v4412_v46, %v4411_v2  ;;  %v4981_v46 = vrot.slane %v24812_v11, 3 }
 0x5e8   :  { %17015 = vmatprep.mubr.msk.bf16.mxu0 %vm19612_vm2, %v24553_v29 }
 0x5e9   :  { %v4414_v52 = vsel %vm4263_vm8, %v4409_v34, %v4413_v47 }
 0x5ef   :  { %17016 = vmatmul.mubr.msk.bf16.gmra.mrb[124].mxu0 %vm534_vm4, %v4394_v51  ;;  %v4422_v51 = vor.u32 %v4421_v26, %v4418_v22 }
 0x5f0   :  { %17019 = vmatprep.mubr.msk.bf16.mxu0 %vm19612_vm2, %v24553_v29 }
 0x5f1   :  { %v4423_v30 = vsel %vm4263_vm8, %v4413_v47, %v4422_v51 }
 0x5f7   :  { %17020 = vmatmul.mubr.msk.bf16.gmra.mrb[128].mxu0 %vm534_vm4, %v4398_v61  ;;  %v24806_v61 = vld [vmem:[#allocation13_spill] sm:$0xff] }
 0x5f8   :  { %17023 = vmatprep.mubr.msk.bf16.mxu0 %vm19612_vm2, %v24553_v29  ;;  %v4969_v60 = vrot.slane %v24806_v61, 3 }
 0x5fa   :  { %v4970_v19 = vsel %vm4967_vm9, %v4968_v55, %v4969_v60  ;;  %v4985_v55 = vrot.slane %v24814_v25, 3 }
 0x5fc   :  { %v4986_v61 = vsel %vm4967_vm9, %v4983_v42, %v4985_v55 }
 0x5ff   :  { %17024 = vmatmul.mubr.msk.bf16.gmra.mrb[132].mxu0 %vm534_vm4, %v4402_v38  ;;  %v4971_v38 = vrot.slane %v24807_v41, 3 }
 0x600   :  { %17027 = vmatprep.mubr.msk.bf16.mxu0 %vm19612_vm2, %v24553_v29 }
 0x601   :  { %v4972_v14 = vsel %vm4967_vm9, %v4969_v60, %v4971_v38  ;;  %v4974_v7 = vsel %vm4967_vm9, %v4971_v38, %v4973_v12  ;;  %v24815_v60 = vld [vmem:[#allocation31_spill] sm:$0xff]  ;;  %v24816_v38 = vld [vmem:[#allocation33_spill] sm:$0xff] }
 0x607   :  { %17028 = vmatmul.mubr.msk.bf16.gmra.mrb[136].mxu0 %vm534_vm4, %v4406_v31  ;;  %v24809_v31 = vld [vmem:[#allocation19_spill] sm:$0xff] }
 0x608   :  { %17031 = vmatprep.mubr.msk.bf16.mxu0 %vm19612_vm2, %v24553_v29  ;;  %v4975_v0 = vrot.slane %v24809_v31, 3 }
 0x60a   :  { %v4976_v5 = vsel %vm4967_vm9, %v4973_v12, %v4975_v0  ;;  %v4978_v34 = vsel %vm4967_vm9, %v4975_v0, %v4977_v6  ;;  %v24817_v12 = vld [vmem:[#allocation35_spill] sm:$0xff]  ;;  %v24818_v0 = vld [vmem:[#allocation37_spill] sm:$0xff] }
 0x60f   :  { %17032 = vmatmul.mubr.msk.bf16.gmra.mrb[140].mxu0 %vm534_vm4, %v4410_v9  ;;  %v24811_v9 = vld [vmem:[#allocation23_spill] sm:$0xff] }
 0x610   :  { %17035 = vmatprep.mubr.msk.bf16.mxu0 %vm19612_vm2, %v24553_v29  ;;  %v4979_v28 = vrot.slane %v24811_v9, 3 }
 0x612   :  { %v4980_v2 = vsel %vm4967_vm9, %v4977_v6, %v4979_v28  ;;  %v4982_v47 = vsel %vm4967_vm9, %v4979_v28, %v4981_v46  ;;  %v24819_v6 = vld [vmem:[#allocation39_spill] sm:$0xff]  ;;  %v24820_v28 = vld [vmem:[#allocation41_spill] sm:$0xff] }
 0x617   :  { %17036 = vmatmul.mubr.msk.bf16.gmra.mrb[144].mxu0 %vm534_vm4, %v4414_v52 }
 0x618   :  { %17039 = vmatprep.mubr.msk.bf16.mxu0 %vm19612_vm2, %v24553_v29 }
 0x61f   :  { %17040 = vmatmul.mubr.msk.bf16.gmra.mrb[148].mxu0 %vm534_vm4, %v4423_v30 }
 0x620   :  { %17043 = vmatprep.mubr.msk.bf16.mxu0 %vm19612_vm2, %v24553_v29 }
 0x627   :  { %17044 = vmatmul.mubr.msk.bf16.gmra.mrb[152].mxu0 %vm534_vm4, %v4422_v51  ;;  %v4984_v51 = vsel %vm4967_vm9, %v4981_v46, %v4983_v42  ;;  %v24821_v46 = vld [vmem:[#allocation43_spill] sm:$0xff] }
 0x628   :  { %17049 = vmatprep.mubr.msk.bf16.mxu0 %vm19612_vm2, %v24553_v29 }
 0x62f   :  { %17050 = vmatmul.mubr.msk.bf16.vlgmr.msra.gmra.mrb[0].mxu0 %vm534_vm4, %v4970_v19  ;;  %v4987_v19 = vrot.slane %v24815_v60, 3 }
 0x630   :  { %17053 = vmatprep.mubr.msk.bf16.mxu0 %vm19612_vm2, %v24553_v29 }
 0x631   :  { %v4988_v41 = vsel %vm4967_vm9, %v4985_v55, %v4987_v19  ;;  %v24824_v55 = vld [vmem:[#allocation49_spill] sm:$0xff] }
 0x637   :  { %17054 = vmatmul.mubr.msk.bf16.gmra.mrb[4].mxu0 %vm534_vm4, %v4972_v14  ;;  %v4989_v14 = vrot.slane %v24816_v38, 3 }
 0x638   :  { %17057 = vmatprep.mubr.msk.bf16.mxu0 %vm19612_vm2, %v24553_v29 }
 0x639   :  { %v4990_v20 = vsel %vm4967_vm9, %v4987_v19, %v4989_v14  ;;  %v24825_v19 = vld [vmem:[#allocation51_spill] sm:$0xff] }
 0x63f   :  { %17058 = vmatmul.mubr.msk.bf16.gmra.mrb[8].mxu0 %vm534_vm4, %v4974_v7  ;;  %v4991_v7 = vrot.slane %v24817_v12, 3 }
 0x640   :  { %17061 = vmatprep.mubr.msk.bf16.mxu0 %vm19612_vm2, %v24553_v29 }
 0x641   :  { %v4992_v31 = vsel %vm4967_vm9, %v4989_v14, %v4991_v7  ;;  %v24826_v14 = vld [vmem:[#allocation53_spill] sm:$0xff] }
 0x647   :  { %17062 = vmatmul.mubr.msk.bf16.gmra.mrb[12].mxu0 %vm534_vm4, %v4976_v5  ;;  %v4993_v5 = vrot.slane %v24818_v0, 3 }
 0x648   :  { %17065 = vmatprep.mubr.msk.bf16.mxu0 %vm19612_vm2, %v24553_v29 }
 0x649   :  { %v4994_v21 = vsel %vm4967_vm9, %v4991_v7, %v4993_v5  ;;  %v24827_v7 = vld [vmem:[#allocation55_spill] sm:$0xff] }
 0x64f   :  { %17066 = vmatmul.mubr.msk.bf16.gmra.mrb[16].mxu0 %vm534_vm4, %v4978_v34  ;;  %v4995_v34 = vrot.slane %v24819_v6, 3 }
 0x650   :  { %17069 = vmatprep.mubr.msk.bf16.mxu0 %vm19612_vm2, %v24553_v29 }
 0x651   :  { %v4996_v9 = vsel %vm4967_vm9, %v4993_v5, %v4995_v34  ;;  %v24828_v5 = vld [vmem:[#allocation57_spill] sm:$0xff] }
 0x657   :  { %17070 = vmatmul.mubr.msk.bf16.gmra.mrb[20].mxu0 %vm534_vm4, %v4980_v2  ;;  %v4997_v2 = vrot.slane %v24820_v28, 3 }
 0x658   :  { %17073 = vmatprep.mubr.msk.bf16.mxu0 %vm19612_vm2, %v24553_v29 }
 0x659   :  { %v4998_v11 = vsel %vm4967_vm9, %v4995_v34, %v4997_v2  ;;  %v24829_v34 = vld [vmem:[#allocation59_spill] sm:$0xff] }
 0x65f   :  { %17074 = vmatmul.mubr.msk.bf16.gmra.mrb[24].mxu0 %vm534_vm4, %v4982_v47  ;;  %v4999_v47 = vrot.slane %v24821_v46, 3 }
 0x660   :  { %17077 = vmatprep.mubr.msk.bf16.mxu0 %vm19612_vm2, %v24553_v29 }
 0x661   :  { %v5000_v42 = vsel %vm4967_vm9, %v4997_v2, %v4999_v47  ;;  %v24830_v2 = vld [vmem:[#allocation61_spill] sm:$0xff] }
 0x662   :  { %v4737_v52 = vpop.f32.mrb[168].mxu0 }
 0x663   :  { %v16969_v22 = vpop.f32.mrb[169].mxu0  ;;  %v24822_v52 = vld [vmem:[#allocation45_spill] sm:$0xff] }
 0x664   :  { %v4739_v26 = vpop.f32.mrb[170].mxu0  ;;  %v5001_v22 = vrot.slane %v24822_v52, 3 }
 0x665   :  { %v16970_v30 = vpop.f32.mrb[171].mxu0 }
 0x666   :  { %v5002_v26 = vsel %vm4967_vm9, %v4999_v47, %v5001_v22  ;;  %v24831_v47 = vld [vmem:[#allocation63_spill] sm:$0xff] }
 0x667   :  { %17078 = vmatmul.mubr.msk.bf16.gmra.mrb[28].mxu0 %vm534_vm4, %v4984_v51  ;;  %v24823_v51 = vld [vmem:[#allocation47_spill] sm:$0xff] }
 0x668   :  { %17081 = vmatprep.mubr.msk.bf16.mxu0 %vm19612_vm2, %v24553_v29  ;;  %v5003_v30 = vrot.slane %v24823_v51, 3 }
 0x66a   :  { %v5004_v25 = vsel %vm4967_vm9, %v5001_v22, %v5003_v30  ;;  %v24832_v22 = vld [vmem:[#allocation66_spill] sm:$0xff] }
 0x66f   :  { %17082 = vmatmul.mubr.msk.bf16.gmra.mrb[32].mxu0 %vm534_vm4, %v4986_v61  ;;  %v5005_v61 = vrot.slane %v24824_v55, 3 }
 0x670   :  { %17085 = vmatprep.mubr.msk.bf16.mxu0 %vm19612_vm2, %v24553_v29 }
 0x671   :  { %v5006_v60 = vsel %vm4967_vm9, %v5003_v30, %v5005_v61  ;;  %v24833_v30 = vld [vmem:[#allocation70_spill] sm:$0xff] }
 0x677   :  { %17086 = vmatmul.mubr.msk.bf16.gmra.mrb[36].mxu0 %vm534_vm4, %v4988_v41  ;;  %v5007_v41 = vrot.slane %v24825_v19, 3 }
 0x678   :  { %17089 = vmatprep.mubr.msk.bf16.mxu0 %vm19612_vm2, %v24553_v29 }
 0x679   :  { %v5008_v38 = vsel %vm4967_vm9, %v5005_v61, %v5007_v41 }
 0x67f   :  { %17090 = vmatmul.mubr.msk.bf16.gmra.mrb[40].mxu0 %vm534_vm4, %v4990_v20  ;;  %v5009_v20 = vrot.slane %v24826_v14, 3 }
 0x680   :  { %17093 = vmatprep.mubr.msk.bf16.mxu0 %vm19612_vm2, %v24553_v29 }
 0x681   :  { %v5010_v12 = vsel %vm4967_vm9, %v5007_v41, %v5009_v20 }
 0x687   :  { %17094 = vmatmul.mubr.msk.bf16.gmra.mrb[44].mxu0 %vm534_vm4, %v4992_v31  ;;  %v5011_v31 = vrot.slane %v24827_v7, 3 }
 0x688   :  { %17097 = vmatprep.mubr.msk.bf16.mxu0 %vm19612_vm2, %v24553_v29 }
 0x689   :  { %v5012_v0 = vsel %vm4967_vm9, %v5009_v20, %v5011_v31  ;;  %v24834_v20 = vld [vmem:[#allocation73_spill] sm:$0xff] }
 0x68f   :  { %17098 = vmatmul.mubr.msk.bf16.gmra.mrb[48].mxu0 %vm534_vm4, %v4994_v21  ;;  %v5013_v21 = vrot.slane %v24828_v5, 3 }
 0x690   :  { %17101 = vmatprep.mubr.msk.bf16.mxu0 %vm19612_vm2, %v24553_v29 }
 0x691   :  { %v5014_v6 = vsel %vm4967_vm9, %v5011_v31, %v5013_v21  ;;  %v22398_v31 = vld [vmem:[%s24306_s2] ss:$0 sm:$0xff] }
 0x697   :  { %17102 = vmatmul.mubr.msk.bf16.gmra.mrb[52].mxu0 %vm534_vm4, %v4996_v9  ;;  %v5015_v9 = vrot.slane %v24829_v34, 3 }
 0x698   :  { %17105 = vmatprep.mubr.msk.bf16.mxu0 %vm19612_vm2, %v24553_v29 }
 0x699   :  { %v5016_v28 = vsel %vm4967_vm9, %v5013_v21, %v5015_v9 }
 0x69f   :  { %17106 = vmatmul.mubr.msk.bf16.gmra.mrb[56].mxu0 %vm534_vm4, %v4998_v11  ;;  %v5017_v11 = vrot.slane %v24830_v2, 3 }
 0x6a0   :  { %17109 = vmatprep.mubr.msk.bf16.mxu0 %vm19612_vm2, %v24553_v29 }
 0x6a1   :  { %v5018_v46 = vsel %vm4967_vm9, %v5015_v9, %v5017_v11 }
 0x6a7   :  { %17110 = vmatmul.mubr.msk.bf16.gmra.mrb[60].mxu0 %vm534_vm4, %v5000_v42  ;;  %v5019_v42 = vrot.slane %v24831_v47, 3 }
 0x6a8   :  { %17113 = vmatprep.mubr.msk.bf16.mxu0 %vm19612_vm2, %v24553_v29 }
 0x6a9   :  { %v5020_v52 = vsel %vm4967_vm9, %v5017_v11, %v5019_v42  ;;  %v24835_v11 = vld [vmem:[#allocation77_spill] sm:$0xff] }
 0x6af   :  { %17114 = vmatmul.mubr.msk.bf16.gmra.mrb[64].mxu0 %vm534_vm4, %v5002_v26  ;;  %v5021_v26 = vrot.slane %v24832_v22, 3 }
 0x6b0   :  { %17117 = vmatprep.mubr.msk.bf16.mxu0 %vm19612_vm2, %v24553_v29 }
 0x6b1   :  { %v5022_v51 = vsel %vm4967_vm9, %v5019_v42, %v5021_v26 }
 0x6b7   :  { %17118 = vmatmul.mubr.msk.bf16.gmra.mrb[68].mxu0 %vm534_vm4, %v5004_v25  ;;  %v5023_v25 = vrot.slane %v24833_v30, 3  ;;  %v6049_v30 = vlaneseq }
 0x6b8   :  { %17121 = vmatprep.mubr.msk.bf16.mxu0 %vm19612_vm2, %v24553_v29 }
 0x6b9   :  { %v5024_v41 = vsel %vm4967_vm9, %v5021_v26, %v5023_v25 }
 0x6bf   :  { %17122 = vmatmul.mubr.msk.bf16.gmra.mrb[72].mxu0 %vm534_vm4, %v5006_v60 }
 0x6c0   :  { %17125 = vmatprep.mubr.msk.bf16.mxu0 %vm19612_vm2, %v24553_v29 }
 0x6c7   :  { %17126 = vmatmul.mubr.msk.bf16.gmra.mrb[172].mxu0 %vm534_vm4, %v5008_v38 }
 0x6c8   :  { %17129 = vmatprep.mubr.msk.bf16.mxu0 %vm19612_vm2, %v24553_v29 }
 0x6cf   :  { %17130 = vmatmul.mubr.msk.bf16.gmra.mrb[80].mxu0 %vm534_vm4, %v5010_v12  ;;  %v5025_v12 = vrot.slane %v24834_v20, 3 }
 0x6d0   :  { %17133 = vmatprep.mubr.msk.bf16.mxu0 %vm19612_vm2, %v24553_v29 }
 0x6d7   :  { %17134 = vmatmul.mubr.msk.bf16.gmra.mrb[84].mxu0 %vm534_vm4, %v5012_v0 }
 0x6d8   :  { %17137 = vmatprep.mubr.msk.bf16.mxu0 %vm19612_vm2, %v24553_v29 }
 0x6df   :  { %17138 = vmatmul.mubr.msk.bf16.gmra.mrb[88].mxu0 %vm534_vm4, %v5014_v6 }
 0x6e0   :  { %17141 = vmatprep.mubr.msk.bf16.mxu0 %vm19612_vm2, %v24553_v29 }
 0x6e7   :  { %17142 = vmatmul.mubr.msk.bf16.gmra.mrb[92].mxu0 %vm534_vm4, %v5016_v28  ;;  %v22408_v28 = vld [vmem:[%s24307_s3] ss:$0 sm:$0xff] }
 0x6e8   :  { %17145 = vmatprep.mubr.msk.bf16.mxu0 %vm19612_vm2, %v24553_v29 }
 0x6ef   :  { %17146 = vmatmul.mubr.msk.bf16.gmra.mrb[96].mxu0 %vm534_vm4, %v5018_v46  ;;  %v5027_v46 = vrot.slane %v24835_v11, 3 }
 0x6f0   :  { %17149 = vmatprep.mubr.msk.bf16.mxu0 %vm19612_vm2, %v24553_v29 }
 0x6f7   :  { %17150 = vmatmul.mubr.msk.bf16.gmra.mrb[100].mxu0 %vm534_vm4, %v5020_v52 }
 0x6f8   :  { %17153 = vmatprep.mubr.msk.bf16.mxu0 %vm19612_vm2, %v24553_v29 }
 0x6ff   :  { %17154 = vmatmul.mubr.msk.bf16.gmra.mrb[104].mxu0 %vm534_vm4, %v5022_v51 }
 0x700   :  { %17157 = vmatprep.mubr.msk.bf16.mxu0 %vm19612_vm2, %v24553_v29 }
 0x702   :  { %v5199_v55 = vpop.f32.mrb[0].mxu0 }
 0x703   :  { %v18043_v61 = vadd.f32 %v5199_v55, %v21693_v10  ;;  %v17051_v60 = vpop.f32.mrb[1].mxu0 }
 0x704   :  { %v5202_v19 = vpop.f32.mrb[2].mxu0 }
 0x705   :  { %v18044_v38 = vadd.f32 %v5202_v19, %v21701_v37  ;;  %v17052_v14 = vpop.f32.mrb[3].mxu0  ;;  %v5026_v37 = vsel %vm4967_vm9, %v5023_v25, %v5025_v12  ;;  %v5587_v9 = vmul.f32 %v18043_v61, %v22398_v31  ;;  %v5028_v61 = vsel %vm4967_vm9, %v5025_v12, %v5027_v46  ;;  %v24836_v12 = vld [vmem:[#allocation81_spill] sm:$0xff] }
 0x707   :  { %17158 = vmatmul.mubr.msk.bf16.gmra.mrb[108].mxu0 %vm534_vm4, %v5024_v41  ;;  %v5668_v42 = vadd.f32 %v22408_v28, %v5587_v9  ;;  %v5588_v25 = vmul.f32 %v18044_v38, %v22398_v31 }
 0x708   :  { %17161 = vmatprep.mubr.msk.bf16.mxu0 %vm19612_vm2, %v24553_v29 }
 0x709   :  { %v5669_v38 = vadd.f32 %v22408_v28, %v5588_v25 }
 0x70a   :  { %v5207_v7 = vpop.f32.mrb[4].mxu0 }
 0x70b   :  { %v18045_v10 = vadd.f32 %v5207_v7, %v21711_v33  ;;  %v17055_v0 = vpop.f32.mrb[5].mxu0  ;;  %v5742_v7 = vmax.f32 %v5668_v42, 0.0  ;;  %v5743_v11 = vmax.f32 %v5669_v38, 0.0 }
 0x70c   :  { %v5210_v5 = vpop.f32.mrb[6].mxu0 }
 0x70d   :  { %v5589_v21 = vmul.f32 %v18045_v10, %v22398_v31  ;;  %v18046_v6 = vadd.f32 %v5210_v5, %v21715_v13  ;;  %v17056_v34 = vpop.f32.mrb[7].mxu0  ;;  %v5029_v5 = vrot.slane %v24836_v12, 3 }
 0x70f   :  { %v5670_v2 = vadd.f32 %v22408_v28, %v5589_v21  ;;  %v5590_v33 = vmul.f32 %v18046_v6, %v22398_v31  ;;  %17162 = vmatmul.mubr.msk.bf16.gmra.mrb[112].mxu0 %vm534_vm4, %v5026_v37 }
 0x710   :  { %17165 = vmatprep.mubr.msk.bf16.mxu0 %vm19612_vm2, %v24553_v29 }
 0x711   :  { %v5744_v13 = vmax.f32 %v5670_v2, 0.0  ;;  %v5671_v47 = vadd.f32 %v22408_v28, %v5590_v33  ;;  %v6052_v2 = vand.u32 127, %v6049_v30 }
 0x712   :  { %v5215_v52 = vpop.f32.mrb[8].mxu0 }
 0x713   :  { %v5745_v22 = vmax.f32 %v5671_v47, 0.0  ;;  %v18047_v26 = vadd.f32 %v5215_v52, %v21723_v57  ;;  %v17059_v51 = vpop.f32.mrb[9].mxu0  ;;  %v5873_v60 = vrot.slane %v5744_v13, 2  ;;  %v22426_v57 = vshrl.u32 %v6049_v30, 7 }
 0x714   :  { %v5218_v55 = vpop.f32.mrb[10].mxu0  ;;  %v5030_v47 = vsel %vm4967_vm9, %v5027_v46, %v5029_v5  ;;  %v24837_v46 = vld [vmem:[#allocation85_spill] sm:$0xff] }
 0x715   :  { %v5874_v19 = vrot.slane %v5745_v22, 2  ;;  %v5591_v41 = vmul.f32 %v18047_v26, %v22398_v31  ;;  %v18048_v14 = vadd.f32 %v5218_v55, %v21727_v45  ;;  %v17060_v20 = vpop.f32.mrb[11].mxu0  ;;  %v6053_v33 = vmul.u32 2, %v22426_v57 }
 0x717   :  { %v5875_v10 = vsel %vm3210_vm7, %v5873_v60, %v5874_v19  ;;  %v5672_v0 = vadd.f32 %v22408_v28, %v5591_v41  ;;  %17166 = vmatmul.mubr.msk.bf16.gmra.mrb[116].mxu0 %vm534_vm4, %v5028_v61  ;;  %vm6054_vm10 = vcmp.eq.s32.totalorder %v6052_v2, %v6053_v33  ;;  %v6057_v30 = vadd.s32 1, %v6053_v33 }
 0x718   :  { %17169 = vmatprep.mubr.msk.bf16.mxu0 %vm19612_vm2, %v24553_v29  ;;  %v6009_v37 = vmax.f32 %v5742_v7, %v5875_v10  ;;  %v5031_v61 = vrot.slane %v24837_v46, 3  ;;  %v22449_v41 = vsel %vm6054_vm10, 1.0, %v24553_v29  ;;  %vm12404_vm10 = vsmask.f32 4352 }
 0x719   :  { %v5746_v21 = vmax.f32 %v5672_v0, 0.0  ;;  %vm6058_vm12 = vcmp.eq.s32.totalorder %v6052_v2, %v6057_v30  ;;  %v5592_v0 = vmul.f32 %v18048_v14, %v22398_v31 }
 0x71a   :  { %v5223_v45 = vpop.f32.mrb[12].mxu0  ;;  %v5032_v12 = vsel %vm4967_vm9, %v5029_v5, %v5031_v61 }
 0x71b   :  { %v5876_v6 = vrot.slane %v5746_v21, 2  ;;  %v18049_v34 = vadd.f32 %v5223_v45, %v21735_v15  ;;  %v17063_v9 = vpop.f32.mrb[13].mxu0 }
 0x71c   :  { %v5226_v13 = vpop.f32.mrb[14].mxu0 }
 0x71d   :  { %v5593_v42 = vmul.f32 %v18049_v34, %v22398_v31  ;;  %v18050_v52 = vadd.f32 %v5226_v13, %v21739_v54  ;;  %v17064_v22 = vpop.f32.mrb[15].mxu0  ;;  %v5877_v26 = vsel %vm3210_vm7, %v5874_v19, %v5876_v6 }
 0x71e   :  { %v6010_v51 = vmax.f32 %v5743_v11, %v5877_v26  ;;  %v24838_v11 = vld [vmem:[#allocation89_spill] sm:$0xff] }
 0x71f   :  { %v22439_v25 = vadd.f32 %v22408_v28, %v5593_v42  ;;  %v5594_v15 = vmul.f32 %v18050_v52, %v22398_v31  ;;  %17170 = vmatmul.mubr.msk.bf16.gmra.mrb[120].mxu0 %vm534_vm4, %v5030_v47  ;;  %v5033_v13 = vrot.slane %v24838_v11, 3 }
 0x720   :  { %v17946_v55 = vpack.c.bf16 %v6010_v51, %v6009_v37  ;;  %17173 = vmatprep.mubr.msk.bf16.mxu0 %vm19612_vm2, %v24553_v29 }
 0x721   :  { %v5748_v54 = vmax.f32 %v22439_v25, 0.0  ;;  %v5675_v60 = vadd.f32 %v22408_v28, %v5594_v15  ;;  %v5034_v30 = vsel %vm4967_vm9, %v5031_v61, %v5033_v13  ;;  %v24839_v61 = vld [vmem:[#allocation93_spill] sm:$0xff] }
 0x722   :  { %v5231_v19 = vpop.f32.mrb[16].mxu0  ;;  %17947 = vmatpush3.bf16.msra.mxu1 %v17946_v55 }
 0x723   :  { %v5749_v20 = vmax.f32 %v5675_v60, 0.0  ;;  %v18051_v7 = vadd.f32 %v5231_v19, %v21747_v4  ;;  %v17067_v10 = vpop.f32.mrb[17].mxu0  ;;  %17948 = vmatprep.subr.bf16.mxu1 %v19613_v1  ;;  %v5878_v37 = vrot.slane %v5748_v54, 2  ;;  %v22462_v4 = vsel %vm6058_vm12, 1.0, %v24553_v29 }
 0x724   :  { %v5234_v38 = vpop.f32.mrb[18].mxu0 }
 0x725   :  { %v5879_v45 = vrot.slane %v5749_v20, 2  ;;  %v5595_v6 = vmul.f32 %v18051_v7, %v22398_v31  ;;  %v18052_v34 = vadd.f32 %v5234_v38, %v21751_v44  ;;  %v17068_v9 = vpop.f32.mrb[19].mxu0  ;;  %17210 = vmatmul.mubr.msk.f32.vlgmr.msra.gmra.mrb[164].mxu1 %vm6061_vm11, %v22449_v41  ;;  %v5673_v44 = vadd.f32 %v22408_v28, %v5592_v0 }
 0x726   :  { %17950 = vmatpush3.bf16.msra.mxu1 %v17946_v55  ;;  %17216 = vmatprep.mubr.msk.f32.mxu1 %vm19612_vm2, %v24553_v29 }
 0x727   :  { %v5880_v14 = vsel %vm3210_vm7, %v5878_v37, %v5879_v45  ;;  %v5676_v5 = vadd.f32 %v22408_v28, %v5595_v6  ;;  %v5596_v2 = vmul.f32 %v18052_v34, %v22398_v31  ;;  %17174 = vmatmul.mubr.msk.bf16.gmra.mrb[124].mxu0 %vm534_vm4, %v5032_v12  ;;  %17951 = vmatprep.subr.bf16.mxu1 %v19613_v1  ;;  %v5747_v25 = vmax.f32 %v5673_v44, 0.0 }
 0x728   :  { %v6011_v33 = vmax.f32 %v5746_v21, %v5880_v14  ;;  %17177 = vmatprep.mubr.msk.bf16.mxu0 %vm19612_vm2, %v24553_v29  ;;  %v5035_v12 = vrot.slane %v24839_v61, 3 }
 0x729   :  { %v5750_v47 = vmax.f32 %v5676_v5, 0.0  ;;  %v22474_v42 = vadd.f32 %v22408_v28, %v5596_v2  ;;  %17217 = vmatmul.mubr.msk.f32.vlgmr.msra.gmra.mrb[166].mxu1 %vm6061_vm11, %v22462_v4 }
 0x72a   :  { %v5239_v52 = vpop.f32.mrb[20].mxu0  ;;  %17223 = vmatprep.mubr.msk.f32.mxu1 %vm19612_vm2, %v24553_v29  ;;  %v5036_v5 = vsel %vm4967_vm9, %v5033_v13, %v5035_v12 }
 0x72b   :  { %v5881_v22 = vrot.slane %v5750_v47, 2  ;;  %v5751_v26 = vmax.f32 %v22474_v42, 0.0  ;;  %v18053_v21 = vadd.f32 %v5239_v52, %v21759_v62  ;;  %v17071_v51 = vpop.f32.mrb[21].mxu0  ;;  %v6214_v62 = vrot.slane %v6011_v33, 4 }
 0x72c   :  { %v5242_v15 = vpop.f32.mrb[22].mxu0 }
 0x72d   :  { %v5882_v55 = vsel %vm3210_vm7, %v5879_v45, %v5881_v22  ;;  %v5883_v46 = vrot.slane %v5751_v26, 2  ;;  %v18054_v60 = vadd.f32 %v5242_v15, %v21763_v32  ;;  %v17072_v19 = vpop.f32.mrb[23].mxu0  ;;  %v5597_v47 = vmul.f32 %v18053_v21, %v22398_v31 }
 0x72e   :  { %v6012_v20 = vmax.f32 %v5747_v25, %v5882_v55 }
 0x72f   :  { %v5884_v7 = vsel %vm3210_vm7, %v5881_v22, %v5883_v46  ;;  %v5598_v10 = vmul.f32 %v18054_v60, %v22398_v31  ;;  %17178 = vmatmul.mubr.msk.bf16.gmra.mrb[128].mxu0 %vm534_vm4, %v5034_v30  ;;  %v5678_v21 = vadd.f32 %v22408_v28, %v5597_v47 }
 0x730   :  { %v6215_v0 = vrot.slane %v6012_v20, 4  ;;  %v6013_v38 = vmax.f32 %v5748_v54, %v5884_v7  ;;  %17181 = vmatprep.mubr.msk.bf16.mxu0 %vm19612_vm2, %v24553_v29 }
 0x731   :  { %v5679_v6 = vadd.f32 %v22408_v28, %v5598_v10  ;;  %v5752_v61 = vmax.f32 %v5678_v21, 0.0 }
 0x732   :  { %v5247_v37 = vpop.f32.mrb[24].mxu0  ;;  %v6216_v32 = vsel %vm6213_vm13, %v6214_v62, %v6215_v0  ;;  %v6217_v45 = vrot.slane %v6013_v38, 4 }
 0x733   :  { %v18055_v34 = vadd.f32 %v5247_v37, %v21771_v24  ;;  %v17075_v9 = vpop.f32.mrb[25].mxu0  ;;  %v5753_v52 = vmax.f32 %v5679_v6, 0.0  ;;  %v24840_v24 = vld [vmem:[#allocation97_spill] sm:$0xff] }
 0x734   :  { %v5250_v14 = vpop.f32.mrb[26].mxu0  ;;  %v6218_v2 = vsel %vm6213_vm13, %v6215_v0, %v6217_v45  ;;  %v5037_v13 = vrot.slane %v24840_v24, 3 }
 0x735   :  { %v5599_v54 = vmul.f32 %v18055_v34, %v22398_v31  ;;  %v18056_v44 = vadd.f32 %v5250_v14, %v21775_v53  ;;  %v17076_v33 = vpop.f32.mrb[27].mxu0  ;;  %v17952_v11 = vpack.c.bf16 %v6218_v2, %v6216_v32  ;;  %v5885_v30 = vrot.slane %v5753_v52, 2 }
 0x736   :  { %v5038_v7 = vsel %vm4967_vm9, %v5035_v12, %v5037_v13 }
 0x737   :  { %v5680_v22 = vadd.f32 %v22408_v28, %v5599_v54  ;;  %v5600_v51 = vmul.f32 %v18056_v44, %v22398_v31  ;;  %17182 = vmatmul.mubr.msk.bf16.gmra.mrb[132].mxu0 %vm534_vm4, %v5036_v5  ;;  %17953 = vmatpush3.bf16.msra.mxu1 %v17952_v11 }
 0x738   :  { %17954 = vmatprep.subr.bf16.mxu1 %v19613_v1  ;;  %17185 = vmatprep.mubr.msk.bf16.mxu0 %vm19612_vm2, %v24553_v29 }
 0x739   :  { %v5754_v53 = vmax.f32 %v5680_v22, 0.0  ;;  %v22509_v25 = vadd.f32 %v22408_v28, %v5600_v51 }
 0x73a   :  { %v5255_v15 = vpop.f32.mrb[28].mxu0  ;;  %17224 = vmatmul.mubr.msk.f32.vlgmr.msra.gmra.mrb[168].mxu1 %vm6061_vm11, %v22449_v41 }
 0x73b   :  { %v5886_v55 = vrot.slane %v5754_v53, 2  ;;  %v5755_v46 = vmax.f32 %v22509_v25, 0.0  ;;  %v18057_v60 = vadd.f32 %v5255_v15, %v21783_v17  ;;  %v17079_v19 = vpop.f32.mrb[29].mxu0  ;;  %17956 = vmatpush3.bf16.msra.mxu1 %v17952_v11  ;;  %17230 = vmatprep.mubr.msk.f32.mxu1 %vm19612_vm2, %v24553_v29 }
 0x73c   :  { %v5258_v20 = vpop.f32.mrb[30].mxu0  ;;  %17957 = vmatprep.subr.bf16.mxu1 %v19613_v1 }
 0x73d   :  { %v5887_v10 = vsel %vm3210_vm7, %v5885_v30, %v5886_v55  ;;  %v5888_v62 = vrot.slane %v5755_v46, 2  ;;  %v18058_v0 = vadd.f32 %v5258_v20, %v21787_v48  ;;  %v17080_v38 = vpop.f32.mrb[31].mxu0  ;;  %v24841_v48 = vld [vmem:[#allocation101_spill] sm:$0xff]  ;;  %v5601_v33 = vmul.f32 %v18057_v60, %v22398_v31 }
 0x73e   :  { %17231 = vmatmul.mubr.msk.f32.vlgmr.msra.gmra.mrb[170].mxu1 %vm6061_vm11, %v22462_v4  ;;  %v6014_v17 = vmax.f32 %v5751_v26, %v5887_v10  ;;  %v5039_v45 = vrot.slane %v24841_v48, 3 }
 0x73f   :  { %v5602_v37 = vmul.f32 %v18058_v0, %v22398_v31  ;;  %17186 = vmatmul.mubr.msk.bf16.gmra.mrb[136].mxu0 %vm534_vm4, %v5038_v7  ;;  %v5889_v12 = vsel %vm3210_vm7, %v5886_v55, %v5888_v62  ;;  %17237 = vmatprep.mubr.msk.f32.mxu1 %vm19612_vm2, %v24553_v29  ;;  %v5682_v51 = vadd.f32 %v22408_v28, %v5601_v33 }
 0x740   :  { %v6015_v32 = vmax.f32 %v5752_v61, %v5889_v12  ;;  %17189 = vmatprep.mubr.msk.bf16.mxu0 %vm19612_vm2, %v24553_v29  ;;  %v5040_v5 = vsel %vm4967_vm9, %v5037_v13, %v5039_v45 }
 0x741   :  { %v5683_v42 = vadd.f32 %v22408_v28, %v5602_v37  ;;  %v5756_v62 = vmax.f32 %v5682_v51, 0.0 }
 0x742   :  { %v5263_v6 = vpop.f32.mrb[32].mxu0  ;;  %v17958_v34 = vpack.c.bf16 %v6015_v32, %v6014_v17  ;;  %v5043_v17 = vrot.slane %v21942_v50, 3 }
 0x743   :  { %v18059_v26 = vadd.f32 %v5263_v6, %v21795_v59  ;;  %v17083_v9 = vpop.f32.mrb[33].mxu0  ;;  %v5757_v11 = vmax.f32 %v5683_v42, 0.0  ;;  %v5041_v59 = vrot.slane %v24802_v39, 3 }
 0x744   :  { %v5266_v14 = vpop.f32.mrb[34].mxu0  ;;  %17959 = vmatpush3.bf16.msra.mxu1 %v17958_v34 }
 0x745   :  { %v5603_v2 = vmul.f32 %v18059_v26, %v22398_v31  ;;  %v18060_v54 = vadd.f32 %v5266_v14, %v21799_v49  ;;  %v17084_v44 = vpop.f32.mrb[35].mxu0  ;;  %17960 = vmatprep.subr.bf16.mxu1 %v19613_v1  ;;  %v5890_v13 = vrot.slane %v5757_v11, 2  ;;  %v5042_v55 = vsel %vm4967_vm9, %v5039_v45, %v5041_v59 }
 0x746   :  { %v5044_v6 = vsel %vm4967_vm9, %v5041_v59, %v5043_v17 }
 0x747   :  { %v5684_v47 = vadd.f32 %v22408_v28, %v5603_v2  ;;  %v5604_v52 = vmul.f32 %v18060_v54, %v22398_v31  ;;  %17190 = vmatmul.mubr.msk.bf16.gmra.mrb[140].mxu0 %vm534_vm4, %v5040_v5  ;;  %17238 = vmatmul.mubr.msk.f32.vlgmr.msra.gmra.mrb[172].mxu1 %vm6061_vm11, %v22449_v41 }
 0x748   :  { %17962 = vmatpush3.bf16.msra.mxu1 %v17958_v34  ;;  %17193 = vmatprep.mubr.msk.bf16.mxu0 %vm19612_vm2, %v24553_v29 }
 0x749   :  { %v5758_v49 = vmax.f32 %v5684_v47, 0.0  ;;  %v5685_v22 = vadd.f32 %v22408_v28, %v5604_v52  ;;  %17244 = vmatprep.mubr.msk.f32.mxu1 %vm19612_vm2, %v24553_v29  ;;  %17963 = vmatprep.subr.bf16.mxu1 %v19613_v1 }
 0x74a   :  { %v5271_v24 = vpop.f32.mrb[36].mxu0 }
 0x74b   :  { %v5891_v53 = vrot.slane %v5758_v49, 2  ;;  %v5759_v21 = vmax.f32 %v5685_v22, 0.0  ;;  %v18061_v15 = vadd.f32 %v5271_v24, %v21807_v56  ;;  %v17087_v30 = vpop.f32.mrb[37].mxu0  ;;  %17245 = vmatmul.mubr.msk.f32.vlgmr.msra.gmra.mrb[174].mxu1 %vm6061_vm11, %v22462_v4 }
 0x74c   :  { %v5274_v39 = vpop.f32.mrb[38].mxu0  ;;  %17251 = vmatprep.mubr.msk.f32.mxu1 %vm19612_vm2, %v24553_v29 }
 0x74d   :  { %v5892_v60 = vsel %vm3210_vm7, %v5890_v13, %v5891_v53  ;;  %v5893_v19 = vrot.slane %v5759_v21, 2  ;;  %v5605_v20 = vmul.f32 %v18061_v15, %v22398_v31  ;;  %v18062_v7 = vadd.f32 %v5274_v39, %v21811_v8  ;;  %v17088_v10 = vpop.f32.mrb[39].mxu0 }
 0x74e   :  { %v6016_v56 = vmax.f32 %v5755_v46, %v5892_v60 }
 0x74f   :  { %v5894_v0 = vsel %vm3210_vm7, %v5891_v53, %v5893_v19  ;;  %v5686_v38 = vadd.f32 %v22408_v28, %v5605_v20  ;;  %17194 = vmatmul.mubr.msk.bf16.gmra.mrb[144].mxu0 %vm534_vm4, %v5042_v55  ;;  %v5606_v49 = vmul.f32 %v18062_v7, %v22398_v31 }
 0x750   :  { %v6017_v61 = vmax.f32 %v5756_v62, %v5894_v0  ;;  %17197 = vmatprep.mubr.msk.bf16.mxu0 %vm19612_vm2, %v24553_v29  ;;  %v6508_v12 = vrot.slane %v6016_v56, 4 }
 0x751   :  { %v5760_v37 = vmax.f32 %v5686_v38, 0.0 }
 0x752   :  { %v6509_v8 = vrot.slane %v6017_v61, 4  ;;  %v5279_v32 = vpop.f32.mrb[40].mxu0 }
 0x753   :  { %v5895_v48 = vrot.slane %v5760_v37, 2  ;;  %v18063_v25 = vadd.f32 %v5279_v32, %v21819_v40  ;;  %v17091_v46 = vpop.f32.mrb[41].mxu0 }
 0x754   :  { %v5282_v45 = vpop.f32.mrb[42].mxu0  ;;  %v6510_v34 = vsel %vm6213_vm13, %v6508_v12, %v6509_v8 }
 0x755   :  { %v5896_v42 = vsel %vm3210_vm7, %v5893_v19, %v5895_v48  ;;  %v5607_v26 = vmul.f32 %v18063_v25, %v22398_v31  ;;  %v18064_v9 = vadd.f32 %v5282_v45, %v21823_v58  ;;  %v17092_v50 = vpop.f32.mrb[43].mxu0  ;;  %v24842_v19 = vld [vmem:[#allocation8_spill] sm:$0xff]  ;;  %v24843_v45 = vld [vmem:[#allocation10_spill] sm:$0xff] }
 0x756   :  { %v6018_v14 = vmax.f32 %v5757_v11, %v5896_v42 }
 0x757   :  { %v5688_v5 = vadd.f32 %v22408_v28, %v5607_v26  ;;  %v5608_v2 = vmul.f32 %v18064_v9, %v22398_v31  ;;  %17198 = vmatmul.mubr.msk.bf16.gmra.mrb[148].mxu0 %vm534_vm4, %v5044_v6 }
 0x758   :  { %v6511_v40 = vrot.slane %v6018_v14, 4  ;;  %17201 = vmatprep.mubr.msk.bf16.mxu0 %vm19612_vm2, %v24553_v29 }
 0x759   :  { %v5762_v54 = vmax.f32 %v5688_v5, 0.0  ;;  %v5689_v44 = vadd.f32 %v22408_v28, %v5608_v2 }
 0x75a   :  { %v5287_v33 = vpop.f32.mrb[44].mxu0  ;;  %v6512_v47 = vsel %vm6213_vm13, %v6509_v8, %v6511_v40 }
 0x75b   :  { %v5763_v52 = vmax.f32 %v5689_v44, 0.0  ;;  %v18065_v58 = vadd.f32 %v5287_v33, %v21831_v43  ;;  %v17095_v11 = vpop.f32.mrb[45].mxu0  ;;  %v17964_v59 = vpack.c.bf16 %v6512_v47, %v6510_v34  ;;  %v5897_v51 = vrot.slane %v5762_v54, 2 }
 0x75c   :  { %v5290_v22 = vpop.f32.mrb[46].mxu0  ;;  %v5687_v43 = vadd.f32 %v22408_v28, %v5606_v49 }
 0x75d   :  { %v5898_v24 = vrot.slane %v5763_v52, 2  ;;  %v5609_v13 = vmul.f32 %v18065_v58, %v22398_v31  ;;  %v18066_v53 = vadd.f32 %v5290_v22, %v21835_v23  ;;  %v17096_v21 = vpop.f32.mrb[47].mxu0  ;;  %17965 = vmatpush3.bf16.msra.mxu1 %v17964_v59 }
 0x75e   :  { %17966 = vmatprep.subr.bf16.mxu1 %v19613_v1  ;;  %v5761_v10 = vmax.f32 %v5687_v43, 0.0 }
 0x75f   :  { %v5899_v15 = vsel %vm3210_vm7, %v5897_v51, %v5898_v24  ;;  %v5690_v30 = vadd.f32 %v22408_v28, %v5609_v13  ;;  %17202 = vmatmul.mubr.msk.bf16.gmra.mrb[152].mxu0 %vm534_vm4, %v5043_v17  ;;  %v5610_v34 = vmul.f32 %v18066_v53, %v22398_v31  ;;  %vm9160_vm4 = vcmask 1042432  }
 0x760   :  { %17252 = vmatmul.mubr.msk.f32.vlgmr.msra.gmra.mrb[176].mxu1 %vm6061_vm11, %v22449_v41  ;;  %v6019_v39 = vmax.f32 %v5760_v37, %v5899_v15 }
 0x761   :  { %v5764_v55 = vmax.f32 %v5690_v30, 0.0  ;;  %17968 = vmatpush3.bf16.msra.mxu1 %v17964_v59  ;;  %17258 = vmatprep.mubr.msk.f32.mxu1 %vm19612_vm2, %v24553_v29  ;;  %v5691_v44 = vadd.f32 %v22408_v28, %v5610_v34  ;;  %v24844_v59 = vld [vmem:[#allocation9_spill] sm:$0xff] }
 0x762   :  { %v5295_v23 = vpop.f32.mrb[48].mxu0  ;;  %17969 = vmatprep.subr.bf16.mxu1 %v19613_v1 }
 0x763   :  { %v5900_v60 = vrot.slane %v5764_v55, 2  ;;  %v18067_v20 = vadd.f32 %v5295_v23, %v24842_v19  ;;  %v17099_v7 = vpop.f32.mrb[49].mxu0  ;;  %v5765_v51 = vmax.f32 %v5691_v44, 0.0 }
 0x764   :  { %v5298_v62 = vpop.f32.mrb[50].mxu0  ;;  %17259 = vmatmul.mubr.msk.f32.vlgmr.msra.gmra.mrb[178].mxu1 %vm6061_vm11, %v22462_v4 }
 0x765   :  { %v5611_v56 = vmul.f32 %v18067_v20, %v22398_v31  ;;  %v18068_v0 = vadd.f32 %v5298_v62, %v21847_v16  ;;  %v17100_v38 = vpop.f32.mrb[51].mxu0  ;;  %v5901_v61 = vsel %vm3210_vm7, %v5898_v24, %v5900_v60  ;;  %17265 = vmatprep.mubr.msk.f32.mxu1 %vm19612_vm2, %v24553_v29  ;;  %v24845_v62 = vld [vmem:[#allocation111_spill] sm:$0xff] }
 0x766   :  { %v6020_v17 = vmax.f32 %v5761_v10, %v5901_v61 }
 0x767   :  { %v5692_v37 = vadd.f32 %v22408_v28, %v5611_v56  ;;  %v5612_v12 = vmul.f32 %v18068_v0, %v22398_v31 }
 0x768   :  { %v17970_v8 = vpack.c.bf16 %v6020_v17, %v6019_v39 }
 0x769   :  { %v5766_v32 = vmax.f32 %v5692_v37, 0.0  ;;  %v5693_v48 = vadd.f32 %v22408_v28, %v5612_v12 }
 0x76a   :  { %v5303_v25 = vpop.f32.mrb[52].mxu0  ;;  %17971 = vmatpush3.bf16.msra.mxu1 %v17970_v8 }
 0x76b   :  { %v5767_v46 = vmax.f32 %v5693_v48, 0.0  ;;  %v18069_v16 = vadd.f32 %v5303_v25, %v24843_v45  ;;  %v17103_v6 = vpop.f32.mrb[53].mxu0  ;;  %17972 = vmatprep.subr.bf16.mxu1 %v19613_v1  ;;  %v5902_v26 = vrot.slane %v5766_v32, 2 }
 0x76c   :  { %v5306_v42 = vpop.f32.mrb[54].mxu0 }
 0x76d   :  { %v5903_v9 = vrot.slane %v5767_v46, 2  ;;  %v5613_v50 = vmul.f32 %v18069_v16, %v22398_v31  ;;  %v18070_v14 = vadd.f32 %v5306_v42, %v21855_v3  ;;  %v17104_v5 = vpop.f32.mrb[55].mxu0  ;;  %17266 = vmatmul.mubr.msk.f32.vlgmr.msra.gmra.mrb[180].mxu1 %vm6061_vm11, %v22449_v41 }
 0x76e   :  { %17974 = vmatpush3.bf16.msra.mxu1 %v17970_v8  ;;  %17272 = vmatprep.mubr.msk.f32.mxu1 %vm19612_vm2, %v24553_v29 }
 0x76f   :  { %v5904_v2 = vsel %vm3210_vm7, %v5902_v26, %v5903_v9  ;;  %v5694_v40 = vadd.f32 %v22408_v28, %v5613_v50  ;;  %v5614_v54 = vmul.f32 %v18070_v14, %v22398_v31  ;;  %17975 = vmatprep.subr.bf16.mxu1 %v19613_v1  ;;  %v24846_v26 = vld [vmem:[#allocation12_spill] sm:$0xff] }
 0x770   :  { %v6021_v33 = vmax.f32 %v5764_v55, %v5904_v2 }
 0x771   :  { %v5768_v3 = vmax.f32 %v5694_v40, 0.0  ;;  %v5695_v47 = vadd.f32 %v22408_v28, %v5614_v54  ;;  %17273 = vmatmul.mubr.msk.f32.vlgmr.msra.gmra.mrb[182].mxu1 %vm6061_vm11, %v22462_v4 }
 0x772   :  { %v5311_v52 = vpop.f32.mrb[56].mxu0  ;;  %17279 = vmatprep.mubr.msk.f32.mxu1 %vm19612_vm2, %v24553_v29  ;;  %v6802_v55 = vrot.slane %v6021_v33, 4 }
 0x773   :  { %v5905_v58 = vrot.slane %v5768_v3, 2  ;;  %v5769_v11 = vmax.f32 %v5695_v47, 0.0  ;;  %v18071_v49 = vadd.f32 %v5311_v52, %v24844_v59  ;;  %v17107_v22 = vpop.f32.mrb[57].mxu0 }
 0x774   :  { %v5314_v24 = vpop.f32.mrb[58].mxu0  ;;  %v24847_v22 = vld [vmem:[#allocation14_spill] sm:$0xff] }
 0x775   :  { %v5906_v13 = vsel %vm3210_vm7, %v5903_v9, %v5905_v58  ;;  %v5907_v53 = vrot.slane %v5769_v11, 2  ;;  %v18072_v21 = vadd.f32 %v5314_v24, %v21863_v63  ;;  %v17108_v15 = vpop.f32.mrb[59].mxu0  ;;  %v5615_v8 = vmul.f32 %v18071_v49, %v22398_v31 }
 0x776   :  { %v6022_v30 = vmax.f32 %v5765_v51, %v5906_v13 }
 0x777   :  { %v5908_v43 = vsel %vm3210_vm7, %v5905_v58, %v5907_v53  ;;  %v5616_v39 = vmul.f32 %v18072_v21, %v22398_v31  ;;  %v5696_v16 = vadd.f32 %v22408_v28, %v5615_v8 }
 0x778   :  { %v6803_v23 = vrot.slane %v6022_v30, 4  ;;  %v6023_v60 = vmax.f32 %v5766_v32, %v5908_v43 }
 0x779   :  { %v5697_v10 = vadd.f32 %v22408_v28, %v5616_v39  ;;  %v5770_v44 = vmax.f32 %v5696_v16, 0.0 }
 0x77a   :  { %v5319_v19 = vpop.f32.mrb[60].mxu0  ;;  %v6804_v20 = vsel %vm6213_vm13, %v6802_v55, %v6803_v23  ;;  %v6805_v7 = vrot.slane %v6023_v60, 4 }
 0x77b   :  { %v18073_v56 = vadd.f32 %v5319_v19, %v24845_v62  ;;  %v17111_v0 = vpop.f32.mrb[61].mxu0  ;;  %v5771_v32 = vmax.f32 %v5697_v10, 0.0 }
 0x77c   :  { %v5322_v38 = vpop.f32.mrb[62].mxu0  ;;  %v6806_v63 = vsel %vm6213_vm13, %v6803_v23, %v6805_v7 }
 0x77d   :  { %v5617_v61 = vmul.f32 %v18073_v56, %v22398_v31  ;;  %v18074_v17 = vadd.f32 %v5322_v38, %v21871_v18  ;;  %v17112_v37 = vpop.f32.mrb[63].mxu0  ;;  %v17976_v12 = vpack.c.bf16 %v6806_v63, %v6804_v20  ;;  %v5909_v18 = vrot.slane %v5771_v32, 2 }
 0x77f   :  { %v5698_v48 = vadd.f32 %v22408_v28, %v5617_v61  ;;  %v5618_v25 = vmul.f32 %v18074_v17, %v22398_v31  ;;  %17977 = vmatpush3.bf16.msra.mxu1 %v17976_v12 }
 0x780   :  { %17978 = vmatprep.subr.bf16.mxu1 %v19613_v1 }
 0x781   :  { %v5772_v46 = vmax.f32 %v5698_v48, 0.0  ;;  %v5699_v45 = vadd.f32 %v22408_v28, %v5618_v25 }
 0x782   :  { %v5327_v6 = vpop.f32.mrb[64].mxu0  ;;  %17280 = vmatmul.mubr.msk.f32.vlgmr.msra.gmra.mrb[184].mxu1 %vm6061_vm11, %v22449_v41 }
 0x783   :  { %v5910_v34 = vrot.slane %v5772_v46, 2  ;;  %v5773_v42 = vmax.f32 %v5699_v45, 0.0  ;;  %v18075_v9 = vadd.f32 %v5327_v6, %v24846_v26  ;;  %v17115_v50 = vpop.f32.mrb[65].mxu0  ;;  %17980 = vmatpush3.bf16.msra.mxu1 %v17976_v12  ;;  %17286 = vmatprep.mubr.msk.f32.mxu1 %vm19612_vm2, %v24553_v29 }
 0x784   :  { %v5330_v14 = vpop.f32.mrb[66].mxu0  ;;  %17981 = vmatprep.subr.bf16.mxu1 %v19613_v1 }
 0x785   :  { %v5911_v5 = vsel %vm3210_vm7, %v5909_v18, %v5910_v34  ;;  %v5912_v2 = vrot.slane %v5773_v42, 2  ;;  %v18076_v40 = vadd.f32 %v5330_v14, %v21879_v36  ;;  %v17116_v54 = vpop.f32.mrb[67].mxu0  ;;  %v5619_v15 = vmul.f32 %v18075_v9, %v22398_v31 }
 0x786   :  { %17287 = vmatmul.mubr.msk.f32.vlgmr.msra.gmra.mrb[186].mxu1 %vm6061_vm11, %v22462_v4  ;;  %v6024_v33 = vmax.f32 %v5769_v11, %v5911_v5  ;;  %v24848_v11 = vld [vmem:[#allocation16_spill] sm:$0xff] }
 0x787   :  { %v5620_v3 = vmul.f32 %v18076_v40, %v22398_v31  ;;  %v5913_v47 = vsel %vm3210_vm7, %v5910_v34, %v5912_v2  ;;  %17293 = vmatprep.mubr.msk.f32.mxu1 %vm19612_vm2, %v24553_v29  ;;  %v5700_v60 = vadd.f32 %v22408_v28, %v5619_v15  ;;  %v24849_v2 = vld [vmem:[#allocation18_spill] sm:$0xff] }
 0x788   :  { %v6025_v52 = vmax.f32 %v5770_v44, %v5913_v47 }
 0x789   :  { %v5701_v49 = vadd.f32 %v22408_v28, %v5620_v3  ;;  %v5774_v37 = vmax.f32 %v5700_v60, 0.0  ;;  %v24850_v3 = vld [vmem:[#allocation20_spill] sm:$0xff]  ;;  %v24853_v60 = vld [vmem:[#allocation26_spill] sm:$0xff] }
 0x78a   :  { %v5335_v58 = vpop.f32.mrb[68].mxu0  ;;  %v17982_v59 = vpack.c.bf16 %v6025_v52, %v6024_v33 }
 0x78b   :  { %v18077_v36 = vadd.f32 %v5335_v58, %v24847_v22  ;;  %v17119_v51 = vpop.f32.mrb[69].mxu0  ;;  %v5775_v30 = vmax.f32 %v5701_v49, 0.0 }
 0x78c   :  { %v5338_v24 = vpop.f32.mrb[70].mxu0  ;;  %17983 = vmatpush3.bf16.msra.mxu1 %v17982_v59 }
 0x78d   :  { %v5621_v13 = vmul.f32 %v18077_v36, %v22398_v31  ;;  %v18078_v53 = vadd.f32 %v5338_v24, %v24848_v11  ;;  %v17120_v21 = vpop.f32.mrb[71].mxu0  ;;  %17984 = vmatprep.subr.bf16.mxu1 %v19613_v1  ;;  %v5914_v20 = vrot.slane %v5775_v30, 2  ;;  %v24852_v24 = vld [vmem:[#allocation24_spill] sm:$0xff] }
 0x78f   :  { %v5702_v43 = vadd.f32 %v22408_v28, %v5621_v13  ;;  %v5622_v39 = vmul.f32 %v18078_v53, %v22398_v31  ;;  %17294 = vmatmul.mubr.msk.f32.vlgmr.msra.gmra.mrb[188].mxu1 %vm6061_vm11, %v22449_v41 }
 0x790   :  { %17986 = vmatpush3.bf16.msra.mxu1 %v17982_v59  ;;  %17300 = vmatprep.mubr.msk.f32.mxu1 %vm19612_vm2, %v24553_v29  ;;  %v24851_v59 = vld [vmem:[#allocation22_spill] sm:$0xff] }
 0x791   :  { %v5776_v55 = vmax.f32 %v5702_v43, 0.0  ;;  %v5703_v23 = vadd.f32 %v22408_v28, %v5622_v39  ;;  %17987 = vmatprep.subr.bf16.mxu1 %v19613_v1 }
 0x792   :  { %v5343_v19 = vpop.f32.mrb[72].mxu0 }
 0x793   :  { %v5915_v7 = vrot.slane %v5776_v55, 2  ;;  %v5777_v10 = vmax.f32 %v5703_v23, 0.0  ;;  %v18079_v62 = vadd.f32 %v5343_v19, %v21891_v35  ;;  %v17123_v56 = vpop.f32.mrb[73].mxu0  ;;  %17301 = vmatmul.mubr.msk.f32.vlgmr.msra.gmra.mrb[190].mxu1 %vm6061_vm11, %v22462_v4 }
 0x794   :  { %v5346_v0 = vpop.f32.mrb[74].mxu0  ;;  %17307 = vmatprep.mubr.msk.f32.mxu1 %vm19612_vm2, %v24553_v29 }
 0x795   :  { %v5916_v38 = vsel %vm3210_vm7, %v5914_v20, %v5915_v7  ;;  %v5917_v63 = vrot.slane %v5777_v10, 2  ;;  %v5623_v61 = vmul.f32 %v18079_v62, %v22398_v31  ;;  %v17124_v17 = vpop.f32.mrb[75].mxu0 }
 0x796   :  { %v6026_v12 = vmax.f32 %v5773_v42, %v5916_v38  ;;  %v24854_v38 = vld [vmem:[#allocation28_spill] sm:$0xff] }
 0x797   :  { %v5918_v8 = vsel %vm3210_vm7, %v5915_v7, %v5917_v63  ;;  %v5704_v35 = vadd.f32 %v22408_v28, %v5623_v61 }
 0x798   :  { %v6027_v32 = vmax.f32 %v5774_v37, %v5918_v8  ;;  %v7096_v25 = vrot.slane %v6026_v12, 4 }
 0x799   :  { %v5778_v48 = vmax.f32 %v5704_v35, 0.0 }
 0x79a   :  { %v7097_v46 = vrot.slane %v6027_v32, 4  ;;  %v5350_v45 = vpop.f32.mrb[172].mxu0 }
 0x79b   :  { %v5919_v16 = vrot.slane %v5778_v48, 2  ;;  %v17127_v6 = vpop.f32.mrb[173].mxu0 }
 0x79c   :  { %v5352_v18 = vpop.f32.mrb[174].mxu0  ;;  %v7098_v34 = vsel %vm6213_vm13, %v7096_v25, %v7097_v46  ;;  %v24855_v6 = vld [vmem:[#allocation30_spill] sm:$0xff] }
 0x79d   :  { %v5920_v26 = vsel %vm3210_vm7, %v5917_v63, %v5919_v16  ;;  %v17128_v9 = vpop.f32.mrb[175].mxu0 }
 0x79e   :  { %v6028_v50 = vmax.f32 %v5775_v30, %v5920_v26 }
 0x7a0   :  { %v7099_v14 = vrot.slane %v6028_v50, 4 }
 0x7a2   :  { %v5356_v42 = vpop.f32.mrb[80].mxu0  ;;  %v7100_v5 = vsel %vm6213_vm13, %v7097_v46, %v7099_v14 }
 0x7a3   :  { %v18080_v40 = vadd.f32 %v5356_v42, %v24849_v2  ;;  %v17131_v54 = vpop.f32.mrb[81].mxu0  ;;  %v17988_v44 = vpack.c.bf16 %v7100_v5, %v7098_v34  ;;  %v24856_v42 = vld [vmem:[#allocation32_spill] sm:$0xff] }
 0x7a4   :  { %v5359_v33 = vpop.f32.mrb[82].mxu0 }
 0x7a5   :  { %v18081_v47 = vadd.f32 %v5359_v33, %v24850_v3  ;;  %v17132_v52 = vpop.f32.mrb[83].mxu0  ;;  %17989 = vmatpush3.bf16.msra.mxu1 %v17988_v44  ;;  %v5624_v53 = vmul.f32 %v18080_v40, %v22398_v31 }
 0x7a6   :  { %17990 = vmatprep.subr.bf16.mxu1 %v19613_v1 }
 0x7a7   :  { %v5705_v39 = vadd.f32 %v22408_v28, %v5624_v53  ;;  %v5625_v7 = vmul.f32 %v18081_v47, %v22398_v31  ;;  %v24858_v53 = vld [vmem:[#allocation36_spill] sm:$0xff] }
 0x7a8   :  { %17308 = vmatmul.mubr.msk.f32.vlgmr.msra.gmra.mrb[192].mxu1 %vm6061_vm11, %v22449_v41 }
 0x7a9   :  { %17992 = vmatpush3.bf16.msra.mxu1 %v17988_v44  ;;  %17314 = vmatprep.mubr.msk.f32.mxu1 %vm19612_vm2, %v24553_v29  ;;  %v5779_v17 = vmax.f32 %v5705_v39, 0.0  ;;  %v5706_v35 = vadd.f32 %v22408_v28, %v5625_v7 }
 0x7aa   :  { %v5364_v58 = vpop.f32.mrb[84].mxu0  ;;  %17993 = vmatprep.subr.bf16.mxu1 %v19613_v1 }
 0x7ab   :  { %v18082_v49 = vadd.f32 %v5364_v58, %v24851_v59  ;;  %v17135_v22 = vpop.f32.mrb[85].mxu0  ;;  %v5780_v26 = vmax.f32 %v5706_v35, 0.0 }
 0x7ac   :  { %v5367_v36 = vpop.f32.mrb[86].mxu0  ;;  %17315 = vmatmul.mubr.msk.f32.vlgmr.msra.gmra.mrb[194].mxu1 %vm6061_vm11, %v22462_v4  ;;  %v24857_v22 = vld [vmem:[#allocation34_spill] sm:$0xff] }
 0x7ad   :  { %v5626_v51 = vmul.f32 %v18082_v49, %v22398_v31  ;;  %v18083_v13 = vadd.f32 %v5367_v36, %v24852_v24  ;;  %v17136_v11 = vpop.f32.mrb[87].mxu0  ;;  %17321 = vmatprep.mubr.msk.f32.mxu1 %vm19612_vm2, %v24553_v29 }
 0x7af   :  { %v5707_v21 = vadd.f32 %v22408_v28, %v5626_v51  ;;  %v5627_v15 = vmul.f32 %v18083_v13, %v22398_v31 }
 0x7b1   :  { %v5781_v30 = vmax.f32 %v5707_v21, 0.0  ;;  %v5708_v43 = vadd.f32 %v22408_v28, %v5627_v15 }
 0x7b2   :  { %v5372_v55 = vpop.f32.mrb[88].mxu0 }
 0x7b3   :  { %v5782_v23 = vmax.f32 %v5708_v43, 0.0  ;;  %v18084_v19 = vadd.f32 %v5372_v55, %v24853_v60  ;;  %v17139_v20 = vpop.f32.mrb[89].mxu0  ;;  %v5921_v62 = vrot.slane %v5781_v30, 2 }
 0x7b4   :  { %v5375_v10 = vpop.f32.mrb[90].mxu0 }
 0x7b5   :  { %v5922_v56 = vrot.slane %v5782_v23, 2  ;;  %v5628_v0 = vmul.f32 %v18084_v19, %v22398_v31  ;;  %v18085_v63 = vadd.f32 %v5375_v10, %v24854_v38  ;;  %v17140_v61 = vpop.f32.mrb[91].mxu0 }
 0x7b7   :  { %v5923_v37 = vsel %vm3210_vm7, %v5921_v62, %v5922_v56  ;;  %v5709_v12 = vadd.f32 %v22408_v28, %v5628_v0  ;;  %v5629_v8 = vmul.f32 %v18085_v63, %v22398_v31  ;;  %v24859_v62 = vld [vmem:[#allocation38_spill] sm:$0xff] }
 0x7b8   :  { %v6029_v32 = vmax.f32 %v5779_v17, %v5923_v37  ;;  %v24860_v17 = vld [vmem:[#allocation40_spill] sm:$0xff] }
 0x7b9   :  { %v5783_v48 = vmax.f32 %v5709_v12, 0.0  ;;  %v22717_v25 = vadd.f32 %v22408_v28, %v5629_v8 }
 0x7ba   :  { %v5380_v46 = vpop.f32.mrb[92].mxu0  ;;  %v7248_v33 = vrot.slane %v6029_v32, 4  ;;  %v22807_v32 = vld [vmem:[%s24306_s2] ss:$0 sm:$0xff] }
 0x7bb   :  { %v5924_v45 = vrot.slane %v5783_v48, 2  ;;  %v5784_v16 = vmax.f32 %v22717_v25, 0.0  ;;  %v18086_v18 = vadd.f32 %v5380_v46, %v24855_v6  ;;  %v17143_v34 = vpop.f32.mrb[93].mxu0  ;;  %v22816_v25 = vld [vmem:[%s24307_s3] ss:$0 sm:$0xff] }
 0x7bc   :  { %v5383_v9 = vpop.f32.mrb[94].mxu0  ;;  %v24861_v34 = vld [vmem:[#allocation42_spill] sm:$0xff] }
 0x7bd   :  { %v5925_v50 = vsel %vm3210_vm7, %v5922_v56, %v5924_v45  ;;  %v5926_v14 = vrot.slane %v5784_v16, 2  ;;  %v18087_v5 = vadd.f32 %v5383_v9, %v24856_v42  ;;  %v17144_v2 = vpop.f32.mrb[95].mxu0  ;;  %v24862_v42 = vld [vmem:[#allocation44_spill] sm:$0xff] }
 0x7be   :  { %v6030_v40 = vmax.f32 %v5780_v26, %v5925_v50 }
 0x7bf   :  { %v5927_v54 = vsel %vm3210_vm7, %v5924_v45, %v5926_v14  ;;  %v5631_v44 = vmul.f32 %v18087_v5, %v22398_v31 }
 0x7c0   :  { %v7249_v3 = vrot.slane %v6030_v40, 4  ;;  %v6031_v47 = vmax.f32 %v5781_v30, %v5927_v54  ;;  %v5630_v30 = vmul.f32 %v18086_v18, %v22398_v31 }
 0x7c1   :  { %v5712_v49 = vadd.f32 %v22408_v28, %v5631_v44 }
 0x7c2   :  { %v5388_v52 = vpop.f32.mrb[96].mxu0  ;;  %v7250_v58 = vsel %vm6213_vm13, %v7248_v33, %v7249_v3  ;;  %v7251_v59 = vrot.slane %v6031_v47, 4  ;;  %v5711_v20 = vadd.f32 %v22408_v28, %v5630_v30 }
 0x7c3   :  { %v18088_v36 = vadd.f32 %v5388_v52, %v24857_v22  ;;  %v17147_v51 = vpop.f32.mrb[97].mxu0  ;;  %v5786_v39 = vmax.f32 %v5712_v49, 0.0 }
 0x7c4   :  { %v5391_v24 = vpop.f32.mrb[98].mxu0  ;;  %v7252_v13 = vsel %vm6213_vm13, %v7249_v3, %v7251_v59  ;;  %v5785_v8 = vmax.f32 %v5711_v20, 0.0 }
 0x7c5   :  { %v5632_v11 = vmul.f32 %v18088_v36, %v22398_v31  ;;  %v18089_v21 = vadd.f32 %v5391_v24, %v24858_v53  ;;  %v17148_v15 = vpop.f32.mrb[99].mxu0  ;;  %v17994_v43 = vpack.c.bf16 %v7252_v13, %v7250_v58  ;;  %v24863_v36 = vld [vmem:[#allocation46_spill] sm:$0xff] }
 0x7c6   :  { %v24864_v15 = vld [vmem:[#allocation48_spill] sm:$0xff] }
 0x7c7   :  { %v5713_v55 = vadd.f32 %v22408_v28, %v5632_v11  ;;  %v5633_v23 = vmul.f32 %v18089_v21, %v22398_v31  ;;  %17995 = vmatpush3.bf16.msra.mxu1 %v17994_v43  ;;  %v5928_v31 = vrot.slane %v5786_v39, 2 }
 0x7c8   :  { %17996 = vmatprep.subr.bf16.mxu1 %v19613_v1 }
 0x7c9   :  { %v5787_v60 = vmax.f32 %v5713_v55, 0.0  ;;  %v22738_v19 = vadd.f32 %v22408_v28, %v5633_v23 }
 0x7ca   :  { %v5396_v7 = vpop.f32.mrb[100].mxu0  ;;  %17322 = vmatmul.mubr.msk.f32.vlgmr.msra.gmra.mrb[196].mxu1 %vm6061_vm11, %v22449_v41 }
 0x7cb   :  { %v5929_v28 = vrot.slane %v5787_v60, 2  ;;  %v5788_v10 = vmax.f32 %v22738_v19, 0.0  ;;  %v18090_v56 = vadd.f32 %v5396_v7, %v24859_v62  ;;  %v17151_v0 = vpop.f32.mrb[101].mxu0  ;;  %17998 = vmatpush3.bf16.msra.mxu1 %v17994_v43  ;;  %17328 = vmatprep.mubr.msk.f32.mxu1 %vm19612_vm2, %v24553_v29 }
 0x7cc   :  { %v5399_v38 = vpop.f32.mrb[102].mxu0  ;;  %17999 = vmatprep.subr.bf16.mxu1 %v19613_v1 }
 0x7cd   :  { %v5930_v63 = vsel %vm3210_vm7, %v5928_v31, %v5929_v28  ;;  %v5931_v61 = vrot.slane %v5788_v10, 2  ;;  %v18091_v37 = vadd.f32 %v5399_v38, %v24860_v17  ;;  %v17152_v12 = vpop.f32.mrb[103].mxu0  ;;  %v5634_v40 = vmul.f32 %v22807_v32, %v18090_v56  ;;  %v24865_v56 = vld [vmem:[#allocation50_spill] sm:$0xff] }
 0x7ce   :  { %17329 = vmatmul.mubr.msk.f32.vlgmr.msra.gmra.mrb[198].mxu1 %vm6061_vm11, %v22462_v4  ;;  %v6032_v35 = vmax.f32 %v5784_v16, %v5930_v63 }
 0x7cf   :  { %v5635_v48 = vmul.f32 %v22807_v32, %v18091_v37  ;;  %v5932_v46 = vsel %vm3210_vm7, %v5929_v28, %v5931_v61  ;;  %17335 = vmatprep.mubr.msk.f32.mxu1 %vm19612_vm2, %v24553_v29  ;;  %v5715_v52 = vadd.f32 %v22816_v25, %v5634_v40  ;;  %v24866_v37 = vld [vmem:[#allocation52_spill] sm:$0xff] }
 0x7d0   :  { %v6033_v45 = vmax.f32 %v5785_v8, %v5932_v46 }
 0x7d1   :  { %v5716_v16 = vadd.f32 %v22816_v25, %v5635_v48  ;;  %v5789_v39 = vmax.f32 %v5715_v52, 0.0 }
 0x7d2   :  { %v5404_v6 = vpop.f32.mrb[104].mxu0  ;;  %v18000_v18 = vpack.c.bf16 %v6033_v45, %v6032_v35 }
 0x7d3   :  { %v18092_v26 = vadd.f32 %v5404_v6, %v24861_v34  ;;  %v17155_v9 = vpop.f32.mrb[105].mxu0  ;;  %v5790_v54 = vmax.f32 %v5716_v16, 0.0 }
 0x7d4   :  { %v5407_v50 = vpop.f32.mrb[106].mxu0  ;;  %18001 = vmatpush3.bf16.msra.mxu1 %v18000_v18  ;;  %v24867_v9 = vld [vmem:[#allocation54_spill] sm:$0xff] }
 0x7d5   :  { %v5636_v14 = vmul.f32 %v22807_v32, %v18092_v26  ;;  %v18093_v5 = vadd.f32 %v5407_v50, %v24862_v42  ;;  %v17156_v2 = vpop.f32.mrb[107].mxu0  ;;  %18002 = vmatprep.subr.bf16.mxu1 %v19613_v1  ;;  %v5933_v59 = vrot.slane %v5790_v54, 2 }
 0x7d7   :  { %v5717_v44 = vadd.f32 %v22816_v25, %v5636_v14  ;;  %v5637_v33 = vmul.f32 %v22807_v32, %v18093_v5  ;;  %17336 = vmatmul.mubr.msk.f32.vlgmr.msra.gmra.mrb[200].mxu1 %vm6061_vm11, %v22449_v41 }
 0x7d8   :  { %18004 = vmatpush3.bf16.msra.mxu1 %v18000_v18  ;;  %17342 = vmatprep.mubr.msk.f32.mxu1 %vm19612_vm2, %v24553_v29 }
 0x7d9   :  { %v5791_v3 = vmax.f32 %v5717_v44, 0.0  ;;  %v5718_v47 = vadd.f32 %v22816_v25, %v5637_v33  ;;  %18005 = vmatprep.subr.bf16.mxu1 %v19613_v1  ;;  %v24868_v33 = vld [vmem:[#allocation56_spill] sm:$0xff] }
 0x7da   :  { %v5412_v58 = vpop.f32.mrb[108].mxu0 }
 0x7db   :  { %v5934_v49 = vrot.slane %v5791_v3, 2  ;;  %v5792_v22 = vmax.f32 %v5718_v47, 0.0  ;;  %v18094_v51 = vadd.f32 %v5412_v58, %v24863_v36  ;;  %v17159_v24 = vpop.f32.mrb[109].mxu0  ;;  %17343 = vmatmul.mubr.msk.f32.vlgmr.msra.gmra.mrb[202].mxu1 %vm6061_vm11, %v22462_v4 }
 0x7dc   :  { %v5415_v13 = vpop.f32.mrb[110].mxu0  ;;  %17349 = vmatprep.mubr.msk.f32.mxu1 %vm19612_vm2, %v24553_v29  ;;  %v24869_v24 = vld [vmem:[#allocation58_spill] sm:$0xff] }
 0x7dd   :  { %v5935_v11 = vsel %vm3210_vm7, %v5933_v59, %v5934_v49  ;;  %v5936_v53 = vrot.slane %v5792_v22, 2  ;;  %v5638_v21 = vmul.f32 %v22807_v32, %v18094_v51  ;;  %v18095_v43 = vadd.f32 %v5415_v13, %v24864_v15  ;;  %v17160_v30 = vpop.f32.mrb[111].mxu0 }
 0x7de   :  { %v6034_v55 = vmax.f32 %v5788_v10, %v5935_v11 }
 0x7df   :  { %v5937_v23 = vsel %vm3210_vm7, %v5934_v49, %v5936_v53  ;;  %v5719_v60 = vadd.f32 %v22816_v25, %v5638_v21  ;;  %v5639_v5 = vmul.f32 %v22807_v32, %v18095_v43  ;;  %v24870_v43 = vld [vmem:[#allocation60_spill] sm:$0xff] }
 0x7e0   :  { %v6035_v19 = vmax.f32 %v5789_v39, %v5937_v23  ;;  %v7542_v7 = vrot.slane %v6034_v55, 4 }
 0x7e1   :  { %v5793_v20 = vmax.f32 %v5719_v60, 0.0  ;;  %v5720_v59 = vadd.f32 %v22816_v25, %v5639_v5 }
 0x7e2   :  { %v7543_v31 = vrot.slane %v6035_v19, 4  ;;  %v5420_v28 = vpop.f32.mrb[112].mxu0 }
 0x7e3   :  { %v5938_v62 = vrot.slane %v5793_v20, 2  ;;  %v18096_v0 = vadd.f32 %v5420_v28, %v24865_v56  ;;  %v17163_v38 = vpop.f32.mrb[113].mxu0 }
 0x7e4   :  { %v5423_v63 = vpop.f32.mrb[114].mxu0  ;;  %v7544_v61 = vsel %vm6213_vm13, %v7542_v7, %v7543_v31  ;;  %v24871_v38 = vld [vmem:[#allocation62_spill] sm:$0xff] }
 0x7e5   :  { %v5939_v17 = vsel %vm3210_vm7, %v5936_v53, %v5938_v62  ;;  %v5640_v10 = vmul.f32 %v22807_v32, %v18096_v0  ;;  %v18097_v12 = vadd.f32 %v5423_v63, %v24866_v37  ;;  %v17164_v8 = vpop.f32.mrb[115].mxu0  ;;  %v5794_v53 = vmax.f32 %v5720_v59, 0.0  ;;  %v24874_v59 = vld [vmem:[#allocation72_spill] sm:$0xff] }
 0x7e6   :  { %v6036_v35 = vmax.f32 %v5790_v54, %v5939_v17 }
 0x7e7   :  { %v5721_v48 = vadd.f32 %v22816_v25, %v5640_v10  ;;  %v5641_v46 = vmul.f32 %v22807_v32, %v18097_v12 }
 0x7e8   :  { %v7545_v45 = vrot.slane %v6036_v35, 4 }
 0x7e9   :  { %v5795_v6 = vmax.f32 %v5721_v48, 0.0  ;;  %v5722_v18 = vadd.f32 %v22816_v25, %v5641_v46  ;;  %v24872_v48 = vld [vmem:[#allocation65_spill] sm:$0xff] }
 0x7ea   :  { %v5428_v16 = vpop.f32.mrb[116].mxu0  ;;  %v7546_v34 = vsel %vm6213_vm13, %v7543_v31, %v7545_v45 }
 0x7eb   :  { %v5796_v26 = vmax.f32 %v5722_v18, 0.0  ;;  %v18098_v50 = vadd.f32 %v5428_v16, %v24867_v9  ;;  %v17167_v14 = vpop.f32.mrb[117].mxu0  ;;  %v18006_v42 = vpack.c.bf16 %v7546_v34, %v7544_v61  ;;  %v5940_v40 = vrot.slane %v5795_v6, 2 }
 0x7ec   :  { %v5431_v2 = vpop.f32.mrb[118].mxu0 }
 0x7ed   :  { %v5941_v54 = vrot.slane %v5796_v26, 2  ;;  %v5642_v44 = vmul.f32 %v22807_v32, %v18098_v50  ;;  %v18099_v3 = vadd.f32 %v5431_v2, %v24868_v33  ;;  %v17168_v47 = vpop.f32.mrb[119].mxu0  ;;  %18007 = vmatpush3.bf16.msra.mxu1 %v18006_v42 }
 0x7ee   :  { %18008 = vmatprep.subr.bf16.mxu1 %v19613_v1 }
 0x7ef   :  { %v5942_v52 = vsel %vm3210_vm7, %v5940_v40, %v5941_v54  ;;  %v5723_v58 = vadd.f32 %v22816_v25, %v5642_v44  ;;  %v5643_v17 = vmul.f32 %v22807_v32, %v18099_v3 }
 0x7f0   :  { %17350 = vmatmul.mubr.msk.f32.vlgmr.msra.gmra.mrb[204].mxu1 %vm6061_vm11, %v22449_v41  ;;  %v6037_v49 = vmax.f32 %v5793_v20, %v5942_v52 }
 0x7f1   :  { %v5797_v22 = vmax.f32 %v5723_v58, 0.0  ;;  %18010 = vmatpush3.bf16.msra.mxu1 %v18006_v42  ;;  %17356 = vmatprep.mubr.msk.f32.mxu1 %vm19612_vm2, %v24553_v29  ;;  %v5724_v9 = vadd.f32 %v22816_v25, %v5643_v17 }
 0x7f2   :  { %v5436_v36 = vpop.f32.mrb[120].mxu0  ;;  %18011 = vmatprep.subr.bf16.mxu1 %v19613_v1 }
 0x7f3   :  { %v5943_v51 = vrot.slane %v5797_v22, 2  ;;  %v18100_v13 = vadd.f32 %v5436_v36, %v24869_v24  ;;  %v17171_v11 = vpop.f32.mrb[121].mxu0  ;;  %v5798_v3 = vmax.f32 %v5724_v9, 0.0 }
 0x7f4   :  { %v5439_v21 = vpop.f32.mrb[122].mxu0  ;;  %17357 = vmatmul.mubr.msk.f32.vlgmr.msra.gmra.mrb[206].mxu1 %vm6061_vm11, %v22462_v4 }
 0x7f5   :  { %v5644_v15 = vmul.f32 %v22807_v32, %v18100_v13  ;;  %v18101_v30 = vadd.f32 %v5439_v21, %v24870_v43  ;;  %v17172_v39 = vpop.f32.mrb[123].mxu0  ;;  %v5944_v55 = vsel %vm3210_vm7, %v5941_v54, %v5943_v51  ;;  %17363 = vmatprep.mubr.msk.f32.mxu1 %vm19612_vm2, %v24553_v29  ;;  %v24873_v54 = vld [vmem:[#allocation69_spill] sm:$0xff] }
 0x7f6   :  { %v6038_v23 = vmax.f32 %v5794_v53, %v5944_v55  ;;  %v24875_v39 = vld [vmem:[#allocation76_spill] sm:$0xff] }
 0x7f7   :  { %v5725_v60 = vadd.f32 %v22816_v25, %v5644_v15  ;;  %v5645_v19 = vmul.f32 %v22807_v32, %v18101_v30 }
 0x7f8   :  { %v18012_v20 = vpack.c.bf16 %v6038_v23, %v6037_v49  ;;  %v6131_v7 = vpop.f32.mrb[164].mxu1 }
 0x7f9   :  { %v5799_v31 = vmax.f32 %v5725_v60, 0.0  ;;  %v5726_v28 = vadd.f32 %v22816_v25, %v5645_v19  ;;  %v17211_v62 = vpop.f32.mrb[165].mxu1 }
 0x7fa   :  { %v5444_v56 = vpop.f32.mrb[124].mxu0  ;;  %18013 = vmatpush3.bf16.msra.mxu1 %v18012_v20 }
 0x7fb   :  { %v5800_v0 = vmax.f32 %v5726_v28, 0.0  ;;  %v18102_v63 = vadd.f32 %v5444_v56, %v24871_v38  ;;  %v17175_v61 = vpop.f32.mrb[125].mxu0  ;;  %18014 = vmatprep.subr.bf16.mxu1 %v19613_v1  ;;  %v5945_v10 = vrot.slane %v5799_v31, 2 }
 0x7fc   :  { %v5447_v37 = vpop.f32.mrb[126].mxu0  ;;  %v6204_v12 = vpop.f32.mrb[166].mxu1 }
 0x7fd   :  { %v5946_v8 = vrot.slane %v5800_v0, 2  ;;  %v5646_v35 = vmul.f32 %v22807_v32, %v18102_v63  ;;  %v18103_v46 = vadd.f32 %v5447_v37, %v24872_v48  ;;  %v17176_v45 = vpop.f32.mrb[127].mxu0  ;;  %17364 = vmatmul.mubr.msk.f32.vlgmr.msra.gmra.mrb[208].mxu1 %vm6061_vm11, %v22449_v41  ;;  %v6208_v6 = vmax.f32 %v6131_v7, %v6204_v12  ;;  %v17218_v18 = vpop.f32.mrb[167].mxu1  ;;  %v24876_v7 = vld [vmem:[#allocation80_spill] sm:$0xff] }
 0x7fe   :  { %18016 = vmatpush3.bf16.msra.mxu1 %v18012_v20  ;;  %17370 = vmatprep.mubr.msk.f32.mxu1 %vm19612_vm2, %v24553_v29 }
 0x7ff   :  { %v5947_v16 = vsel %vm3210_vm7, %v5945_v10, %v5946_v8  ;;  %v5727_v34 = vadd.f32 %v22816_v25, %v5646_v35  ;;  %v5647_v26 = vmul.f32 %v22807_v32, %v18103_v46  ;;  %18017 = vmatprep.subr.bf16.mxu1 %v19613_v1  ;;  %6209 = vst.msk [vmem:[#allocation2 + $0xb] sm:$0xff] %vm49_vm14, %v6208_v6 }
 0x800   :  { %v6039_v50 = vmax.f32 %v5797_v22, %v5947_v16  ;;  %v24877_v16 = vld [vmem:[#allocation84_spill] sm:$0xff] }
 0x801   :  { %v5801_v14 = vmax.f32 %v5727_v34, 0.0  ;;  %v22892_v42 = vadd.f32 %v22816_v25, %v5647_v26  ;;  %17371 = vmatmul.mubr.msk.f32.vlgmr.msra.gmra.mrb[210].mxu1 %vm6061_vm11, %v22462_v4 }
 0x802   :  { %v5452_v5 = vpop.f32.mrb[128].mxu0  ;;  %17377 = vmatprep.mubr.msk.f32.mxu1 %vm19612_vm2, %v24553_v29  ;;  %v7836_v13 = vrot.slane %v6039_v50, 4 }
 0x803   :  { %v5948_v2 = vrot.slane %v5801_v14, 2  ;;  %v5802_v40 = vmax.f32 %v22892_v42, 0.0  ;;  %v18104_v44 = vadd.f32 %v5452_v5, %v24873_v54  ;;  %v17179_v33 = vpop.f32.mrb[129].mxu0 }
 0x804   :  { %v5455_v47 = vpop.f32.mrb[130].mxu0 }
 0x805   :  { %v5949_v52 = vsel %vm3210_vm7, %v5946_v8, %v5948_v2  ;;  %v5950_v58 = vrot.slane %v5802_v40, 2  ;;  %v18105_v49 = vadd.f32 %v5455_v47, %v24874_v59  ;;  %v17180_v22 = vpop.f32.mrb[131].mxu0 }
 0x806   :  { %v6040_v36 = vmax.f32 %v5798_v3, %v5949_v52 }
 0x807   :  { %v5951_v51 = vsel %vm3210_vm7, %v5948_v2, %v5950_v58  ;;  %v5649_v24 = vmul.f32 %v22807_v32, %v18105_v49 }
 0x808   :  { %v7837_v11 = vrot.slane %v6040_v36, 4  ;;  %v6041_v53 = vmax.f32 %v5799_v31, %v5951_v51  ;;  %v5648_v31 = vmul.f32 %v22807_v32, %v18104_v44 }
 0x809   :  { %v5730_v30 = vadd.f32 %v22816_v25, %v5649_v24  ;;  %v24879_v24 = vld [vmem:[#allocation92_spill] sm:$0xff] }
 0x80a   :  { %v5460_v21 = vpop.f32.mrb[132].mxu0  ;;  %v7838_v15 = vsel %vm6213_vm13, %v7836_v13, %v7837_v11  ;;  %v7839_v43 = vrot.slane %v6041_v53, 4  ;;  %v5729_v8 = vadd.f32 %v22816_v25, %v5648_v31 }
 0x80b   :  { %v18106_v55 = vadd.f32 %v5460_v21, %v24875_v39  ;;  %v17183_v23 = vpop.f32.mrb[133].mxu0  ;;  %v5804_v63 = vmax.f32 %v5730_v30, 0.0 }
 0x80c   :  { %v5463_v60 = vpop.f32.mrb[134].mxu0  ;;  %v7840_v19 = vsel %vm6213_vm13, %v7837_v11, %v7839_v43  ;;  %v5803_v2 = vmax.f32 %v5729_v8, 0.0 }
 0x80d   :  { %v5650_v20 = vmul.f32 %v22807_v32, %v18106_v55  ;;  %v18107_v28 = vadd.f32 %v5463_v60, %v24876_v7  ;;  %v17184_v62 = vpop.f32.mrb[135].mxu0  ;;  %v18018_v56 = vpack.c.bf16 %v7840_v19, %v7838_v15  ;;  %v6287_v0 = vpop.f32.mrb[168].mxu1  ;;  %v5952_v45 = vrot.slane %v5804_v63, 2 }
 0x80e   :  { %v17225_v38 = vpop.f32.mrb[169].mxu1 }
 0x80f   :  { %v5731_v61 = vadd.f32 %v22816_v25, %v5650_v20  ;;  %v5651_v17 = vmul.f32 %v22807_v32, %v18107_v28  ;;  %18019 = vmatpush3.bf16.msra.mxu1 %v18018_v56 }
 0x810   :  { %18020 = vmatprep.subr.bf16.mxu1 %v19613_v1 }
 0x811   :  { %v5805_v10 = vmax.f32 %v5731_v61, 0.0  ;;  %v22915_v37 = vadd.f32 %v22816_v25, %v5651_v17  ;;  %v6357_v12 = vpop.f32.mrb[170].mxu1 }
 0x812   :  { %v5468_v35 = vpop.f32.mrb[136].mxu0  ;;  %17378 = vmatmul.mubr.msk.f32.vlgmr.msra.gmra.mrb[212].mxu1 %vm6061_vm11, %v22449_v41  ;;  %v6361_v48 = vmax.f32 %v6287_v0, %v6357_v12  ;;  %v17232_v46 = vpop.f32.mrb[171].mxu1 }
 0x813   :  { %v5953_v6 = vrot.slane %v5805_v10, 2  ;;  %v5806_v18 = vmax.f32 %v22915_v37, 0.0  ;;  %v18108_v34 = vadd.f32 %v5468_v35, %v24877_v16  ;;  %v17187_v26 = vpop.f32.mrb[137].mxu0  ;;  %18022 = vmatpush3.bf16.msra.mxu1 %v18018_v56  ;;  %17384 = vmatprep.mubr.msk.f32.mxu1 %vm19612_vm2, %v24553_v29  ;;  %v24880_v56 = vld [vmem:[#allocation96_spill] sm:$0xff] }
 0x814   :  { %v5471_v9 = vpop.f32.mrb[138].mxu0  ;;  %18023 = vmatprep.subr.bf16.mxu1 %v19613_v1  ;;  %6362 = vst.msk [vmem:[#allocation2 + $0x15] sm:$0xff] %vm49_vm14, %v6361_v48  ;;  %v24881_v10 = vld [vmem:[#allocation100_spill] sm:$0xff] }
 0x815   :  { %v5954_v50 = vsel %vm3210_vm7, %v5952_v45, %v5953_v6  ;;  %v5955_v14 = vrot.slane %v5806_v18, 2  ;;  %v18109_v42 = vadd.f32 %v5471_v9, %v22045_v27  ;;  %v17188_v5 = vpop.f32.mrb[139].mxu0  ;;  %v24878_v27 = vld [vmem:[#allocation88_spill] sm:$0xff]  ;;  %v5652_v53 = vmul.f32 %v22807_v32, %v18108_v34  ;;  %v8422_v34 = vld [vmem:[#allocation2 + $0x8] sm:$0xff] }
 0x816   :  { %17385 = vmatmul.mubr.msk.f32.vlgmr.msra.gmra.mrb[214].mxu1 %vm6061_vm11, %v22462_v4  ;;  %v6042_v54 = vmax.f32 %v5802_v40, %v5954_v50  ;;  %v8421_v16 = vld [vmem:[#allocation2] sm:$0xff] }
 0x817   :  { %v5653_v44 = vmul.f32 %v22807_v32, %v18109_v42  ;;  %v5956_v33 = vsel %vm3210_vm7, %v5953_v6, %v5955_v14  ;;  %17391 = vmatprep.mubr.msk.f32.mxu1 %vm19612_vm2, %v24553_v29  ;;  %v5733_v19 = vadd.f32 %v22816_v25, %v5652_v53  ;;  %v24882_v42 = vld [vmem:[#allocation105_spill] sm:$0xff] }
 0x818   :  { %v6043_v3 = vmax.f32 %v5803_v2, %v5956_v33 }
 0x819   :  { %v22935_v59 = vadd.f32 %v22816_v25, %v5653_v44  ;;  %v5807_v8 = vmax.f32 %v5733_v19, 0.0  ;;  %v24884_v19 = vld [vmem:[#allocation67_spill] sm:$0xff] }
 0x81a   :  { %v5476_v47 = vpop.f32.mrb[140].mxu0  ;;  %v18024_v52 = vpack.c.bf16 %v6043_v3, %v6042_v54  ;;  %v6429_v58 = vpop.f32.mrb[172].mxu1  ;;  %v22965_v3 = vpack.c.bf16 %v8422_v34, %v8421_v16 }
 0x81b   :  { %v18110_v49 = vadd.f32 %v5476_v47, %v24878_v27  ;;  %v17191_v22 = vpop.f32.mrb[141].mxu0  ;;  %v17239_v36 = vpop.f32.mrb[173].mxu1  ;;  %v5808_v15 = vmax.f32 %v22935_v59, 0.0  ;;  %v8423_v54 = vld [vmem:[#allocation2 + $0x10] sm:$0xff] }
 0x81c   :  { %v5479_v51 = vpop.f32.mrb[142].mxu0  ;;  %18025 = vmatpush3.bf16.msra.mxu1 %v18024_v52  ;;  %v8496_v36 = vshrl.u32 %v22965_v3, 16 }
 0x81d   :  { %v5654_v40 = vmul.f32 %v22807_v32, %v18110_v49  ;;  %v18111_v13 = vadd.f32 %v5479_v51, %v24879_v24  ;;  %v17192_v11 = vpop.f32.mrb[143].mxu0  ;;  %18026 = vmatprep.subr.bf16.mxu1 %v19613_v1  ;;  %v5957_v7 = vrot.slane %v5808_v15, 2 }
 0x81e   :  { %v6499_v21 = vpop.f32.mrb[174].mxu1 }
 0x81f   :  { %v5735_v43 = vadd.f32 %v22816_v25, %v5654_v40  ;;  %v5655_v30 = vmul.f32 %v22807_v32, %v18111_v13  ;;  %17392 = vmatmul.mubr.msk.f32.vlgmr.msra.gmra.mrb[216].mxu1 %vm6061_vm11, %v22449_v41  ;;  %v6503_v39 = vmax.f32 %v6429_v58, %v6499_v21  ;;  %v17246_v55 = vpop.f32.mrb[175].mxu1  ;;  %v24883_v58 = vld [vmem:[#allocation104_spill] sm:$0xff]  ;;  %v8498_v13 = vshll.u32 %v22965_v3, 16 }
 0x820   :  { %18028 = vmatpush3.bf16.msra.mxu1 %v18024_v52  ;;  %17398 = vmatprep.mubr.msk.f32.mxu1 %vm19612_vm2, %v24553_v29 }
 0x821   :  { %v5809_v23 = vmax.f32 %v5735_v43, 0.0  ;;  %v5736_v60 = vadd.f32 %v22816_v25, %v5655_v30  ;;  %18029 = vmatprep.subr.bf16.mxu1 %v19613_v1  ;;  %6504 = vst.msk [vmem:[#allocation2 + $0x1f] sm:$0xff] %vm49_vm14, %v6503_v39  ;;  %v9382_v39 = vrot.slane %v8496_v36, 5  ;;  %v9383_v55 = vrot.slane %v8498_v13, 6 }
 0x822   :  { %v5484_v20 = vpop.f32.mrb[144].mxu0 }
 0x823   :  { %v5958_v28 = vrot.slane %v5809_v23, 2  ;;  %v5810_v62 = vmax.f32 %v5736_v60, 0.0  ;;  %v18112_v0 = vadd.f32 %v5484_v20, %v24880_v56  ;;  %v17195_v31 = vpop.f32.mrb[145].mxu0  ;;  %17399 = vmatmul.mubr.msk.f32.vlgmr.msra.gmra.mrb[218].mxu1 %vm6061_vm11, %v22462_v4 }
 0x824   :  { %v5487_v38 = vpop.f32.mrb[146].mxu0  ;;  %17405 = vmatprep.mubr.msk.f32.mxu1 %vm19612_vm2, %v24553_v29  ;;  %v9384_v31 = vor.u32 %v9383_v55, %v9382_v39 }
 0x825   :  { %v5959_v63 = vsel %vm3210_vm7, %v5957_v7, %v5958_v28  ;;  %v5960_v61 = vrot.slane %v5810_v62, 2  ;;  %v5656_v17 = vmul.f32 %v22807_v32, %v18112_v0  ;;  %v18113_v37 = vadd.f32 %v5487_v38, %v24881_v10  ;;  %v17196_v12 = vpop.f32.mrb[147].mxu0 }
 0x826   :  { %v6044_v35 = vmax.f32 %v5806_v18, %v5959_v63 }
 0x827   :  { %v5961_v48 = vsel %vm3210_vm7, %v5958_v28, %v5960_v61  ;;  %v5737_v46 = vadd.f32 %v22816_v25, %v5656_v17  ;;  %v5657_v23 = vmul.f32 %v22807_v32, %v18113_v37 }
 0x828   :  { %v6045_v45 = vmax.f32 %v5807_v8, %v5961_v48  ;;  %v8130_v26 = vrot.slane %v6044_v35, 4  ;;  %v8424_v44 = vld [vmem:[#allocation2 + $0x18] sm:$0xff] }
 0x829   :  { %v5811_v6 = vmax.f32 %v5737_v46, 0.0  ;;  %v22970_v22 = vpack.c.bf16 %v8424_v44, %v8423_v54  ;;  %v5738_v48 = vadd.f32 %v22816_v25, %v5657_v23  ;;  %v8500_v54 = vrot.slane %v8498_v13, 1 }
 0x82a   :  { %v8131_v9 = vrot.slane %v6045_v45, 4  ;;  %v5492_v50 = vpop.f32.mrb[148].mxu0 }
 0x82b   :  { %v5962_v14 = vrot.slane %v5811_v6, 2  ;;  %v18114_v5 = vadd.f32 %v5492_v50, %v24882_v42  ;;  %v17199_v2 = vpop.f32.mrb[149].mxu0  ;;  %v22977_v11 = vshrl.u32 %v22970_v22, 16  ;;  %v22982_v30 = vshll.u32 %v22970_v22, 16 }
 0x82c   :  { %v5495_v33 = vpop.f32.mrb[150].mxu0  ;;  %v8132_v18 = vsel %vm6213_vm13, %v8130_v26, %v8131_v9  ;;  %v5812_v42 = vmax.f32 %v5738_v48, 0.0  ;;  %v8425_v2 = vld [vmem:[#allocation2 + $0x20] sm:$0xff] }
 0x82d   :  { %v5963_v47 = vsel %vm3210_vm7, %v5960_v61, %v5962_v14  ;;  %v5658_v52 = vmul.f32 %v22807_v32, %v18114_v5  ;;  %v18115_v59 = vadd.f32 %v5495_v33, %v24883_v58  ;;  %v17200_v27 = vpop.f32.mrb[151].mxu0  ;;  %v9385_v38 = vrot.slane %v22977_v11, 5  ;;  %v19448_v58 = vld [vmem:[%s24308_s4 + $0x10] sm:$0xff]  }
 0x82e   :  { %v6046_v49 = vmax.f32 %v5808_v15, %v5963_v47  ;;  %v9386_v63 = vrot.slane %v22982_v30, 6  ;;  %v10068_v8 = vrot.slane %v22977_v11, 2  ;;  %v10069_v35 = vrot.slane %v22982_v30, 3 }
 0x82f   :  { %v5739_v51 = vadd.f32 %v22816_v25, %v5658_v52  ;;  %v5659_v40 = vmul.f32 %v22807_v32, %v18115_v59  ;;  %v8501_v59 = vor.u32 %v8500_v54, %v8496_v36  ;;  %v8505_v27 = vrot.slane %v22982_v30, 1  ;;  %v19449_v36 = vld [vmem:[%s24308_s4 + $0x18] sm:$0xff]  }
 0x830   :  { %v8133_v24 = vrot.slane %v6046_v49, 4  ;;  %v9387_v37 = vor.u32 %v9386_v63, %v9385_v38  ;;  %v10070_v50 = vor.u32 %v10069_v35, %v10068_v8 }
 0x831   :  { %v5813_v53 = vmax.f32 %v5739_v51, 0.0  ;;  %v5740_v21 = vadd.f32 %v22816_v25, %v5659_v40  ;;  %v8509_v39 = vor.u32 %v22977_v11, %v8505_v27 }
 0x832   :  { %v5500_v43 = vpop.f32.mrb[152].mxu0  ;;  %v8134_v15 = vsel %vm6213_vm13, %v8131_v9, %v8133_v24  ;;  %v23000_v9 = vsel %vm9381_vm15, %v9384_v31, %v9387_v37 }
 0x833   :  { %v5814_v60 = vmax.f32 %v5740_v21, 0.0  ;;  %v18116_v20 = vadd.f32 %v5500_v43, %v24884_v19  ;;  %v17203_v7 = vpop.f32.mrb[153].mxu0  ;;  %v18030_v28 = vpack.c.bf16 %v8134_v15, %v8132_v18  ;;  %v6581_v62 = vpop.f32.mrb[176].mxu1  ;;  %v5964_v61 = vrot.slane %v5813_v53, 2 }
 0x834   :  { %v5503_v56 = vpop.f32.mrb[154].mxu0  ;;  %v17253_v0 = vpop.f32.mrb[177].mxu1  ;;  %v8506_v53 = vsel %vm211_vm5, %v8501_v59, %v8505_v27 }
 0x835   :  { %v5965_v17 = vrot.slane %v5814_v60, 2  ;;  %v5660_v10 = vmul.f32 %v22807_v32, %v18116_v20  ;;  %v17204_v12 = vpop.f32.mrb[155].mxu0  ;;  %18031 = vmatpush3.bf16.msra.mxu1 %v18030_v28 }
 0x836   :  { %18032 = vmatprep.subr.bf16.mxu1 %v19613_v1 }
 0x837   :  { %v5966_v46 = vsel %vm3210_vm7, %v5964_v61, %v5965_v17  ;;  %v5741_v45 = vadd.f32 %v22816_v25, %v5660_v10  ;;  %v6651_v16 = vpop.f32.mrb[178].mxu1 }
 0x838   :  { %17406 = vmatmul.mubr.msk.f32.vlgmr.msra.gmra.mrb[220].mxu1 %vm6061_vm11, %v22449_v41  ;;  %v6047_v32 = vmax.f32 %v5811_v6, %v5966_v46  ;;  %v6655_v34 = vmax.f32 %v6581_v62, %v6651_v16  ;;  %v17260_v26 = vpop.f32.mrb[179].mxu1 }
 0x839   :  { %v5815_v14 = vmax.f32 %v5741_v45, 0.0  ;;  %18034 = vmatpush3.bf16.msra.mxu1 %v18030_v28  ;;  %17412 = vmatprep.mubr.msk.f32.mxu1 %vm19612_vm2, %v24553_v29 }
 0x83a   :  { %18035 = vmatprep.subr.bf16.mxu1 %v19613_v1  ;;  %6656 = vst.msk [vmem:[#allocation2 + $0x29] sm:$0xff] %vm49_vm14, %v6655_v34 }
 0x83b   :  { %v5967_v25 = vrot.slane %v5815_v14, 2 }
 0x83c   :  { %17413 = vmatmul.mubr.msk.f32.vlgmr.msra.gmra.mrb[222].mxu1 %vm6061_vm11, %v22462_v4 }
 0x83d   :  { %v5968_v6 = vsel %vm3210_vm7, %v5965_v17, %v5967_v25  ;;  %17419 = vmatprep.mubr.msk.f32.mxu1 %vm19612_vm2, %v24553_v29 }
 0x83e   :  { %v6048_v5 = vmax.f32 %v5812_v42, %v5968_v6 }
 0x840   :  { %v18036_v44 = vpack.c.bf16 %v6048_v5, %v6047_v32  ;;  %v6723_v33 = vpop.f32.mrb[180].mxu1 }
 0x841   :  { %v8426_v18 = vld [vmem:[#allocation2 + $0x28] sm:$0xff]  ;;  %v17267_v47 = vpop.f32.mrb[181].mxu1 }
 0x842   :  { %18037 = vmatpush3.bf16.msra.mxu1 %v18036_v44  ;;  %v23011_v52 = vpack.c.bf16 %v8426_v18, %v8425_v2 }
 0x843   :  { %18038 = vmatprep.subr.bf16.mxu1 %v19613_v1 }
 0x844   :  { %v6793_v49 = vpop.f32.mrb[182].mxu1  ;;  %v8511_v51 = vshll.u32 %v23011_v52, 16  ;;  %v8515_v40 = vshrl.u32 %v23011_v52, 16 }
 0x845   :  { %17420 = vmatmul.mubr.msk.f32.vlgmr.msra.gmra.mrb[224].mxu1 %vm6061_vm11, %v22449_v41  ;;  %v6797_v24 = vmax.f32 %v6723_v33, %v6793_v49  ;;  %v17274_v13 = vpop.f32.mrb[183].mxu1 }
 0x846   :  { %18040 = vmatpush3.bf16.msra.mxu1 %v18036_v44  ;;  %17426 = vmatprep.mubr.msk.f32.mxu1 %vm19612_vm2, %v24553_v29  ;;  %v9389_v1 = vrot.slane %v8515_v40, 5  ;;  %v9390_v21 = vrot.slane %v8511_v51, 6  ;;  %v10071_v43 = vrot.slane %v8515_v40, 2  ;;  %v10072_v15 = vrot.slane %v8511_v51, 3 }
 0x847   :  { %6798 = vst.msk [vmem:[#allocation2 + $0x33] sm:$0xff] %vm49_vm14, %v6797_v24  ;;  %17429 = vmatprep.subr.bf16.mxu1 %v19448_v58  ;;  %v8513_v55 = vrot.slane %v8511_v51, 1 }
 0x848   :  { %v9391_v30 = vor.u32 %v9390_v21, %v9389_v1  ;;  %v10073_v23 = vor.u32 %v10072_v15, %v10071_v43 }
 0x849   :  { %17427 = vmatmul.mubr.msk.f32.vlgmr.msra.gmra.mrb[226].mxu1 %vm6061_vm11, %v22462_v4  ;;  %v8514_v20 = vsel %vm211_vm5, %v8509_v39, %v8513_v55  ;;  %v8517_v10 = vor.u32 %v8515_v40, %v8513_v55  ;;  %vm12766_vm11 = vsmask.f32 1280 }
 0x84a   :  { %17430 = vmatpush3.bf16.msra.mxu1 %v19448_v58  ;;  %17433 = vmatprep.mubr.msk.bf16.mxu1 %vm49_vm14, %v8506_v53  ;;  %v23036_v60 = vsel %vm9381_vm15, %v9387_v37, %v9391_v30  ;;  %v23039_v19 = vsel %vm4263_vm8, %v10070_v50, %v10073_v23 }
 0x84b   :  { %17431 = vmatprep.subr.bf16.mxu1 %v19449_v36 }
 0x84e   :  { %17432 = vmatpush3.bf16.msra.mxu1 %v19449_v36  ;;  %v8427_v0 = vld [vmem:[#allocation2 + $0x30] sm:$0xff] }
 0x851   :  { %17434 = vmatmul.mubr.msk.bf16.vlgmr.msra.gmra.mrb[228].mxu1 %vm49_vm14, %v8514_v20 }
 0x855   :  { %v6875_v7 = vpop.f32.mrb[184].mxu1 }
 0x856   :  { %v17281_v28 = vpop.f32.mrb[185].mxu1 }
 0x859   :  { %v6945_v62 = vpop.f32.mrb[186].mxu1 }
 0x85a   :  { %v6949_v11 = vmax.f32 %v6875_v7, %v6945_v62  ;;  %v17288_v56 = vpop.f32.mrb[187].mxu1 }
 0x85c   :  { %6950 = vst.msk [vmem:[#allocation2 + $0x3d] sm:$0xff] %vm49_vm14, %v6949_v11 }
 0x862   :  { %v7017_v31 = vpop.f32.mrb[188].mxu1 }
 0x863   :  { %v8428_v38 = vld [vmem:[#allocation2 + $0x38] sm:$0xff]  ;;  %v17295_v63 = vpop.f32.mrb[189].mxu1 }
 0x864   :  { %v23044_v61 = vpack.c.bf16 %v8428_v38, %v8427_v0 }
 0x866   :  { %v7087_v17 = vpop.f32.mrb[190].mxu1  ;;  %v8519_v12 = vshll.u32 %v23044_v61, 16  ;;  %v8523_v37 = vshrl.u32 %v23044_v61, 16 }
 0x867   :  { %v7091_v8 = vmax.f32 %v7017_v31, %v7087_v17  ;;  %v17302_v35 = vpop.f32.mrb[191].mxu1 }
 0x868   :  { %v8521_v48 = vrot.slane %v8519_v12, 1  ;;  %v9393_v46 = vrot.slane %v8523_v37, 5  ;;  %v9394_v45 = vrot.slane %v8519_v12, 6  ;;  %v10075_v16 = vrot.slane %v8523_v37, 2  ;;  %v8433_v35 = vld [vmem:[#allocation2 + $0x60] sm:$0xff] }
 0x869   :  { %7092 = vst.msk [vmem:[#allocation2 + $0x47] sm:$0xff] %vm49_vm14, %v7091_v8  ;;  %v10076_v34 = vrot.slane %v8519_v12, 3 }
 0x86a   :  { %v8522_v32 = vsel %vm211_vm5, %v8517_v10, %v8521_v48  ;;  %v9395_v26 = vor.u32 %v9394_v45, %v9393_v46  ;;  %v8525_v2 = vor.u32 %v8523_v37, %v8521_v48 }
 0x86b   :  { %17437 = vmatprep.mubr.msk.bf16.mxu1 %vm49_vm14, %v8522_v32  ;;  %v10077_v50 = vor.u32 %v10076_v34, %v10075_v16  ;;  %v19450_v32 = vld [vmem:[%s24308_s4] sm:$0xff]  }
 0x86c   :  { %v23052_v14 = vsel %vm9381_vm15, %v9391_v30, %v9395_v26  ;;  %17457 = vmatprep.subr.bf16.mxu1 %v19450_v32 }
 0x86d   :  { %v23055_v25 = vsel %vm4263_vm8, %v10073_v23, %v10077_v50  ;;  %17458 = vmatpush3.bf16.msra.mxu1 %v19450_v32 }
 0x870   :  { %v8429_v42 = vld [vmem:[#allocation2 + $0x40] sm:$0xff]  ;;  %v8430_v6 = vld [vmem:[#allocation2 + $0x48] sm:$0xff] }
 0x871   :  { %v23057_v5 = vpack.c.bf16 %v8430_v6, %v8429_v42 }
 0x873   :  { %v8527_v54 = vshll.u32 %v23057_v5, 16  ;;  %v8531_v44 = vshrl.u32 %v23057_v5, 16 }
 0x875   :  { %v8529_v33 = vrot.slane %v8527_v54, 1  ;;  %v9397_v18 = vrot.slane %v8531_v44, 5  ;;  %v9398_v47 = vrot.slane %v8527_v54, 6  ;;  %v10079_v58 = vrot.slane %v8531_v44, 2 }
 0x876   :  { %v10080_v27 = vrot.slane %v8527_v54, 3 }
 0x877   :  { %v8530_v59 = vsel %vm211_vm5, %v8525_v2, %v8529_v33  ;;  %v9399_v49 = vor.u32 %v9398_v47, %v9397_v18  ;;  %v8533_v39 = vor.u32 %v8531_v44, %v8529_v33  ;;  %v19451_v44 = vld [vmem:[%s24308_s4 + $0x8] sm:$0xff]  }
 0x878   :  { %17438 = vmatmul.mubr.msk.bf16.gmra.mrb[232].mxu1 %vm49_vm14, %v8530_v59  ;;  %v10081_v51 = vor.u32 %v10080_v27, %v10079_v58  ;;  %17459 = vmatprep.subr.bf16.mxu1 %v19451_v44 }
 0x879   :  { %v23064_v40 = vsel %vm9381_vm15, %v9395_v26, %v9399_v49  ;;  %17460 = vmatpush3.bf16.msra.mxu1 %v19451_v44 }
 0x87a   :  { %v23067_v13 = vsel %vm4263_vm8, %v10077_v50, %v10081_v51 }
 0x87b   :  { %v7169_v24 = vpop.f32.mrb[192].mxu1 }
 0x87c   :  { %v17309_v1 = vpop.f32.mrb[193].mxu1 }
 0x87f   :  { %v7239_v36 = vpop.f32.mrb[194].mxu1 }
 0x880   :  { %v7243_v53 = vmax.f32 %v7169_v24, %v7239_v36  ;;  %v17316_v21 = vpop.f32.mrb[195].mxu1 }
 0x882   :  { %7244 = vst.msk [vmem:[#allocation2 + $0x51] sm:$0xff] %vm49_vm14, %v7243_v53 }
 0x889   :  { %v8431_v43 = vld [vmem:[#allocation2 + $0x50] sm:$0xff]  ;;  %v8432_v15 = vld [vmem:[#allocation2 + $0x58] sm:$0xff] }
 0x88a   :  { %v23070_v30 = vpack.c.bf16 %v8432_v15, %v8431_v43 }
 0x88c   :  { %v8535_v55 = vshll.u32 %v23070_v30, 16  ;;  %v8539_v23 = vshrl.u32 %v23070_v30, 16 }
 0x88e   :  { %v8537_v20 = vrot.slane %v8535_v55, 1  ;;  %v9401_v7 = vrot.slane %v8539_v23, 5  ;;  %v9402_v28 = vrot.slane %v8535_v55, 6  ;;  %v10083_v62 = vrot.slane %v8539_v23, 2 }
 0x88f   :  { %v10084_v56 = vrot.slane %v8535_v55, 3 }
 0x890   :  { %v8538_v11 = vsel %vm211_vm5, %v8533_v39, %v8537_v20  ;;  %v9403_v0 = vor.u32 %v9402_v28, %v9401_v7  ;;  %v8541_v26 = vor.u32 %v8539_v23, %v8537_v20 }
 0x891   :  { %17441 = vmatprep.mubr.msk.bf16.mxu1 %vm49_vm14, %v8538_v11  ;;  %v10085_v31 = vor.u32 %v10084_v56, %v10083_v62 }
 0x892   :  { %v23077_v38 = vsel %vm9381_vm15, %v9399_v49, %v9403_v0 }
 0x893   :  { %v23080_v63 = vsel %vm4263_vm8, %v10081_v51, %v10085_v31 }
 0x89d   :  { %v7321_v17 = vpop.f32.mrb[196].mxu1 }
 0x89e   :  { %v17323_v10 = vpop.f32.mrb[197].mxu1 }
 0x8a1   :  { %v7391_v12 = vpop.f32.mrb[198].mxu1 }
 0x8a2   :  { %v7395_v37 = vmax.f32 %v7321_v17, %v7391_v12  ;;  %v17330_v8 = vpop.f32.mrb[199].mxu1 }
 0x8a4   :  { %7396 = vst.msk [vmem:[#allocation2 + $0x6f] sm:$0xff] %vm49_vm14, %v7395_v37 }
 0x8aa   :  { %v7463_v48 = vpop.f32.mrb[200].mxu1 }
 0x8ab   :  { %v8434_v46 = vld [vmem:[#allocation2 + $0x68] sm:$0xff]  ;;  %v17337_v45 = vpop.f32.mrb[201].mxu1  ;;  %v8435_v24 = vld [vmem:[#allocation2 + $0x70] sm:$0xff] }
 0x8ac   :  { %v23083_v16 = vpack.c.bf16 %v8434_v46, %v8433_v35 }
 0x8ae   :  { %v7533_v34 = vpop.f32.mrb[202].mxu1  ;;  %v8543_v50 = vshll.u32 %v23083_v16, 16  ;;  %v8547_v42 = vshrl.u32 %v23083_v16, 16 }
 0x8af   :  { %v7537_v6 = vmax.f32 %v7463_v48, %v7533_v34  ;;  %v17344_v2 = vpop.f32.mrb[203].mxu1  ;;  %v23119_v34 = vld [vmem:[%s24308_s4 + $0x20] sm:$0xff]  }
 0x8b0   :  { %v8545_v54 = vrot.slane %v8543_v50, 1  ;;  %v9405_v33 = vrot.slane %v8547_v42, 5  ;;  %v9406_v18 = vrot.slane %v8543_v50, 6  ;;  %v10087_v47 = vrot.slane %v8547_v42, 2  ;;  %17485 = vmatprep.subr.bf16.mxu1 %v23119_v34 }
 0x8b1   :  { %7538 = vst.msk [vmem:[#allocation2 + $0x79] sm:$0xff] %vm49_vm14, %v7537_v6  ;;  %v10088_v59 = vrot.slane %v8543_v50, 3 }
 0x8b2   :  { %v8546_v58 = vsel %vm211_vm5, %v8541_v26, %v8545_v54  ;;  %v9407_v27 = vor.u32 %v9406_v18, %v9405_v33  ;;  %v8549_v21 = vor.u32 %v8547_v42, %v8545_v54 }
 0x8b3   :  { %17442 = vmatmul.mubr.msk.bf16.gmra.mrb[236].mxu1 %vm49_vm14, %v8546_v58  ;;  %v10089_v49 = vor.u32 %v10088_v59, %v10087_v47 }
 0x8b4   :  { %v23097_v51 = vsel %vm9381_vm15, %v9403_v0, %v9407_v27 }
 0x8b5   :  { %v23100_v1 = vsel %vm4263_vm8, %v10085_v31, %v10089_v49 }
 0x8b8   :  { %v8436_v36 = vld [vmem:[#allocation2 + $0x78] sm:$0xff] }
 0x8b9   :  { %v23102_v53 = vpack.c.bf16 %v8436_v36, %v8435_v24 }
 0x8bb   :  { %v8551_v43 = vshll.u32 %v23102_v53, 16  ;;  %v8555_v15 = vshrl.u32 %v23102_v53, 16 }
 0x8bd   :  { %v8553_v39 = vrot.slane %v8551_v43, 1  ;;  %v9409_v55 = vrot.slane %v8555_v15, 5  ;;  %v9410_v23 = vrot.slane %v8551_v43, 6  ;;  %v10091_v20 = vrot.slane %v8555_v15, 2 }
 0x8be   :  { %v10092_v28 = vrot.slane %v8551_v43, 3 }
 0x8bf   :  { %v8554_v7 = vsel %vm211_vm5, %v8549_v21, %v8553_v39  ;;  %v9411_v62 = vor.u32 %v9410_v23, %v9409_v55  ;;  %v8557_v42 = vor.u32 %v8555_v15, %v8553_v39 }
 0x8c0   :  { %17445 = vmatprep.mubr.msk.bf16.mxu1 %vm49_vm14, %v8554_v7  ;;  %v10093_v11 = vor.u32 %v10092_v28, %v10091_v20 }
 0x8c1   :  { %v23109_v56 = vsel %vm9381_vm15, %v9407_v27, %v9411_v62 }
 0x8c2   :  { %v23112_v31 = vsel %vm4263_vm8, %v10089_v49, %v10093_v11 }
 0x8c3   :  { %v7615_v0 = vpop.f32.mrb[204].mxu1 }
 0x8c4   :  { %v17351_v17 = vpop.f32.mrb[205].mxu1 }
 0x8c7   :  { %v7685_v10 = vpop.f32.mrb[206].mxu1 }
 0x8c8   :  { %v7689_v12 = vmax.f32 %v7615_v0, %v7685_v10  ;;  %v17358_v37 = vpop.f32.mrb[207].mxu1 }
 0x8ca   :  { %7690 = vst.msk [vmem:[#allocation2 + $0x83] sm:$0xff] %vm49_vm14, %v7689_v12 }
 0x8d0   :  { %v7757_v8 = vpop.f32.mrb[208].mxu1 }
 0x8d1   :  { %v17365_v35 = vpop.f32.mrb[209].mxu1  ;;  %v8437_v32 = vld [vmem:[#allocation2 + $0x80] sm:$0xff] }
 0x8d4   :  { %v7827_v48 = vpop.f32.mrb[210].mxu1 }
 0x8d5   :  { %v7831_v46 = vmax.f32 %v7757_v8, %v7827_v48  ;;  %v17372_v45 = vpop.f32.mrb[211].mxu1 }
 0x8d7   :  { %7832 = vst.msk [vmem:[#allocation2 + $0x8d] sm:$0xff] %vm49_vm14, %v7831_v46 }
 0x8de   :  { %v8438_v26 = vld [vmem:[#allocation2 + $0x88] sm:$0xff] }
 0x8df   :  { %v23121_v50 = vpack.c.bf16 %v8438_v26, %v8437_v32 }
 0x8e1   :  { %v8559_v6 = vshll.u32 %v23121_v50, 16  ;;  %v8563_v2 = vshrl.u32 %v23121_v50, 16 }
 0x8e3   :  { %v8561_v54 = vrot.slane %v8559_v6, 1  ;;  %v9413_v44 = vrot.slane %v8563_v2, 5  ;;  %v9414_v33 = vrot.slane %v8559_v6, 6  ;;  %v10095_v18 = vrot.slane %v8563_v2, 2 }
 0x8e4   :  { %v10096_v59 = vrot.slane %v8559_v6, 3 }
 0x8e5   :  { %v7909_v47 = vpop.f32.mrb[212].mxu1  ;;  %v8562_v58 = vsel %vm211_vm5, %v8557_v42, %v8561_v54  ;;  %v9415_v49 = vor.u32 %v9414_v33, %v9413_v44  ;;  %v8565_v17 = vor.u32 %v8563_v2, %v8561_v54 }
 0x8e6   :  { %v17379_v27 = vpop.f32.mrb[213].mxu1  ;;  %17446 = vmatmul.mubr.msk.bf16.gmra.mrb[240].mxu1 %vm49_vm14, %v8562_v58  ;;  %v10097_v24 = vor.u32 %v10096_v59, %v10095_v18 }
 0x8e7   :  { %v23129_v36 = vsel %vm9381_vm15, %v9411_v62, %v9415_v49 }
 0x8e8   :  { %v23132_v43 = vsel %vm4263_vm8, %v10093_v11, %v10097_v24 }
 0x8e9   :  { %v7979_v21 = vpop.f32.mrb[214].mxu1 }
 0x8ea   :  { %v7983_v15 = vmax.f32 %v7909_v47, %v7979_v21  ;;  %v17386_v39 = vpop.f32.mrb[215].mxu1 }
 0x8ec   :  { %7984 = vst.msk [vmem:[#allocation2 + $0x97] sm:$0xff] %vm49_vm14, %v7983_v15 }
 0x8f2   :  { %v8051_v55 = vpop.f32.mrb[216].mxu1 }
 0x8f3   :  { %v8439_v23 = vld [vmem:[#allocation2 + $0x90] sm:$0xff]  ;;  %v8440_v20 = vld [vmem:[#allocation2 + $0x98] sm:$0xff]  ;;  %v17393_v7 = vpop.f32.mrb[217].mxu1 }
 0x8f4   :  { %v23135_v28 = vpack.c.bf16 %v8440_v20, %v8439_v23 }
 0x8f6   :  { %v8121_v0 = vpop.f32.mrb[218].mxu1  ;;  %v8567_v10 = vshll.u32 %v23135_v28, 16  ;;  %v8571_v62 = vshrl.u32 %v23135_v28, 16 }
 0x8f7   :  { %v8125_v12 = vmax.f32 %v8051_v55, %v8121_v0  ;;  %v17400_v37 = vpop.f32.mrb[219].mxu1 }
 0x8f8   :  { %v8569_v11 = vrot.slane %v8567_v10, 1  ;;  %v9417_v8 = vrot.slane %v8571_v62, 5  ;;  %v9418_v35 = vrot.slane %v8567_v10, 6  ;;  %v10099_v48 = vrot.slane %v8571_v62, 2 }
 0x8f9   :  { %8126 = vst.msk [vmem:[#allocation2 + $0xa1] sm:$0xff] %vm49_vm14, %v8125_v12  ;;  %v10100_v45 = vrot.slane %v8567_v10, 3  ;;  %v8445_v12 = vld [vmem:[#allocation2 + $0xc0] sm:$0xff] }
 0x8fa   :  { %v8570_v46 = vsel %vm211_vm5, %v8565_v17, %v8569_v11  ;;  %v9419_v32 = vor.u32 %v9418_v35, %v9417_v8  ;;  %v8573_v23 = vor.u32 %v8571_v62, %v8569_v11 }
 0x8fb   :  { %17449 = vmatprep.mubr.msk.bf16.mxu1 %vm49_vm14, %v8570_v46  ;;  %v10101_v26 = vor.u32 %v10100_v45, %v10099_v48  ;;  %v23159_v46 = vpack.c.bf16 %v8445_v12, %v8445_v12 }
 0x8fc   :  { %v23143_v42 = vsel %vm9381_vm15, %v9415_v49, %v9419_v32 }
 0x8fd   :  { %v23146_v6 = vsel %vm4263_vm8, %v10097_v24, %v10101_v26 }
 0x900   :  { %v8441_v58 = vld [vmem:[#allocation2 + $0xa0] sm:$0xff] }
 0x90b   :  { %v8203_v2 = vpop.f32.mrb[220].mxu1 }
 0x90c   :  { %v17407_v54 = vpop.f32.mrb[221].mxu1 }
 0x90d   :  { %v10338_v54 = vrot.slane %v23159_v46, 3 }
 0x90f   :  { %v8273_v44 = vpop.f32.mrb[222].mxu1 }
 0x910   :  { %v8277_v33 = vmax.f32 %v8203_v2, %v8273_v44  ;;  %v17414_v18 = vpop.f32.mrb[223].mxu1 }
 0x912   :  { %8278 = vst.msk [vmem:[#allocation2 + $0xab] sm:$0xff] %vm49_vm14, %v8277_v33 }
 0x918   :  { %v8345_v47 = vpop.f32.mrb[224].mxu1 }
 0x919   :  { %v8442_v59 = vld [vmem:[#allocation2 + $0xa8] sm:$0xff]  ;;  %v17421_v27 = vpop.f32.mrb[225].mxu1 }
 0x91a   :  { %v23149_v21 = vpack.c.bf16 %v8442_v59, %v8441_v58 }
 0x91c   :  { %v8415_v15 = vpop.f32.mrb[226].mxu1  ;;  %v8575_v49 = vshll.u32 %v23149_v21, 16  ;;  %v8579_v39 = vshrl.u32 %v23149_v21, 16  ;;  %v8959_v44 = vrot.slane %v23149_v21, 1  ;;  %v9180_v33 = vrot.slane %v23149_v21, 5 }
 0x91d   :  { %v8419_v24 = vmax.f32 %v8345_v47, %v8415_v15  ;;  %v17428_v55 = vpop.f32.mrb[227].mxu1  ;;  %v9646_v18 = vrot.slane %v23149_v21, 6 }
 0x91e   :  { %v8577_v20 = vrot.slane %v8575_v49, 1  ;;  %v9421_v7 = vrot.slane %v8579_v39, 5  ;;  %v9422_v0 = vrot.slane %v8575_v49, 6  ;;  %v10103_v17 = vrot.slane %v8579_v39, 2 }
 0x91f   :  { %8420 = vst.msk [vmem:[#allocation2 + $0xb5] sm:$0xff] %vm49_vm14, %v8419_v24  ;;  %v10104_v37 = vrot.slane %v8575_v49, 3 }
 0x920   :  { %v8578_v10 = vsel %vm211_vm5, %v8573_v23, %v8577_v20  ;;  %v9423_v8 = vor.u32 %v9422_v0, %v9421_v7  ;;  %v8581_v27 = vor.u32 %v8579_v39, %v8577_v20 }
 0x921   :  { %17450 = vmatmul.mubr.msk.bf16.gmra.mrb[244].mxu1 %vm49_vm14, %v8578_v10  ;;  %v10105_v35 = vor.u32 %v10104_v37, %v10103_v17  ;;  %v10334_v10 = vrot.slane %v23149_v21, 3 }
 0x922   :  { %v23157_v48 = vsel %vm9381_vm15, %v9419_v32, %v9423_v8  ;;  %v9865_v32 = vrot.slane %v23149_v21, 2 }
 0x923   :  { %v23162_v62 = vsel %vm4263_vm8, %v10101_v26, %v10105_v35 }
 0x926   :  { %v8443_v11 = vld [vmem:[#allocation2 + $0xb0] sm:$0xff]  ;;  %v8444_v45 = vld [vmem:[#allocation2 + $0xb8] sm:$0xff] }
 0x927   :  { %v23164_v2 = vpack.c.bf16 %v8444_v45, %v8443_v11 }
 0x929   :  { %v8583_v47 = vshll.u32 %v23164_v2, 16  ;;  %v8587_v26 = vshrl.u32 %v23164_v2, 16  ;;  %v8961_v58 = vrot.slane %v23164_v2, 1  ;;  %v24498_v59 = vrot.slane %v23164_v2, 5 }
 0x92a   :  { %v24499_v15 = vrot.slane %v23164_v2, 6  ;;  %v24500_v49 = vrot.slane %v23164_v2, 2  ;;  %v10336_v24 = vrot.slane %v23164_v2, 3 }
 0x92b   :  { %v8585_v55 = vrot.slane %v8583_v47, 1  ;;  %v23183_v23 = vsel %vm1461_vm3, %v8959_v44, %v8961_v58  ;;  %v23190_v39 = vsel %vm9160_vm4, %v9180_v33, %v24498_v59  ;;  %v9425_v20 = vrot.slane %v8587_v26, 5 }
 0x92c   :  { %v9426_v7 = vrot.slane %v8583_v47, 6  ;;  %v23197_v0 = vsel %vm653_vm1, %v9646_v18, %v24499_v15  ;;  %v23204_v17 = vsel %vm3210_vm7, %v9865_v32, %v24500_v49  ;;  %v10107_v11 = vrot.slane %v8587_v26, 2 }
 0x92d   :  { %v8586_v12 = vsel %vm211_vm5, %v8581_v27, %v8585_v55  ;;  %v8589_v37 = vor.u32 %v8587_v26, %v8585_v55  ;;  %v10108_v45 = vrot.slane %v8583_v47, 3  ;;  %v23214_v15 = vsel %vm4967_vm9, %v10334_v10, %v10336_v24 }
 0x92e   :  { %17453 = vmatprep.mubr.msk.bf16.mxu1 %vm49_vm14, %v8586_v12  ;;  %v23209_v59 = vor.u32 %v9426_v7, %v9425_v20  ;;  %v23219_v49 = vsel %vm4967_vm9, %v10336_v24, %v10338_v54  ;;  %v19453_v24 = vld [vmem:[%s24308_s4 + $0x28] sm:$0xff]   ;;  %v8943_v20 = vrot.slane %v23011_v52, 1  ;;  %v8945_v7 = vrot.slane %v23044_v61, 1  ;;  %v19455_v12 = vld [vmem:[%s24308_s4 + $0x38] sm:$0xff]  }
 0x92f   :  { %17454 = vmatmul.mubr.msk.bf16.gmra.mrb[248].mxu1 %vm49_vm14, %v8589_v37  ;;  %v23222_v27 = vor.u32 %v10108_v45, %v10107_v11  ;;  %v19456_v45 = vld [vmem:[%s24308_s4 + $0x40] sm:$0xff]  }
 0x930   :  { %17461 = vmatprep.mubr.msk.bf16.mxu1 %vm49_vm14, %v22965_v3  ;;  %v23228_v47 = vsel %vm9381_vm15, %v9423_v8, %v23209_v59  ;;  %v19454_v8 = vld [vmem:[%s24308_s4 + $0x30] sm:$0xff]   ;;  %v8946_v11 = vsel %vm1461_vm3, %v8943_v20, %v8945_v7 }
 0x931   :  { %v23232_v26 = vsel %vm4263_vm8, %v10105_v35, %v23222_v27  ;;  %v8941_v35 = vrot.slane %v22970_v22, 1 }
 0x933   :  { %v8944_v37 = vsel %vm1461_vm3, %v8941_v35, %v8943_v20  ;;  %v8953_v20 = vrot.slane %v23102_v53, 1 }
 0x937   :  { %17462 = vmatmul.mubr.msk.bf16.vlgmr.msra.gmra.mrb[228].mxu1 %vm49_vm14, %v22970_v22 }
 0x938   :  { %17465 = vmatprep.mubr.msk.bf16.mxu1 %vm49_vm14, %v23011_v52  ;;  %17486 = vmatpush3.bf16.msra.mxu1 %v23119_v34  ;;  %v8940_v34 = vrot.slane %v22965_v3, 1 }
 0x939   :  { %17487 = vmatprep.subr.bf16.mxu1 %v19453_v24 }
 0x93a   :  { %v8942_v55 = vsel %vm1461_vm3, %v8940_v34, %v8941_v35  ;;  %v8949_v34 = vrot.slane %v23070_v30, 1 }
 0x93c   :  { %17488 = vmatpush3.bf16.msra.mxu1 %v19453_v24  ;;  %v8947_v24 = vrot.slane %v23057_v5, 1 }
 0x93d   :  { %17513 = vmatprep.subr.bf16.mxu1 %v19454_v8 }
 0x93e   :  { %v8948_v35 = vsel %vm1461_vm3, %v8945_v7, %v8947_v24  ;;  %v8955_v7 = vrot.slane %v23121_v50, 1 }
 0x93f   :  { %17466 = vmatmul.mubr.msk.bf16.gmra.mrb[232].mxu1 %vm49_vm14, %v23044_v61 }
 0x940   :  { %17469 = vmatprep.mubr.msk.bf16.mxu1 %vm49_vm14, %v23057_v5 }
 0x947   :  { %17470 = vmatmul.mubr.msk.bf16.gmra.mrb[236].mxu1 %vm49_vm14, %v23070_v30 }
 0x948   :  { %17473 = vmatprep.mubr.msk.bf16.mxu1 %vm49_vm14, %v23083_v16 }
 0x94f   :  { %17474 = vmatmul.mubr.msk.bf16.gmra.mrb[240].mxu1 %vm49_vm14, %v23102_v53 }
 0x950   :  { %17477 = vmatprep.mubr.msk.bf16.mxu1 %vm49_vm14, %v23121_v50 }
 0x957   :  { %17478 = vmatmul.mubr.msk.bf16.gmra.mrb[244].mxu1 %vm49_vm14, %v23135_v28 }
 0x958   :  { %17481 = vmatprep.mubr.msk.bf16.mxu1 %vm49_vm14, %v23149_v21  ;;  %v23541_v21 = vld [vmem:[%s24310_s6] ss:$0 sm:$0xff] }
 0x95f   :  { %17482 = vmatmul.mubr.msk.bf16.gmra.mrb[248].mxu1 %vm49_vm14, %v23164_v2 }
 0x960   :  { %17489 = vmatprep.mubr.msk.bf16.mxu1 %vm49_vm14, %v8942_v55  ;;  %v8950_v55 = vsel %vm1461_vm3, %v8947_v24, %v8949_v34  ;;  %v8956_v24 = vsel %vm1461_vm3, %v8953_v20, %v8955_v7 }
 0x967   :  { %17490 = vmatmul.mubr.msk.bf16.vlgmr.msra.gmra.mrb[228].mxu1 %vm49_vm14, %v8944_v37 }
 0x968   :  { %17493 = vmatprep.mubr.msk.bf16.mxu1 %vm49_vm14, %v8946_v11  ;;  %17514 = vmatpush3.bf16.msra.mxu1 %v19454_v8  ;;  %v8951_v8 = vrot.slane %v23083_v16, 1 }
 0x969   :  { %17515 = vmatprep.subr.bf16.mxu1 %v19455_v12 }
 0x96a   :  { %v8952_v37 = vsel %vm1461_vm3, %v8949_v34, %v8951_v8  ;;  %v8954_v11 = vsel %vm1461_vm3, %v8951_v8, %v8953_v20  ;;  %v9162_v8 = vrot.slane %v22970_v22, 5 }
 0x96c   :  { %17516 = vmatpush3.bf16.msra.mxu1 %v19455_v12  ;;  %v8957_v12 = vrot.slane %v23135_v28, 1 }
 0x96d   :  { %17541 = vmatprep.subr.bf16.mxu1 %v19456_v45 }
 0x96e   :  { %v8960_v34 = vsel %vm1461_vm3, %v8957_v12, %v8959_v44  ;;  %v9166_v44 = vrot.slane %v23044_v61, 5 }
 0x96f   :  { %17494 = vmatmul.mubr.msk.bf16.gmra.mrb[232].mxu1 %vm49_vm14, %v8948_v35  ;;  %v8958_v35 = vsel %vm1461_vm3, %v8955_v7, %v8957_v12  ;;  %v9168_v12 = vrot.slane %v23057_v5, 5 }
 0x970   :  { %17497 = vmatprep.mubr.msk.bf16.mxu1 %vm49_vm14, %v8950_v55  ;;  %v9161_v55 = vrot.slane %v22965_v3, 5 }
 0x972   :  { %v9163_v20 = vsel %vm9160_vm4, %v9161_v55, %v9162_v8  ;;  %v9174_v55 = vrot.slane %v23102_v53, 5 }
 0x977   :  { %17498 = vmatmul.mubr.msk.bf16.gmra.mrb[236].mxu1 %vm49_vm14, %v8952_v37  ;;  %v9164_v37 = vrot.slane %v23011_v52, 5 }
 0x978   :  { %17501 = vmatprep.mubr.msk.bf16.mxu1 %vm49_vm14, %v8954_v11 }
 0x979   :  { %v9165_v11 = vsel %vm9160_vm4, %v9162_v8, %v9164_v37  ;;  %v9167_v7 = vsel %vm9160_vm4, %v9164_v37, %v9166_v44  ;;  %v9176_v37 = vrot.slane %v23121_v50, 5 }
 0x97f   :  { %17502 = vmatmul.mubr.msk.bf16.gmra.mrb[240].mxu1 %vm49_vm14, %v8956_v24  ;;  %v9170_v24 = vrot.slane %v23070_v30, 5 }
 0x980   :  { %17505 = vmatprep.mubr.msk.bf16.mxu1 %vm49_vm14, %v8958_v35  ;;  %v9169_v35 = vsel %vm9160_vm4, %v9166_v44, %v9168_v12  ;;  %v9178_v44 = vrot.slane %v23135_v28, 5 }
 0x987   :  { %17506 = vmatmul.mubr.msk.bf16.gmra.mrb[244].mxu1 %vm49_vm14, %v8960_v34  ;;  %v9171_v34 = vsel %vm9160_vm4, %v9168_v12, %v9170_v24  ;;  %v24885_v12 = vrot.slane %v23164_v2, 5 }
 0x988   :  { %17509 = vmatprep.mubr.msk.bf16.mxu1 %vm49_vm14, %v23183_v23  ;;  %v19457_v23 = vld [vmem:[%s24308_s4 + $0x48] sm:$0xff]  }
 0x98f   :  { %17510 = vmatmul.mubr.msk.bf16.gmra.mrb[248].mxu1 %vm49_vm14, %v8961_v58  ;;  %v19458_v58 = vld [vmem:[%s24308_s4 + $0x50] sm:$0xff]  }
 0x990   :  { %17517 = vmatprep.mubr.msk.bf16.mxu1 %vm49_vm14, %v9163_v20 }
 0x997   :  { %17518 = vmatmul.mubr.msk.bf16.vlgmr.msra.gmra.mrb[228].mxu1 %vm49_vm14, %v9165_v11  ;;  %v9179_v11 = vsel %vm9160_vm4, %v9176_v37, %v9178_v44 }
 0x998   :  { %17521 = vmatprep.mubr.msk.bf16.mxu1 %vm49_vm14, %v9167_v7  ;;  %17542 = vmatpush3.bf16.msra.mxu1 %v19456_v45  ;;  %v9172_v45 = vrot.slane %v23083_v16, 5  ;;  %v9181_v7 = vsel %vm9160_vm4, %v9178_v44, %v9180_v33  ;;  %v19460_v33 = vld [vmem:[%s24308_s4 + $0x60] sm:$0xff]   ;;  %v9848_v44 = vrot.slane %v22970_v22, 2 }
 0x999   :  { %17543 = vmatprep.subr.bf16.mxu1 %v19457_v23 }
 0x99a   :  { %v9173_v8 = vsel %vm9160_vm4, %v9170_v24, %v9172_v45  ;;  %v9175_v20 = vsel %vm9160_vm4, %v9172_v45, %v9174_v55  ;;  %v19459_v24 = vld [vmem:[%s24308_s4 + $0x58] sm:$0xff]   ;;  %v9642_v45 = vrot.slane %v23121_v50, 6 }
 0x99c   :  { %17544 = vmatpush3.bf16.msra.mxu1 %v19457_v23  ;;  %v9177_v23 = vsel %vm9160_vm4, %v9174_v55, %v9176_v37  ;;  %v9644_v55 = vrot.slane %v23135_v28, 6 }
 0x99d   :  { %17569 = vmatprep.subr.bf16.mxu1 %v19458_v58 }
 0x99e   :  { %v9647_v37 = vsel %vm653_vm1, %v9644_v55, %v9646_v18  ;;  %v9853_v18 = vrot.slane %v23057_v5, 2 }
 0x99f   :  { %17522 = vmatmul.mubr.msk.bf16.gmra.mrb[232].mxu1 %vm49_vm14, %v9169_v35 }
 0x9a0   :  { %17525 = vmatprep.mubr.msk.bf16.mxu1 %vm49_vm14, %v9171_v34 }
 0x9a7   :  { %17526 = vmatmul.mubr.msk.bf16.gmra.mrb[236].mxu1 %vm49_vm14, %v9173_v8 }
 0x9a8   :  { %17529 = vmatprep.mubr.msk.bf16.mxu1 %vm49_vm14, %v9175_v20  ;;  %v9645_v20 = vsel %vm653_vm1, %v9642_v45, %v9644_v55 }
 0x9af   :  { %17530 = vmatmul.mubr.msk.bf16.gmra.mrb[240].mxu1 %vm49_vm14, %v9177_v23  ;;  %v9849_v23 = vrot.slane %v23011_v52, 2 }
 0x9b0   :  { %17533 = vmatprep.mubr.msk.bf16.mxu1 %vm49_vm14, %v9179_v11  ;;  %v24886_v11 = vrot.slane %v23164_v2, 6 }
 0x9b7   :  { %17534 = vmatmul.mubr.msk.bf16.gmra.mrb[244].mxu1 %vm49_vm14, %v9181_v7  ;;  %v9850_v7 = vsel %vm3210_vm7, %v9848_v44, %v9849_v23 }
 0x9b8   :  { %17537 = vmatprep.mubr.msk.bf16.mxu1 %vm49_vm14, %v23190_v39 }
 0x9bf   :  { %17538 = vmatmul.mubr.msk.bf16.gmra.mrb[248].mxu1 %vm49_vm14, %v24885_v12  ;;  %v9851_v12 = vrot.slane %v23044_v61, 2 }
 0x9c0   :  { %17545 = vmatprep.mubr.msk.bf16.mxu1 %vm49_vm14, %v23000_v9  ;;  %v9627_v9 = vrot.slane %v22965_v3, 6 }
 0x9c7   :  { %17546 = vmatmul.mubr.msk.bf16.vlgmr.msra.gmra.mrb[228].mxu1 %vm49_vm14, %v23036_v60  ;;  %v9628_v60 = vrot.slane %v22970_v22, 6 }
 0x9c8   :  { %17549 = vmatprep.mubr.msk.bf16.mxu1 %vm49_vm14, %v23052_v14  ;;  %17570 = vmatpush3.bf16.msra.mxu1 %v19458_v58  ;;  %v9640_v58 = vrot.slane %v23102_v53, 6 }
 0x9c9   :  { %17571 = vmatprep.subr.bf16.mxu1 %v19459_v24  ;;  %v9629_v14 = vsel %vm653_vm1, %v9627_v9, %v9628_v60  ;;  %v19464_v9 = vld [vmem:[%s24308_s4 + $0x80] sm:$0xff]  }
 0x9ca   :  { %v9643_v8 = vsel %vm653_vm1, %v9640_v58, %v9642_v45 }
 0x9cc   :  { %17572 = vmatpush3.bf16.msra.mxu1 %v19459_v24  ;;  %v9852_v24 = vsel %vm3210_vm7, %v9849_v23, %v9851_v12 }
 0x9cd   :  { %17597 = vmatprep.subr.bf16.mxu1 %v19460_v33 }
 0x9cf   :  { %17550 = vmatmul.mubr.msk.bf16.gmra.mrb[232].mxu1 %vm49_vm14, %v23064_v40  ;;  %v9630_v40 = vrot.slane %v23011_v52, 6 }
 0x9d0   :  { %17553 = vmatprep.mubr.msk.bf16.mxu1 %vm49_vm14, %v23077_v38  ;;  %v9632_v38 = vrot.slane %v23044_v61, 6 }
 0x9d2   :  { %v9633_v3 = vsel %vm653_vm1, %v9630_v40, %v9632_v38 }
 0x9d7   :  { %17554 = vmatmul.mubr.msk.bf16.gmra.mrb[236].mxu1 %vm49_vm14, %v23097_v51  ;;  %v19461_v51 = vld [vmem:[%s24308_s4 + $0x68] sm:$0xff]  }
 0x9d8   :  { %17557 = vmatprep.mubr.msk.bf16.mxu1 %vm49_vm14, %v23109_v56  ;;  %v9631_v56 = vsel %vm653_vm1, %v9628_v60, %v9630_v40  ;;  %v9855_v60 = vrot.slane %v23070_v30, 2 }
 0x9da   :  { %v9856_v40 = vsel %vm3210_vm7, %v9853_v18, %v9855_v60 }
 0x9df   :  { %17558 = vmatmul.mubr.msk.bf16.gmra.mrb[240].mxu1 %vm49_vm14, %v23129_v36  ;;  %v19462_v36 = vld [vmem:[%s24308_s4 + $0x70] sm:$0xff]  }
 0x9e0   :  { %17561 = vmatprep.mubr.msk.bf16.mxu1 %vm49_vm14, %v23143_v42  ;;  %v9634_v42 = vrot.slane %v23057_v5, 6 }
 0x9e7   :  { %17562 = vmatmul.mubr.msk.bf16.gmra.mrb[244].mxu1 %vm49_vm14, %v23157_v48  ;;  %v9636_v48 = vrot.slane %v23070_v30, 6 }
 0x9e8   :  { %17565 = vmatprep.mubr.msk.bf16.mxu1 %vm49_vm14, %v23228_v47  ;;  %v9638_v47 = vrot.slane %v23083_v16, 6 }
 0x9e9   :  { %v9637_v39 = vsel %vm653_vm1, %v9634_v42, %v9636_v48 }
 0x9ea   :  { %v9639_v35 = vsel %vm653_vm1, %v9636_v48, %v9638_v47  ;;  %v9641_v34 = vsel %vm653_vm1, %v9638_v47, %v9640_v58  ;;  %v24887_v47 = vrot.slane %v23164_v2, 2 }
 0x9ef   :  { %17566 = vmatmul.mubr.msk.bf16.gmra.mrb[248].mxu1 %vm49_vm14, %v23209_v59  ;;  %v9635_v59 = vsel %vm653_vm1, %v9632_v38, %v9634_v42  ;;  %v9863_v42 = vrot.slane %v23135_v28, 2 }
 0x9f0   :  { %17573 = vmatprep.mubr.msk.bf16.mxu1 %vm49_vm14, %v9629_v14  ;;  %v9857_v14 = vrot.slane %v23083_v16, 2 }
 0x9f2   :  { %v9858_v38 = vsel %vm3210_vm7, %v9855_v60, %v9857_v14 }
 0x9f7   :  { %17574 = vmatmul.mubr.msk.bf16.vlgmr.msra.gmra.mrb[228].mxu1 %vm49_vm14, %v9631_v56  ;;  %v9861_v56 = vrot.slane %v23121_v50, 2 }
 0x9f8   :  { %17577 = vmatprep.mubr.msk.bf16.mxu1 %vm49_vm14, %v9633_v3  ;;  %17598 = vmatpush3.bf16.msra.mxu1 %v19460_v33  ;;  %v9854_v33 = vsel %vm3210_vm7, %v9851_v12, %v9853_v18 }
 0x9f9   :  { %17599 = vmatprep.subr.bf16.mxu1 %v19461_v51  ;;  %v9864_v48 = vsel %vm3210_vm7, %v9861_v56, %v9863_v42 }
 0x9fc   :  { %17600 = vmatpush3.bf16.msra.mxu1 %v19461_v51  ;;  %v9859_v51 = vrot.slane %v23102_v53, 2 }
 0x9fd   :  { %17625 = vmatprep.subr.bf16.mxu1 %v19462_v36 }
 0x9fe   :  { %v9860_v3 = vsel %vm3210_vm7, %v9857_v14, %v9859_v51 }
 0x9ff   :  { %17578 = vmatmul.mubr.msk.bf16.gmra.mrb[232].mxu1 %vm49_vm14, %v9635_v59  ;;  %v9866_v59 = vsel %vm3210_vm7, %v9863_v42, %v9865_v32  ;;  %v19465_v32 = vld [vmem:[%s24308_s4 + $0x88] sm:$0xff]  }
 0xa00   :  { %17581 = vmatprep.mubr.msk.bf16.mxu1 %vm49_vm14, %v9637_v39  ;;  %v9869_v39 = vrot.slane %v23159_v46, 2 }
 0xa02   :  { %v9870_v58 = vsel %vm3210_vm7, %v24887_v47, %v9869_v39 }
 0xa07   :  { %17582 = vmatmul.mubr.msk.bf16.gmra.mrb[236].mxu1 %vm49_vm14, %v9639_v35 }
 0xa08   :  { %17585 = vmatprep.mubr.msk.bf16.mxu1 %vm49_vm14, %v9641_v34  ;;  %v10330_v34 = vrot.slane %v23121_v50, 3  ;;  %v23536_v50 = vld [vmem:[%s24309_s5] ss:$0 sm:$0xff] }
 0xa0f   :  { %17586 = vmatmul.mubr.msk.bf16.gmra.mrb[240].mxu1 %vm49_vm14, %v9643_v8 }
 0xa10   :  { %17589 = vmatprep.mubr.msk.bf16.mxu1 %vm49_vm14, %v9645_v20 }
 0xa17   :  { %17590 = vmatmul.mubr.msk.bf16.gmra.mrb[244].mxu1 %vm49_vm14, %v9647_v37 }
 0xa18   :  { %17593 = vmatprep.mubr.msk.bf16.mxu1 %vm49_vm14, %v23197_v0  ;;  %v19463_v0 = vld [vmem:[%s24308_s4 + $0x78] sm:$0xff]  }
 0xa1f   :  { %17594 = vmatmul.mubr.msk.bf16.gmra.mrb[248].mxu1 %vm49_vm14, %v24886_v11 }
 0xa20   :  { %17601 = vmatprep.mubr.msk.bf16.mxu1 %vm49_vm14, %v9850_v7 }
 0xa27   :  { %17602 = vmatmul.mubr.msk.bf16.vlgmr.msra.gmra.mrb[228].mxu1 %vm49_vm14, %v9852_v24 }
 0xa28   :  { %17605 = vmatprep.mubr.msk.bf16.mxu1 %vm49_vm14, %v9854_v33  ;;  %17626 = vmatpush3.bf16.msra.mxu1 %v19462_v36  ;;  %v9862_v36 = vsel %vm3210_vm7, %v9859_v51, %v9861_v56 }
 0xa29   :  { %17627 = vmatprep.subr.bf16.mxu1 %v19463_v0 }
 0xa2c   :  { %17628 = vmatpush3.bf16.msra.mxu1 %v19463_v0 }
 0xa2d   :  { %17653 = vmatprep.subr.bf16.mxu1 %v19464_v9 }
 0xa2f   :  { %17606 = vmatmul.mubr.msk.bf16.gmra.mrb[232].mxu1 %vm49_vm14, %v9856_v40 }
 0xa30   :  { %17609 = vmatprep.mubr.msk.bf16.mxu1 %vm49_vm14, %v9858_v38 }
 0xa37   :  { %17610 = vmatmul.mubr.msk.bf16.gmra.mrb[236].mxu1 %vm49_vm14, %v9860_v3 }
 0xa38   :  { %17613 = vmatprep.mubr.msk.bf16.mxu1 %vm49_vm14, %v9862_v36 }
 0xa3f   :  { %17614 = vmatmul.mubr.msk.bf16.gmra.mrb[240].mxu1 %vm49_vm14, %v9864_v48 }
 0xa40   :  { %17617 = vmatprep.mubr.msk.bf16.mxu1 %vm49_vm14, %v9866_v59 }
 0xa47   :  { %17618 = vmatmul.mubr.msk.bf16.gmra.mrb[244].mxu1 %vm49_vm14, %v23204_v17  ;;  %v10322_v17 = vrot.slane %v23057_v5, 3  ;;  %v10328_v5 = vrot.slane %v23102_v53, 3 }
 0xa48   :  { %17621 = vmatprep.mubr.msk.bf16.mxu1 %vm49_vm14, %v9870_v58 }
 0xa4f   :  { %17622 = vmatmul.mubr.msk.bf16.gmra.mrb[248].mxu1 %vm49_vm14, %v9869_v39 }
 0xa50   :  { %17629 = vmatprep.mubr.msk.bf16.mxu1 %vm49_vm14, %v23039_v19  ;;  %v10112_v19 = vshrl.u32 %v23159_v46, 16 }
 0xa57   :  { %17630 = vmatmul.mubr.msk.bf16.vlgmr.msra.gmra.mrb[228].mxu1 %vm49_vm14, %v23055_v25  ;;  %v10115_v25 = vshll.u32 %v23159_v46, 16 }
 0xa58   :  { %17633 = vmatprep.mubr.msk.bf16.mxu1 %vm49_vm14, %v23067_v13  ;;  %17654 = vmatpush3.bf16.msra.mxu1 %v19464_v9  ;;  %v10114_v13 = vrot.slane %v10112_v19, 2 }
 0xa59   :  { %17655 = vmatprep.subr.bf16.mxu1 %v19465_v32  ;;  %v10117_v2 = vrot.slane %v10115_v25, 3 }
 0xa5c   :  { %17656 = vmatpush3.bf16.msra.mxu1 %v19465_v32 }
 0xa5d   :  { %17681 = vmatprep.subr.mxu1 %v24553_v29 }
 0xa5f   :  { %17634 = vmatmul.mubr.msk.bf16.gmra.mrb[232].mxu1 %vm49_vm14, %v23080_v63  ;;  %v10118_v63 = vor.u32 %v10117_v2, %v10114_v13 }
 0xa60   :  { %17637 = vmatprep.mubr.msk.bf16.mxu1 %vm49_vm14, %v23100_v1 }
 0xa61   :  { %v10119_v1 = vsel %vm4263_vm8, %v23222_v27, %v10118_v63  ;;  %vm10839_vm8 = vcmask 519168  }
 0xa67   :  { %17638 = vmatmul.mubr.msk.bf16.gmra.mrb[236].mxu1 %vm49_vm14, %v23112_v31  ;;  %v10317_v31 = vrot.slane %v22970_v22, 3  ;;  %v10324_v22 = vrot.slane %v23070_v30, 3  ;;  %v10331_v30 = vsel %vm4967_vm9, %v10328_v5, %v10330_v34 }
 0xa68   :  { %17641 = vmatprep.mubr.msk.bf16.mxu1 %vm49_vm14, %v23132_v43  ;;  %v10318_v43 = vrot.slane %v23011_v52, 3  ;;  %v10326_v52 = vrot.slane %v23083_v16, 3  ;;  %v10332_v16 = vrot.slane %v23135_v28, 3 }
 0xa69   :  { %v10325_v35 = vsel %vm4967_vm9, %v10322_v17, %v10324_v22 }
 0xa6a   :  { %v10329_v45 = vsel %vm4967_vm9, %v10326_v52, %v10328_v5  ;;  %v10333_v55 = vsel %vm4967_vm9, %v10330_v34, %v10332_v16  ;;  %v10335_v53 = vsel %vm4967_vm9, %v10332_v16, %v10334_v10 }
 0xa6f   :  { %17642 = vmatmul.mubr.msk.bf16.gmra.mrb[240].mxu1 %vm49_vm14, %v23146_v6  ;;  %v10319_v6 = vsel %vm4967_vm9, %v10317_v31, %v10318_v43 }
 0xa70   :  { %17645 = vmatprep.mubr.msk.bf16.mxu1 %vm49_vm14, %v23162_v62  ;;  %v10320_v62 = vrot.slane %v23044_v61, 3  ;;  %v10327_v61 = vsel %vm4967_vm9, %v10324_v22, %v10326_v52 }
 0xa72   :  { %v10323_v27 = vsel %vm4967_vm9, %v10320_v62, %v10322_v17 }
 0xa77   :  { %17646 = vmatmul.mubr.msk.bf16.gmra.mrb[244].mxu1 %vm49_vm14, %v23232_v26  ;;  %v10321_v26 = vsel %vm4967_vm9, %v10318_v43, %v10320_v62 }
 0xa78   :  { %17649 = vmatprep.mubr.msk.bf16.mxu1 %vm49_vm14, %v10119_v1 }
 0xa7f   :  { %17650 = vmatmul.mubr.msk.bf16.gmra.mrb[248].mxu1 %vm49_vm14, %v10118_v63 }
 0xa80   :  { %17657 = vmatprep.mubr.msk.bf16.mxu1 %vm49_vm14, %v10319_v6 }
 0xa87   :  { %17658 = vmatmul.mubr.msk.bf16.vlgmr.msra.gmra.mrb[228].mxu1 %vm49_vm14, %v10321_v26 }
 0xa88   :  { %17661 = vmatprep.mubr.msk.bf16.mxu1 %vm49_vm14, %v10323_v27 }
 0xa8f   :  { %17662 = vmatmul.mubr.msk.bf16.gmra.mrb[232].mxu1 %vm49_vm14, %v10325_v35 }
 0xa90   :  { %17665 = vmatprep.mubr.msk.bf16.mxu1 %vm49_vm14, %v10327_v61 }
 0xa97   :  { %17666 = vmatmul.mubr.msk.bf16.gmra.mrb[236].mxu1 %vm49_vm14, %v10329_v45 }
 0xa98   :  { %17669 = vmatprep.mubr.msk.bf16.mxu1 %vm49_vm14, %v10331_v30 }
 0xa9f   :  { %17670 = vmatmul.mubr.msk.bf16.gmra.mrb[240].mxu1 %vm49_vm14, %v10333_v55 }
 0xaa0   :  { %17673 = vmatprep.mubr.msk.bf16.mxu1 %vm49_vm14, %v10335_v53 }
 0xaa7   :  { %17674 = vmatmul.mubr.msk.bf16.gmra.mrb[244].mxu1 %vm49_vm14, %v23214_v15 }
 0xaa8   :  { %17677 = vmatprep.mubr.msk.bf16.mxu1 %vm49_vm14, %v23219_v49 }
 0xaaf   :  { %17678 = vmatmul.mubr.msk.bf16.gmra.mrb[248].mxu1 %vm49_vm14, %v10338_v54 }
 0xab0   :  { %17683 = vmatprep.mubr.msk.f32.mxu1 %vm19612_vm2, %v24553_v29 }
 0xb5a   :  { %v17659_v28 = vpop.f32.mrb[228].mxu1 }
 0xb5b   :  { %v10546_v15 = vmul.f32 %v17659_v28, %v23536_v50  ;;  %v10422_v49 = vpop.f32.mrb[229].mxu1 }
 0xb5c   :  { %v17660_v46 = vpop.f32.mrb[230].mxu1  ;;  %v10544_v10 = vmul.f32 %v23536_v50, %v10422_v49 }
 0xb5d   :  { %v10575_v54 = vadd.f32 %v23541_v21, %v10546_v15  ;;  %v10425_v8 = vpop.f32.mrb[231].mxu1  ;;  %v10547_v20 = vmul.f32 %v17660_v46, %v23536_v50 }
 0xb5e   :  { %v10545_v37 = vmul.f32 %v23536_v50, %v10425_v8  ;;  %v10573_v11 = vadd.f32 %v23541_v21, %v10544_v10 }
 0xb5f   :  { %v10597_v44 = vmax.f32 %v10575_v54, 0.0  ;;  %v10576_v7 = vadd.f32 %v23541_v21, %v10547_v20 }
 0xb60   :  { %v10574_v23 = vadd.f32 %v23541_v21, %v10545_v37  ;;  %v10595_v40 = vmax.f32 %v10573_v11, 0.0 }
 0xb61   :  { %v10638_v33 = vrot.slane %v10597_v44, 2  ;;  %v10598_v3 = vmax.f32 %v10576_v7, 0.0 }
 0xb62   :  { %v10596_v12 = vmax.f32 %v10574_v23, 0.0  ;;  %v17663_v18 = vpop.f32.mrb[232].mxu1 }
 0xb63   :  { %v10550_v0 = vmul.f32 %v17663_v18, %v23536_v50  ;;  %v10438_v24 = vpop.f32.mrb[233].mxu1  ;;  %v10640_v25 = vrot.slane %v10598_v3, 2 }
 0xb64   :  { %v10637_v9 = vrot.slane %v10596_v12, 2  ;;  %v10548_v60 = vmul.f32 %v23536_v50, %v10438_v24  ;;  %v17664_v14 = vpop.f32.mrb[234].mxu1 }
 0xb65   :  { %v10579_v38 = vadd.f32 %v23541_v21, %v10550_v0  ;;  %v10551_v51 = vmul.f32 %v17664_v14, %v23536_v50  ;;  %v10441_v56 = vpop.f32.mrb[235].mxu1 }
 0xb66   :  { %v10639_v36 = vsel %vm3210_vm7, %v10637_v9, %v10638_v33  ;;  %v10577_v42 = vadd.f32 %v23541_v21, %v10548_v60  ;;  %v10549_v48 = vmul.f32 %v23536_v50, %v10441_v56 }
 0xb67   :  { %v10601_v59 = vmax.f32 %v10579_v38, 0.0  ;;  %v23559_v39 = vadd.f32 %v23541_v21, %v10551_v51  ;;  %v10681_v47 = vmax.f32 %v10595_v40, %v10639_v36 }
 0xb68   :  { %v10599_v58 = vmax.f32 %v10577_v42, 0.0  ;;  %v10578_v32 = vadd.f32 %v23541_v21, %v10549_v48 }
 0xb69   :  { %v10602_v19 = vmax.f32 %v23559_v39, 0.0  ;;  %17682 = vmatpush3.msra.mxu1 %v10681_v47  ;;  %v10645_v1 = vrot.slane %v10601_v59, 2 }
 0xb6a   :  { %v10641_v13 = vrot.slane %v10599_v58, 2  ;;  %v10600_v2 = vmax.f32 %v10578_v32, 0.0  ;;  %v17667_v63 = vpop.f32.mrb[236].mxu1  ;;  %17686 = vmatprep.subr.mxu1 %v24553_v29  ;;  %17684 = vmatmul.mubr.msk.f32.vlgmr.msra.gmra.mrb[252].mxu1 %vm10693_vm6, %v22449_v41 }
 0xb6b   :  { %v10646_v31 = vrot.slane %v10602_v19, 2  ;;  %v10554_v43 = vmul.f32 %v17667_v63, %v23536_v50  ;;  %v10454_v6 = vpop.f32.mrb[237].mxu1  ;;  %17687 = vmatpush3.msra.mxu1 %v10681_v47  ;;  %17688 = vmatprep.mubr.msk.f32.mxu1 %vm19612_vm2, %v24553_v29 }
 0xb6c   :  { %v10642_v62 = vsel %vm3210_vm7, %v10640_v25, %v10641_v13  ;;  %v10643_v17 = vrot.slane %v10600_v2, 2  ;;  %v10552_v26 = vmul.f32 %v23536_v50, %v10454_v6  ;;  %v17668_v27 = vpop.f32.mrb[238].mxu1  ;;  %17691 = vmatprep.subr.mxu1 %v24553_v29 }
 0xb6d   :  { %v10647_v22 = vsel %vm3210_vm7, %v10645_v1, %v10646_v31  ;;  %v10583_v52 = vadd.f32 %v23541_v21, %v10554_v43  ;;  %v10457_v35 = vpop.f32.mrb[239].mxu1  ;;  %v10682_v61 = vmax.f32 %v10597_v44, %v10642_v62 }
 0xb6e   :  { %v23574_v5 = vmax.f32 %v10600_v2, %v10647_v22  ;;  %v10581_v34 = vadd.f32 %v23541_v21, %v10552_v26  ;;  %v10553_v45 = vmul.f32 %v23536_v50, %v10457_v35  ;;  %17689 = vmatmul.mubr.msk.f32.vlgmr.msra.gmra.mrb[254].mxu1 %vm10693_vm6, %v22462_v4  ;;  %v10644_v30 = vsel %vm3210_vm7, %v10641_v13, %v10643_v17 }
 0xb6f   :  { %v10683_v16 = vmax.f32 %v10598_v3, %v10644_v30  ;;  %17693 = vmatprep.mubr.msk.f32.mxu1 %vm19612_vm2, %v24553_v29  ;;  %v10605_v55 = vmax.f32 %v10583_v52, 0.0  ;;  %v10843_v15 = vrot.slane %v10682_v61, 4 }
 0xb70   :  { %v10603_v53 = vmax.f32 %v10581_v34, 0.0  ;;  %v10582_v28 = vadd.f32 %v23541_v21, %v10553_v45 }
 0xb71   :  { %v10844_v49 = vrot.slane %v10683_v16, 4  ;;  %v10651_v37 = vrot.slane %v10605_v55, 2 }
 0xb72   :  { %v10604_v46 = vmax.f32 %v10582_v28, 0.0  ;;  %v17671_v54 = vpop.f32.mrb[240].mxu1  ;;  %v10648_v44 = vrot.slane %v10603_v53, 2 }
 0xb73   :  { %v10557_v10 = vmul.f32 %v17671_v54, %v23536_v50  ;;  %v10469_v8 = vpop.f32.mrb[241].mxu1  ;;  %v10845_v20 = vsel %vm6213_vm13, %v10843_v15, %v10844_v49 }
 0xb74   :  { %v10649_v23 = vrot.slane %v10604_v46, 2  ;;  %v17672_v11 = vpop.f32.mrb[242].mxu1  ;;  %17692 = vmatpush3.msra.mxu1 %v10845_v20  ;;  %v10555_v33 = vmul.f32 %v23536_v50, %v10469_v8 }
 0xb75   :  { %v10586_v7 = vadd.f32 %v23541_v21, %v10557_v10  ;;  %v10558_v12 = vmul.f32 %v17672_v11, %v23536_v50  ;;  %v10472_v18 = vpop.f32.mrb[243].mxu1  ;;  %17694 = vmatmul.mubr.msk.f32.vlgmr.msra.gmra.mrb[76].mxu1 %vm10693_vm6, %v22449_v41  ;;  %17696 = vmatprep.subr.mxu1 %v24553_v29 }
 0xb76   :  { %v10650_v0 = vsel %vm3210_vm7, %v10648_v44, %v10649_v23  ;;  %v10652_v24 = vsel %vm3210_vm7, %v10649_v23, %v10651_v37  ;;  %v10556_v9 = vmul.f32 %v23536_v50, %v10472_v18  ;;  %17697 = vmatpush3.msra.mxu1 %v10845_v20  ;;  %17698 = vmatprep.mubr.msk.f32.mxu1 %vm19612_vm2, %v24553_v29 }
 0xb77   :  { %v10608_v60 = vmax.f32 %v10586_v7, 0.0  ;;  %v23596_v14 = vadd.f32 %v23541_v21, %v10558_v12  ;;  %17701 = vmatprep.subr.mxu1 %v24553_v29  ;;  %v10685_v40 = vmax.f32 %v10602_v19, %v10650_v0  ;;  %v10686_v38 = vmax.f32 %v10603_v53, %v10652_v24 }
 0xb78   :  { %v10585_v51 = vadd.f32 %v23541_v21, %v10556_v9  ;;  %v10584_v42 = vadd.f32 %v23541_v21, %v10555_v33 }
 0xb79   :  { %v10609_v56 = vmax.f32 %v23596_v14, 0.0  ;;  %17699 = vmatmul.mubr.msk.f32.vlgmr.msra.gmra.mrb[78].mxu1 %vm10693_vm6, %v22462_v4  ;;  %v11133_v3 = vrot.slane %v10685_v40, 4  ;;  %v11134_v36 = vrot.slane %v10686_v38, 4  ;;  %v10654_v39 = vrot.slane %v10608_v60, 2 }
 0xb7a   :  { %v10607_v48 = vmax.f32 %v10585_v51, 0.0  ;;  %17702 = vmatpush3.msra.mxu1 %v23574_v5  ;;  %v17675_v59 = vpop.f32.mrb[244].mxu1  ;;  %17703 = vmatprep.mubr.msk.f32.mxu1 %vm19612_vm2, %v24553_v29  ;;  %v10606_v6 = vmax.f32 %v10584_v42, 0.0 }
 0xb7b   :  { %v10656_v47 = vrot.slane %v10609_v56, 2  ;;  %v10561_v58 = vmul.f32 %v17675_v59, %v23536_v50  ;;  %v10485_v32 = vpop.f32.mrb[245].mxu1  ;;  %17706 = vmatprep.subr.mxu1 %v24553_v29  ;;  %v11135_v19 = vsel %vm6213_vm13, %v11133_v3, %v11134_v36  ;;  %v19467_v59 = vld [vmem:[%s24311_s7 + $0x28] sm:$0xff]  }
 0xb7c   :  { %v10653_v25 = vrot.slane %v10607_v48, 2  ;;  %v10559_v13 = vmul.f32 %v23536_v50, %v10485_v32  ;;  %v17676_v2 = vpop.f32.mrb[246].mxu1 }
 0xb7d   :  { %v10657_v63 = vsel %vm3210_vm7, %v10654_v39, %v10656_v47  ;;  %v10590_v1 = vadd.f32 %v23541_v21, %v10561_v58  ;;  %v10562_v31 = vmul.f32 %v17676_v2, %v23536_v50  ;;  %v10488_v43 = vpop.f32.mrb[247].mxu1  ;;  %17704 = vmatmul.mubr.msk.f32.vlgmr.msra.gmra.mrb[156].mxu1 %vm10693_vm6, %v22449_v41  ;;  %v19469_v47 = vld [vmem:[%s24311_s7 + $0x38] sm:$0xff]   ;;  %v23727_v58 = vld [vmem:[%s24311_s7] sm:$0xff]  }
 0xb7e   :  { %v10688_v62 = vmax.f32 %v10607_v48, %v10657_v63  ;;  %v10588_v17 = vadd.f32 %v23541_v21, %v10559_v13  ;;  %v10560_v26 = vmul.f32 %v23536_v50, %v10488_v43  ;;  %17707 = vmatpush3.msra.mxu1 %v23574_v5  ;;  %17708 = vmatprep.mubr.msk.f32.mxu1 %vm19612_vm2, %v24553_v29  ;;  %v19466_v48 = vld [vmem:[%s24311_s7 + $0x20] sm:$0xff]  }
 0xb7f   :  { %v10612_v27 = vmax.f32 %v10590_v1, 0.0  ;;  %v10591_v22 = vadd.f32 %v23541_v21, %v10562_v31  ;;  %17711 = vmatprep.subr.mxu1 %v24553_v29  ;;  %v10655_v52 = vsel %vm3210_vm7, %v10653_v25, %v10654_v39  ;;  %v19468_v39 = vld [vmem:[%s24311_s7 + $0x30] sm:$0xff]  }
 0xb80   :  { %v11282_v35 = vrot.slane %v10688_v62, 4  ;;  %v10589_v61 = vadd.f32 %v23541_v21, %v10560_v26  ;;  %v10687_v34 = vmax.f32 %v10606_v6, %v10655_v52  ;;  %v10610_v45 = vmax.f32 %v10588_v17, 0.0 }
 0xb81   :  { %v10613_v30 = vmax.f32 %v10591_v22, 0.0  ;;  %17709 = vmatmul.mubr.msk.f32.vlgmr.msra.gmra.mrb[158].mxu1 %vm10693_vm6, %v22462_v4  ;;  %v10661_v53 = vrot.slane %v10612_v27, 2 }
 0xb82   :  { %v10611_v5 = vmax.f32 %v10589_v61, 0.0  ;;  %17712 = vmatpush3.msra.mxu1 %v11135_v19  ;;  %v17679_v16 = vpop.f32.mrb[248].mxu1  ;;  %17713 = vmatprep.mubr.msk.f32.mxu1 %vm19612_vm2, %v24553_v29  ;;  %v11281_v55 = vrot.slane %v10687_v34, 4  ;;  %v10658_v20 = vrot.slane %v10610_v45, 2 }
 0xb83   :  { %v10662_v28 = vrot.slane %v10613_v30, 2  ;;  %v10565_v15 = vmul.f32 %v17679_v16, %v23536_v50  ;;  %v10501_v49 = vpop.f32.mrb[249].mxu1  ;;  %17716 = vmatprep.subr.mxu1 %v24553_v29 }
 0xb84   :  { %v10659_v46 = vrot.slane %v10611_v5, 2  ;;  %v10563_v54 = vmul.f32 %v23536_v50, %v10501_v49  ;;  %v17680_v10 = vpop.f32.mrb[250].mxu1  ;;  %v11283_v8 = vsel %vm6213_vm13, %v11281_v55, %v11282_v35 }
 0xb85   :  { %v10663_v37 = vsel %vm3210_vm7, %v10661_v53, %v10662_v28  ;;  %v10594_v44 = vadd.f32 %v23541_v21, %v10565_v15  ;;  %v10504_v23 = vpop.f32.mrb[251].mxu1  ;;  %17714 = vmatmul.mubr.msk.f32.vlgmr.msra.gmra.mrb[0].mxu1 %vm10693_vm6, %v22449_v41 }
 0xb86   :  { %v10690_v11 = vmax.f32 %v10611_v5, %v10663_v37  ;;  %v10592_v7 = vadd.f32 %v23541_v21, %v10563_v54  ;;  %v10564_v12 = vmul.f32 %v23536_v50, %v10504_v23  ;;  %17717 = vmatpush3.msra.mxu1 %v11135_v19  ;;  %17718 = vmatprep.mubr.msk.f32.mxu1 %vm19612_vm2, %v24553_v29 }
 0xb87   :  { %17721 = vmatprep.subr.mxu1 %v24553_v29  ;;  %v10660_v18 = vsel %vm3210_vm7, %v10658_v20, %v10659_v46  ;;  %v10616_v0 = vmax.f32 %v10594_v44, 0.0 }
 0xb88   :  { %v10614_v24 = vmax.f32 %v10592_v7, 0.0  ;;  %v10593_v33 = vadd.f32 %v23541_v21, %v10564_v12  ;;  %v10689_v9 = vmax.f32 %v10609_v56, %v10660_v18  ;;  %v11571_v56 = vrot.slane %v10690_v11, 4 }
 0xb89   :  { %17719 = vmatmul.mubr.msk.f32.vlgmr.msra.gmra.mrb[2].mxu1 %vm10693_vm6, %v22462_v4  ;;  %v10667_v40 = vrot.slane %v10616_v0, 2 }
 0xb8a   :  { %v10664_v60 = vrot.slane %v10614_v24, 2  ;;  %v10615_v50 = vmax.f32 %v10593_v33, 0.0  ;;  %17722 = vmatpush3.msra.mxu1 %v11283_v8  ;;  %17723 = vmatprep.mubr.msk.f32.mxu1 %vm19612_vm2, %v24553_v29 }
 0xb8b   :  { %17726 = vmatprep.subr.mxu1 %v24553_v29 }
 0xb8c   :  { %v10666_v38 = vrot.slane %v10615_v50, 2  ;;  %v10665_v51 = vsel %vm3210_vm7, %v10662_v28, %v10664_v60 }
 0xb8d   :  { %17724 = vmatmul.mubr.msk.f32.vlgmr.msra.gmra.mrb[160].mxu1 %vm10693_vm6, %v22449_v41  ;;  %v10691_v21 = vmax.f32 %v10612_v27, %v10665_v51 }
 0xb8e   :  { %v10668_v14 = vsel %vm3210_vm7, %v10666_v38, %v10667_v40  ;;  %17727 = vmatpush3.msra.mxu1 %v11283_v8  ;;  %17728 = vmatprep.mubr.msk.f32.mxu1 %vm19612_vm2, %v24553_v29  ;;  %vm75_vm7 = vcmask 523264  }
 0xb8f   :  { %17731 = vmatprep.subr.mxu1 %v24553_v29  ;;  %v11572_v3 = vrot.slane %v10691_v21, 4  ;;  %v10692_v36 = vmax.f32 %v10614_v24, %v10668_v14  ;;  %76 = vst.msk [vmem:[#allocation3] sm:$0xff] %vm75_vm7, %v24553_v29  ;;  %77 = vst.msk [vmem:[#allocation3 + $0x8] sm:$0xff] %vm75_vm7, %v24553_v29 }
 0xb90   :  { %78 = vst.msk [vmem:[#allocation3 + $0x10] sm:$0xff] %vm75_vm7, %v24553_v29  ;;  %79 = vst.msk [vmem:[#allocation3 + $0x18] sm:$0xff] %vm75_vm7, %v24553_v29 }
 0xb91   :  { %17729 = vmatmul.mubr.msk.f32.vlgmr.msra.gmra.mrb[162].mxu1 %vm10693_vm6, %v22462_v4  ;;  %v11573_v42 = vsel %vm6213_vm13, %v11571_v56, %v11572_v3  ;;  %80 = vst.msk [vmem:[#allocation3 + $0x20] sm:$0xff] %vm75_vm7, %v24553_v29  ;;  %81 = vst.msk [vmem:[#allocation3 + $0x28] sm:$0xff] %vm75_vm7, %v24553_v29 }
 0xb92   :  { %17732 = vmatpush3.msra.mxu1 %v10689_v9  ;;  %17733 = vmatprep.mubr.msk.f32.mxu1 %vm19612_vm2, %v24553_v29  ;;  %82 = vst.msk [vmem:[#allocation3 + $0x30] sm:$0xff] %vm75_vm7, %v24553_v29  ;;  %83 = vst.msk [vmem:[#allocation3 + $0x38] sm:$0xff] %vm75_vm7, %v24553_v29 }
 0xb93   :  { %17736 = vmatprep.subr.mxu1 %v24553_v29  ;;  %84 = vst.msk [vmem:[#allocation3 + $0x40] sm:$0xff] %vm75_vm7, %v24553_v29 }
 0xb95   :  { %17734 = vmatmul.mubr.msk.f32.vlgmr.msra.gmra.mrb[4].mxu1 %vm10693_vm6, %v22449_v41 }
 0xb96   :  { %17737 = vmatpush3.msra.mxu1 %v10689_v9  ;;  %17738 = vmatprep.mubr.msk.f32.mxu1 %vm19612_vm2, %v24553_v29 }
 0xb97   :  { %17741 = vmatprep.subr.mxu1 %v24553_v29 }
 0xb99   :  { %17739 = vmatmul.mubr.msk.f32.vlgmr.msra.gmra.mrb[6].mxu1 %vm10693_vm6, %v22462_v4 }
 0xb9a   :  { %17742 = vmatpush3.msra.mxu1 %v11573_v42  ;;  %17743 = vmatprep.mubr.msk.f32.mxu1 %vm19612_vm2, %v24553_v29 }
 0xb9b   :  { %17746 = vmatprep.subr.mxu1 %v24553_v29 }
 0xb9d   :  { %17744 = vmatmul.mubr.msk.f32.vlgmr.msra.gmra.mrb[8].mxu1 %vm10693_vm6, %v22449_v41 }
 0xb9e   :  { %17747 = vmatpush3.msra.mxu1 %v11573_v42  ;;  %17748 = vmatprep.mubr.msk.f32.mxu1 %vm19612_vm2, %v24553_v29 }
 0xb9f   :  { %17751 = vmatprep.subr.mxu1 %v24553_v29 }
 0xba1   :  { %17749 = vmatmul.mubr.msk.f32.vlgmr.msra.gmra.mrb[10].mxu1 %vm10693_vm6, %v22462_v4 }
 0xba2   :  { %17752 = vmatpush3.msra.mxu1 %v10692_v36  ;;  %17753 = vmatprep.mubr.msk.f32.mxu1 %vm19612_vm2, %v24553_v29 }
 0xba3   :  { %17756 = vmatprep.subr.mxu1 %v24553_v29 }
 0xba5   :  { %17754 = vmatmul.mubr.msk.f32.vlgmr.msra.gmra.mrb[12].mxu1 %vm10693_vm6, %v22449_v41 }
 0xba6   :  { %17757 = vmatpush3.msra.mxu1 %v10692_v36  ;;  %17758 = vmatprep.mubr.msk.f32.mxu1 %vm19612_vm2, %v24553_v29 }
 0xba7   :  { %17761 = vmatprep.subr.bf16.mxu1 %v19466_v48 }
 0xba9   :  { %17759 = vmatmul.mubr.msk.f32.vlgmr.msra.gmra.mrb[14].mxu1 %vm10693_vm6, %v22462_v4 }
 0xbaa   :  { %17762 = vmatpush3.bf16.msra.mxu1 %v19466_v48 }
 0xbab   :  { %17763 = vmatprep.subr.bf16.mxu1 %v19467_v59 }
 0xbae   :  { %17764 = vmatpush3.bf16.msra.mxu1 %v19467_v59  ;;  %v11863_v59 = vld [vmem:[#allocation3 + $0x20] sm:$0xff] }
 0xbaf   :  { %17765 = vmatprep.subr.bf16.mxu1 %v19468_v39 }
 0xbb2   :  { %17766 = vmatpush3.bf16.msra.mxu1 %v19468_v39 }
 0xbb3   :  { %17767 = vmatprep.subr.bf16.mxu1 %v19469_v47 }
 0xbb6   :  { %17768 = vmatpush3.bf16.msra.mxu1 %v19469_v47 }
 0xbb7   :  { %17777 = vmatprep.subr.bf16.mxu1 %v23727_v58 }
 0xc3d   :  { %v10762_v32 = vpop.f32.mrb[252].mxu1 }
 0xc3e   :  { %v17685_v19 = vpop.f32.mrb[253].mxu1 }
 0xc41   :  { %v10834_v25 = vpop.f32.mrb[254].mxu1 }
 0xc42   :  { %v10838_v13 = vmax.f32 %v10762_v32, %v10834_v25  ;;  %v17690_v2 = vpop.f32.mrb[255].mxu1 }
 0xc44   :  { %10840 = vst.msk [vmem:[#allocation3 + $0x7] sm:$0xf] %vm10839_vm8, %v10838_v13 }
 0xc48   :  { %v10913_v63 = vpop.f32.mrb[76].mxu1 }
 0xc49   :  { %v17695_v1 = vpop.f32.mrb[77].mxu1 }
 0xc4b   :  { %v11859_v52 = vld [vmem:[#allocation3] sm:$0xff] }
 0xc4c   :  { %v10983_v31 = vpop.f32.mrb[78].mxu1 }
 0xc4d   :  { %v10987_v43 = vmax.f32 %v10913_v63, %v10983_v31  ;;  %v17700_v6 = vpop.f32.mrb[79].mxu1 }
 0xc4f   :  { %10988 = vst.msk [vmem:[#allocation3 + $0xd] sm:$0xf] %vm10839_vm8, %v10987_v43 }
 0xc50   :  { %v11055_v62 = vpop.f32.mrb[156].mxu1 }
 0xc51   :  { %v17705_v17 = vpop.f32.mrb[157].mxu1 }
 0xc54   :  { %v11125_v26 = vpop.f32.mrb[158].mxu1 }
 0xc55   :  { %v11129_v27 = vmax.f32 %v11055_v62, %v11125_v26  ;;  %v17710_v22 = vpop.f32.mrb[159].mxu1 }
 0xc56   :  { %v11860_v35 = vld [vmem:[#allocation3 + $0x8] sm:$0xff] }
 0xc57   :  { %11130 = vst.msk [vmem:[#allocation3 + $0x13] sm:$0xf] %vm10839_vm8, %v11129_v27  ;;  %v23733_v61 = vpack.c.bf16 %v11860_v35, %v11859_v52 }
 0xc58   :  { %v11203_v34 = vpop.f32.mrb[0].mxu1 }
 0xc59   :  { %v17715_v45 = vpop.f32.mrb[1].mxu1  ;;  %v11946_v30 = vshrl.u32 %v23733_v61, 16  ;;  %v11948_v5 = vshll.u32 %v23733_v61, 16  ;;  %v12290_v24 = vrot.slane %v23733_v61, 3  ;;  %v12534_v33 = vrot.slane %v23733_v61, 4 }
 0xc5a   :  { %v12650_v38 = vrot.slane %v23733_v61, 6  ;;  %v12896_v14 = vrot.slane %v23733_v61, 7 }
 0xc5b   :  { %v12405_v16 = vrot.slane %v11946_v30, 3  ;;  %v12406_v55 = vrot.slane %v11948_v5, 4  ;;  %v12767_v53 = vrot.slane %v11946_v30, 6  ;;  %v12768_v15 = vrot.slane %v11948_v5, 7 }
 0xc5c   :  { %v11273_v28 = vpop.f32.mrb[2].mxu1  ;;  %v11950_v18 = vrot.slane %v11948_v5, 1 }
 0xc5d   :  { %v11277_v49 = vmax.f32 %v11203_v34, %v11273_v28  ;;  %v17720_v46 = vpop.f32.mrb[3].mxu1  ;;  %v12407_v54 = vor.u32 %v12406_v55, %v12405_v16  ;;  %v12769_v10 = vor.u32 %v12768_v15, %v12767_v53 }
 0xc5e   :  { %v11861_v11 = vld [vmem:[#allocation3 + $0x10] sm:$0xff]  ;;  %v11951_v3 = vor.u32 %v11950_v18, %v11946_v30  ;;  %v19471_v46 = vld [vmem:[%s24311_s7 + $0x8] sm:$0xff]  }
 0xc5f   :  { %11278 = vst.msk [vmem:[#allocation3 + $0x19] sm:$0xf] %vm10839_vm8, %v11277_v49 }
 0xc60   :  { %v11351_v8 = vpop.f32.mrb[160].mxu1 }
 0xc61   :  { %v17725_v20 = vpop.f32.mrb[161].mxu1 }
 0xc64   :  { %v11421_v37 = vpop.f32.mrb[162].mxu1 }
 0xc65   :  { %v11425_v44 = vmax.f32 %v11351_v8, %v11421_v37  ;;  %v17730_v23 = vpop.f32.mrb[163].mxu1 }
 0xc66   :  { %v11862_v7 = vld [vmem:[#allocation3 + $0x18] sm:$0xff] }
 0xc67   :  { %v23738_v12 = vpack.c.bf16 %v11862_v7, %v11861_v11  ;;  %11426 = vst.msk [vmem:[#allocation3 + $0x2b] sm:$0xf] %vm10839_vm8, %v11425_v44 }
 0xc68   :  { %v11493_v0 = vpop.f32.mrb[4].mxu1 }
 0xc69   :  { %v17735_v9 = vpop.f32.mrb[5].mxu1  ;;  %v11953_v60 = vshll.u32 %v23738_v12, 16  ;;  %v11957_v50 = vshrl.u32 %v23738_v12, 16  ;;  %v12291_v40 = vrot.slane %v23738_v12, 3  ;;  %v12535_v51 = vrot.slane %v23738_v12, 4 }
 0xc6a   :  { %v12651_v21 = vrot.slane %v23738_v12, 6  ;;  %v12897_v56 = vrot.slane %v23738_v12, 7 }
 0xc6b   :  { %v11955_v36 = vrot.slane %v11953_v60, 1  ;;  %v23752_v42 = vsel %vm4967_vm9, %v12290_v24, %v12291_v40  ;;  %v12408_v48 = vrot.slane %v11957_v50, 3  ;;  %v12409_v47 = vrot.slane %v11953_v60, 4 }
 0xc6c   :  { %v11563_v39 = vpop.f32.mrb[6].mxu1  ;;  %v23755_v32 = vsel %vm6213_vm13, %v12534_v33, %v12535_v51  ;;  %v23758_v19 = vsel %vm653_vm1, %v12650_v38, %v12651_v21  ;;  %v12770_v25 = vrot.slane %v11957_v50, 6  ;;  %v12771_v1 = vrot.slane %v11953_v60, 7  ;;  %v19472_v33 = vld [vmem:[%s24311_s7 + $0x10] sm:$0xff]  }
 0xc6d   :  { %v11567_v13 = vmax.f32 %v11493_v0, %v11563_v39  ;;  %v17740_v2 = vpop.f32.mrb[7].mxu1  ;;  %v11956_v63 = vsel %vm211_vm5, %v11951_v3, %v11955_v36  ;;  %v12410_v43 = vor.u32 %v12409_v47, %v12408_v48  ;;  %v23763_v6 = vsel %vm652_vm0, %v12896_v14, %v12897_v56 }
 0xc6e   :  { %v11864_v31 = vld [vmem:[#allocation3 + $0x28] sm:$0xff]  ;;  %17769 = vmatprep.mubr.msk.bf16.mxu1 %vm75_vm7, %v11956_v63  ;;  %v12772_v17 = vor.u32 %v12771_v1, %v12770_v25  ;;  %v11959_v55 = vor.u32 %v11957_v50, %v11955_v36 }
 0xc6f   :  { %v23765_v62 = vpack.c.bf16 %v11864_v31, %v11863_v59  ;;  %11568 = vst.msk [vmem:[#allocation3 + $0x31] sm:$0xf] %vm10839_vm8, %v11567_v13  ;;  %v23769_v27 = vsel %vm12404_vm10, %v12407_v54, %v12410_v43 }
 0xc70   :  { %v11641_v26 = vpop.f32.mrb[8].mxu1  ;;  %v23777_v5 = vsel %vm12766_vm11, %v12769_v10, %v12772_v17 }
 0xc71   :  { %v17745_v22 = vpop.f32.mrb[9].mxu1  ;;  %v11961_v52 = vshll.u32 %v23765_v62, 16  ;;  %v11965_v35 = vshrl.u32 %v23765_v62, 16  ;;  %v12293_v34 = vrot.slane %v23765_v62, 3  ;;  %v12537_v45 = vrot.slane %v23765_v62, 4 }
 0xc72   :  { %v12653_v30 = vrot.slane %v23765_v62, 6  ;;  %v12899_v16 = vrot.slane %v23765_v62, 7 }
 0xc73   :  { %v11963_v53 = vrot.slane %v11961_v52, 1  ;;  %v12412_v28 = vrot.slane %v11965_v35, 3  ;;  %v12774_v15 = vrot.slane %v11965_v35, 6  ;;  %v23786_v54 = vsel %vm4967_vm9, %v12291_v40, %v12293_v34 }
 0xc74   :  { %v11711_v49 = vpop.f32.mrb[10].mxu1  ;;  %v12413_v8 = vrot.slane %v11961_v52, 4  ;;  %v23789_v10 = vsel %vm6213_vm13, %v12535_v51, %v12537_v45  ;;  %v23792_v20 = vsel %vm653_vm1, %v12651_v21, %v12653_v30  ;;  %v12775_v11 = vrot.slane %v11961_v52, 7  ;;  %v19474_v21 = vld [vmem:[%s24311_s7 + $0x40] sm:$0xff]  }
 0xc75   :  { %v11715_v37 = vmax.f32 %v11641_v26, %v11711_v49  ;;  %v17750_v44 = vpop.f32.mrb[11].mxu1  ;;  %v11964_v23 = vsel %vm211_vm5, %v11959_v55, %v11963_v53  ;;  %v23801_v18 = vsel %vm652_vm0, %v12897_v56, %v12899_v16  ;;  %v11967_v25 = vor.u32 %v11965_v35, %v11963_v53  ;;  %v19475_v53 = vld [vmem:[%s24311_s7 + $0x48] sm:$0xff]  }
 0xc76   :  { %17770 = vmatmul.mubr.msk.bf16.vlgmr.msra.gmra.mrb[16].mxu1 %vm75_vm7, %v11964_v23  ;;  %v23796_v7 = vor.u32 %v12413_v8, %v12412_v28  ;;  %v12776_v0 = vor.u32 %v12775_v11, %v12774_v15  ;;  %v12177_v28 = vrot.slane %v23738_v12, 1  ;;  %v19477_v15 = vld [vmem:[%s24311_s7 + $0x58] sm:$0xff]   ;;  %v12176_v49 = vrot.slane %v23733_v61, 1  ;;  %v19480_v11 = vld [vmem:[%s24311_s7 + $0x70] sm:$0xff]  }
 0xc77   :  { %11716 = vst.msk [vmem:[#allocation3 + $0x37] sm:$0xf] %vm10839_vm8, %v11715_v37  ;;  %17778 = vmatpush3.bf16.msra.mxu1 %v23727_v58  ;;  %v19473_v58 = vld [vmem:[%s24311_s7 + $0x18] sm:$0xff]   ;;  %v12179_v8 = vrot.slane %v23765_v62, 1 }
 0xc78   :  { %v11783_v24 = vpop.f32.mrb[12].mxu1  ;;  %17779 = vmatprep.subr.bf16.mxu1 %v19471_v46  ;;  %v23810_v9 = vsel %vm12404_vm10, %v12410_v43, %v23796_v7  ;;  %v23813_v50 = vsel %vm12766_vm11, %v12772_v17, %v12776_v0 }
 0xc79   :  { %v17755_v60 = vpop.f32.mrb[13].mxu1  ;;  %v12180_v44 = vsel %vm1461_vm3, %v12177_v28, %v12179_v8 }
 0xc7a   :  { %v19483_v60 = vld [vmem:[%s24311_s7 + $0x88] sm:$0xff]  }
 0xc7b   :  { %17780 = vmatpush3.bf16.msra.mxu1 %v19471_v46  ;;  %v12178_v46 = vsel %vm1461_vm3, %v12176_v49, %v12177_v28 }
 0xc7c   :  { %v11853_v40 = vpop.f32.mrb[14].mxu1  ;;  %17781 = vmatprep.subr.bf16.mxu1 %v19472_v33 }
 0xc7d   :  { %v11857_v38 = vmax.f32 %v11783_v24, %v11853_v40  ;;  %v17760_v51 = vpop.f32.mrb[15].mxu1  ;;  %v19482_v24 = vld [vmem:[%s24311_s7 + $0x80] sm:$0xff]   ;;  %v19484_v40 = vld [vmem:[%s24311_s7 + $0x90] sm:$0xff]  }
 0xc7e   :  { %v11865_v14 = vld [vmem:[#allocation3 + $0x30] sm:$0xff]  ;;  %v19487_v51 = vld [vmem:[%s24311_s7 + $0xa8] sm:$0xff]  }
 0xc7f   :  { %11858 = vst.msk [vmem:[#allocation3 + $0x3d] sm:$0xf] %vm10839_vm8, %v11857_v38  ;;  %17782 = vmatpush3.bf16.msra.mxu1 %v19472_v33 }
 0xc80   :  { %17783 = vmatprep.subr.bf16.mxu1 %v19473_v58 }
 0xc83   :  { %17784 = vmatpush3.bf16.msra.mxu1 %v19473_v58  ;;  %v19485_v58 = vld [vmem:[%s24311_s7 + $0x98] sm:$0xff]  }
 0xc84   :  { %17793 = vmatprep.subr.bf16.mxu1 %v19474_v21 }
 0xc86   :  { %v11866_v56 = vld [vmem:[#allocation3 + $0x38] sm:$0xff]  ;;  %v11867_v36 = vld [vmem:[#allocation3 + $0x40] sm:$0xff] }
 0xc87   :  { %v23822_v3 = vpack.c.bf16 %v11866_v56, %v11865_v14  ;;  %v23833_v2 = vpack.c.bf16 %v11867_v36, %v11867_v36  ;;  %v19488_v14 = vld [vmem:[%s24311_s7 + $0xb0] sm:$0xff]  }
 0xc89   :  { %v23825_v48 = vshll.u32 %v23822_v3, 16  ;;  %v23828_v59 = vshrl.u32 %v23822_v3, 16  ;;  %v12539_v39 = vrot.slane %v23822_v3, 4  ;;  %v12655_v47 = vrot.slane %v23822_v3, 6 }
 0xc8a   :  { %v12901_v22 = vrot.slane %v23822_v3, 7  ;;  %v12903_v52 = vrot.slane %v23833_v2, 7  ;;  %v12181_v37 = vrot.slane %v23822_v3, 1  ;;  %v12295_v33 = vrot.slane %v23822_v3, 3 }
 0xc8b   :  { %v11971_v13 = vrot.slane %v23825_v48, 1  ;;  %v23838_v63 = vsel %vm6213_vm13, %v12537_v45, %v12539_v39  ;;  %v23845_v43 = vsel %vm653_vm1, %v12653_v30, %v12655_v47  ;;  %v12778_v17 = vrot.slane %v23828_v59, 6 }
 0xc8c   :  { %v12779_v26 = vrot.slane %v23825_v48, 7  ;;  %v23860_v45 = vsel %vm652_vm0, %v12899_v16, %v12901_v22  ;;  %v23863_v30 = vsel %vm652_vm0, %v12901_v22, %v12903_v52  ;;  %v19476_v16 = vld [vmem:[%s24311_s7 + $0x50] sm:$0xff]   ;;  %v12182_v23 = vsel %vm1461_vm3, %v12179_v8, %v12181_v37  ;;  %v14955_v52 = vld [vmem:[%s24313_s9] ss:$0 sm:$0xff] }
 0xc8d   :  { %v11972_v1 = vsel %vm211_vm5, %v11967_v25, %v11971_v13  ;;  %v11975_v31 = vor.u32 %v23828_v59, %v11971_v13  ;;  %v19493_v25 = vld [vmem:[%s24311_s7 + $0xd8] sm:$0xff]   ;;  %v19494_v13 = vld [vmem:[%s24311_s7 + $0xe0] sm:$0xff]   ;;  %vm13073_vm3 = vcmask 31744  }
 0xc8e   :  { %17773 = vmatprep.mubr.msk.bf16.mxu1 %vm75_vm7, %v11972_v1  ;;  %v23855_v35 = vor.u32 %v12779_v26, %v12778_v17  ;;  %v19497_v1 = vld [vmem:[%s24311_s7 + $0xf8] sm:$0xff]  }
 0xc8f   :  { %17774 = vmatmul.mubr.msk.bf16.gmra.mrb[20].mxu1 %vm75_vm7, %v11975_v31  ;;  %v19498_v31 = vld [vmem:[%s24311_s7 + $0x100] sm:$0xff]   ;;  %v19501_v26 = vld [vmem:[%s24311_s7 + $0x118] sm:$0xff]  }
 0xc90   :  { %17785 = vmatprep.mubr.msk.bf16.mxu1 %vm75_vm7, %v23733_v61  ;;  %v23867_v55 = vsel %vm12766_vm11, %v12776_v0, %v23855_v35  ;;  %v19479_v61 = vld [vmem:[%s24311_s7 + $0x68] sm:$0xff]   ;;  %v19481_v0 = vld [vmem:[%s24311_s7 + $0x78] sm:$0xff]  }
 0xc97   :  { %17786 = vmatmul.mubr.msk.bf16.vlgmr.msra.gmra.mrb[16].mxu1 %vm75_vm7, %v23738_v12  ;;  %v19478_v12 = vld [vmem:[%s24311_s7 + $0x60] sm:$0xff]  }
 0xc98   :  { %17794 = vmatpush3.bf16.msra.mxu1 %v19474_v21  ;;  %17789 = vmatprep.mubr.msk.bf16.mxu1 %vm75_vm7, %v23765_v62  ;;  %v12416_v62 = vrot.slane %v23828_v59, 3  ;;  %v12541_v59 = vrot.slane %v23833_v2, 4 }
 0xc99   :  { %17795 = vmatprep.subr.bf16.mxu1 %v19475_v53 }
 0xc9c   :  { %17796 = vmatpush3.bf16.msra.mxu1 %v19475_v53 }
 0xc9d   :  { %17797 = vmatprep.subr.bf16.mxu1 %v19476_v16 }
 0xc9f   :  { %17790 = vmatmul.mubr.msk.bf16.gmra.mrb[20].mxu1 %vm75_vm7, %v23822_v3  ;;  %v19499_v3 = vld [vmem:[%s24311_s7 + $0x108] sm:$0xff]  }
 0xca0   :  { %17798 = vmatpush3.bf16.msra.mxu1 %v19476_v16  ;;  %17801 = vmatprep.mubr.msk.bf16.mxu1 %vm75_vm7, %v12178_v46 }
 0xca1   :  { %17799 = vmatprep.subr.bf16.mxu1 %v19477_v15 }
 0xca4   :  { %17800 = vmatpush3.bf16.msra.mxu1 %v19477_v15 }
 0xca5   :  { %17809 = vmatprep.subr.bf16.mxu1 %v19478_v12 }
 0xca7   :  { %17802 = vmatmul.mubr.msk.bf16.vlgmr.msra.gmra.mrb[16].mxu1 %vm75_vm7, %v12180_v44 }
 0xca8   :  { %17810 = vmatpush3.bf16.msra.mxu1 %v19478_v12  ;;  %17805 = vmatprep.mubr.msk.bf16.mxu1 %vm75_vm7, %v12182_v23 }
 0xca9   :  { %17811 = vmatprep.subr.bf16.mxu1 %v19479_v61 }
 0xcac   :  { %17812 = vmatpush3.bf16.msra.mxu1 %v19479_v61 }
 0xcad   :  { %17813 = vmatprep.subr.bf16.mxu1 %v19480_v11 }
 0xcaf   :  { %17806 = vmatmul.mubr.msk.bf16.gmra.mrb[20].mxu1 %vm75_vm7, %v12181_v37 }
 0xcb0   :  { %17814 = vmatpush3.bf16.msra.mxu1 %v19480_v11  ;;  %17817 = vmatprep.mubr.msk.bf16.mxu1 %vm75_vm7, %v23752_v42  ;;  %v12296_v42 = vsel %vm4967_vm9, %v12293_v34, %v12295_v33  ;;  %v12417_v34 = vrot.slane %v23825_v48, 4  ;;  %v19491_v48 = vld [vmem:[%s24311_s7 + $0xc8] sm:$0xff]  }
 0xcb1   :  { %17815 = vmatprep.subr.bf16.mxu1 %v19481_v0 }
 0xcb2   :  { %v12418_v38 = vor.u32 %v12417_v34, %v12416_v62 }
 0xcb4   :  { %17816 = vmatpush3.bf16.msra.mxu1 %v19481_v0  ;;  %v12419_v21 = vsel %vm12404_vm10, %v23796_v7, %v12418_v38  ;;  %v19490_v7 = vld [vmem:[%s24311_s7 + $0xc0] sm:$0xff]  }
 0xcb5   :  { %17825 = vmatprep.subr.bf16.mxu1 %v19482_v24 }
 0xcb7   :  { %17818 = vmatmul.mubr.msk.bf16.vlgmr.msra.gmra.mrb[16].mxu1 %vm75_vm7, %v23786_v54  ;;  %v19486_v54 = vld [vmem:[%s24311_s7 + $0xa0] sm:$0xff]  }
 0xcb8   :  { %17826 = vmatpush3.bf16.msra.mxu1 %v19482_v24  ;;  %17821 = vmatprep.mubr.msk.bf16.mxu1 %vm75_vm7, %v12296_v42 }
 0xcb9   :  { %17827 = vmatprep.subr.bf16.mxu1 %v19483_v60 }
 0xcbc   :  { %17828 = vmatpush3.bf16.msra.mxu1 %v19483_v60 }
 0xcbd   :  { %17829 = vmatprep.subr.bf16.mxu1 %v19484_v40 }
 0xcbf   :  { %17822 = vmatmul.mubr.msk.bf16.gmra.mrb[20].mxu1 %vm75_vm7, %v12295_v33 }
 0xcc0   :  { %17830 = vmatpush3.bf16.msra.mxu1 %v19484_v40  ;;  %17833 = vmatprep.mubr.msk.bf16.mxu1 %vm75_vm7, %v23769_v27  ;;  %v12421_v27 = vshll.u32 %v23833_v2, 16 }
 0xcc1   :  { %17831 = vmatprep.subr.bf16.mxu1 %v19485_v58 }
 0xcc2   :  { %v12423_v56 = vrot.slane %v12421_v27, 4  ;;  %v12785_v17 = vrot.slane %v12421_v27, 7 }
 0xcc4   :  { %17832 = vmatpush3.bf16.msra.mxu1 %v19485_v58  ;;  %v12424_v36 = vsel %vm12404_vm10, %v12418_v38, %v12423_v56 }
 0xcc5   :  { %17841 = vmatprep.subr.bf16.mxu1 %v19486_v54 }
 0xcc7   :  { %17834 = vmatmul.mubr.msk.bf16.vlgmr.msra.gmra.mrb[16].mxu1 %vm75_vm7, %v23810_v9  ;;  %v19489_v9 = vld [vmem:[%s24311_s7 + $0xb8] sm:$0xff]  }
 0xcc8   :  { %17842 = vmatpush3.bf16.msra.mxu1 %v19486_v54  ;;  %17837 = vmatprep.mubr.msk.bf16.mxu1 %vm75_vm7, %v12419_v21 }
 0xcc9   :  { %17843 = vmatprep.subr.bf16.mxu1 %v19487_v51 }
 0xccc   :  { %17844 = vmatpush3.bf16.msra.mxu1 %v19487_v51 }
 0xccd   :  { %17845 = vmatprep.subr.bf16.mxu1 %v19488_v14 }
 0xccf   :  { %17838 = vmatmul.mubr.msk.bf16.gmra.mrb[20].mxu1 %vm75_vm7, %v12424_v36 }
 0xcd0   :  { %17846 = vmatpush3.bf16.msra.mxu1 %v19488_v14  ;;  %17849 = vmatprep.mubr.msk.bf16.mxu1 %vm75_vm7, %v23755_v32  ;;  %v19492_v32 = vld [vmem:[%s24311_s7 + $0xd0] sm:$0xff]  }
 0xcd1   :  { %17847 = vmatprep.subr.bf16.mxu1 %v19489_v9 }
 0xcd4   :  { %17848 = vmatpush3.bf16.msra.mxu1 %v19489_v9 }
 0xcd5   :  { %17857 = vmatprep.subr.bf16.mxu1 %v19490_v7 }
 0xcd7   :  { %17850 = vmatmul.mubr.msk.bf16.vlgmr.msra.gmra.mrb[16].mxu1 %vm75_vm7, %v23789_v10  ;;  %v12542_v10 = vsel %vm6213_vm13, %v12539_v39, %v12541_v59  ;;  %v12657_v39 = vrot.slane %v23833_v2, 6 }
 0xcd8   :  { %17858 = vmatpush3.bf16.msra.mxu1 %v19490_v7  ;;  %17853 = vmatprep.mubr.msk.bf16.mxu1 %vm75_vm7, %v23838_v63  ;;  %v19495_v63 = vld [vmem:[%s24311_s7 + $0xe8] sm:$0xff]  }
 0xcd9   :  { %17859 = vmatprep.subr.bf16.mxu1 %v19491_v48 }
 0xcdc   :  { %17860 = vmatpush3.bf16.msra.mxu1 %v19491_v48 }
 0xcdd   :  { %17861 = vmatprep.subr.bf16.mxu1 %v19492_v32 }
 0xcdf   :  { %17854 = vmatmul.mubr.msk.bf16.gmra.mrb[20].mxu1 %vm75_vm7, %v12542_v10 }
 0xce0   :  { %17862 = vmatpush3.bf16.msra.mxu1 %v19492_v32  ;;  %17865 = vmatprep.mubr.msk.bf16.mxu1 %vm75_vm7, %v23758_v19  ;;  %v19496_v19 = vld [vmem:[%s24311_s7 + $0xf0] sm:$0xff]  }
 0xce1   :  { %17863 = vmatprep.subr.bf16.mxu1 %v19493_v25 }
 0xce4   :  { %17864 = vmatpush3.bf16.msra.mxu1 %v19493_v25 }
 0xce5   :  { %17873 = vmatprep.subr.bf16.mxu1 %v19494_v13 }
 0xce7   :  { %17866 = vmatmul.mubr.msk.bf16.vlgmr.msra.gmra.mrb[16].mxu1 %vm75_vm7, %v23792_v20  ;;  %v12658_v20 = vsel %vm653_vm1, %v12655_v47, %v12657_v39  ;;  %v19502_v39 = vld [vmem:[%s24314_s10] ss:$16 sps:$4 sm:$0xff]  }
 0xce8   :  { %17869 = vmatprep.mubr.msk.bf16.mxu1 %vm75_vm7, %v23845_v43  ;;  %17874 = vmatpush3.bf16.msra.mxu1 %v19494_v13  ;;  %v12782_v43 = vshrl.u32 %v23833_v2, 16 }
 0xce9   :  { %17875 = vmatprep.subr.bf16.mxu1 %v19495_v63 }
 0xcea   :  { %v12784_v47 = vrot.slane %v12782_v43, 6  ;;  %v19511_v43 = vld [vmem:[%s24314_s10 + $0x60] ss:$16 sps:$4 sm:$0xff]  }
 0xcec   :  { %17876 = vmatpush3.bf16.msra.mxu1 %v19495_v63  ;;  %v12786_v2 = vor.u32 %v12785_v17, %v12784_v47  ;;  %v19516_v47 = vld [vmem:[%s24314_s10 + $0x84] ss:$16 sps:$4 sm:$0xff]  }
 0xced   :  { %17877 = vmatprep.subr.bf16.mxu1 %v19496_v19  ;;  %v19519_v17 = vld [vmem:[%s24314_s10 + $0xa4] ss:$16 sps:$4 sm:$0xff]  }
 0xcee   :  { %v12787_v22 = vsel %vm12766_vm11, %v23855_v35, %v12786_v2  ;;  %v19614_v2 = vmov 0  }
 0xcef   :  { %17870 = vmatmul.mubr.msk.bf16.gmra.mrb[20].mxu1 %vm75_vm7, %v12658_v20  ;;  %v19508_v20 = vld [vmem:[%s24314_s10 + $0x40] ss:$16 sps:$4 sm:$0xff]  }
 0xcf0   :  { %17878 = vmatpush3.bf16.msra.mxu1 %v19496_v19  ;;  %17881 = vmatprep.mubr.msk.bf16.mxu1 %vm75_vm7, %v23777_v5  ;;  %v19500_v5 = vld [vmem:[%s24311_s7 + $0x110] sm:$0xff]  }
 0xcf1   :  { %17879 = vmatprep.subr.bf16.mxu1 %v19497_v1 }
 0xcf4   :  { %17880 = vmatpush3.bf16.msra.mxu1 %v19497_v1  ;;  %v19504_v1 = vld [vmem:[%s24314_s10 + $0x4] ss:$16 sps:$4 sm:$0xff]  }
 0xcf5   :  { %17889 = vmatprep.subr.bf16.mxu1 %v19498_v31 }
 0xcf7   :  { %17882 = vmatmul.mubr.msk.bf16.vlgmr.msra.gmra.mrb[16].mxu1 %vm75_vm7, %v23813_v50 }
 0xcf8   :  { %17885 = vmatprep.mubr.msk.bf16.mxu1 %vm75_vm7, %v23867_v55  ;;  %17890 = vmatpush3.bf16.msra.mxu1 %v19498_v31  ;;  %v19513_v31 = vld [vmem:[%s24314_s10 + $0x64] ss:$16 sps:$4 sm:$0xff]  }
 0xcf9   :  { %17891 = vmatprep.subr.bf16.mxu1 %v19499_v3 }
 0xcfc   :  { %17892 = vmatpush3.bf16.msra.mxu1 %v19499_v3  ;;  %v19514_v3 = vld [vmem:[%s24314_s10 + $0x80] ss:$16 sps:$4 sm:$0xff]  }
 0xcfd   :  { %17893 = vmatprep.subr.bf16.mxu1 %v19500_v5 }
 0xcff   :  { %17886 = vmatmul.mubr.msk.bf16.gmra.mrb[20].mxu1 %vm75_vm7, %v12787_v22  ;;  %v19520_v22 = vld [vmem:[%s24314_s10 + $0xc0] ss:$16 sps:$4 sm:$0xff]  }
 0xd00   :  { %17894 = vmatpush3.bf16.msra.mxu1 %v19500_v5  ;;  %17897 = vmatprep.mubr.msk.bf16.mxu1 %vm75_vm7, %v23763_v6  ;;  %v14954_v6 = vld [vmem:[%s24312_s8] ss:$0 sm:$0xff] }
 0xd01   :  { %17895 = vmatprep.subr.bf16.mxu1 %v19501_v26  ;;  %v19517_v5 = vld [vmem:[%s24314_s10 + $0xa0] ss:$16 sps:$4 sm:$0xff]  }
 0xd04   :  { %17896 = vmatpush3.bf16.msra.mxu1 %v19501_v26  ;;  %v19522_v26 = vld [vmem:[%s24314_s10 + $0xc4] ss:$16 sps:$4 sm:$0xff]  }
 0xd05   :  { %17905 = vmatprep.subr.mxu1 %v24553_v29 }
 0xd07   :  { %17898 = vmatmul.mubr.msk.bf16.vlgmr.msra.gmra.mrb[16].mxu1 %vm75_vm7, %v23801_v18 }
 0xd08   :  { %17901 = vmatprep.mubr.msk.bf16.mxu1 %vm75_vm7, %v23860_v45 }
 0xd0f   :  { %17902 = vmatmul.mubr.msk.bf16.gmra.mrb[20].mxu1 %vm75_vm7, %v23863_v30 }
 0xd10   :  { %17907 = vmatprep.mubr.msk.f32.mxu1 %vm19612_vm2, %v24553_v29 }
 0xdda   :  { %v17899_v50 = vpop.f32.mrb[16].mxu1 }
 0xddb   :  { %v13021_v35 = vmul.f32 %v17899_v50, %v14954_v6  ;;  %v12975_v18 = vpop.f32.mrb[17].mxu1  ;;  %v19523_v50 = vld [vmem:[%s24314_s10 + $0xe0] ss:$16 sps:$4 sm:$0xff]  }
 0xddc   :  { %v13019_v55 = vmul.f32 %v14954_v6, %v12975_v18  ;;  %v17900_v53 = vpop.f32.mrb[18].mxu1 }
 0xddd   :  { %v13035_v45 = vadd.f32 %v14955_v52, %v13021_v35  ;;  %v12978_v16 = vpop.f32.mrb[19].mxu1 }
 0xdde   :  { %v13033_v28 = vadd.f32 %v14955_v52, %v13019_v55  ;;  %v13020_v30 = vmul.f32 %v14954_v6, %v12978_v16 }
 0xddf   :  { %v13042_v15 = vmax.f32 %v13035_v45, 0.0 }
 0xde0   :  { %v13040_v49 = vmax.f32 %v13033_v28, 0.0  ;;  %v13034_v46 = vadd.f32 %v14955_v52, %v13020_v30 }
 0xde1   :  { %v13057_v44 = vrot.slane %v13042_v15, 6 }
 0xde2   :  { %v13041_v12 = vmax.f32 %v13034_v46, 0.0  ;;  %v17903_v8 = vpop.f32.mrb[20].mxu1  ;;  %v13054_v23 = vrot.slane %v13040_v49, 6 }
 0xde3   :  { %v13024_v37 = vmul.f32 %v17903_v8, %v14954_v6  ;;  %v12990_v61 = vpop.f32.mrb[21].mxu1 }
 0xde4   :  { %v13055_v11 = vrot.slane %v13041_v12, 6  ;;  %v13022_v0 = vmul.f32 %v14954_v6, %v12990_v61  ;;  %v17904_v24 = vpop.f32.mrb[22].mxu1 }
 0xde5   :  { %v13038_v33 = vadd.f32 %v14955_v52, %v13024_v37  ;;  %v13025_v60 = vmul.f32 %v17904_v24, %v14954_v6  ;;  %v12993_v42 = vpop.f32.mrb[23].mxu1 }
 0xde6   :  { %v13056_v40 = vsel %vm653_vm1, %v13054_v23, %v13055_v11  ;;  %v13058_v58 = vsel %vm653_vm1, %v13055_v11, %v13057_v44  ;;  %v13036_v62 = vadd.f32 %v14955_v52, %v13022_v0  ;;  %v13023_v34 = vmul.f32 %v14954_v6, %v12993_v42  ;;  %v19525_v6 = vld [vmem:[%s24314_s10 + $0xe4] ss:$16 sps:$4 sm:$0xff]  }
 0xde7   :  { %v13069_v54 = vmax.f32 %v13040_v49, %v13056_v40  ;;  %v13070_v38 = vmax.f32 %v13041_v12, %v13058_v58  ;;  %v13045_v51 = vmax.f32 %v13038_v33, 0.0  ;;  %v13039_v21 = vadd.f32 %v14955_v52, %v13025_v60 }
 0xde8   :  { %v13043_v27 = vmax.f32 %v13036_v62, 0.0  ;;  %v13037_v14 = vadd.f32 %v14955_v52, %v13023_v34  ;;  %v19528_v52 = vld [vmem:[%s24314_s10 + $0xc] ss:$16 sps:$4 sm:$0xff]  }
 0xde9   :  { %v13046_v56 = vmax.f32 %v13039_v21, 0.0  ;;  %17906 = vmatpush3.msk.msra.mxu1 %vm6213_vm13, %v13069_v54  ;;  %v13062_v36 = vrot.slane %v13045_v51, 6  ;;  %v13224_v59 = vrot.slane %v13070_v38, 4 }
 0xdea   :  { %v13044_v9 = vmax.f32 %v13037_v14, 0.0  ;;  %17908 = vmatmul.mubr.msk.f32.vlgmr.msra.gmra.mrb[24].mxu1 %vm13073_vm3, %v22449_v41  ;;  %17910 = vmatprep.subr.mxu1 %v24553_v29  ;;  %v13059_v48 = vrot.slane %v13043_v27, 6 }
 0xdeb   :  { %v13063_v7 = vrot.slane %v13046_v56, 6  ;;  %17911 = vmatpush3.msk.msra.mxu1 %vm6213_vm13, %v13069_v54  ;;  %17912 = vmatprep.mubr.msk.f32.mxu1 %vm19612_vm2, %v24553_v29 }
 0xdec   :  { %v13060_v32 = vrot.slane %v13044_v9, 6  ;;  %17915 = vmatprep.subr.mxu1 %v24553_v29 }
 0xded   :  { %v13064_v25 = vsel %vm653_vm1, %v13062_v36, %v13063_v7 }
 0xdee   :  { %v13072_v10 = vmax.f32 %v13045_v51, %v13064_v25  ;;  %v13061_v13 = vsel %vm653_vm1, %v13059_v48, %v13060_v32  ;;  %17913 = vmatmul.mubr.msk.f32.vlgmr.msra.gmra.mrb[26].mxu1 %vm13073_vm3, %v22462_v4  ;;  %v19526_v32 = vld [vmem:[%s24314_s10 + $0x8] ss:$16 sps:$4 sm:$0xff]  }
 0xdef   :  { %v13071_v63 = vmax.f32 %v13043_v27, %v13061_v13  ;;  %17916 = vmatpush3.msk.msra.mxu1 %vm6213_vm13, %v13224_v59  ;;  %17917 = vmatprep.mubr.msk.f32.mxu1 %vm19612_vm2, %v24553_v29  ;;  %v19529_v13 = vld [vmem:[%s24314_s10 + $0x28] ss:$16 sps:$4 sm:$0xff]  }
 0xdf0   :  { %17920 = vmatprep.subr.mxu1 %v24553_v29 }
 0xdf1   :  { %v13370_v19 = vrot.slane %v13071_v63, 4  ;;  %v19534_v63 = vld [vmem:[%s24314_s10 + $0x4c] ss:$16 sps:$4 sm:$0xff]  }
 0xdf2   :  { %17918 = vmatmul.mubr.msk.f32.vlgmr.msra.gmra.mrb[28].mxu1 %vm13073_vm3, %v22449_v41 }
 0xdf3   :  { %17921 = vmatpush3.msk.msra.mxu1 %vm6213_vm13, %v13224_v59  ;;  %17922 = vmatprep.mubr.msk.f32.mxu1 %vm19612_vm2, %v24553_v29 }
 0xdf4   :  { %17925 = vmatprep.subr.mxu1 %v24553_v29 }
 0xdf6   :  { %17923 = vmatmul.mubr.msk.f32.vlgmr.msra.gmra.mrb[30].mxu1 %vm13073_vm3, %v22462_v4 }
 0xdf7   :  { %17926 = vmatpush3.msk.msra.mxu1 %vm6213_vm13, %v13370_v19  ;;  %17927 = vmatprep.mubr.msk.f32.mxu1 %vm19612_vm2, %v24553_v29 }
 0xdf8   :  { %17930 = vmatprep.subr.mxu1 %v24553_v29 }
 0xdfa   :  { %17928 = vmatmul.mubr.msk.f32.vlgmr.msra.gmra.mrb[32].mxu1 %vm13073_vm3, %v22449_v41 }
 0xdfb   :  { %17931 = vmatpush3.msk.msra.mxu1 %vm6213_vm13, %v13370_v19  ;;  %17932 = vmatprep.mubr.msk.f32.mxu1 %vm19612_vm2, %v24553_v29  ;;  %v19532_v19 = vld [vmem:[%s24314_s10 + $0x48] ss:$16 sps:$4 sm:$0xff]  }
 0xdfc   :  { %17935 = vmatprep.subr.mxu1 %v24553_v29 }
 0xdfe   :  { %17933 = vmatmul.mubr.msk.f32.vlgmr.msra.gmra.mrb[34].mxu1 %vm13073_vm3, %v22462_v4 }
 0xdff   :  { %17936 = vmatpush3.msk.msra.mxu1 %vm6213_vm13, %v13072_v10  ;;  %17937 = vmatprep.mubr.msk.f32.mxu1 %vm19612_vm2, %v24553_v29 }
 0xe00   :  { %17940 = vmatprep.subr.mxu1 %v24553_v29 }
 0xe02   :  { %17938 = vmatmul.mubr.msk.f32.vlgmr.msra.gmra.mrb[36].mxu1 %vm13073_vm3, %v22449_v41  ;;  %v19507_v41 = vld [vmem:[%s24314_s10 + $0x24] ss:$16 sps:$4 sm:$0xff]  }
 0xe03   :  { %17941 = vmatpush3.msk.msra.mxu1 %vm6213_vm13, %v13072_v10  ;;  %17942 = vmatprep.mubr.msk.f32.mxu1 %vm19612_vm2, %v24553_v29  ;;  %v19505_v29 = vld [vmem:[%s24314_s10 + $0x20] ss:$16 sps:$4 sm:$0xff]   ;;  %v19531_v10 = vld [vmem:[%s24314_s10 + $0x2c] ss:$16 sps:$4 sm:$0xff]  }
 0xe04   :  { %13897 = vmatprep.subr.bf16.mxu1 %v19504_v1  ;;  %v19535_v1 = vld [vmem:[%s24314_s10 + $0x68] ss:$16 sps:$4 sm:$0xff]  }
 0xe06   :  { %17943 = vmatmul.mubr.msk.f32.vlgmr.msra.gmra.mrb[38].mxu1 %vm13073_vm3, %v22462_v4  ;;  %v19510_v4 = vld [vmem:[%s24314_s10 + $0x44] ss:$16 sps:$4 sm:$0xff]  }
 0xe07   :  { %13898 = vmatpush1.bf16.msra.mxu1 %v19502_v39  ;;  %13929 = vmatprep.mubr.bf16.mxu1 %v19614_v2  ;;  %v19537_v39 = vld [vmem:[%s24314_s10 + $0x6c] ss:$16 sps:$4 sm:$0xff]  }
 0xe08   :  { %13899 = vmatprep.subr.bf16.mxu1 %v19507_v41  ;;  %v19540_v41 = vld [vmem:[%s24314_s10 + $0x8c] ss:$16 sps:$4 sm:$0xff]  }
 0xe0b   :  { %13900 = vmatpush1.bf16.msra.mxu1 %v19505_v29  ;;  %v19538_v29 = vld [vmem:[%s24314_s10 + $0x88] ss:$16 sps:$4 sm:$0xff]  }
 0xe0c   :  { %13901 = vmatprep.subr.bf16.mxu1 %v19510_v4  ;;  %v19543_v4 = vld [vmem:[%s24314_s10 + $0xac] ss:$16 sps:$4 sm:$0xff]  }
 0xe0f   :  { %13902 = vmatpush1.bf16.msra.mxu1 %v19508_v20  ;;  %v19541_v20 = vld [vmem:[%s24314_s10 + $0xa8] ss:$16 sps:$4 sm:$0xff]  }
 0xe10   :  { %13903 = vmatprep.subr.bf16.mxu1 %v19513_v31  ;;  %v19546_v31 = vld [vmem:[%s24314_s10 + $0xcc] ss:$16 sps:$4 sm:$0xff]  }
 0xe13   :  { %13904 = vmatpush1.bf16.msra.mxu1 %v19511_v43  ;;  %v19544_v43 = vld [vmem:[%s24314_s10 + $0xc8] ss:$16 sps:$4 sm:$0xff]  }
 0xe14   :  { %13905 = vmatprep.subr.bf16.mxu1 %v19516_v47  ;;  %v19547_v47 = vld [vmem:[%s24314_s10 + $0xe8] ss:$16 sps:$4 sm:$0xff]  }
 0xe17   :  { %13906 = vmatpush1.bf16.msra.mxu1 %v19514_v3  ;;  %v19549_v3 = vld [vmem:[%s24314_s10 + $0xec] ss:$16 sps:$4 sm:$0xff]  }
 0xe18   :  { %13907 = vmatprep.subr.bf16.mxu1 %v19519_v17  ;;  %v19550_v17 = vld [vmem:[%s24316_s12 + $0x40] sm:$0xff]  }
 0xe1b   :  { %13908 = vmatpush1.bf16.msra.mxu1 %v19517_v5  ;;  %v19551_v5 = vld [vmem:[%s24316_s12] sm:$0xff]  }
 0xe1c   :  { %13909 = vmatprep.subr.bf16.mxu1 %v19522_v26  ;;  %v19553_v26 = vld [vmem:[%s24316_s12 + $0x8] sm:$0xff]  }
 0xe1f   :  { %13910 = vmatpush1.bf16.msra.mxu1 %v19520_v22  ;;  %v19554_v22 = vld [vmem:[%s24316_s12 + $0x50] sm:$0xff]  }
 0xe20   :  { %13911 = vmatprep.subr.bf16.mxu1 %v19525_v6  ;;  %v19555_v6 = vld [vmem:[%s24316_s12 + $0x10] sm:$0xff]  }
 0xe23   :  { %13912 = vmatpush1.bf16.msra.mxu1 %v19523_v50  ;;  %v19556_v50 = vld [vmem:[%s24316_s12 + $0x58] sm:$0xff]  }
 0xe24   :  { %13938 = vmatprep.subr.bf16.mxu1 %v19528_v52  ;;  %v19557_v52 = vld [vmem:[%s24316_s12 + $0x18] sm:$0xff]  }
 0xebd   :  { %v13145_v35 = vpop.f32.mrb[24].mxu1 }
 0xebe   :  { %v17909_v18 = vpop.f32.mrb[25].mxu1 }
 0xebf   :  { %v19559_v18 = vld [vmem:[%s24316_s12 + $0x20] sm:$0xff]  }
 0xec1   :  { %v13217_v55 = vpop.f32.mrb[26].mxu1 }
 0xec2   :  { %v13221_v53 = vmax.f32 %v13145_v35, %v13217_v55  ;;  %v17914_v45 = vpop.f32.mrb[27].mxu1  ;;  %v19558_v35 = vld [vmem:[%s24316_s12 + $0x60] sm:$0xff]   ;;  %v19560_v55 = vld [vmem:[%s24316_s12 + $0x68] sm:$0xff]  }
 0xec3   :  { %v19562_v45 = vld [vmem:[%s24316_s12 + $0x70] sm:$0xff]  }
 0xec4   :  { %13222 = vst [vmem:[#allocation4] sm:$0x3] %v13221_v53  ;;  %v19561_v53 = vld [vmem:[%s24316_s12 + $0x28] sm:$0xff]  }
 0xec5   :  { %v13293_v16 = vpop.f32.mrb[28].mxu1 }
 0xec6   :  { %v17919_v28 = vpop.f32.mrb[29].mxu1 }
 0xec7   :  { %v19564_v28 = vld [vmem:[%s24316_s12 + $0x78] sm:$0xff]  }
 0xec9   :  { %v13363_v30 = vpop.f32.mrb[30].mxu1 }
 0xeca   :  { %v13367_v15 = vmax.f32 %v13293_v16, %v13363_v30  ;;  %v17924_v49 = vpop.f32.mrb[31].mxu1  ;;  %v19563_v16 = vld [vmem:[%s24316_s12 + $0x30] sm:$0xff]   ;;  %v19565_v30 = vld [vmem:[%s24316_s12 + $0x38] sm:$0xff]  }
 0xecb   :  { %v13719_v49 = vsub.s32 0, %v22426_v57 }
 0xecc   :  { %13368 = vst [vmem:[#allocation4 + $0x2] sm:$0x3] %v13367_v15  ;;  %v19566_v15 = vld [vmem:[%s24316_s12 + $0xc0] sm:$0xff]  }
 0xecd   :  { %v13439_v46 = vpop.f32.mrb[32].mxu1 }
 0xece   :  { %v17929_v12 = vpop.f32.mrb[33].mxu1 }
 0xecf   :  { %v13723_v12 = vsub.s32 1, %v22426_v57 }
 0xed1   :  { %v13509_v8 = vpop.f32.mrb[34].mxu1 }
 0xed2   :  { %v13513_v37 = vmax.f32 %v13439_v46, %v13509_v8  ;;  %v17934_v61 = vpop.f32.mrb[35].mxu1  ;;  %v13715_v46 = vld [vmem:[%s24315_s11] sm:$0xf] }
 0xed3   :  { %v13720_v8 = vrot.slane %v13715_v46, %v13719_v49 }
 0xed4   :  { %13514 = vst [vmem:[#allocation4 + $0x4] sm:$0x3] %v13513_v37  ;;  %v13724_v37 = vrot.slane %v13715_v46, %v13723_v12 }
 0xed5   :  { %v13584_v44 = vpop.f32.mrb[36].mxu1 }
 0xed6   :  { %v17939_v23 = vpop.f32.mrb[37].mxu1 }
 0xed9   :  { %v13654_v11 = vpop.f32.mrb[38].mxu1 }
 0xeda   :  { %v13658_v0 = vmax.f32 %v13584_v44, %v13654_v11  ;;  %v17944_v24 = vpop.f32.mrb[39].mxu1 }
 0xedc   :  { %13659 = vst [vmem:[#allocation4 + $0x6] sm:$0x3] %v13658_v0 }
 0xee3   :  { %v13660_v33 = vld [vmem:[#allocation4] sm:$0xff] }
 0xee4   :  { %v13661_v60 = vsel %vm6213_vm13, %v13660_v33, 0.0  ;;  %v13671_v42 = vrot.slane %v13660_v33, 4 }
 0xee5   :  { %v13662_v40 = vrot.slane %v13661_v60, 4 }
 0xee6   :  { %v13673_v58 = vsel %vm6213_vm13, %v13671_v42, 0.0 }
 0xee7   :  { %v13663_v62 = vadd.f32 %v13662_v40, %v13661_v60  ;;  %v13674_v34 = vrot.slane %v13673_v58, 4  ;;  %v19567_v40 = vld [vmem:[%s24316_s12 + $0x80] sm:$0xff]  }
 0xee9   :  { %v13664_v54 = vrot.slane %v13663_v62, 2  ;;  %v13675_v38 = vadd.f32 %v13674_v34, %v13673_v58  ;;  %v19569_v34 = vld [vmem:[%s24316_s12 + $0x88] sm:$0xff]  }
 0xeeb   :  { %v13665_v51 = vadd.f32 %v13664_v54, %v13663_v62  ;;  %v13676_v21 = vrot.slane %v13675_v38, 2  ;;  %v19568_v62 = vld [vmem:[%s24316_s12 + $0xc8] sm:$0xff]   ;;  %v19570_v54 = vld [vmem:[%s24316_s12 + $0xd0] sm:$0xff]  }
 0xeed   :  { %v13666_v27 = vrot.slane %v13665_v51, 1  ;;  %v13677_v14 = vadd.f32 %v13676_v21, %v13675_v38  ;;  %v19571_v38 = vld [vmem:[%s24316_s12 + $0x90] sm:$0xff]   ;;  %v19573_v21 = vld [vmem:[%s24316_s12 + $0x98] sm:$0xff]  }
 0xeef   :  { %v13667_v56 = vadd.f32 %v13666_v27, %v13665_v51  ;;  %v13678_v9 = vrot.slane %v13677_v14, 1  ;;  %v19572_v51 = vld [vmem:[%s24316_s12 + $0xd8] sm:$0xff]   ;;  %v19574_v27 = vld [vmem:[%s24316_s12 + $0xe0] sm:$0xff]  }
 0xef1   :  { %v13679_v36 = vadd.f32 %v13678_v9, %v13677_v14  ;;  %v13669_v7 = vmul.f32 0.25, %v13667_v56  ;;  %v19575_v14 = vld [vmem:[%s24316_s12 + $0xa0] sm:$0xff]   ;;  %v19576_v56 = vld [vmem:[%s24316_s12 + $0xe8] sm:$0xff]   ;;  %v13727_v9 = vsub.s32 2, %v22426_v57 }
 0xef3   :  { %v13680_v48 = vmul.f32 0.25, %v13679_v36  ;;  %v19577_v36 = vld [vmem:[%s24316_s12 + $0xa8] sm:$0xff]  }
 0xef5   :  { %v13681_v59 = vsel %vm652_vm0, %v13669_v7, %v13680_v48  ;;  %v13731_v7 = vsub.s32 3, %v22426_v57  ;;  %v19578_v48 = vld [vmem:[%s24316_s12 + $0xf0] sm:$0xff]   ;;  %vm14330_vm0 = vcmask 74752  }
 0xef6   :  { %v13682_v25 = vpack.c.bf16 %v13681_v59, %v13681_v59 }
 0xef7   :  { %v13732_v59 = vrot.slane %v13715_v46, %v13731_v7 }
 0xef8   :  { %13930 = vmatmul.mubr.bf16.vlgmr.msra.gmra.mrb[40].mxu1 %v13682_v25 }
 0xef9   :  { %13939 = vmatpush1.bf16.msra.mxu1 %v19526_v32  ;;  %13970 = vmatprep.mubr.bf16.mxu1 %v19614_v2  ;;  %v19552_v2 = vld [vmem:[%s24316_s12 + $0x48] sm:$0xff]   ;;  %v13728_v32 = vrot.slane %v13715_v46, %v13727_v9 }
 0xefa   :  { %13940 = vmatprep.subr.bf16.mxu1 %v19531_v10  ;;  %v19580_v10 = vld [vmem:[%s24316_s12 + $0xf8] sm:$0xff]  }
 0xefd   :  { %13941 = vmatpush1.bf16.msra.mxu1 %v19529_v13 }
 0xefe   :  { %13942 = vmatprep.subr.bf16.mxu1 %v19534_v63 }
 0xf01   :  { %13943 = vmatpush1.bf16.msra.mxu1 %v19532_v19 }
 0xf02   :  { %13944 = vmatprep.subr.bf16.mxu1 %v19537_v39 }
 0xf05   :  { %13945 = vmatpush1.bf16.msra.mxu1 %v19535_v1  ;;  %v19581_v1 = vld [vmem:[%s24316_s12 + $0xb8] sm:$0xff]  }
 0xf06   :  { %13946 = vmatprep.subr.bf16.mxu1 %v19540_v41 }
 0xf09   :  { %13947 = vmatpush1.bf16.msra.mxu1 %v19538_v29 }
 0xf0a   :  { %13948 = vmatprep.subr.bf16.mxu1 %v19543_v4 }
 0xf0d   :  { %13949 = vmatpush1.bf16.msra.mxu1 %v19541_v20 }
 0xf0e   :  { %13950 = vmatprep.subr.bf16.mxu1 %v19546_v31 }
 0xf11   :  { %13951 = vmatpush1.bf16.msra.mxu1 %v19544_v43 }
 0xf12   :  { %13952 = vmatprep.subr.bf16.mxu1 %v19549_v3 }
 0xf15   :  { %13953 = vmatpush1.bf16.msra.mxu1 %v19547_v47 }
 0xf16   :  { %15739 = vmatprep.subr.bf16.mxu1 %v19550_v17 }
 0xf18   :  { %13971 = vmatmul.mubr.bf16.vlgmr.msra.gmra.mrb[44].mxu1 %v13682_v25  ;;  %v19579_v25 = vld [vmem:[%s24316_s12 + $0xb0] sm:$0xff]   ;;  %s19615_s12 = smov [#allocation5]  }
 0xf19   :  { %15740 = vmatpush3.bf16.msra.mxu1 %v19551_v5  ;;  %s14338_s2 = sshll.u32 %s19615_s12, 4  ;;  %s14339_s2 = int_to_ptr.vmem [resolvable:$true] %s14338_s2 }
 0xf1a   :  { %15741 = vmatprep.subr.bf16.mxu1 %v19552_v2  ;;  %v15004_v2 = vld [vmem:[%s24317_s13] ss:$0 sm:$0xff]  ;;  %s19586_s3 = scalar_lea.vmem %s14339_s2, 32  ;;  %p19591_p1 = scmp.lt.s32.totalorder %s14339_s2, %s14339_s2 }
 0xf1b   :  { %p19587_p0 = scmp.ne.s32.totalorder %s14339_s2, %s19586_s3  ;;  %p19592_p2 = scmp.lt.s32.totalorder %s19586_s3, %s19586_s3 }
 0xf1d   :  { %15742 = vmatpush3.bf16.msra.mxu1 %v19553_v26  ;;  %p19593_p3 = por %p19592_p2, %p19591_p1 }
 0xf1e   :  { %15743 = vmatprep.subr.bf16.mxu1 %v19554_v22 }
 0xf1f   :  { %p19594_p4 = pnand %p19593_p3, %p19587_p0 }
 0xf21   :  { %15744 = vmatpush3.bf16.msra.mxu1 %v19555_v6 }
 0xf22   :  { %15745 = vmatprep.subr.bf16.mxu1 %v19556_v50 }
 0xf25   :  { %15746 = vmatpush3.bf16.msra.mxu1 %v19557_v52 }
 0xf26   :  { %15747 = vmatprep.subr.bf16.mxu1 %v19558_v35 }
 0xf29   :  { %15748 = vmatpush3.bf16.msra.mxu1 %v19559_v18 }
 0xf2a   :  { %15749 = vmatprep.subr.bf16.mxu1 %v19560_v55 }
 0xf2d   :  { %15750 = vmatpush3.bf16.msra.mxu1 %v19561_v53 }
 0xf2e   :  { %15751 = vmatprep.subr.bf16.mxu1 %v19562_v45 }
 0xf31   :  { %15752 = vmatpush3.bf16.msra.mxu1 %v19563_v16 }
 0xf32   :  { %15753 = vmatprep.subr.bf16.mxu1 %v19564_v28 }
 0xf35   :  { %15754 = vmatpush3.bf16.msra.mxu1 %v19565_v30 }
 0xf36   :  { %15761 = vmatprep.subr.bf16.mxu1 %v19566_v15 }
 0xfcb   :  { %v13931_v61 = vpop.f32.mrb[40].mxu1 }
 0xfcc   :  { %v13932_v44 = vadd.f32 %v13931_v61, %v13720_v8  ;;  %v13933_v23 = vpop.f32.mrb[41].mxu1 }
 0xfcd   :  { %v13934_v11 = vadd.f32 %v13933_v23, %v13724_v37  ;;  %v13935_v0 = vpop.f32.mrb[42].mxu1 }
 0xfce   :  { %v13979_v24 = vmax.f32 %v13932_v44, 0.0  ;;  %v13936_v33 = vpop.f32.mrb[43].mxu1 }
 0xfcf   :  { %v13980_v60 = vmax.f32 %v13934_v11, 0.0 }
 0xfd0   :  { %v13983_v58 = vpack.c.bf16 %v13979_v24, %v13979_v24 }
 0xfd1   :  { %v13984_v42 = vpack.c.bf16 %v13980_v60, %v13980_v60 }
 0xfd3   :  { %14282 = vmatprep.mubr.bf16.mxu1 %v13984_v42 }
 0xfd4   :  { %14283 = vmatmul.mubr.bf16.vlgmr.msra.gmra.mrb[48].mxu1 %v13983_v58 }
 0xfd5   :  { %15762 = vmatpush3.bf16.msra.mxu1 %v19567_v40 }
 0xfd6   :  { %15763 = vmatprep.subr.bf16.mxu1 %v19568_v62 }
 0xfd9   :  { %15764 = vmatpush3.bf16.msra.mxu1 %v19569_v34 }
 0xfda   :  { %15765 = vmatprep.subr.bf16.mxu1 %v19570_v54 }
 0xfdd   :  { %15766 = vmatpush3.bf16.msra.mxu1 %v19571_v38 }
 0xfde   :  { %15767 = vmatprep.subr.bf16.mxu1 %v19572_v51 }
 0xfe1   :  { %15768 = vmatpush3.bf16.msra.mxu1 %v19573_v21 }
 0xfe2   :  { %15769 = vmatprep.subr.bf16.mxu1 %v19574_v27 }
 0xfe5   :  { %15770 = vmatpush3.bf16.msra.mxu1 %v19575_v14 }
 0xfe6   :  { %15771 = vmatprep.subr.bf16.mxu1 %v19576_v56 }
 0xfe9   :  { %15772 = vmatpush3.bf16.msra.mxu1 %v19577_v36 }
 0xfea   :  { %15773 = vmatprep.subr.bf16.mxu1 %v19578_v48 }
 0xfeb   :  { %v13972_v13 = vpop.f32.mrb[44].mxu1 }
 0xfec   :  { %v13973_v63 = vadd.f32 %v13972_v13, %v13728_v32  ;;  %v13974_v57 = vpop.f32.mrb[45].mxu1 }
 0xfed   :  { %v13975_v19 = vadd.f32 %v13974_v57, %v13732_v59  ;;  %15774 = vmatpush3.bf16.msra.mxu1 %v19579_v25  ;;  %v13976_v39 = vpop.f32.mrb[46].mxu1 }
 0xfee   :  { %v13981_v41 = vmax.f32 %v13973_v63, 0.0  ;;  %v13977_v29 = vpop.f32.mrb[47].mxu1  ;;  %15775 = vmatprep.subr.bf16.mxu1 %v19580_v10 }
 0xfef   :  { %v13982_v4 = vmax.f32 %v13975_v19, 0.0 }
 0xff0   :  { %v13985_v31 = vpack.c.bf16 %v13981_v41, %v13981_v41 }
 0xff1   :  { %v13986_v20 = vpack.c.bf16 %v13982_v4, %v13982_v4  ;;  %15776 = vmatpush3.bf16.msra.mxu1 %v19581_v1 }
 0xff3   :  { %14322 = vmatprep.mubr.bf16.mxu1 %v13986_v20 }
 0xff4   :  { %14323 = vmatmul.mubr.bf16.vlgmr.msra.gmra.mrb[52].mxu1 %v13985_v31 }
0x10a7   :  { %v15755_v43 = vpop.f32.mrb[48].mxu1 }
0x10a8   :  { %v15756_v3 = vpop.f32.mrb[49].mxu1 }
0x10a9   :  { %v15757_v47 = vadd.f32 %v15756_v3, %v15755_v43  ;;  %v15758_v17 = vpop.f32.mrb[50].mxu1 }
0x10aa   :  { %v15759_v5 = vpop.f32.mrb[51].mxu1 }
0x10ab   :  { %v14285_v6 = vadd.f32 %v15757_v47, %v15004_v2 }
0x10c7   :  { %v15777_v26 = vpop.f32.mrb[52].mxu1 }
0x10c8   :  { %v15778_v22 = vpop.f32.mrb[53].mxu1 }
0x10c9   :  { %v15779_v50 = vadd.f32 %v15778_v22, %v15777_v26  ;;  %v15780_v52 = vpop.f32.mrb[54].mxu1 }
0x10ca   :  { %v15781_v35 = vpop.f32.mrb[55].mxu1 }
0x10cb   :  { %v14325_v18 = vadd.f32 %v15779_v50, %v14285_v6 }
0x10cd   :  { %14331 = vst.msk [vmem:[#allocation5] sm:$0x3] %vm14330_vm0, %v14325_v18 }
0x10ce   :  { %19597 = shalt.err (!%p19594_p4)
}
0x10cf   :  { %s19598_s8 = scalar_lea.hbm %s24318_s14, 32 }
0x10d0   :  { %p19599_p5 = scmp.ne.s32.totalorder %s24318_s14, %s19598_s8  ;;  %p19602_p6 = scmp.lt.u32.totalorder %s19598_s8, %s24318_s14 }
0x10d2   :  { %p19604_p7 = pnand %p19602_p6, %p19599_p5 }
0x10d4   :  { %19607 = shalt.err (!%p19604_p7)
}
0x10d5   :  { %14341 = dma.vmem_to_hbm [thread:$0]  %s14339_s2, 32, %s24318_s14, [#allocation6]  }
0x10d6   :  { %19608 = dma.done.wait [#allocation6], 32  }
0x10d7   :  { %19609 = vsyncadd [#allocation6], 4294967264 }
0x10d8   :  { %14345 = vsyncpa [#allocation6], 1 }

</bundles_post_ra>
